<compile_context>
chip_gen: v7x
topology: tpu7x:2x2x1
jax: 0.10.0
libtpu: 0.0.40
codegen_flags: <defaults>
</compile_context>

<pallas_src>
import functools
import math

import numpy as np
import jax
import jax.numpy as jnp
from jax.experimental import pallas as pl
from jax.experimental.pallas import tpu as pltpu


_VMEM_BUDGET_BYTES = 24 * 1024 * 1024   # stay safely under the 32 MiB default scoped VMEM


def _block_vmem_bytes(bt, H, tH, W, C):
    in_blk = bt * H * W * 4
    out_blk = bt * tH * W * C * 4
    consts = (tH * H + W * W + 3 * C) * 4
    # double-buffered in/out/const blocks + ~3 full-size f32 intermediates.
    return 2 * (in_blk + out_blk + consts) + 3 * out_blk


def _pick_blocks(B, H, W, C):
    """Largest (batch block, H tile) whose per-step working set fits the VMEM budget."""
    h_tiles = sorted({H} | {d for d in range(8, H, 8) if H % d == 0}, reverse=True)
    for bt in range(B, 0, -1):
        if B % bt:
            continue
        for tH in h_tiles:
            if _block_vmem_bytes(bt, H, tH, W, C) <= _VMEM_BUDGET_BYTES:
                return bt, tH
    # TODO(synk): for feature maps so large that a single (1, 8, W, C) block exceeds the
    # budget, also tile W and/or carry the cumsum across tiles; not needed at DETR scale.
    return 1, h_tiles[-1]


def _pos_embed_kernel(nm_ref, tril_ref, triu_ref, coef_ref, out_ref, *, normalize, scale):
    # nm_ref:   (bt, H, W)  f32  not_mask (1.0 valid, 0.0 padded), full spatial extent
    # tril_ref: (tH, H)     f32  rows of the lower-triangular ones matrix for this H tile
    # triu_ref: (W, W)      f32  upper-triangular ones matrix
    # coef_ref: (3, C)      f32  rows: wy (y-half 1/dim_t, else 0), wx, phase (0 / pi/2)
    # out_ref:  (bt, tH, W, C) f32
    bt, H, W = nm_ref.shape
    tH = out_ref.shape[1]
    C = out_ref.shape[3]

    nm = nm_ref[...]                                             # (bt, H, W)

    # y-cumsum for this tile's rows: MXU matmul against the triangular slice (exact: 0/1
    # operands, f32 accumulation).  Keeps the scan off the XLU.
    tril_b = jnp.broadcast_to(tril_ref[...][None], (bt, tH, H))
    y_embed = jnp.einsum('bij,bjw->biw', tril_b, nm,
                         preferred_element_type=jnp.float32)     # (bt, tH, W)

    # x-cumsum only needs this tile's rows of the mask.
    h0 = pl.multiple_of(pl.program_id(1) * tH, tH)
    nm_tile = nm_ref[:, pl.ds(h0, tH), :]                        # (bt, tH, W)
    triu_b = jnp.broadcast_to(triu_ref[...][None], (bt, W, W))
    x_embed = jnp.einsum('bhj,bjw->bhw', nm_tile, triu_b,
                         preferred_element_type=jnp.float32)     # (bt, tH, W)

    if normalize:
        eps = 1e-6
        # Denominators: last row / last column of the full cumsums == column/row totals.
        y_tot = jnp.sum(nm, axis=1, keepdims=True)               # (bt, 1, W)
        x_tot = jnp.sum(nm_tile, axis=2, keepdims=True)          # (bt, tH, 1)
        # Small exact divides (per row/column), then broadcast multiplies over the tile.
        y_embed = (y_embed - 0.5) * (scale / (y_tot + eps))
        x_embed = (x_embed - 0.5) * (scale / (x_tot + eps))

    # arg[..., c] = y*wy[c] + x*wx[c] + phase[c];  sin(arg) yields the interleaved
    # sin/cos of the PyTorch module because cos(t) == sin(t + pi/2) and dim_t[2j]==dim_t[2j+1].
    wy = coef_ref[0:1, :].reshape(1, 1, 1, C)
    wx = coef_ref[1:2, :].reshape(1, 1, 1, C)
    ph = coef_ref[2:3, :].reshape(1, 1, 1, C)
    arg = y_embed[..., None] * wy + x_embed[..., None] * wx + ph  # (bt, tH, W, C)
    out_ref[...] = jnp.sin(arg)


def position_embedding_sine(mask, *, num_pos_feats=64, temperature=10000,
                            normalize=False, scale=None, channels_last=False):
    """mask: (B, H, W) bool, True = padded.  Returns (B, 2*num_pos_feats, H, W) f32
    (or (B, H, W, 2*num_pos_feats) if channels_last=True)."""
    if scale is not None and normalize is False:
        raise ValueError('normalize should be True if scale is passed')
    if scale is None:
        scale = 2 * math.pi

    B, H, W = mask.shape
    F = num_pos_feats
    C = 2 * F
    not_mask = (~mask).astype(jnp.float32)   # glue: bool -> float32

    # Trace-time constants (numpy): triangular ones matrices for the cumsum matmuls and
    # per-channel reciprocal frequencies / phases (replaces in-kernel iota + pow + divides).
    tril = np.tril(np.ones((H, H), np.float32))
    triu = np.triu(np.ones((W, W), np.float32))
    i = np.arange(F, dtype=np.float64)
    dim_t = float(temperature) ** (2.0 * np.floor(i / 2.0) / float(F))
    inv_dim_t = (1.0 / dim_t).astype(np.float32)
    phase_half = np.where(np.arange(F) % 2 == 1, np.pi / 2.0, 0.0).astype(np.float32)
    zeros = np.zeros((F,), np.float32)
    coef = np.stack([np.concatenate([inv_dim_t, zeros]),        # wy (y half)
                     np.concatenate([zeros, inv_dim_t]),        # wx (x half)
                     np.concatenate([phase_half, phase_half]),  # phase
                     ]).astype(np.float32)                      # (3, C)

    bt, tH = _pick_blocks(B, H, W, C)
    est = _block_vmem_bytes(bt, H, tH, W, C)

    kernel = functools.partial(_pos_embed_kernel, normalize=normalize, scale=float(scale))

    pos_nhwc = pl.pallas_call(
        kernel,
        out_shape=jax.ShapeDtypeStruct((B, H, W, C), jnp.float32),
        grid_spec=pltpu.PrefetchScalarGridSpec(
            num_scalar_prefetch=0,
            grid=(B // bt, H // tH),
            in_specs=[
                pl.BlockSpec((bt, H, W), lambda b, h: (b, 0, 0)),
                pl.BlockSpec((tH, H), lambda b, h: (h, 0)),
                pl.BlockSpec((W, W), lambda b, h: (0, 0)),
                pl.BlockSpec((3, C), lambda b, h: (0, 0)),
            ],
            out_specs=pl.BlockSpec((bt, tH, W, C), lambda b, h: (b, h, 0, 0)),
        ),
        compiler_params=pltpu.CompilerParams(
            dimension_semantics=("parallel", "parallel"),
            vmem_limit_bytes=int(min(64 * 1024 * 1024, max(32 * 1024 * 1024, 2 * est))),
        ),
    )(not_mask, jnp.asarray(tril), jnp.asarray(triu), jnp.asarray(coef))

    if channels_last:
        return pos_nhwc                       # lane-dense layout, no relayout
    return jnp.transpose(pos_nhwc, (0, 3, 1, 2))   # match torch .permute(0, 3, 1, 2)


def _reference(mask, *, num_pos_feats, temperature, normalize, scale):
    """Pure-JAX reference mirroring the PyTorch forward."""
    not_mask = (~mask).astype(jnp.float32)
    y_embed = jnp.cumsum(not_mask, axis=1)
    x_embed = jnp.cumsum(not_mask, axis=2)
    if normalize:
        eps = 1e-6
        y_embed = (y_embed - 0.5) / (y_embed[:, -1:, :] + eps) * scale
        x_embed = (x_embed - 0.5) / (x_embed[:, :, -1:] + eps) * scale
    dim_t = jnp.arange(num_pos_feats, dtype=jnp.float32)
    dim_t = temperature ** (2 * jnp.floor(dim_t / 2) / num_pos_feats)
    pos_x = x_embed[:, :, :, None] / dim_t
    pos_y = y_embed[:, :, :, None] / dim_t
    pos_x = jnp.stack((jnp.sin(pos_x[:, :, :, 0::2]),
                       jnp.cos(pos_x[:, :, :, 1::2])), axis=4).reshape(
                           pos_x.shape[0], pos_x.shape[1], pos_x.shape[2], -1)
    pos_y = jnp.stack((jnp.sin(pos_y[:, :, :, 0::2]),
                       jnp.cos(pos_y[:, :, :, 1::2])), axis=4).reshape(
                           pos_y.shape[0], pos_y.shape[1], pos_y.shape[2], -1)
    pos = jnp.concatenate((pos_y, pos_x), axis=3)
    return jnp.transpose(pos, (0, 3, 1, 2))


if __name__ == "__main__":
    key = jax.random.PRNGKey(0)
    B, Cin, H, W = 2, 4, 16, 16
    num_pos_feats = 64
    temperature = 10000
    scale = 2 * math.pi

    kx, kh, kw = jax.random.split(key, 3)
    # x is only consulted for its device in the PyTorch module; build it anyway.
    x = jax.random.normal(kx, (B, Cin, H, W), dtype=jnp.float32)

    # Deterministic DETR-style padding mask (True = padded).
    valid_h = jax.random.randint(kh, (B,), minval=H // 2, maxval=H + 1)
    valid_w = jax.random.randint(kw, (B,), minval=W // 2, maxval=W + 1)
    hh = jnp.arange(H)[None, :, None]
    ww = jnp.arange(W)[None, None, :]
    mask = (hh >= valid_h[:, None, None]) | (ww >= valid_w[:, None, None])  # (B,H,W) bool

    # --- Test 1: padded mask, normalize=True; compare on the valid (unpadded) region. ---
    # In fully-padded rows/columns the normalized coordinates reach ~0.5/1e-6 and float32
    # sin of such huge arguments is chaotic; both PyTorch and the kernel produce the same
    # kind of never-consumed garbage there, so we exclude it from the bitwise comparison.
    pos = position_embedding_sine(mask, num_pos_feats=num_pos_feats,
                                  temperature=temperature, normalize=True, scale=scale)
    pos = jax.block_until_ready(pos)
    ref = _reference(mask, num_pos_feats=num_pos_feats, temperature=temperature,
                     normalize=True, scale=scale)
    assert pos.shape == (B, 2 * num_pos_feats, H, W), pos.shape
    assert pos.dtype == jnp.float32
    valid = (~mask)[:, None, :, :]                      # (B,1,H,W)
    err = jnp.where(valid, jnp.abs(pos - ref), 0.0)
    assert float(jnp.max(err)) < 1e-4, float(jnp.max(err))

    # --- Test 2: no padding, normalize=True; full-array comparison. ---
    mask0 = jnp.zeros((B, H, W), dtype=bool)
    pos0 = jax.block_until_ready(
        position_embedding_sine(mask0, num_pos_feats=num_pos_feats,
                                temperature=temperature, normalize=True, scale=scale))
    ref0 = _reference(mask0, num_pos_feats=num_pos_feats, temperature=temperature,
                      normalize=True, scale=scale)
    assert jnp.allclose(pos0, ref0, atol=1e-4, rtol=1e-4), \
        float(jnp.max(jnp.abs(pos0 - ref0)))

    # --- Test 3: no padding, normalize=False; full-array comparison. ---
    pos1 = jax.block_until_ready(
        position_embedding_sine(mask0, num_pos_feats=num_pos_feats,
                                temperature=temperature, normalize=False))
    ref1 = _reference(mask0, num_pos_feats=num_pos_feats, temperature=temperature,
                      normalize=False, scale=scale)
    assert jnp.allclose(pos1, ref1, atol=1e-4, rtol=1e-4), \
        float(jnp.max(jnp.abs(pos1 - ref1)))

    print("KERNEL_OK")
</pallas_src>

<mosaic_0001>
module attributes {stable_mosaic.version = 11 : i64} {
  func.func @_pos_embed_kernel(%arg0: i32, %arg1: i32, %arg2: memref<2x16x16xf32, #tpu.memory_space<vmem>>, %arg3: memref<16x16xf32, #tpu.memory_space<vmem>>, %arg4: memref<16x16xf32, #tpu.memory_space<vmem>>, %arg5: memref<3x128xf32, #tpu.memory_space<vmem>>, %arg6: memref<2x16x16x128xf32, #tpu.memory_space<vmem>>) attributes {dimension_semantics = [#tpu.dimension_semantics<parallel>, #tpu.dimension_semantics<parallel>], iteration_bounds = array<i64: 1, 1>, scalar_prefetch = 0 : i64, scratch_operands = 0 : i64, tpu.core_type = #tpu.core_type<tc>, window_params = [{transform_indices = @transform_0, window_bounds = array<i64: 2, 16, 16>}, {transform_indices = @transform_1, window_bounds = array<i64: 16, 16>}, {pipeline_mode = #tpu.pipeline_mode<synchronous>, transform_indices = @transform_2, window_bounds = array<i64: 16, 16>}, {pipeline_mode = #tpu.pipeline_mode<synchronous>, transform_indices = @transform_3, window_bounds = array<i64: 3, 128>}, {transform_indices = @transform_4, window_bounds = array<i64: 2, 16, 16, 128>}]} {
    %c0 = arith.constant 0 : index
    %c0_0 = arith.constant 0 : index
    %c0_1 = arith.constant 0 : index
    %0 = vector.load %arg2[%c0, %c0_0, %c0_1] : memref<2x16x16xf32, #tpu.memory_space<vmem>>, vector<2x16x16xf32>
    %c0_2 = arith.constant 0 : index
    %c0_3 = arith.constant 0 : index
    %1 = vector.load %arg3[%c0_2, %c0_3] : memref<16x16xf32, #tpu.memory_space<vmem>>, vector<16x16xf32>
    %2 = vector.shape_cast %1 : vector<16x16xf32> to vector<1x16x16xf32>
    %3 = vector.shape_cast %2 : vector<1x16x16xf32> to vector<1x16x16xf32>
    %4 = vector.broadcast %3 : vector<1x16x16xf32> to vector<2x16x16xf32>
    "tpu.trace_start"() <{level = 10 : i32, message = "bij,bjw->biw"}> : () -> ()
    %cst = arith.constant dense<0.000000e+00> : vector<2x16x16xf32>
    %5 = tpu.matmul %4, %0, %cst {dimension_numbers = #tpu.dot_dimension_numbers<[2], [1], [1], [2], [0, 0, 0, 1, 1, 2], [0], [0]>} : vector<2x16x16xf32>, vector<2x16x16xf32>, vector<2x16x16xf32> -> vector<2x16x16xf32>
    "tpu.trace_stop"() : () -> ()
    %c16_i32 = arith.constant 16 : i32
    %6 = arith.muli %arg1, %c16_i32 : i32
    %7 = tpu.assume_multiple %6, 16 : i32
    %c0_4 = arith.constant 0 : index
    %8 = arith.index_cast %7 : i32 to index
    %c0_5 = arith.constant 0 : index
    %9 = vector.load %arg2[%c0_4, %8, %c0_5] : memref<2x16x16xf32, #tpu.memory_space<vmem>>, vector<2x16x16xf32>
    %c0_6 = arith.constant 0 : index
    %c0_7 = arith.constant 0 : index
    %10 = vector.load %arg4[%c0_6, %c0_7] : memref<16x16xf32, #tpu.memory_space<vmem>>, vector<16x16xf32>
    %11 = vector.shape_cast %10 : vector<16x16xf32> to vector<1x16x16xf32>
    %12 = vector.shape_cast %11 : vector<1x16x16xf32> to vector<1x16x16xf32>
    %13 = vector.broadcast %12 : vector<1x16x16xf32> to vector<2x16x16xf32>
    "tpu.trace_start"() <{level = 10 : i32, message = "bhj,bjw->bhw"}> : () -> ()
    %cst_8 = arith.constant dense<0.000000e+00> : vector<2x16x16xf32>
    %14 = tpu.matmul %9, %13, %cst_8 {dimension_numbers = #tpu.dot_dimension_numbers<[2], [1], [1], [2], [0, 0, 0, 1, 1, 2], [0], [0]>} : vector<2x16x16xf32>, vector<2x16x16xf32>, vector<2x16x16xf32> -> vector<2x16x16xf32>
    "tpu.trace_stop"() : () -> ()
    %cst_9 = arith.constant dense<0.000000e+00> : vector<2x16xf32>
    %15 = vector.multi_reduction <add>, %0, %cst_9 [1] : vector<2x16x16xf32> to vector<2x16xf32>
    %16 = vector.shape_cast %15 : vector<2x16xf32> to vector<2x1x16xf32>
    %cst_10 = arith.constant dense<0.000000e+00> : vector<2x16xf32>
    %17 = vector.multi_reduction <add>, %9, %cst_10 [2] : vector<2x16x16xf32> to vector<2x16xf32>
    %18 = vector.shape_cast %17 : vector<2x16xf32> to vector<2x16x1xf32>
    %cst_11 = arith.constant 5.000000e-01 : f32
    %19 = vector.broadcast %cst_11 : f32 to vector<2x16x16xf32>
    %20 = arith.subf %5, %19 : vector<2x16x16xf32>
    %cst_12 = arith.constant 9.99999997E-7 : f32
    %21 = vector.broadcast %cst_12 : f32 to vector<2x1x16xf32>
    %22 = arith.addf %16, %21 : vector<2x1x16xf32>
    %cst_13 = arith.constant 6.28318548 : f32
    %23 = vector.broadcast %cst_13 : f32 to vector<2x1x16xf32>
    %24 = arith.divf %23, %22 : vector<2x1x16xf32>
    %25 = vector.broadcast %24 : vector<2x1x16xf32> to vector<2x16x16xf32>
    %26 = arith.mulf %20, %25 : vector<2x16x16xf32>
    %cst_14 = arith.constant 5.000000e-01 : f32
    %27 = vector.broadcast %cst_14 : f32 to vector<2x16x16xf32>
    %28 = arith.subf %14, %27 : vector<2x16x16xf32>
    %cst_15 = arith.constant 9.99999997E-7 : f32
    %29 = vector.broadcast %cst_15 : f32 to vector<2x16x1xf32>
    %30 = arith.addf %18, %29 : vector<2x16x1xf32>
    %cst_16 = arith.constant 6.28318548 : f32
    %31 = vector.broadcast %cst_16 : f32 to vector<2x16x1xf32>
    %32 = arith.divf %31, %30 : vector<2x16x1xf32>
    %33 = vector.broadcast %32 : vector<2x16x1xf32> to vector<2x16x16xf32>
    %34 = arith.mulf %28, %33 : vector<2x16x16xf32>
    %c0_17 = arith.constant 0 : index
    %c0_18 = arith.constant 0 : index
    %35 = vector.load %arg5[%c0_17, %c0_18] : memref<3x128xf32, #tpu.memory_space<vmem>>, vector<1x128xf32>
    %36 = vector.shape_cast %35 : vector<1x128xf32> to vector<1x1x1x128xf32>
    %c1 = arith.constant 1 : index
    %c0_19 = arith.constant 0 : index
    %37 = vector.load %arg5[%c1, %c0_19] : memref<3x128xf32, #tpu.memory_space<vmem>>, vector<1x128xf32>
    %38 = vector.shape_cast %37 : vector<1x128xf32> to vector<1x1x1x128xf32>
    %c2 = arith.constant 2 : index
    %c0_20 = arith.constant 0 : index
    %39 = vector.load %arg5[%c2, %c0_20] : memref<3x128xf32, #tpu.memory_space<vmem>>, vector<1x128xf32>
    %40 = vector.shape_cast %39 : vector<1x128xf32> to vector<1x1x1x128xf32>
    %41 = vector.shape_cast %26 : vector<2x16x16xf32> to vector<2x16x16x1xf32>
    %42 = vector.broadcast %41 : vector<2x16x16x1xf32> to vector<2x16x16x128xf32>
    %43 = vector.broadcast %36 : vector<1x1x1x128xf32> to vector<2x16x16x128xf32>
    %44 = arith.mulf %42, %43 : vector<2x16x16x128xf32>
    %45 = vector.shape_cast %34 : vector<2x16x16xf32> to vector<2x16x16x1xf32>
    %46 = vector.broadcast %45 : vector<2x16x16x1xf32> to vector<2x16x16x128xf32>
    %47 = vector.broadcast %38 : vector<1x1x1x128xf32> to vector<2x16x16x128xf32>
    %48 = arith.mulf %46, %47 : vector<2x16x16x128xf32>
    %49 = arith.addf %44, %48 : vector<2x16x16x128xf32>
    %50 = vector.broadcast %40 : vector<1x1x1x128xf32> to vector<2x16x16x128xf32>
    %51 = arith.addf %49, %50 : vector<2x16x16x128xf32>
    %52 = math.sin %51 : vector<2x16x16x128xf32>
    %c0_21 = arith.constant 0 : index
    %c0_22 = arith.constant 0 : index
    %c0_23 = arith.constant 0 : index
    %c0_24 = arith.constant 0 : index
    %53 = vector.load %arg6[%c0_21, %c0_22, %c0_23, %c0_24] : memref<2x16x16x128xf32, #tpu.memory_space<vmem>>, vector<2x16x16x128xf32>
    tpu.vector_store %arg6[%c0_21, %c0_22, %c0_23, %c0_24], %52 {strides = array<i32>} : memref<2x16x16x128xf32, #tpu.memory_space<vmem>>, vector<2x16x16x128xf32>,
    return
  }
  func.func @transform_0(%arg0: i32, %arg1: i32) -> (i32, i32, i32) {
    %c0_i32 = arith.constant 0 : i32
    %c0_i32_0 = arith.constant 0 : i32
    %c0_i32_1 = arith.constant 0 : i32
    return %arg0, %c0_i32, %c0_i32_0 : i32, i32, i32
  }
  func.func @transform_1(%arg0: i32, %arg1: i32) -> (i32, i32) {
    %c0_i32 = arith.constant 0 : i32
    %c0_i32_0 = arith.constant 0 : i32
    return %arg1, %c0_i32 : i32, i32
  }
  func.func @transform_2(%arg0: i32, %arg1: i32) -> (i32, i32) {
    %c0_i32 = arith.constant 0 : i32
    %c0_i32_0 = arith.constant 0 : i32
    %c0_i32_1 = arith.constant 0 : i32
    return %c0_i32, %c0_i32_0 : i32, i32
  }
  func.func @transform_3(%arg0: i32, %arg1: i32) -> (i32, i32) {
    %c0_i32 = arith.constant 0 : i32
    %c0_i32_0 = arith.constant 0 : i32
    %c0_i32_1 = arith.constant 0 : i32
    return %c0_i32, %c0_i32_0 : i32, i32
  }
  func.func @transform_4(%arg0: i32, %arg1: i32) -> (i32, i32, i32, i32) {
    %c0_i32 = arith.constant 0 : i32
    %c0_i32_0 = arith.constant 0 : i32
    %c0_i32_1 = arith.constant 0 : i32
    return %arg0, %arg1, %c0_i32, %c0_i32_0 : i32, i32, i32, i32
  }
}

</mosaic_0001>

<bundles_post_ra>
// kernel: tpu_custom_call.1
= control target key start
LH: loop header
LB: loop body
LE: loop exit
PB: predicated region body
PF: predicated region fallthrough
CT: control target
= control target key end

     0   :  { %9 = vsyncpa [#allocation3], 0  ;;  %s15200_s0 = inlined_call_operand.hbm [shape: f32[2,16,16], index: 0, kind: input, shape index: {}]   ;;  %s15201_s1 = inlined_call_operand.hbm [shape: f32[16,16], index: 1, kind: input, shape index: {}]   ;;  %s15202_s2 = inlined_call_operand.hbm [shape: f32[16,16], index: 2, kind: input, shape index: {}]   ;;  %s15203_s3 = inlined_call_operand.vmem [shape: f32[3,128], index: 3, kind: input, shape index: {}]   ;;  %s15204_s4 = inlined_call_operand.hbm [shape: f32[2,16,16,128], index: 4, kind: output, shape index: {}]  }
   0x1   :  { %10 = vsyncpa [#allocation6], 0 }
   0x2   :  { %11 = vsyncpa [#allocation4], 0  ;;  %s9167_s15 = smov [#allocation5]   ;;  %s9168_s17 = smov [#allocation2]  }
   0x3   :  { %s29_s16 = sshll.u32 %s9167_s15, 4  ;;  %s17_s18 = sshll.u32 %s9168_s17, 4  ;;  %s30_s16 = int_to_ptr.vmem [resolvable:$true] %s29_s16  ;;  %s9204_s18 = int_to_ptr.vmem [resolvable:$true] %s17_s18 }
   0x4   :  { %s9073_s21 = scalar_lea.hbm %s15201_s1, 256 }
   0x5   :  { %p9074_p0 = scmp.ne.s32.totalorder %s15201_s1, %s9073_s21  ;;  %p9077_p1 = scmp.lt.u32.totalorder %s9073_s21, %s15201_s1 }
   0x7   :  { %p9079_p2 = pnand %p9077_p1, %p9074_p0 }
   0x9   :  { %9082 = shalt.err (!%p9079_p2)
}
   0xa   :  { %s9083_s26 = scalar_lea.vmem %s30_s16, 256  ;;  %p9088_p4 = scmp.lt.s32.totalorder %s30_s16, %s30_s16 }
   0xb   :  { %p9084_p3 = scmp.ne.s32.totalorder %s30_s16, %s9083_s26  ;;  %p9089_p5 = scmp.lt.s32.totalorder %s9083_s26, %s9083_s26 }
   0xd   :  { %p9090_p6 = por %p9089_p5, %p9088_p4 }
   0xf   :  { %p9091_p7 = pnand %p9090_p6, %p9084_p3 }
  0x11   :  { %9094 = shalt.err (!%p9091_p7)
}
  0x12   :  { %s9169_s27 = smov 128   ;;  %s9170_s28 = smov 8  }
  0x13   :  { %35 = dma.hbm_to_vmem [thread:$0]  %s15201_s1, 256, %s30_s16, [#allocation6], %s9169_s27, %s9169_s27, %s9170_s28  }
  0x14   :  { %s9095_s7 = scalar_lea.hbm %s15200_s0, 512 }
  0x15   :  { %p9096_p8 = scmp.ne.s32.totalorder %s15200_s0, %s9095_s7  ;;  %p9099_p9 = scmp.lt.u32.totalorder %s9095_s7, %s15200_s0 }
  0x17   :  { %p9101_p10 = pnand %p9099_p9, %p9096_p8 }
  0x19   :  { %9104 = shalt.err (!%p9101_p10)
}
  0x1a   :  { %s9105_s12 = scalar_lea.vmem %s9204_s18, 512  ;;  %p9110_p12 = scmp.lt.s32.totalorder %s9204_s18, %s9204_s18 }
  0x1b   :  { %p9106_p11 = scmp.ne.s32.totalorder %s9204_s18, %s9105_s12  ;;  %p9111_p13 = scmp.lt.s32.totalorder %s9105_s12, %s9105_s12 }
  0x1d   :  { %p9112_p0 = por %p9111_p13, %p9110_p12 }
  0x1f   :  { %p9113_p1 = pnand %p9112_p0, %p9106_p11 }
  0x21   :  { %9116 = shalt.err (!%p9113_p1)
}
  0x22   :  { %23 = dma.hbm_to_vmem [thread:$0]  %s15200_s0, 512, %s9204_s18, [#allocation3], %s9169_s27, %s9169_s27, %s9170_s28  }
  0x23   :  { %s9171_s14 = smov [#allocation7]   ;;  %s9117_s19 = scalar_lea.hbm %s15202_s2, 256 }
  0x24   :  { %s41_s15 = sshll.u32 %s9171_s14, 4  ;;  %p9118_p2 = scmp.ne.s32.totalorder %s15202_s2, %s9117_s19  ;;  %s42_s15 = int_to_ptr.vmem [resolvable:$true] %s41_s15 }
  0x25   :  { %p9121_p3 = scmp.lt.u32.totalorder %s9117_s19, %s15202_s2 }
  0x27   :  { %p9123_p4 = pnand %p9121_p3, %p9118_p2 }
  0x29   :  { %9126 = shalt.err (!%p9123_p4)
}
  0x2a   :  { %s9127_s24 = scalar_lea.vmem %s42_s15, 256  ;;  %p9132_p6 = scmp.lt.s32.totalorder %s42_s15, %s42_s15 }
  0x2b   :  { %p9128_p5 = scmp.ne.s32.totalorder %s42_s15, %s9127_s24  ;;  %p9133_p7 = scmp.lt.s32.totalorder %s9127_s24, %s9127_s24 }
  0x2d   :  { %p9134_p8 = por %p9133_p7, %p9132_p6 }
  0x2f   :  { %p9135_p9 = pnand %p9134_p8, %p9128_p5 }
  0x31   :  { %9138 = shalt.err (!%p9135_p9)
}
  0x32   :  { %47 = dma.hbm_to_vmem [thread:$0]  %s15202_s2, 256, %s42_s15, [#allocation6], %s9169_s27, %s9169_s27, %s9170_s28  }
  0x33   :  { %9161 = dma.done.wait [#allocation3], 512  }
  0x34   :  { %9162 = vsyncadd [#allocation3], 4294966784 }
  0x35   :  { %9163 = dma.done.wait [#allocation6], 512  }
  0x36   :  { %9164 = vsyncadd [#allocation6], 4294966784  ;;  %vm65_vm0 = vcmask 130048   ;;  %v59_v0 = vld [vmem:[#allocation2] sm:$0xff]  ;;  %v60_v1 = vld [vmem:[#allocation2 + $0x8] sm:$0xff]  ;;  %v459_v38 = vlaneseq }
  0x37   :  { %v63_v2 = vld [vmem:[#allocation5] sm:$0xff]  ;;  %v8488_v3 = vpack.c.bf16 %v60_v1, %v59_v0  ;;  %v392_v4 = vsel %vm65_vm0, %v59_v0, 0.0  ;;  %v393_v5 = vsel %vm65_vm0, %v60_v1, 0.0  ;;  %v61_v6 = vld [vmem:[#allocation2 + $0x10] sm:$0xff]  ;;  %v62_v7 = vld [vmem:[#allocation2 + $0x18] sm:$0xff] }
  0x38   :  { %8464 = vmatprep.mubr.msk.f32.mxu0 %vm65_vm0, %v63_v2  ;;  %8471 = vmatprep.mubr.msk.f32.mxu1 %vm65_vm0, %v63_v2  ;;  %v394_v8 = vadd.f32 %v393_v5, %v392_v4  ;;  %v8492_v9 = vpack.c.bf16 %v62_v7, %v61_v6  ;;  %v401_v10 = vsel %vm65_vm0, %v61_v6, 0.0  ;;  %v402_v11 = vsel %vm65_vm0, %v62_v7, 0.0  ;;  %v228_v12 = vld [vmem:[#allocation7] sm:$0xff]  ;;  %v229_v13 = vld [vmem:[#allocation7 + $0x8] sm:$0xff]  ;;  %v64_v16 = vld [vmem:[#allocation5 + $0x8] sm:$0xff] }
  0x39   :  { %411 = vadd.xlane.f32.xlu0 %v392_v4  ;;  %8489 = vmatprep.subr.bf16.mxu0 %v8488_v3  ;;  %v403_v14 = vadd.f32 %v402_v11, %v401_v10  ;;  %v8496_v15 = vpack.c.bf16 %v229_v13, %v228_v12  ;;  %v460_v42 = vshrl.u32 %v459_v38, 7 }
  0x3a   :  { %417 = vadd.xlane.f32.xlu1 %v401_v10  ;;  %8491 = vmatpush3.bf16.msra.mxu0 %v8488_v3  ;;  %v395_v17 = vrot.slane %v394_v8, 4 }
  0x3b   :  { %8493 = vmatprep.subr.bf16.mxu1 %v8492_v9  ;;  %8497 = vmatprep.subr.bf16.mxu0 %v8496_v15  ;;  %v404_v18 = vrot.slane %v403_v14, 4  ;;  %v9268_v48 = vsub.s32 0, %v460_v42  ;;  %v9278_v61 = vsub.s32 1, %v460_v42  ;;  %v9280_v4 = vsub.s32 2, %v460_v42 }
  0x3c   :  { %8495 = vmatpush3.bf16.msra.mxu1 %v8492_v9  ;;  %v396_v19 = vadd.f32 %v395_v17, %v394_v8 }
  0x3d   :  { %8501 = vmatprep.subr.bf16.mxu1 %v8496_v15  ;;  %414 = vadd.xlane.f32.xlu0 %v393_v5  ;;  %v405_v20 = vadd.f32 %v404_v18, %v403_v14  ;;  %v9282_v5 = vsub.s32 3, %v460_v42  ;;  %v9298_v14 = vsub.s32 6, %v460_v42 }
  0x3e   :  { %8465 = vmatmul.mubr.msk.f32.vlgmr.msra.gmra.mrb[0].mxu0 %vm65_vm0, %v64_v16  ;;  %420 = vadd.xlane.f32.xlu1 %v402_v11  ;;  %v397_v21 = vrot.slane %v396_v19, 2 }
  0x3f   :  { %8472 = vmatmul.mubr.msk.f32.vlgmr.msra.gmra.mrb[0].mxu1 %vm65_vm0, %v64_v16  ;;  %8499 = vmatpush3.bf16.msra.mxu0 %v8496_v15  ;;  %v406_v22 = vrot.slane %v405_v20, 2 }
  0x40   :  { %8503 = vmatpush3.bf16.msra.mxu1 %v8496_v15  ;;  %8478 = vmatprep.mubr.msk.f32.mxu0 %vm65_vm0, %v59_v0  ;;  %v398_v23 = vadd.f32 %v397_v21, %v396_v19  ;;  %v9300_v15 = vsub.s32 7, %v460_v42 }
  0x41   :  { %8485 = vmatprep.mubr.msk.f32.mxu1 %vm65_vm0, %v61_v6  ;;  %v407_v24 = vadd.f32 %v406_v22, %v405_v20  ;;  %v9284_v6 = vsub.s32 4, %v460_v42 }
  0x42   :  { %8479 = vmatmul.mubr.msk.f32.vlgmr.msra.gmra.mrb[2].mxu0 %vm65_vm0, %v60_v1  ;;  %v399_v25 = vrot.slane %v398_v23, 1 }
  0x43   :  { %8486 = vmatmul.mubr.msk.f32.vlgmr.msra.gmra.mrb[2].mxu1 %vm65_vm0, %v62_v7  ;;  %v408_v26 = vrot.slane %v407_v24, 1  ;;  %v9286_v7 = vsub.s32 5, %v460_v42 }
  0x44   :  { %v400_v27 = vadd.f32 %v399_v25, %v398_v23 }
  0x45   :  { %v409_v28 = vadd.f32 %v408_v26, %v407_v24 }
  0x46   :  { %v426_v30 = vadd.f32 1e-06, %v400_v27 }
  0x47   :  { %v427_v31 = vadd.f32 1e-06, %v409_v28 }
  0x48   :  { %8772 = vrcp.f32 %v426_v30 }
  0x49   :  { %8774 = vrcp.f32 %v427_v31 }
  0x52   :  { %v8773_v40 = vpop.eup %8772 }
  0x53   :  { %v8775_v41 = vpop.eup %8774  ;;  %v429_v43 = vmul.f32 6.2831855, %v8773_v40 }
  0x54   :  { %v431_v45 = vmul.f32 6.2831855, %v8775_v41 }
  0xc6   :  { %v412_v29 = vpop.xlane.xlu0 %411 }
  0xc7   :  { %v418_v32 = vpop.xlane.xlu1 %417  ;;  %v440_v37 = vadd.f32 1e-06, %v412_v29 }
  0xc8   :  { %v442_v39 = vadd.f32 1e-06, %v418_v32 }
  0xca   :  { %v415_v33 = vpop.xlane.xlu0 %414 }
  0xcb   :  { %v421_v34 = vpop.xlane.xlu1 %420  ;;  %v441_v35 = vadd.f32 1e-06, %v415_v33 }
  0xcc   :  { %v443_v36 = vadd.f32 1e-06, %v421_v34 }
  0xcd   :  { %8776 = vrcp.f32 %v441_v35 }
  0xce   :  { %8778 = vrcp.f32 %v443_v36 }
  0xcf   :  { %8780 = vrcp.f32 %v440_v37 }
  0xd0   :  { %8782 = vrcp.f32 %v442_v39 }
  0xd7   :  { %v8777_v55 = vpop.eup %8776 }
  0xd8   :  { %v8779_v59 = vpop.eup %8778  ;;  %v447_v8 = vmul.f32 6.2831855, %v8777_v55 }
  0xd9   :  { %v8781_v0 = vpop.eup %8780  ;;  %v451_v9 = vmul.f32 6.2831855, %v8779_v59 }
  0xda   :  { %v8783_v3 = vpop.eup %8782  ;;  %v445_v17 = vmul.f32 6.2831855, %v8781_v0 }
  0xdb   :  { %v449_v16 = vmul.f32 6.2831855, %v8783_v3 }
 0x111   :  { %v8466_v44 = vpop.f32.mrb[0].mxu0 }
 0x112   :  { %v8178_v46 = vadd.f32 -0.5, %v8466_v44  ;;  %v138_v47 = vpop.f32.mrb[1].mxu0  ;;  %v8473_v49 = vpop.f32.mrb[0].mxu1 }
 0x113   :  { %v8177_v50 = vadd.f32 -0.5, %v138_v47  ;;  %v8180_v51 = vadd.f32 -0.5, %v8473_v49  ;;  %v213_v52 = vpop.f32.mrb[1].mxu1 }
 0x114   :  { %v9270_v53 = vmul.f32 %v8178_v46, %v429_v43  ;;  %v8179_v54 = vadd.f32 -0.5, %v213_v52 }
 0x115   :  { %v9272_v56 = vmul.f32 %v8177_v50, %v429_v43  ;;  %v9274_v57 = vmul.f32 %v8180_v51, %v431_v45  ;;  %v8480_v58 = vpop.f32.mrb[2].mxu0 }
 0x116   :  { %v550_v60 = vrot.slane %v9270_v53, %v9268_v48  ;;  %v8487_v62 = vpop.f32.mrb[2].mxu1  ;;  %v302_v63 = vpop.f32.mrb[3].mxu0  ;;  %v434_v1 = vmul.f32 %v8179_v54, %v431_v45  ;;  %v561_v10 = vrot.slane %v9270_v53, %v9278_v61  ;;  %v8182_v13 = vadd.f32 -0.5, %v8480_v58 }
 0x117   :  { %v383_v2 = vpop.f32.mrb[3].mxu1  ;;  %v9292_v11 = vrot.slane %v9272_v56, %v9268_v48  ;;  %v9296_v12 = vrot.slane %v9272_v56, %v9278_v61  ;;  %v572_v18 = vrot.slane %v9270_v53, %v9280_v4  ;;  %v583_v19 = vrot.slane %v9270_v53, %v9282_v5 }
 0x118   :  { %556 = vbcast.lane.b32.xlu1 %v550_v60, 264  ;;  %552 = vbcast.lane.b32.xlu0 %v550_v60, 256  ;;  %v9307_v20 = vrot.slane %v434_v1, %v9268_v48  ;;  %v8184_v21 = vadd.f32 -0.5, %v8487_v62  ;;  %v9310_v22 = vrot.slane %v434_v1, %v9278_v61  ;;  %v9313_v23 = vrot.slane %v434_v1, %v9280_v4 }
 0x119   :  { %v9316_v24 = vrot.slane %v434_v1, %v9282_v5  ;;  %v9319_v25 = vrot.slane %v434_v1, %v9284_v6  ;;  %v9322_v26 = vrot.slane %v434_v1, %v9286_v7  ;;  %v9325_v27 = vrot.slane %v434_v1, %v9298_v14 }
 0x11a   :  { %v453_v28 = vmul.f32 %v8182_v13, %v447_v8  ;;  %v9327_v29 = vmul.f32 %v8184_v21, %v451_v9  ;;  %v594_v30 = vrot.slane %v9270_v53, %v9284_v6  ;;  %v8183_v31 = vadd.f32 -0.5, %v383_v2 }
 0x11b   :  { %v9332_v32 = vrot.slane %v434_v1, %v9300_v15  ;;  %v8181_v33 = vadd.f32 -0.5, %v302_v63  ;;  %v737_v21 = vrot.slane %v9274_v57, %v9278_v61 }
 0x11c   :  { %567 = vbcast.lane.b32.xlu1 %v561_v10, 264  ;;  %563 = vbcast.lane.b32.xlu0 %v561_v10, 256  ;;  %v9335_v34 = vrot.slane %v453_v28, %v9268_v48  ;;  %v9338_v35 = vrot.slane %v453_v28, %v9278_v61  ;;  %v9341_v36 = vrot.slane %v453_v28, %v9280_v4 }
 0x11d   :  { %v454_v37 = vmul.f32 %v8183_v31, %v449_v16  ;;  %v452_v38 = vmul.f32 %v8181_v33, %v445_v17  ;;  %v9344_v39 = vrot.slane %v453_v28, %v9282_v5  ;;  %v9347_v40 = vrot.slane %v453_v28, %v9284_v6 }
 0x11e   :  { %v9350_v41 = vrot.slane %v453_v28, %v9286_v7  ;;  %v9353_v42 = vrot.slane %v453_v28, %v9298_v14  ;;  %v9356_v43 = vrot.slane %v453_v28, %v9300_v15  ;;  %v9360_v44 = vrot.slane %v9327_v29, %v9268_v48 }
 0x11f   :  { %v9363_v45 = vrot.slane %v452_v38, %v9268_v48  ;;  %v9366_v46 = vrot.slane %v452_v38, %v9278_v61  ;;  %v9369_v47 = vrot.slane %v452_v38, %v9280_v4  ;;  %v9372_v49 = vrot.slane %v452_v38, %v9282_v5 }
 0x120   :  { %578 = vbcast.lane.b32.xlu1 %v572_v18, 264  ;;  %574 = vbcast.lane.b32.xlu0 %v572_v18, 256  ;;  %v9375_v50 = vrot.slane %v452_v38, %v9284_v6  ;;  %v9378_v51 = vrot.slane %v452_v38, %v9286_v7  ;;  %v9381_v52 = vrot.slane %v452_v38, %v9298_v14 }
 0x121   :  { %v9384_v54 = vrot.slane %v452_v38, %v9300_v15  ;;  %v9387_v55 = vrot.slane %v454_v37, %v9268_v48  ;;  %v9390_v58 = vrot.slane %v454_v37, %v9278_v61  ;;  %v9393_v59 = vrot.slane %v454_v37, %v9280_v4 }
 0x122   :  { %v9396_v60 = vrot.slane %v454_v37, %v9282_v5  ;;  %v9399_v62 = vrot.slane %v454_v37, %v9284_v6  ;;  %v9402_v63 = vrot.slane %v454_v37, %v9286_v7  ;;  %v9405_v0 = vrot.slane %v454_v37, %v9298_v14 }
 0x123   :  { %v9408_v1 = vrot.slane %v454_v37, %v9300_v15  ;;  %v9412_v2 = vrot.slane %v9327_v29, %v9278_v61  ;;  %v9416_v3 = vrot.slane %v9327_v29, %v9280_v4  ;;  %v9420_v8 = vrot.slane %v9327_v29, %v9282_v5 }
 0x124   :  { %589 = vbcast.lane.b32.xlu1 %v583_v19, 264  ;;  %585 = vbcast.lane.b32.xlu0 %v583_v19, 256  ;;  %v9424_v9 = vrot.slane %v9327_v29, %v9284_v6  ;;  %v9428_v10 = vrot.slane %v9327_v29, %v9286_v7  ;;  %v9432_v13 = vrot.slane %v9327_v29, %v9298_v14 }
 0x125   :  { %v605_v16 = vrot.slane %v9270_v53, %v9286_v7  ;;  %v616_v17 = vrot.slane %v9270_v53, %v9298_v14  ;;  %v627_v18 = vrot.slane %v9270_v53, %v9300_v15  ;;  %v726_v19 = vrot.slane %v9274_v57, %v9268_v48 }
 0x126   :  { %v748_v28 = vrot.slane %v9274_v57, %v9280_v4  ;;  %v759_v53 = vrot.slane %v9274_v57, %v9282_v5  ;;  %v770_v48 = vrot.slane %v9274_v57, %v9284_v6  ;;  %v781_v61 = vrot.slane %v9274_v57, %v9286_v7 }
 0x127   :  { %v803_v31 = vrot.slane %v9274_v57, %v9300_v15  ;;  %v9458_v33 = vrot.slane %v9327_v29, %v9300_v15  ;;  %v484_v37 = vrot.slane %v9272_v56, %v9280_v4  ;;  %v495_v38 = vrot.slane %v9272_v56, %v9282_v5 }
 0x128   :  { %600 = vbcast.lane.b32.xlu1 %v594_v30, 264  ;;  %596 = vbcast.lane.b32.xlu0 %v594_v30, 256  ;;  %v792_v30 = vrot.slane %v9274_v57, %v9298_v14  ;;  %v506_v57 = vrot.slane %v9272_v56, %v9284_v6  ;;  %v528_v4 = vrot.slane %v9272_v56, %v9298_v14 }
 0x129   :  { %v539_v5 = vrot.slane %v9272_v56, %v9300_v15 }
 0x12c   :  { %611 = vbcast.lane.b32.xlu1 %v605_v16, 264  ;;  %607 = vbcast.lane.b32.xlu0 %v605_v16, 256 }
 0x130   :  { %622 = vbcast.lane.b32.xlu1 %v616_v17, 264  ;;  %618 = vbcast.lane.b32.xlu0 %v616_v17, 256 }
 0x134   :  { %633 = vbcast.lane.b32.xlu1 %v627_v18, 264  ;;  %629 = vbcast.lane.b32.xlu0 %v627_v18, 256 }
 0x138   :  { %732 = vbcast.lane.b32.xlu1 %v726_v19, 264  ;;  %728 = vbcast.lane.b32.xlu0 %v726_v19, 256 }
 0x13c   :  { %743 = vbcast.lane.b32.xlu1 %v737_v21, 264  ;;  %739 = vbcast.lane.b32.xlu0 %v737_v21, 256 }
 0x140   :  { %754 = vbcast.lane.b32.xlu1 %v748_v28, 264  ;;  %750 = vbcast.lane.b32.xlu0 %v748_v28, 256 }
 0x144   :  { %765 = vbcast.lane.b32.xlu1 %v759_v53, 264  ;;  %761 = vbcast.lane.b32.xlu0 %v759_v53, 256 }
 0x148   :  { %776 = vbcast.lane.b32.xlu1 %v770_v48, 264  ;;  %772 = vbcast.lane.b32.xlu0 %v770_v48, 256 }
 0x14c   :  { %787 = vbcast.lane.b32.xlu1 %v781_v61, 264  ;;  %783 = vbcast.lane.b32.xlu0 %v781_v61, 256 }
 0x150   :  { %798 = vbcast.lane.b32.xlu1 %v792_v30, 264  ;;  %794 = vbcast.lane.b32.xlu0 %v792_v30, 256 }
 0x154   :  { %809 = vbcast.lane.b32.xlu1 %v803_v31, 264  ;;  %805 = vbcast.lane.b32.xlu0 %v803_v31, 256 }
 0x158   :  { %468 = vbcast.lane.b32.xlu1 %v9292_v11, 264  ;;  %464 = vbcast.lane.b32.xlu0 %v9292_v11, 256  ;;  %v517_v11 = vrot.slane %v9272_v56, %v9286_v7 }
 0x15c   :  { %475 = vbcast.lane.b32.xlu1 %v9296_v12, 256  ;;  %486 = vbcast.lane.b32.xlu0 %v484_v37, 256 }
 0x160   :  { %479 = vbcast.lane.b32.xlu1 %v9296_v12, 264  ;;  %497 = vbcast.lane.b32.xlu0 %v495_v38, 256 }
 0x164   :  { %490 = vbcast.lane.b32.xlu1 %v484_v37, 264  ;;  %508 = vbcast.lane.b32.xlu0 %v506_v57, 256 }
 0x168   :  { %501 = vbcast.lane.b32.xlu1 %v495_v38, 264  ;;  %519 = vbcast.lane.b32.xlu0 %v517_v11, 256 }
 0x16c   :  { %512 = vbcast.lane.b32.xlu1 %v506_v57, 264  ;;  %530 = vbcast.lane.b32.xlu0 %v528_v4, 256 }
 0x170   :  { %523 = vbcast.lane.b32.xlu1 %v517_v11, 264  ;;  %541 = vbcast.lane.b32.xlu0 %v539_v5, 256 }
 0x174   :  { %534 = vbcast.lane.b32.xlu1 %v528_v4, 264  ;;  %640 = vbcast.lane.b32.xlu0 %v9307_v20, 256 }
 0x178   :  { %545 = vbcast.lane.b32.xlu1 %v539_v5, 264  ;;  %651 = vbcast.lane.b32.xlu0 %v9310_v22, 256 }
 0x17c   :  { %644 = vbcast.lane.b32.xlu1 %v9307_v20, 264  ;;  %662 = vbcast.lane.b32.xlu0 %v9313_v23, 256 }
 0x180   :  { %655 = vbcast.lane.b32.xlu1 %v9310_v22, 264  ;;  %673 = vbcast.lane.b32.xlu0 %v9316_v24, 256 }
 0x184   :  { %666 = vbcast.lane.b32.xlu1 %v9313_v23, 264  ;;  %684 = vbcast.lane.b32.xlu0 %v9319_v25, 256 }
 0x188   :  { %677 = vbcast.lane.b32.xlu1 %v9316_v24, 264  ;;  %695 = vbcast.lane.b32.xlu0 %v9322_v26, 256 }
 0x18a   :  { %v9486_v56 = vpop.permute.xlu1 %556  ;;  %v9488_v6 = vpop.permute.xlu0 %552 }
 0x18c   :  { %688 = vbcast.lane.b32.xlu1 %v9319_v25, 264  ;;  %706 = vbcast.lane.b32.xlu0 %v9325_v27, 256 }
 0x18e   :  { %v9492_v7 = vpop.permute.xlu1 %567  ;;  %v9494_v12 = vpop.permute.xlu0 %563 }
 0x190   :  { %699 = vbcast.lane.b32.xlu1 %v9322_v26, 264  ;;  %717 = vbcast.lane.b32.xlu0 %v9332_v32, 256 }
 0x192   :  { %v9498_v14 = vpop.permute.xlu1 %578  ;;  %v9500_v15 = vpop.permute.xlu0 %574 }
 0x194   :  { %710 = vbcast.lane.b32.xlu1 %v9325_v27, 264  ;;  %972 = vbcast.lane.b32.xlu0 %v9335_v34, 256 }
 0x196   :  { %v9504_v20 = vpop.permute.xlu1 %589  ;;  %v9506_v22 = vpop.permute.xlu0 %585 }
 0x198   :  { %721 = vbcast.lane.b32.xlu1 %v9332_v32, 264  ;;  %983 = vbcast.lane.b32.xlu0 %v9338_v35, 256 }
 0x19a   :  { %v9510_v23 = vpop.permute.xlu1 %600  ;;  %v9512_v24 = vpop.permute.xlu0 %596 }
 0x19c   :  { %976 = vbcast.lane.b32.xlu1 %v9335_v34, 264  ;;  %994 = vbcast.lane.b32.xlu0 %v9341_v36, 256 }
 0x19e   :  { %v9516_v25 = vpop.permute.xlu1 %611  ;;  %v9518_v26 = vpop.permute.xlu0 %607 }
 0x1a0   :  { %987 = vbcast.lane.b32.xlu1 %v9338_v35, 264  ;;  %1005 = vbcast.lane.b32.xlu0 %v9344_v39, 256 }
 0x1a2   :  { %v9522_v27 = vpop.permute.xlu1 %622  ;;  %v9524_v29 = vpop.permute.xlu0 %618 }
 0x1a4   :  { %998 = vbcast.lane.b32.xlu1 %v9341_v36, 264  ;;  %1016 = vbcast.lane.b32.xlu0 %v9347_v40, 256 }
 0x1a6   :  { %v9528_v32 = vpop.permute.xlu1 %633  ;;  %v9530_v34 = vpop.permute.xlu0 %629 }
 0x1a8   :  { %1009 = vbcast.lane.b32.xlu1 %v9344_v39, 264  ;;  %1027 = vbcast.lane.b32.xlu0 %v9350_v41, 256 }
 0x1aa   :  { %v9534_v16 = vpop.permute.xlu1 %732  ;;  %v9536_v35 = vpop.permute.xlu0 %728 }
 0x1ab   :  { %15219 = vst [vmem:[#allocation12_spill] sm:$0xff] %v9534_v16  ;;  %15220 = vst [vmem:[#allocation13_spill] sm:$0xff] %v9536_v35 }
 0x1ac   :  { %1020 = vbcast.lane.b32.xlu1 %v9347_v40, 264  ;;  %1038 = vbcast.lane.b32.xlu0 %v9353_v42, 256 }
 0x1ae   :  { %v9540_v17 = vpop.permute.xlu1 %743  ;;  %v9542_v36 = vpop.permute.xlu0 %739 }
 0x1af   :  { %15221 = vst [vmem:[#allocation14_spill] sm:$0xff] %v9540_v17  ;;  %15222 = vst [vmem:[#allocation15_spill] sm:$0xff] %v9542_v36 }
 0x1b0   :  { %1031 = vbcast.lane.b32.xlu1 %v9350_v41, 264  ;;  %1049 = vbcast.lane.b32.xlu0 %v9356_v43, 256 }
 0x1b2   :  { %v9546_v18 = vpop.permute.xlu1 %754  ;;  %v9548_v39 = vpop.permute.xlu0 %750 }
 0x1b3   :  { %15223 = vst [vmem:[#allocation16_spill] sm:$0xff] %v9546_v18  ;;  %15224 = vst [vmem:[#allocation17_spill] sm:$0xff] %v9548_v39 }
 0x1b4   :  { %1042 = vbcast.lane.b32.xlu1 %v9353_v42, 264  ;;  %884 = vbcast.lane.b32.xlu0 %v9363_v45, 256 }
 0x1b6   :  { %v9552_v19 = vpop.permute.xlu1 %765  ;;  %v9554_v40 = vpop.permute.xlu0 %761 }
 0x1b7   :  { %15225 = vst [vmem:[#allocation18_spill] sm:$0xff] %v9552_v19  ;;  %15226 = vst [vmem:[#allocation19_spill] sm:$0xff] %v9554_v40  ;;  %v9690_v40 = vld [vmem:[%s15203_s3 + $0x2] ss:$0 sm:$0xff] }
 0x1b8   :  { %1053 = vbcast.lane.b32.xlu1 %v9356_v43, 264  ;;  %895 = vbcast.lane.b32.xlu0 %v9366_v46, 256 }
 0x1ba   :  { %v9558_v21 = vpop.permute.xlu1 %776  ;;  %v9560_v41 = vpop.permute.xlu0 %772 }
 0x1bb   :  { %15227 = vst [vmem:[#allocation20_spill] sm:$0xff] %v9558_v21  ;;  %15228 = vst [vmem:[#allocation21_spill] sm:$0xff] %v9560_v41 }
 0x1bc   :  { %888 = vbcast.lane.b32.xlu1 %v9363_v45, 264  ;;  %906 = vbcast.lane.b32.xlu0 %v9369_v47, 256 }
 0x1be   :  { %v9564_v28 = vpop.permute.xlu1 %787  ;;  %v9566_v42 = vpop.permute.xlu0 %783 }
 0x1bf   :  { %15229 = vst [vmem:[#allocation22_spill] sm:$0xff] %v9564_v28  ;;  %15230 = vst [vmem:[#allocation23_spill] sm:$0xff] %v9566_v42  ;;  %v9673_v42 = vld [vmem:[%s15203_s3] ss:$0 sm:$0xff] }
 0x1c0   :  { %899 = vbcast.lane.b32.xlu1 %v9366_v46, 264  ;;  %917 = vbcast.lane.b32.xlu0 %v9372_v49, 256  ;;  %v831_v41 = vmul.f32 %v9673_v42, %v9488_v6 }
 0x1c2   :  { %v9570_v53 = vpop.permute.xlu1 %798  ;;  %v9572_v43 = vpop.permute.xlu0 %794 }
 0x1c3   :  { %15231 = vst [vmem:[#allocation24_spill] sm:$0xff] %v9570_v53  ;;  %15232 = vst [vmem:[#allocation25_spill] sm:$0xff] %v9572_v43 }
 0x1c4   :  { %910 = vbcast.lane.b32.xlu1 %v9369_v47, 264  ;;  %928 = vbcast.lane.b32.xlu0 %v9375_v50, 256 }
 0x1c6   :  { %v9576_v48 = vpop.permute.xlu1 %809  ;;  %v9578_v45 = vpop.permute.xlu0 %805 }
 0x1c7   :  { %15233 = vst [vmem:[#allocation26_spill] sm:$0xff] %v9576_v48  ;;  %15234 = vst [vmem:[#allocation27_spill] sm:$0xff] %v9578_v45 }
 0x1c8   :  { %921 = vbcast.lane.b32.xlu1 %v9372_v49, 264  ;;  %939 = vbcast.lane.b32.xlu0 %v9378_v51, 256 }
 0x1ca   :  { %v9582_v61 = vpop.permute.xlu1 %468  ;;  %v9584_v46 = vpop.permute.xlu0 %464 }
 0x1cc   :  { %932 = vbcast.lane.b32.xlu1 %v9375_v50, 264  ;;  %950 = vbcast.lane.b32.xlu0 %v9381_v52, 256 }
 0x1ce   :  { %v9588_v30 = vpop.permute.xlu1 %475  ;;  %v9590_v47 = vpop.permute.xlu0 %486 }
 0x1cf   :  { %15235 = vst [vmem:[#allocation28_spill] sm:$0xff] %v9590_v47 }
 0x1d0   :  { %943 = vbcast.lane.b32.xlu1 %v9378_v51, 264  ;;  %961 = vbcast.lane.b32.xlu0 %v9384_v54, 256 }
 0x1d2   :  { %v9594_v31 = vpop.permute.xlu1 %479  ;;  %v9596_v49 = vpop.permute.xlu0 %497 }
 0x1d3   :  { %15236 = vst [vmem:[#allocation29_spill] sm:$0xff] %v9594_v31  ;;  %15237 = vst [vmem:[#allocation30_spill] sm:$0xff] %v9596_v49 }
 0x1d4   :  { %954 = vbcast.lane.b32.xlu1 %v9381_v52, 264  ;;  %1060 = vbcast.lane.b32.xlu0 %v9387_v55, 256 }
 0x1d6   :  { %v9600_v37 = vpop.permute.xlu1 %490  ;;  %v9602_v50 = vpop.permute.xlu0 %508 }
 0x1d7   :  { %15238 = vst [vmem:[#allocation31_spill] sm:$0xff] %v9600_v37  ;;  %15239 = vst [vmem:[#allocation32_spill] sm:$0xff] %v9602_v50 }
 0x1d8   :  { %965 = vbcast.lane.b32.xlu1 %v9384_v54, 264  ;;  %1071 = vbcast.lane.b32.xlu0 %v9390_v58, 256 }
 0x1da   :  { %v9606_v38 = vpop.permute.xlu1 %501  ;;  %v9608_v51 = vpop.permute.xlu0 %519 }
 0x1db   :  { %15240 = vst [vmem:[#allocation33_spill] sm:$0xff] %v9606_v38  ;;  %15241 = vst [vmem:[#allocation34_spill] sm:$0xff] %v9608_v51 }
 0x1dc   :  { %1064 = vbcast.lane.b32.xlu1 %v9387_v55, 264  ;;  %1082 = vbcast.lane.b32.xlu0 %v9393_v59, 256 }
 0x1de   :  { %v9612_v57 = vpop.permute.xlu1 %512  ;;  %v9614_v52 = vpop.permute.xlu0 %530 }
 0x1df   :  { %15242 = vst [vmem:[#allocation35_spill] sm:$0xff] %v9612_v57  ;;  %15243 = vst [vmem:[#allocation36_spill] sm:$0xff] %v9614_v52 }
 0x1e0   :  { %1075 = vbcast.lane.b32.xlu1 %v9390_v58, 264  ;;  %1093 = vbcast.lane.b32.xlu0 %v9396_v60, 256 }
 0x1e2   :  { %v9618_v11 = vpop.permute.xlu1 %523  ;;  %v9620_v54 = vpop.permute.xlu0 %541 }
 0x1e3   :  { %15244 = vst [vmem:[#allocation37_spill] sm:$0xff] %v9618_v11  ;;  %15245 = vst [vmem:[#allocation38_spill] sm:$0xff] %v9620_v54 }
 0x1e4   :  { %1086 = vbcast.lane.b32.xlu1 %v9393_v59, 264  ;;  %1104 = vbcast.lane.b32.xlu0 %v9399_v62, 256 }
 0x1e6   :  { %v9624_v4 = vpop.permute.xlu1 %534  ;;  %v9626_v55 = vpop.permute.xlu0 %640 }
 0x1e7   :  { %15246 = vst [vmem:[#allocation39_spill] sm:$0xff] %v9624_v4  ;;  %15247 = vst [vmem:[#allocation40_spill] sm:$0xff] %v9626_v55 }
 0x1e8   :  { %1097 = vbcast.lane.b32.xlu1 %v9396_v60, 264  ;;  %1115 = vbcast.lane.b32.xlu0 %v9402_v63, 256 }
 0x1ea   :  { %v9630_v5 = vpop.permute.xlu1 %545  ;;  %v9632_v58 = vpop.permute.xlu0 %651 }
 0x1eb   :  { %15248 = vst [vmem:[#allocation41_spill] sm:$0xff] %v9630_v5  ;;  %15249 = vst [vmem:[#allocation42_spill] sm:$0xff] %v9632_v58 }
 0x1ec   :  { %1108 = vbcast.lane.b32.xlu1 %v9399_v62, 264  ;;  %1126 = vbcast.lane.b32.xlu0 %v9405_v0, 256 }
 0x1ee   :  { %v9636_v48 = vpop.permute.xlu1 %644  ;;  %v9638_v59 = vpop.permute.xlu0 %662 }
 0x1ef   :  { %15250 = vst [vmem:[#allocation43_spill] sm:$0xff] %v9636_v48  ;;  %15251 = vst [vmem:[#allocation44_spill] sm:$0xff] %v9638_v59 }
 0x1f0   :  { %1119 = vbcast.lane.b32.xlu1 %v9402_v63, 264  ;;  %1137 = vbcast.lane.b32.xlu0 %v9408_v1, 256 }
 0x1f2   :  { %v9642_v53 = vpop.permute.xlu1 %655  ;;  %v9644_v60 = vpop.permute.xlu0 %673 }
 0x1f3   :  { %15252 = vst [vmem:[#allocation45_spill] sm:$0xff] %v9642_v53  ;;  %15253 = vst [vmem:[#allocation46_spill] sm:$0xff] %v9644_v60 }
 0x1f4   :  { %1130 = vbcast.lane.b32.xlu1 %v9405_v0, 264  ;;  %1148 = vbcast.lane.b32.xlu0 %v9360_v44, 256 }
 0x1f6   :  { %v9648_v45 = vpop.permute.xlu1 %666  ;;  %v9650_v62 = vpop.permute.xlu0 %684 }
 0x1f7   :  { %15254 = vst [vmem:[#allocation47_spill] sm:$0xff] %v9648_v45  ;;  %15255 = vst [vmem:[#allocation48_spill] sm:$0xff] %v9650_v62  ;;  %v15217_v45 = vmov 1326507024  }
 0x1f8   :  { %1141 = vbcast.lane.b32.xlu1 %v9408_v1, 264  ;;  %1159 = vbcast.lane.b32.xlu0 %v9412_v2, 256 }
 0x1fa   :  { %v9654_v28 = vpop.permute.xlu1 %677  ;;  %v9656_v63 = vpop.permute.xlu0 %695 }
 0x1fb   :  { %15256 = vst [vmem:[#allocation49_spill] sm:$0xff] %v9654_v28  ;;  %15257 = vst [vmem:[#allocation50_spill] sm:$0xff] %v9656_v63  ;;  %v15264_v28 = vmov 683565275  }
 0x1fc   :  { %1152 = vbcast.lane.b32.xlu1 %v9360_v44, 264  ;;  %1170 = vbcast.lane.b32.xlu0 %v9416_v3, 256  ;;  %v9680_v44 = vld [vmem:[%s15203_s3 + $0x1] ss:$0 sm:$0xff] }
 0x1fe   :  { %v9660_v43 = vpop.permute.xlu1 %688  ;;  %v9662_v0 = vpop.permute.xlu0 %706 }
 0x1ff   :  { %15258 = vst [vmem:[#allocation51_spill] sm:$0xff] %v9660_v43  ;;  %15259 = vst [vmem:[#allocation52_spill] sm:$0xff] %v9662_v0 }
 0x200   :  { %1163 = vbcast.lane.b32.xlu1 %v9412_v2, 264  ;;  %1181 = vbcast.lane.b32.xlu0 %v9420_v8, 256 }
 0x202   :  { %v9666_v21 = vpop.permute.xlu1 %699  ;;  %v9668_v1 = vpop.permute.xlu0 %717 }
 0x203   :  { %15260 = vst [vmem:[#allocation53_spill] sm:$0xff] %v9666_v21  ;;  %15261 = vst [vmem:[#allocation54_spill] sm:$0xff] %v9668_v1 }
 0x204   :  { %1174 = vbcast.lane.b32.xlu1 %v9416_v3, 264  ;;  %1192 = vbcast.lane.b32.xlu0 %v9424_v9, 256 }
 0x206   :  { %v9682_v2 = vpop.permute.xlu1 %710  ;;  %v973_v19 = vpop.permute.xlu0 %972 }
 0x207   :  { %15262 = vst [vmem:[#allocation55_spill] sm:$0xff] %v9682_v2  ;;  %v1251_v18 = vmul.f32 %v9680_v44, %v973_v19  ;;  %v833_v19 = vmul.f32 %v9673_v42, %v9494_v12 }
 0x208   :  { %1185 = vbcast.lane.b32.xlu1 %v9420_v8, 264  ;;  %1203 = vbcast.lane.b32.xlu0 %v9428_v10, 256 }
 0x209   :  { %v1315_v3 = vadd.f32 %v1251_v18, %v831_v41 }
 0x20a   :  { %v9694_v17 = vpop.permute.xlu1 %721  ;;  %v984_v39 = vpop.permute.xlu0 %983 }
 0x20b   :  { %15263 = vst [vmem:[#allocation56_spill] sm:$0xff] %v9694_v17  ;;  %v9697_v16 = vadd.f32 %v9690_v40, %v1315_v3  ;;  %v1253_v6 = vmul.f32 %v9680_v44, %v984_v39  ;;  %v832_v17 = vmul.f32 %v9673_v42, %v9486_v56 }
 0x20c   :  { %1196 = vbcast.lane.b32.xlu1 %v9424_v9, 264  ;;  %1214 = vbcast.lane.b32.xlu0 %v9432_v13, 256 }
 0x20d   :  { %v15205_v8 = vand.u32 2147483647, %v9697_v16  ;;  %v3098_v36 = vand.u32 2139095040, %v9697_v16  ;;  %v1317_v18 = vadd.f32 %v1253_v6, %v833_v19  ;;  %vm3097_vm15 = vcmp.lt.s32.totalorder %v9697_v16, 0 }
 0x20e   :  { %v977_v41 = vpop.permute.xlu1 %976 }
 0x20f   :  { %v3099_v3 = vshrl.u32 %v3098_v36, 23  ;;  %v1252_v35 = vmul.f32 %v9680_v44, %v977_v41  ;;  %v3102_v39 = vand.u32 8388607, %v15205_v8  ;;  %v9712_v12 = vadd.f32 %v9690_v40, %v1317_v18 }
 0x210   :  { %1207 = vbcast.lane.b32.xlu1 %v9428_v10, 264  ;;  %1225 = vbcast.lane.b32.xlu0 %v9458_v33, 256 }
 0x211   :  { %v8252_v9 = vadd.s32 4294967169, %v3099_v3  ;;  %v1316_v2 = vadd.f32 %v1252_v35, %v832_v17  ;;  %v15206_v6 = vand.u32 2147483647, %v9712_v12  ;;  %v3306_v19 = vand.u32 2139095040, %v9712_v12 }
 0x212   :  { %v3103_v41 = vor.u32 8388608, %v3102_v39  ;;  %v9727_v17 = vmul.f32 %v9673_v42, %v9500_v15  ;;  %v15211_v15 = vmov 2131351028   ;;  %vm3305_vm0 = vcmp.lt.s32.totalorder %v9712_v12, 0 }
 0x213   :  { %v3105_v56 = vadd.s32 1, %v8252_v9  ;;  %v9719_v36 = vadd.f32 %v9690_v40, %v1316_v2  ;;  %v3307_v1 = vshrl.u32 %v3306_v19, 23  ;;  %v3310_v18 = vand.u32 8388607, %v15206_v6 }
 0x214   :  { %1218 = vbcast.lane.b32.xlu1 %v9432_v13, 264  ;;  %v9729_v2 = vshll.u32 %v3103_v41, 8  ;;  %v15207_v6 = vmov 683565275  }
 0x215   :  { %vm3106_vm1 = vcmp.gt.s32.totalorder %v3105_v56, 0  ;;  %v3202_v10 = vand.u32 2139095040, %v9719_v36  ;;  %v8260_v35 = vadd.s32 4294967169, %v3307_v1  ;;  %v3311_v39 = vor.u32 8388608, %v3310_v18 }
 0x216   :  { %v3107_v3 = vsel %vm3106_vm1, %v3105_v56, 0  ;;  %v15209_v56 = vmov 2475754826   ;;  %v15215_v18 = vmov 920167782  }
 0x217   :  { %v3108_v9 = vshrl.u32 %v3107_v3, 5  ;;  %v3109_v8 = vand.u32 31, %v3107_v3  ;;  %v3203_v21 = vshrl.u32 %v3202_v10, 23  ;;  %v3313_v43 = vadd.s32 1, %v8260_v35 }
 0x218   :  { %1229 = vbcast.lane.b32.xlu1 %v9458_v33, 264  ;;  %v15213_v3 = vmov 2102212464  }
 0x219   :  { %v3110_v13 = vsub.s32 32, %v3109_v8  ;;  %v3112_v0 = vshll.u32 %v15207_v6, %v3109_v8  ;;  %v3115_v1 = vshll.u32 %v15209_v56, %v3109_v8  ;;  %v3118_v63 = vshll.u32 %v15211_v15, %v3109_v8 }
 0x21a   :  { %v3121_v41 = vshll.u32 %v15213_v3, %v3109_v8  ;;  %v3124_v19 = vshll.u32 %v15215_v18, %v3109_v8  ;;  %vm3127_vm2 = vcmp.lt.s32.totalorder %v3108_v9, 1  ;;  %vm3128_vm3 = vcmp.lt.s32.totalorder %v3108_v9, 2 }
 0x21b   :  { %v3113_v33 = vshrl.u32 %v15209_v56, %v3110_v13  ;;  %v3116_v10 = vshrl.u32 %v15211_v15, %v3110_v13  ;;  %v3119_v6 = vshrl.u32 %v15213_v3, %v3110_v13  ;;  %v3111_v62 = vshrl.u32 %v15264_v28, %v3110_v13 }
 0x21c   :  { %v3122_v35 = vshrl.u32 %v15215_v18, %v3110_v13  ;;  %v3125_v60 = vshrl.u32 %v15217_v45, %v3110_v13  ;;  %vm3129_vm4 = vcmp.lt.s32.totalorder %v3108_v9, 3  ;;  %vm3314_vm5 = vcmp.gt.s32.totalorder %v3313_v43, 0  ;;  %v995_v18 = vpop.permute.xlu0 %994 }
 0x21d   :  { %v3114_v53 = vor.u32 %v3113_v33, %v3112_v0  ;;  %v3117_v59 = vor.u32 %v3116_v10, %v3115_v1  ;;  %v3120_v48 = vor.u32 %v3119_v6, %v3118_v63  ;;  %vm3130_vm6 = vcmp.lt.s32.totalorder %v3108_v9, 4 }
 0x21e   :  { %v3123_v8 = vor.u32 %v3122_v35, %v3121_v41  ;;  %v3126_v58 = vor.u32 %v3125_v60, %v3124_v19  ;;  %v3315_v56 = vsel %vm3314_vm5, %v3313_v43, 0  ;;  %v1255_v1 = vmul.f32 %v9680_v44, %v995_v18 }
 0x21f   :  { %v3131_v15 = vsel %vm3127_vm2, %v3111_v62, %v3114_v53  ;;  %v3132_v3 = vsel %vm3130_vm6, %v3120_v48, 2102212464  ;;  %v3135_v5 = vsel %vm3127_vm2, %v3114_v53, %v3117_v59  ;;  %v3139_v55 = vsel %vm3127_vm2, %v3117_v59, %v3120_v48 }
 0x220   :  { %v3133_v4 = vsel %vm3129_vm4, %v3117_v59, %v3132_v3  ;;  %v3136_v13 = vsel %vm3130_vm6, %v3123_v8, 920167782  ;;  %v3140_v45 = vsel %vm3130_vm6, %v3126_v58, 1326507024  ;;  %v3316_v0 = vshrl.u32 %v3315_v56, 5 }
 0x221   :  { %v3134_v63 = vsel %vm3128_vm3, %v3131_v15, %v3133_v4  ;;  %v3137_v6 = vsel %vm3129_vm4, %v3120_v48, %v3136_v13  ;;  %v3141_v60 = vsel %vm3129_vm4, %v3123_v8, %v3140_v45  ;;  %v3317_v43 = vand.u32 31, %v3315_v56 }
 0x222   :  { %v3138_v62 = vsel %vm3128_vm3, %v3135_v5, %v3137_v6  ;;  %v3142_v19 = vsel %vm3128_vm3, %v3139_v55, %v3141_v60  ;;  %v9753_v53 = vshll.u32 %v3311_v39, 8  ;;  %v3150_v48 = vmul.u32 %v9729_v2, %v3134_v63 }
 0x223   :  { %v9757_v59 = vmul.u32.u64.low %v9729_v2, %v3142_v19  ;;  %v9758_v3 = vmul.u32.u64.high %v9729_v2, %v3142_v19, %v9757_v59  ;;  %v9761_v58 = vmul.u32.u64.low %v9729_v2, %v3138_v62  ;;  %v9762_v4 = vmul.u32.u64.high %v9729_v2, %v3138_v62, %v9761_v58 }
 0x224   :  { %v3318_v45 = vsub.s32 32, %v3317_v43  ;;  %v8256_v56 = vadd.s32 4294967169, %v3203_v21  ;;  %v15265_v5 = vand.u32 2147483647, %v9719_v36  ;;  %v3320_v9 = vshll.u32 %v15264_v28, %v3317_v43 }
 0x225   :  { %v15266_v39 = vmov 2475754826   ;;  %v15267_v41 = vmov 2131351028   ;;  %vm3335_vm7 = vcmp.lt.s32.totalorder %v3316_v0, 1  ;;  %vm3152_vm8 = vc.u32 %v9758_v3, %v9761_v58 }
 0x226   :  { %v9768_v55 = vand.u32 8388607, %v15265_v5  ;;  %v3323_v15 = vshll.u32 %v15266_v39, %v3317_v43  ;;  %v3326_v18 = vshll.u32 %v15267_v41, %v3317_v43  ;;  %v3321_v33 = vshrl.u32 %v15266_v39, %v3318_v45 }
 0x227   :  { %v3324_v10 = vshrl.u32 %v15267_v41, %v3318_v45  ;;  %v15268_v35 = vmov 2102212464   ;;  %v3153_v21 = vadd.s32 1, %v9762_v4  ;;  %v15269_v13 = vmov 920167782  }
 0x228   :  { %v3327_v8 = vshrl.u32 %v15268_v35, %v3318_v45  ;;  %v3329_v2 = vshll.u32 %v15268_v35, %v3317_v43  ;;  %v3330_v63 = vshrl.u32 %v15269_v13, %v3318_v45  ;;  %v3332_v6 = vshll.u32 %v15269_v13, %v3317_v43 }
 0x229   :  { %v3322_v60 = vor.u32 %v3321_v33, %v3320_v9  ;;  %v3325_v62 = vor.u32 %v3324_v10, %v3323_v15  ;;  %v15270_v59 = vmov 1326507024   ;;  %v3154_v54 = vsel %vm3152_vm8, %v3153_v21, %v9762_v4 }
 0x22a   :  { %v3328_v19 = vor.u32 %v3327_v8, %v3326_v18  ;;  %v3333_v5 = vshrl.u32 %v15270_v59, %v3318_v45  ;;  %v3331_v11 = vor.u32 %v3330_v63, %v3329_v2  ;;  %vm3336_vm9 = vcmp.lt.s32.totalorder %v3316_v0, 2 }
 0x22b   :  { %vm3338_vm10 = vcmp.lt.s32.totalorder %v3316_v0, 4  ;;  %v3155_v52 = vadd.s32 %v3154_v54, %v3150_v48  ;;  %v3319_v57 = vshrl.u32 %v15264_v28, %v3318_v45  ;;  %vm3337_vm11 = vcmp.lt.s32.totalorder %v3316_v0, 3 }
 0x22c   :  { %v3334_v51 = vor.u32 %v3333_v5, %v3332_v6  ;;  %v3340_v38 = vsel %vm3338_vm10, %v3328_v19, 2102212464  ;;  %v3343_v50 = vsel %vm3335_vm7, %v3322_v60, %v3325_v62  ;;  %v3344_v37 = vsel %vm3338_vm10, %v3331_v11, 920167782 }
 0x22d   :  { %v3347_v43 = vsel %vm3335_vm7, %v3325_v62, %v3328_v19  ;;  %v3156_v9 = vadd.s32 536870912, %v3155_v52  ;;  %v3339_v15 = vsel %vm3335_vm7, %v3319_v57, %v3322_v60  ;;  %v3345_v18 = vsel %vm3337_vm11, %v3328_v19, %v3344_v37 }
 0x22e   :  { %v3348_v33 = vsel %vm3338_vm10, %v3334_v51, 1326507024  ;;  %v3341_v4 = vsel %vm3337_vm11, %v3325_v62, %v3340_v38  ;;  %v3346_v10 = vsel %vm3336_vm9, %v3343_v50, %v3345_v18  ;;  %v3209_v54 = vadd.s32 1, %v8256_v56 }
 0x22f   :  { %v3349_v8 = vsel %vm3337_vm11, %v3331_v11, %v3348_v33  ;;  %v3157_v48 = vshrl.u32 %v3156_v9, 30  ;;  %v9791_v2 = vmul.u32.u64.low %v9753_v53, %v3346_v10  ;;  %v9792_v21 = vmul.u32.u64.high %v9753_v53, %v3346_v10, %v9791_v2 }
 0x230   :  { %v3350_v45 = vsel %vm3336_vm9, %v3347_v43, %v3349_v8  ;;  %vm3210_vm12 = vcmp.gt.s32.totalorder %v3209_v54, 0  ;;  %v1319_v37 = vadd.f32 %v1255_v1, %v9727_v17  ;;  %v3342_v50 = vsel %vm3336_vm9, %v3339_v15, %v3341_v4  ;;  %v988_v17 = vpop.permute.xlu1 %987 }
 0x231   :  { %v9796_v63 = vmul.u32.u64.low %v9753_v53, %v3350_v45  ;;  %v9797_v6 = vmul.u32.u64.high %v9753_v53, %v3350_v45, %v9796_v63  ;;  %v3158_v38 = vshll.u32 %v3157_v48, 30  ;;  %v3211_v51 = vsel %vm3210_vm12, %v3209_v54, 0 }
 0x232   :  { %v3213_v57 = vand.u32 31, %v3211_v51  ;;  %v3361_v56 = vadd.s32 1, %v9792_v21  ;;  %v3207_v60 = vor.u32 8388608, %v9768_v55  ;;  %v3358_v62 = vmul.u32 %v9753_v53, %v3342_v50 }
 0x233   :  { %v9801_v11 = vsub.s32 %v3155_v52, %v3158_v38  ;;  %vm3360_vm13 = vc.u32 %v9797_v6, %v9791_v2  ;;  %v9809_v5 = vadd.f32 %v9690_v40, %v1319_v37  ;;  %v3181_v1 = vsub.s32 4, %v3157_v48 }
 0x234   :  { %v3214_v19 = vsub.s32 32, %v3213_v57  ;;  %v3362_v52 = vsel %vm3360_vm13, %v3361_v56, %v9792_v21  ;;  %v9815_v43 = vmul.f32 %v9673_v42, %v9492_v7  ;;  %v15271_v55 = vand.u32 2147483647, %v9697_v16 }
 0x235   :  { %v3161_v0 = vsub.s32 0, %v9801_v11  ;;  %v3363_v9 = vadd.s32 %v3362_v52, %v3358_v62  ;;  %v3151_v15 = vadd.s32 %v9761_v58, %v9758_v3  ;;  %v9827_v33 = vshll.u32 %v3207_v60, 8 }
 0x236   :  { %vm9819_vm14 = vcmp.le.f32.partialorder %v15271_v55, 0.7853982  ;;  %v9830_v4 = vmul.f32 %v9680_v44, %v988_v17  ;;  %v3217_v10 = vshrl.u32 %v15266_v39, %v3214_v19  ;;  %v3220_v8 = vshrl.u32 %v15267_v41, %v3214_v19 }
 0x237   :  { %v8253_v18 = vmin.u32 %v3161_v0, %v9801_v11  ;;  %v3364_v7 = vadd.s32 536870912, %v3363_v9  ;;  %v9837_v21 = vsel %vm3097_vm15, %v3181_v1, %v3157_v48  ;;  %v3212_v3 = vshrl.u32 %v3211_v51, 5 }
 0x238   :  { %v3216_v58 = vshll.u32 %v15264_v28, %v3213_v57  ;;  %v3219_v37 = vshll.u32 %v15266_v39, %v3213_v57  ;;  %v3223_v38 = vshrl.u32 %v15268_v35, %v3214_v19  ;;  %v3226_v50 = vshrl.u32 %v15269_v13, %v3214_v19 }
 0x239   :  { %v3163_v45 = vclz %v8253_v18  ;;  %v3365_v63 = vshrl.u32 %v3364_v7, 30  ;;  %v3225_v60 = vshll.u32 %v15268_v35, %v3213_v57  ;;  %v3229_v62 = vshrl.u32 %v15270_v59, %v3214_v19 }
 0x23a   :  { %v3514_v48 = vand.u32 2139095040, %v9809_v5  ;;  %v3218_v51 = vor.u32 %v3217_v10, %v3216_v58  ;;  %v3221_v0 = vor.u32 %v3220_v8, %v3219_v37  ;;  %v3222_v1 = vshll.u32 %v15267_v41, %v3213_v57 }
 0x23b   :  { %v8254_v56 = vadd.s32 4294967294, %v3163_v45  ;;  %v3366_v17 = vshll.u32 %v3365_v63, 30  ;;  %v3184_v52 = vsel %vm9819_vm14, 0, %v9837_v21  ;;  %v3227_v55 = vor.u32 %v3226_v50, %v3225_v60 }
 0x23c   :  { %v3228_v18 = vshll.u32 %v15269_v13, %v3213_v57  ;;  %v3224_v54 = vor.u32 %v3223_v38, %v3222_v1  ;;  %vm3231_vm2 = vcmp.lt.s32.totalorder %v3212_v3, 1  ;;  %v3389_v47 = vsub.s32 4, %v3365_v63 }
 0x23d   :  { %vm8255_vm1 = vcmp.lt.s32.totalorder %v8254_v56, 0  ;;  %v9852_v45 = vsub.s32 %v3363_v9, %v3366_v17  ;;  %vm3233_vm3 = vcmp.lt.s32.totalorder %v3212_v3, 3  ;;  %vm3234_vm4 = vcmp.lt.s32.totalorder %v3212_v3, 4 }
 0x23e   :  { %v3166_v7 = vsel %vm8255_vm1, 0, %v8254_v56  ;;  %v3230_v10 = vor.u32 %v3229_v62, %v3228_v18  ;;  %v3239_v58 = vsel %vm3231_vm2, %v3218_v51, %v3221_v0  ;;  %v15274_v57 = vand.u32 2147483647, %v9712_v12 }
 0x23f   :  { %v3167_v49 = vsub.s32 32, %v3166_v7  ;;  %v3171_v31 = vsub.s32 4294967266, %v3166_v7  ;;  %v3369_v8 = vsub.s32 0, %v9852_v45  ;;  %v3168_v21 = vshll.u32 %v9801_v11, %v3166_v7 }
 0x240   :  { %vm9859_vm5 = vcmp.le.f32.partialorder %v15274_v57, 0.7853982  ;;  %v3240_v38 = vsel %vm3234_vm4, %v3227_v55, 920167782  ;;  %vm3232_vm6 = vcmp.lt.s32.totalorder %v3212_v3, 2  ;;  %v3359_v11 = vadd.s32 %v9791_v2, %v9797_v6 }
 0x241   :  { %v3169_v37 = vshrl.u32 %v3151_v15, %v3167_v49  ;;  %v3172_v50 = vadd.s32 127, %v3171_v31  ;;  %v8261_v56 = vmin.u32 %v3369_v8, %v9852_v45  ;;  %v3236_v60 = vsel %vm3234_vm4, %v3224_v54, 2102212464 }
 0x242   :  { %v3241_v62 = vsel %vm3233_vm3, %v3224_v54, %v3240_v38  ;;  %v3215_v49 = vshrl.u32 %v15264_v28, %v3214_v19  ;;  %v3390_v18 = vsel %vm3305_vm0, %v3389_v47, %v3365_v63  ;;  %v3243_v7 = vsel %vm3231_vm2, %v3221_v0, %v3224_v54 }
 0x243   :  { %v3170_v17 = vor.u32 %v3169_v37, %v3168_v21  ;;  %v3173_v1 = vshll.u32 %v3172_v50, 23  ;;  %v3242_v31 = vsel %vm3232_vm6, %v3239_v58, %v3241_v62  ;;  %v3371_v15 = vclz %v8261_v56 }
 0x244   :  { %v3235_v57 = vsel %vm3231_vm2, %v3215_v49, %v3218_v51  ;;  %v3237_v38 = vsel %vm3233_vm3, %v3221_v0, %v3236_v60  ;;  %v3244_v21 = vsel %vm3234_vm4, %v3230_v10, 1326507024  ;;  %v3515_v63 = vshrl.u32 %v3514_v48, 23 }
 0x245   :  { %v3174_v8 = vor.u32 4788187, %v3173_v1  ;;  %v8262_v37 = vadd.s32 4294967294, %v3371_v15  ;;  %v3245_v19 = vsel %vm3233_vm3, %v3227_v55, %v3244_v21  ;;  %v3177_v6 = vcvt.s32.f32 %v3170_v17 }
 0x246   :  { %v9879_v58 = vmul.u32.u64.low %v9827_v33, %v3242_v31  ;;  %v9880_v50 = vmul.u32.u64.high %v9827_v33, %v3242_v31, %v9879_v58  ;;  %v3246_v47 = vsel %vm3232_vm6, %v3243_v7, %v3245_v19  ;;  %v3238_v54 = vsel %vm3232_vm6, %v3235_v57, %v3237_v38 }
 0x247   :  { %v3175_v2 = vand.u32 2147483647, %v3174_v8  ;;  %vm8263_vm7 = vcmp.lt.s32.totalorder %v8262_v37, 0  ;;  %v9885_v51 = vmul.u32.u64.low %v9827_v33, %v3246_v47  ;;  %v9886_v0 = vmul.u32.u64.high %v9827_v33, %v3246_v47, %v9885_v51 }
 0x248   :  { %v3188_v56 = vadd.s32 3, %v3184_v52  ;;  %v3374_v60 = vsel %vm8263_vm7, 0, %v8262_v37  ;;  %v8268_v55 = vadd.s32 4294967169, %v3515_v63  ;;  %v3392_v49 = vsel %vm9859_vm5, 0, %v3390_v18 }
 0x249   :  { %v3178_v10 = vmul.f32 %v3177_v6, %v3175_v2  ;;  %v3375_v62 = vsub.s32 32, %v3374_v60  ;;  %v3379_v1 = vsub.s32 4294967266, %v3374_v60  ;;  %v3257_v17 = vadd.s32 1, %v9880_v50 }
 0x24a   :  { %v3254_v48 = vmul.u32 %v9827_v33, %v3238_v54  ;;  %v15277_v3 = vand.u32 2147483647, %v9809_v5  ;;  %v3521_v7 = vadd.s32 1, %v8268_v55  ;;  %v3376_v8 = vshll.u32 %v9852_v45, %v3374_v60 }
 0x24b   :  { %v3179_v31 = vxor.u32 2147483648, %v3178_v10  ;;  %v3377_v57 = vshrl.u32 %v3359_v11, %v3375_v62  ;;  %v3380_v52 = vadd.s32 127, %v3379_v1  ;;  %vm3256_vm8 = vc.u32 %v9886_v0, %v9879_v58 }
 0x24c   :  { %v3518_v15 = vand.u32 8388607, %v15277_v3  ;;  %v3258_v18 = vsel %vm3256_vm8, %v3257_v17, %v9880_v50  ;;  %vm3522_vm9 = vcmp.gt.s32.totalorder %v3521_v7, 0  ;;  %v1318_v21 = vadd.f32 %v9830_v4, %v9815_v43 }
 0x24d   :  { %v3180_v38 = vsel %vm3097_vm15, %v3179_v31, %v3178_v10  ;;  %v3378_v37 = vor.u32 %v3377_v57, %v3376_v8  ;;  %v3381_v19 = vshll.u32 %v3380_v52, 23  ;;  %v3259_v45 = vadd.s32 %v3258_v18, %v3254_v48 }
 0x24e   :  { %v3183_v33 = vsel %vm9819_vm14, %v9697_v16, %v3180_v38  ;;  %v3189_v11 = vand.u32 3, %v3188_v56  ;;  %v3396_v2 = vadd.s32 3, %v3392_v49  ;;  %v3523_v6 = vsel %vm3522_vm9, %v3521_v7, 0 }
 0x24f   :  { %8784 = vcosq.f32 %v3183_v33  ;;  %v3382_v47 = vor.u32 4788187, %v3381_v19  ;;  %v3260_v63 = vadd.s32 536870912, %v3259_v45  ;;  %v3519_v54 = vor.u32 8388608, %v3518_v15 }
 0x250   :  { %8786 = vsinq.f32 %v3183_v33  ;;  %v3525_v50 = vand.u32 31, %v3523_v6  ;;  %v9905_v51 = vadd.f32 %v9690_v40, %v1318_v21  ;;  %v3385_v4 = vcvt.s32.f32 %v3378_v37 }
 0x251   :  { %v3383_v43 = vand.u32 2147483647, %v3382_v47  ;;  %v9907_v10 = vshrl.u32 %v3260_v63, 30  ;;  %vm3194_vm10 = vcmp.eq.s32.totalorder %v3189_v11, 2  ;;  %vm3191_vm11 = vcmp.eq.s32.totalorder %v3189_v11, 0 }
 0x252   :  { %v3526_v53 = vsub.s32 32, %v3525_v50  ;;  %v9909_v55 = vand.u32 3, %v3396_v2  ;;  %v9912_v62 = vshll.u32 %v3519_v54, 8  ;;  %vm3190_vm12 = vcmp.lt.s32.totalorder %v3189_v11, 2 }
 0x253   :  { %v3386_v60 = vmul.f32 %v3385_v4, %v3383_v43  ;;  %v3262_v56 = vshll.u32 %v9907_v10, 30  ;;  %v9915_v1 = vadd.s32 %v9879_v58, %v9886_v0  ;;  %v3407_v31 = vand.u32 2147483647, %v9905_v51 }
 0x254   :  { %v3529_v49 = vshrl.u32 %v15266_v39, %v3526_v53  ;;  %v3532_v17 = vshrl.u32 %v15267_v41, %v3526_v53  ;;  %vm3187_vm13 = vweird.f32 %v9697_v16  ;;  %v9923_v15 = vshrl.u32 %v3523_v6, 5 }
 0x255   :  { %v3387_v48 = vxor.u32 2147483648, %v3386_v60  ;;  %v9921_v3 = vsub.s32 %v3259_v45, %v3262_v56  ;;  %v3535_v7 = vshrl.u32 %v15268_v35, %v3526_v53  ;;  %v3528_v8 = vshll.u32 %v15264_v28, %v3525_v50 }
 0x256   :  { %v3531_v58 = vshll.u32 %v15266_v39, %v3525_v50  ;;  %v3538_v0 = vshrl.u32 %v15269_v13, %v3526_v53  ;;  %v3410_v57 = vand.u32 2139095040, %v9905_v51  ;;  %v3534_v18 = vshll.u32 %v15267_v41, %v3525_v50 }
 0x257   :  { %v3388_v52 = vsel %vm3305_vm0, %v3387_v48, %v3386_v60  ;;  %v3265_v38 = vsub.s32 0, %v9921_v3  ;;  %v3537_v21 = vshll.u32 %v15268_v35, %v3525_v50  ;;  %v3530_v19 = vor.u32 %v3529_v49, %v3528_v8 }
 0x258   :  { %v3391_v37 = vsel %vm9859_vm5, %v9712_v12, %v3388_v52  ;;  %v3533_v45 = vor.u32 %v3532_v17, %v3531_v58  ;;  %v3541_v2 = vshrl.u32 %v15270_v59, %v3526_v53  ;;  %v3536_v54 = vor.u32 %v3535_v7, %v3534_v18 }
 0x259   :  { %v8785_v33 = vpop.eup %8784  ;;  %8788 = vcosq.f32 %v3391_v37  ;;  %v8257_v63 = vmin.u32 %v3265_v38, %v9921_v3  ;;  %v3539_v4 = vor.u32 %v3538_v0, %v3537_v21  ;;  %v3540_v60 = vshll.u32 %v15269_v13, %v3525_v50 }
 0x25a   :  { %v8787_v6 = vpop.eup %8786  ;;  %v3195_v47 = vxor.u32 2147483648, %v8785_v33  ;;  %8790 = vsinq.f32 %v3391_v37  ;;  %vm3201_vm14 = vcmp.lt.s32.totalorder %v9719_v36, 0  ;;  %v3285_v49 = vsub.s32 4, %v9907_v10 }
 0x25b   :  { %v3192_v43 = vxor.u32 2147483648, %v8787_v6  ;;  %v3267_v9 = vclz %v8257_v63  ;;  %v3527_v17 = vshrl.u32 %v15264_v28, %v3526_v53  ;;  %v3542_v8 = vor.u32 %v3541_v2, %v3540_v60 }
 0x25c   :  { %v3196_v56 = vsel %vm3194_vm10, %v3195_v47, %v8787_v6  ;;  %vm3543_vm15 = vcmp.lt.s32.totalorder %v9923_v15, 1  ;;  %vm3546_vm0 = vcmp.lt.s32.totalorder %v9923_v15, 4  ;;  %vm3544_vm1 = vcmp.lt.s32.totalorder %v9923_v15, 2 }
 0x25d   :  { %v3193_v48 = vsel %vm3191_vm11, %v8785_v33, %v3192_v43  ;;  %v8258_v58 = vadd.s32 4294967294, %v3267_v9  ;;  %v3548_v50 = vsel %vm3546_vm0, %v3536_v54, 2102212464  ;;  %vm3399_vm2 = vcmp.eq.s32.totalorder %v9909_v55, 0 }
 0x25e   :  { %v3197_v7 = vsel %vm3190_vm12, %v3193_v48, %v3196_v56  ;;  %v15278_v53 = vand.u32 2147483647, %v9719_v36  ;;  %vm3545_vm4 = vcmp.lt.s32.totalorder %v9923_v15, 3  ;;  %v3551_v11 = vsel %vm3543_vm15, %v3530_v19, %v3533_v45 }
 0x25f   :  { %v3198_v0 = vsel %vm3187_vm13, nan, %v3197_v7  ;;  %v3552_v38 = vsel %vm3546_vm0, %v3539_v4, 920167782  ;;  %vm3398_vm5 = vcmp.lt.s32.totalorder %v9909_v55, 2  ;;  %vm8259_vm6 = vcmp.lt.s32.totalorder %v8258_v58, 0 }
 0x260   :  { %vm9957_vm3 = vcmp.le.f32.partialorder %v15278_v53, 0.7853982  ;;  %8103 = vst [vmem:[#allocation8 + $0x80] sm:$0xff] %v3198_v0  ;;  %v3547_v16 = vsel %vm3543_vm15, %v3527_v17, %v3530_v19  ;;  %v3553_v18 = vsel %vm3545_vm4, %v3536_v54, %v3552_v38  ;;  %v3555_v21 = vsel %vm3543_vm15, %v3533_v45, %v3536_v54 }
 0x261   :  { %vm3395_vm7 = vweird.f32 %v9712_v12  ;;  %v3270_v33 = vsel %vm8259_vm6, 0, %v8258_v58  ;;  %v3549_v37 = vsel %vm3545_vm4, %v3533_v45, %v3548_v50  ;;  %v3554_v2 = vsel %vm3544_vm1, %v3551_v11, %v3553_v18 }
 0x262   :  { %v3556_v6 = vsel %vm3546_vm0, %v3542_v8, 1326507024  ;;  %v3271_v47 = vsub.s32 32, %v3270_v33  ;;  %v3272_v19 = vshll.u32 %v9921_v3, %v3270_v33  ;;  %v3275_v63 = vsub.s32 4294967266, %v3270_v33 }
 0x263   :  { %v3557_v43 = vsel %vm3545_vm4, %v3539_v4, %v3556_v6  ;;  %v9986_v60 = vmul.u32.u64.low %v9912_v62, %v3554_v2  ;;  %v9987_v56 = vmul.u32.u64.high %v9912_v62, %v3554_v2, %v9986_v60  ;;  %v3411_v45 = vshrl.u32 %v3410_v57, 23  ;;  %v8789_v9 = vpop.eup %8788 }
 0x264   :  { %v3558_v54 = vsel %vm3544_vm1, %v3555_v21, %v3557_v43  ;;  %v3273_v17 = vshrl.u32 %v9915_v1, %v3271_v47  ;;  %v3276_v48 = vadd.s32 127, %v3275_v63  ;;  %v8791_v7 = vpop.eup %8790  ;;  %v3403_v58 = vxor.u32 2147483648, %v8789_v9  ;;  %v1006_v63 = vpop.permute.xlu0 %1005 }
 0x265   :  { %v9992_v8 = vmul.u32.u64.low %v9912_v62, %v3558_v54  ;;  %v9993_v3 = vmul.u32.u64.high %v9912_v62, %v3558_v54, %v9992_v8  ;;  %v3286_v4 = vsel %vm3201_vm14, %v3285_v49, %v9907_v10  ;;  %v3550_v50 = vsel %vm3544_vm1, %v3547_v16, %v3549_v37 }
 0x266   :  { %v8264_v0 = vadd.s32 4294967169, %v3411_v45  ;;  %v3400_v53 = vxor.u32 2147483648, %v8791_v7  ;;  %vm3402_vm8 = vcmp.eq.s32.totalorder %v9909_v55, 2  ;;  %v3274_v57 = vor.u32 %v3273_v17, %v3272_v19 }
 0x267   :  { %v3277_v1 = vshll.u32 %v3276_v48, 23  ;;  %v3404_v11 = vsel %vm3402_vm8, %v3403_v58, %v8791_v7  ;;  %v3569_v38 = vadd.s32 1, %v9987_v56  ;;  %v3414_v18 = vand.u32 8388607, %v3407_v31 }
 0x268   :  { %v3417_v21 = vadd.s32 1, %v8264_v0  ;;  %v3401_v33 = vsel %vm3399_vm2, %v8789_v9, %v3400_v53  ;;  %v3288_v15 = vsel %vm9957_vm3, 0, %v3286_v4  ;;  %v3566_v49 = vmul.u32 %v9912_v62, %v3550_v50 }
 0x269   :  { %v3278_v10 = vor.u32 4788187, %v3277_v1  ;;  %v3405_v16 = vsel %vm3398_vm5, %v3401_v33, %v3404_v11  ;;  %v3281_v37 = vcvt.s32.f32 %v3274_v57  ;;  %vm3568_vm9 = vc.u32 %v9993_v3, %v9986_v60 }
 0x26a   :  { %vm3418_vm10 = vcmp.gt.s32.totalorder %v3417_v21, 0  ;;  %v3406_v2 = vsel %vm3395_vm7, nan, %v3405_v16  ;;  %v3570_v47 = vsel %vm3568_vm9, %v3569_v38, %v9987_v56  ;;  %v10018_v43 = vmul.f32 %v9673_v42, %v9498_v14 }
 0x26b   :  { %v3279_v6 = vand.u32 2147483647, %v3278_v10  ;;  %v3419_v19 = vsel %vm3418_vm10, %v3417_v21, 0  ;;  %8105 = vst [vmem:[#allocation8 + $0x90] sm:$0xff] %v3406_v2  ;;  %v3571_v55 = vadd.s32 %v3570_v47, %v3566_v49  ;;  %v837_v54 = vmul.f32 %v9673_v42, %v9506_v22 }
 0x26c   :  { %v3421_v62 = vand.u32 31, %v3419_v19  ;;  %v3292_v9 = vadd.s32 3, %v3288_v15  ;;  %v3415_v17 = vor.u32 8388608, %v3414_v18  ;;  %v10022_v48 = vshrl.u32 %v3419_v19, 5 }
 0x26d   :  { %v3282_v45 = vmul.f32 %v3281_v37, %v3279_v6  ;;  %v3572_v12 = vadd.s32 536870912, %v3571_v55  ;;  %v1257_v56 = vmul.f32 %v9680_v44, %v1006_v63  ;;  %vm3513_vm11 = vcmp.lt.s32.totalorder %v9809_v5, 0 }
 0x26e   :  { %v3422_v8 = vsub.s32 32, %v3421_v62  ;;  %v3424_v58 = vshll.u32 %v15264_v28, %v3421_v62  ;;  %v3427_v14 = vshll.u32 %v15266_v39, %v3421_v62  ;;  %v3430_v4 = vshll.u32 %v15267_v41, %v3421_v62 }
 0x26f   :  { %v3283_v7 = vxor.u32 2147483648, %v3282_v45  ;;  %v3573_v50 = vshrl.u32 %v3572_v12, 30  ;;  %v3433_v53 = vshll.u32 %v15268_v35, %v3421_v62  ;;  %v3436_v10 = vshll.u32 %v15269_v13, %v3421_v62 }
 0x270   :  { %v3425_v0 = vshrl.u32 %v15266_v39, %v3422_v8  ;;  %v3428_v22 = vshrl.u32 %v15267_v41, %v3422_v8  ;;  %v3431_v1 = vshrl.u32 %v15268_v35, %v3422_v8  ;;  %v3434_v11 = vshrl.u32 %v15269_v13, %v3422_v8 }
 0x271   :  { %v3284_v57 = vsel %vm3201_vm14, %v3283_v7, %v3282_v45  ;;  %v3437_v38 = vshrl.u32 %v15270_v59, %v3422_v8  ;;  %v3574_v21 = vshll.u32 %v3573_v50, 30  ;;  %v10040_v37 = vand.u32 3, %v3292_v9  ;;  %v999_v7 = vpop.permute.xlu1 %998 }
 0x272   :  { %v3287_v18 = vsel %vm9957_vm3, %v9719_v36, %v3284_v57  ;;  %v3426_v33 = vor.u32 %v3425_v0, %v3424_v58  ;;  %v3429_v15 = vor.u32 %v3428_v22, %v3427_v14  ;;  %v3432_v49 = vor.u32 %v3431_v1, %v3430_v4 }
 0x273   :  { %8792 = vcosq.f32 %v3287_v18  ;;  %v3435_v16 = vor.u32 %v3434_v11, %v3433_v53  ;;  %v10043_v2 = vsub.s32 %v3571_v55, %v3574_v21  ;;  %v15281_v6 = vand.u32 2147483647, %v9809_v5 }
 0x274   :  { %8794 = vsinq.f32 %v3287_v18  ;;  %v3438_v47 = vor.u32 %v3437_v38, %v3436_v10  ;;  %v3455_v19 = vshll.u32 %v3415_v17, 8  ;;  %v1321_v63 = vadd.f32 %v1257_v56, %v837_v54 }
 0x275   :  { %vm10047_vm12 = vcmp.le.f32.partialorder %v15281_v6, 0.7853982  ;;  %v3577_v62 = vsub.s32 0, %v10043_v2  ;;  %v3597_v45 = vsub.s32 4, %v3573_v50  ;;  %vm3439_vm13 = vcmp.lt.s32.totalorder %v10022_v48, 1 }
 0x276   :  { %vm3442_vm14 = vcmp.lt.s32.totalorder %v10022_v48, 4  ;;  %vm3441_vm15 = vcmp.lt.s32.totalorder %v10022_v48, 3  ;;  %v3447_v9 = vsel %vm3439_vm13, %v3426_v33, %v3429_v15  ;;  %vm3295_vm0 = vcmp.eq.s32.totalorder %v10040_v37, 0 }
 0x277   :  { %v3444_v55 = vsel %vm3442_vm14, %v3432_v49, 2102212464  ;;  %v3448_v12 = vsel %vm3442_vm14, %v3435_v16, 920167782  ;;  %v8269_v17 = vmin.u32 %v3577_v62, %v10043_v2  ;;  %v3423_v54 = vshrl.u32 %v15264_v28, %v3422_v8 }
 0x278   :  { %vm3440_vm1 = vcmp.lt.s32.totalorder %v10022_v48, 2  ;;  %v3449_v56 = vsel %vm3441_vm15, %v3432_v49, %v3448_v12  ;;  %vm3294_vm2 = vcmp.lt.s32.totalorder %v10040_v37, 2  ;;  %v3451_v14 = vsel %vm3439_vm13, %v3429_v15, %v3432_v49 }
 0x279   :  { %v3450_v58 = vsel %vm3440_vm1, %v3447_v9, %v3449_v56  ;;  %v3452_v4 = vsel %vm3442_vm14, %v3438_v47, 1326507024  ;;  %v10069_v0 = vadd.f32 %v9690_v40, %v1321_v63  ;;  %vm3291_vm3 = vweird.f32 %v9719_v36 }
 0x27a   :  { %v3579_v8 = vclz %v8269_v17  ;;  %v3443_v22 = vsel %vm3439_vm13, %v3423_v54, %v3426_v33  ;;  %v3445_v53 = vsel %vm3441_vm15, %v3429_v15, %v3444_v55  ;;  %v1256_v57 = vmul.f32 %v9680_v44, %v999_v7 }
 0x27b   :  { %v3598_v1 = vsel %vm3513_vm11, %v3597_v45, %v3573_v50  ;;  %v3453_v11 = vsel %vm3441_vm15, %v3435_v16, %v3452_v4  ;;  %v10081_v38 = vmul.u32.u64.low %v3455_v19, %v3450_v58  ;;  %v10082_v18 = vmul.u32.u64.high %v3455_v19, %v3450_v58, %v10081_v38 }
 0x27c   :  { %vm3298_vm4 = vcmp.eq.s32.totalorder %v10040_v37, 2  ;;  %v3567_v21 = vadd.s32 %v9986_v60, %v9993_v3  ;;  %v8270_v33 = vadd.s32 4294967294, %v3579_v8  ;;  %v3454_v10 = vsel %vm3440_vm1, %v3451_v14, %v3453_v11 }
 0x27d   :  { %v8793_v15 = vpop.eup %8792  ;;  %v3446_v49 = vsel %vm3440_vm1, %v3443_v22, %v3445_v53  ;;  %v10091_v50 = vmul.u32.u64.low %v3455_v19, %v3454_v10  ;;  %v10092_v6 = vmul.u32.u64.high %v3455_v19, %v3454_v10, %v10091_v50  ;;  %v3722_v16 = vand.u32 2139095040, %v10069_v0 }
 0x27e   :  { %v8795_v47 = vpop.eup %8794  ;;  %v3299_v63 = vxor.u32 2147483648, %v8793_v15  ;;  %vm8271_vm5 = vcmp.lt.s32.totalorder %v8270_v33, 0  ;;  %v3600_v62 = vsel %vm10047_vm12, 0, %v3598_v1  ;;  %v1320_v60 = vadd.f32 %v1256_v57, %v10018_v43 }
 0x27f   :  { %v3296_v3 = vxor.u32 2147483648, %v8795_v47  ;;  %v3582_v45 = vsel %vm8271_vm5, 0, %v8270_v33  ;;  %v3465_v55 = vadd.s32 1, %v10082_v18  ;;  %v3723_v9 = vshrl.u32 %v3722_v16, 23 }
 0x280   :  { %v3300_v48 = vsel %vm3298_vm4, %v3299_v63, %v8795_v47  ;;  %v3583_v12 = vsub.s32 32, %v3582_v45  ;;  %v3587_v7 = vsub.s32 4294967266, %v3582_v45  ;;  %v3462_v17 = vmul.u32 %v3455_v19, %v3446_v49  ;;  %v1017_v49 = vpop.permute.xlu0 %1016 }
 0x281   :  { %v3297_v54 = vsel %vm3295_vm0, %v8793_v15, %v3296_v3  ;;  %v3584_v56 = vshll.u32 %v10043_v2, %v3582_v45  ;;  %vm3464_vm6 = vc.u32 %v10092_v6, %v10081_v38  ;;  %v8276_v58 = vadd.s32 4294967169, %v3723_v9 }
 0x282   :  { %v3301_v43 = vsel %vm3294_vm2, %v3297_v54, %v3300_v48  ;;  %v3585_v14 = vshrl.u32 %v3567_v21, %v3583_v12  ;;  %v3588_v4 = vadd.s32 127, %v3587_v7  ;;  %v3466_v8 = vsel %vm3464_vm6, %v3465_v55, %v10082_v18 }
 0x283   :  { %v3302_v22 = vsel %vm3291_vm3, nan, %v3301_v43  ;;  %v3467_v53 = vadd.s32 %v3466_v8, %v3462_v17  ;;  %v3719_v19 = vand.u32 2147483647, %v10069_v0  ;;  %v3729_v57 = vadd.s32 1, %v8276_v58 }
 0x284   :  { %8104 = vst [vmem:[#allocation8 + $0x88] sm:$0xff] %v3302_v22  ;;  %v3586_v1 = vor.u32 %v3585_v14, %v3584_v56  ;;  %v3589_v2 = vshll.u32 %v3588_v4, 23  ;;  %v3604_v10 = vadd.s32 3, %v3600_v62  ;;  %v10116_v36 = vadd.f32 %v9690_v40, %v1320_v60 }
 0x285   :  { %v3468_v11 = vadd.s32 536870912, %v3467_v53  ;;  %vm3730_vm7 = vcmp.gt.s32.totalorder %v3729_v57, 0  ;;  %v3726_v18 = vand.u32 8388607, %v3719_v19  ;;  %v10120_v47 = vmul.f32 %v9673_v42, %v9512_v24 }
 0x286   :  { %v3590_v33 = vor.u32 4788187, %v3589_v2  ;;  %v3731_v37 = vsel %vm3730_vm7, %v3729_v57, 0  ;;  %v3593_v16 = vcvt.s32.f32 %v3586_v1  ;;  %v10123_v45 = vand.u32 3, %v3604_v10 }
 0x287   :  { %v10111_v15 = vshrl.u32 %v3468_v11, 30  ;;  %v3733_v21 = vand.u32 31, %v3731_v37  ;;  %v3463_v55 = vadd.s32 %v10081_v38, %v10092_v6  ;;  %v10127_v9 = vmul.f32 %v9680_v44, %v1017_v49 }
 0x288   :  { %v3591_v50 = vand.u32 2147483647, %v3590_v33  ;;  %v3727_v60 = vor.u32 8388608, %v3726_v18  ;;  %v3618_v12 = vand.u32 2139095040, %v10116_v36  ;;  %v3732_v58 = vshrl.u32 %v3731_v37, 5 }
 0x289   :  { %v3470_v63 = vshll.u32 %v10111_v15, 30  ;;  %v3734_v62 = vsub.s32 32, %v3733_v21  ;;  %v3736_v42 = vshll.u32 %v15264_v28, %v3733_v21  ;;  %v3739_v38 = vshll.u32 %v15266_v39, %v3733_v21 }
 0x28a   :  { %v3594_v3 = vmul.f32 %v3593_v16, %v3591_v50  ;;  %v3742_v44 = vshll.u32 %v15267_v41, %v3733_v21  ;;  %v3745_v14 = vshll.u32 %v15268_v35, %v3733_v21  ;;  %v3748_v1 = vshll.u32 %v15269_v13, %v3733_v21 }
 0x28b   :  { %v10129_v40 = vsub.s32 %v3467_v53, %v3470_v63  ;;  %v3737_v48 = vshrl.u32 %v15266_v39, %v3734_v62  ;;  %v3740_v7 = vshrl.u32 %v15267_v41, %v3734_v62  ;;  %v3743_v17 = vshrl.u32 %v15268_v35, %v3734_v62 }
 0x28c   :  { %v3595_v24 = vxor.u32 2147483648, %v3594_v3  ;;  %v3746_v6 = vshrl.u32 %v15269_v13, %v3734_v62  ;;  %v3749_v2 = vshrl.u32 %v15270_v59, %v3734_v62  ;;  %vm3409_vm8 = vcmp.lt.s32.totalorder %v9905_v51, 0 }
 0x28d   :  { %v3473_v54 = vsub.s32 0, %v10129_v40  ;;  %v3738_v43 = vor.u32 %v3737_v48, %v3736_v42  ;;  %v3741_v22 = vor.u32 %v3740_v7, %v3739_v38  ;;  %v3744_v53 = vor.u32 %v3743_v17, %v3742_v44 }
 0x28e   :  { %v3596_v56 = vsel %vm3513_vm11, %v3595_v24, %v3594_v3  ;;  %v3747_v57 = vor.u32 %v3746_v6, %v3745_v14  ;;  %v10150_v33 = vshll.u32 %v3727_v60, 8  ;;  %v3619_v10 = vshrl.u32 %v3618_v12, 23 }
 0x28f   :  { %v3599_v4 = vsel %vm10047_vm12, %v9809_v5, %v3596_v56  ;;  %v8265_v8 = vmin.u32 %v3473_v54, %v10129_v40  ;;  %v3493_v52 = vsub.s32 4, %v10111_v15  ;;  %v3735_v37 = vshrl.u32 %v15264_v28, %v3734_v62 }
 0x290   :  { %8796 = vcosq.f32 %v3599_v4  ;;  %v3750_v18 = vor.u32 %v3749_v2, %v3748_v1  ;;  %vm3751_vm9 = vcmp.lt.s32.totalorder %v3732_v58, 1  ;;  %vm3753_vm10 = vcmp.lt.s32.totalorder %v3732_v58, 3 }
 0x291   :  { %8798 = vsinq.f32 %v3599_v4  ;;  %v3475_v11 = vclz %v8265_v8  ;;  %vm3754_vm11 = vcmp.lt.s32.totalorder %v3732_v58, 4  ;;  %v3759_v21 = vsel %vm3751_vm9, %v3738_v43, %v3741_v22 }
 0x292   :  { %v3756_v50 = vsel %vm3754_vm11, %v3744_v53, 2102212464  ;;  %v3760_v16 = vsel %vm3754_vm11, %v3747_v57, 920167782  ;;  %v3763_v63 = vsel %vm3751_vm9, %v3741_v22, %v3744_v53  ;;  %v3764_v3 = vsel %vm3754_vm11, %v3750_v18, 1326507024 }
 0x293   :  { %v8266_v49 = vadd.s32 4294967294, %v3475_v11  ;;  %vm10158_vm12 = vcmp.le.f32.partialorder %v3407_v31, 0.7853982  ;;  %vm3752_vm14 = vcmp.lt.s32.totalorder %v3732_v58, 2  ;;  %v3761_v62 = vsel %vm3753_vm10, %v3744_v53, %v3760_v16  ;;  %v1010_v58 = vpop.permute.xlu1 %1009 }
 0x294   :  { %v3765_v48 = vsel %vm3753_vm10, %v3747_v57, %v3764_v3  ;;  %vm3606_vm15 = vcmp.lt.s32.totalorder %v10123_v45, 2  ;;  %v3755_v24 = vsel %vm3751_vm9, %v3735_v37, %v3738_v43  ;;  %v3762_v42 = vsel %vm3752_vm14, %v3759_v21, %v3761_v62 }
 0x295   :  { %vm8267_vm13 = vcmp.lt.s32.totalorder %v8266_v49, 0  ;;  %v3766_v7 = vsel %vm3752_vm14, %v3763_v63, %v3765_v48  ;;  %vm3603_vm0 = vweird.f32 %v9809_v5  ;;  %v3757_v54 = vsel %vm3753_vm10, %v3741_v22, %v3756_v50 }
 0x296   :  { %v3478_v12 = vsel %vm8267_vm13, 0, %v8266_v49  ;;  %v8272_v38 = vadd.s32 4294967169, %v3619_v10  ;;  %v10171_v44 = vmul.u32.u64.low %v10150_v33, %v3766_v7  ;;  %v10172_v6 = vmul.u32.u64.high %v10150_v33, %v3766_v7, %v10171_v44 }
 0x297   :  { %v3479_v31 = vsub.s32 32, %v3478_v12  ;;  %v3483_v17 = vsub.s32 4294967266, %v3478_v12  ;;  %v10175_v56 = vmul.u32.u64.low %v10150_v33, %v3762_v42  ;;  %v10176_v14 = vmul.u32.u64.high %v10150_v33, %v3762_v42, %v10175_v56 }
 0x298   :  { %v3480_v43 = vshll.u32 %v10129_v40, %v3478_v12  ;;  %v3625_v53 = vadd.s32 1, %v8272_v38  ;;  %vm3607_vm1 = vcmp.eq.s32.totalorder %v10123_v45, 0  ;;  %vm3610_vm2 = vcmp.eq.s32.totalorder %v10123_v45, 2 }
 0x299   :  { %v3481_v4 = vshrl.u32 %v3463_v55, %v3479_v31  ;;  %v3484_v8 = vadd.s32 127, %v3483_v17  ;;  %v3494_v22 = vsel %vm3409_vm8, %v3493_v52, %v10111_v15  ;;  %v3758_v1 = vsel %vm3752_vm14, %v3755_v24, %v3757_v54  ;;  %v10205_v31 = vld [vmem:[%s15203_s3 + $0x1] ss:$0 sm:$0xff] }
 0x29a   :  { %v8797_v57 = vpop.eup %8796  ;;  %vm3626_vm3 = vcmp.gt.s32.totalorder %v3625_v53, 0  ;;  %vm3776_vm4 = vc.u32 %v10172_v6, %v10175_v56  ;;  %v3777_v55 = vadd.s32 1, %v10176_v14  ;;  %v3615_v18 = vand.u32 2147483647, %v10116_v36 }
 0x29b   :  { %v8799_v2 = vpop.eup %8798  ;;  %v3611_v11 = vxor.u32 2147483648, %v8797_v57  ;;  %v3482_v10 = vor.u32 %v3481_v4, %v3480_v43  ;;  %v3485_v37 = vshll.u32 %v3484_v8, 23  ;;  %v3774_v50 = vmul.u32 %v10150_v33, %v3758_v1 }
 0x29c   :  { %v3608_v40 = vxor.u32 2147483648, %v8799_v2  ;;  %v3627_v15 = vsel %vm3626_vm3, %v3625_v53, 0  ;;  %v3496_v16 = vsel %vm10158_vm12, 0, %v3494_v22  ;;  %v3778_v63 = vsel %vm3776_vm4, %v3777_v55, %v10176_v14 }
 0x29d   :  { %v3612_v49 = vsel %vm3610_vm2, %v3611_v11, %v8799_v2  ;;  %v3486_v21 = vor.u32 4788187, %v3485_v37  ;;  %v3629_v3 = vand.u32 31, %v3627_v15  ;;  %v3489_v12 = vcvt.s32.f32 %v3482_v10 }
 0x29e   :  { %v3609_v52 = vsel %vm3607_vm1, %v8797_v57, %v3608_v40  ;;  %v3779_v24 = vadd.s32 %v3778_v63, %v3774_v50  ;;  %v3622_v42 = vand.u32 8388607, %v3615_v18  ;;  %v10208_v17 = vmul.f32 %v10205_v31, %v1010_v58 }
 0x29f   :  { %v3613_v62 = vsel %vm3606_vm15, %v3609_v52, %v3612_v49  ;;  %v3487_v48 = vand.u32 2147483647, %v3486_v21  ;;  %v3630_v7 = vsub.s32 32, %v3629_v3  ;;  %v3500_v54 = vadd.s32 3, %v3496_v16 }
 0x2a0   :  { %v3614_v33 = vsel %vm3603_vm0, nan, %v3613_v62  ;;  %v3780_v38 = vadd.s32 536870912, %v3779_v24  ;;  %v3628_v44 = vshrl.u32 %v3627_v15, 5  ;;  %v3632_v5 = vshll.u32 %v15264_v28, %v3629_v3 }
 0x2a1   :  { %8107 = vst [vmem:[#allocation8 + $0xa0] sm:$0xff] %v3614_v33  ;;  %v3490_v45 = vmul.f32 %v3489_v12, %v3487_v48  ;;  %v3633_v14 = vshrl.u32 %v15266_v39, %v3630_v7  ;;  %v3636_v43 = vshrl.u32 %v15267_v41, %v3630_v7  ;;  %v3639_v4 = vshrl.u32 %v15268_v35, %v3630_v7 }
 0x2a2   :  { %v3781_v53 = vshrl.u32 %v3780_v38, 30  ;;  %v3635_v57 = vshll.u32 %v15266_v39, %v3629_v3  ;;  %v3642_v22 = vshrl.u32 %v15269_v13, %v3630_v7  ;;  %v3638_v1 = vshll.u32 %v15267_v41, %v3629_v3 }
 0x2a3   :  { %v3491_v8 = vxor.u32 2147483648, %v3490_v45  ;;  %v3641_v2 = vshll.u32 %v15268_v35, %v3629_v3  ;;  %v3644_v11 = vshll.u32 %v15269_v13, %v3629_v3  ;;  %v3645_v10 = vshrl.u32 %v15270_v59, %v3630_v7 }
 0x2a4   :  { %v3782_v40 = vshll.u32 %v3781_v53, 30  ;;  %v3634_v55 = vor.u32 %v3633_v14, %v3632_v5  ;;  %v3637_v49 = vor.u32 %v3636_v43, %v3635_v57  ;;  %v3640_v50 = vor.u32 %v3639_v4, %v3638_v1  ;;  %v10242_v14 = vld [vmem:[%s15203_s3 + $0x2] ss:$0 sm:$0xff] }
 0x2a5   :  { %v3492_v37 = vsel %vm3409_vm8, %v3491_v8, %v3490_v45  ;;  %v3643_v15 = vor.u32 %v3642_v22, %v3641_v2  ;;  %v3646_v58 = vor.u32 %v3645_v10, %v3644_v11  ;;  %v10225_v52 = vand.u32 3, %v3500_v54 }
 0x2a6   :  { %v3495_v21 = vsel %vm10158_vm12, %v9905_v51, %v3492_v37  ;;  %v10227_v16 = vsub.s32 %v3779_v24, %v3782_v40  ;;  %v1323_v63 = vadd.f32 %v10127_v9, %v10120_v47  ;;  %v3805_v3 = vsub.s32 4, %v3781_v53 }
 0x2a7   :  { %8800 = vcosq.f32 %v3495_v21  ;;  %v3623_v62 = vor.u32 8388608, %v3622_v42  ;;  %vm3647_vm5 = vcmp.lt.s32.totalorder %v3628_v44, 1  ;;  %vm3649_vm6 = vcmp.lt.s32.totalorder %v3628_v44, 3 }
 0x2a8   :  { %8802 = vsinq.f32 %v3495_v21  ;;  %v3785_v48 = vsub.s32 0, %v10227_v16  ;;  %vm3650_vm7 = vcmp.lt.s32.totalorder %v3628_v44, 4  ;;  %v3655_v60 = vsel %vm3647_vm5, %v3634_v55, %v3637_v49 }
 0x2a9   :  { %v3631_v12 = vshrl.u32 %v15264_v28, %v3630_v7  ;;  %v3652_v33 = vsel %vm3650_vm7, %v3640_v50, 2102212464  ;;  %v3656_v45 = vsel %vm3650_vm7, %v3643_v15, 920167782  ;;  %v3660_v54 = vsel %vm3650_vm7, %v3646_v58, 1326507024 }
 0x2aa   :  { %v8277_v24 = vmin.u32 %v3785_v48, %v10227_v16  ;;  %vm3648_vm8 = vcmp.lt.s32.totalorder %v3628_v44, 2  ;;  %v3657_v47 = vsel %vm3649_vm6, %v3640_v50, %v3656_v45  ;;  %v3659_v9 = vsel %vm3647_vm5, %v3637_v49, %v3640_v50 }
 0x2ab   :  { %v3658_v42 = vsel %vm3648_vm8, %v3655_v60, %v3657_v47  ;;  %v3661_v38 = vsel %vm3649_vm6, %v3643_v15, %v3660_v54  ;;  %v3663_v5 = vshll.u32 %v3623_v62, 8  ;;  %v10245_v7 = vadd.f32 %v10242_v14, %v1323_v63 }
 0x2ac   :  { %vm3721_vm9 = vcmp.lt.s32.totalorder %v10069_v0, 0  ;;  %v3787_v43 = vclz %v8277_v24  ;;  %v3651_v4 = vsel %vm3647_vm5, %v3631_v12, %v3634_v55  ;;  %v3653_v8 = vsel %vm3649_vm6, %v3637_v49, %v3652_v33 }
 0x2ad   :  { %vm3499_vm10 = vweird.f32 %v9905_v51  ;;  %v3806_v57 = vsel %vm3721_vm9, %v3805_v3, %v3781_v53  ;;  %v3662_v22 = vsel %vm3648_vm8, %v3659_v9, %v3661_v38  ;;  %vm10259_vm11 = vcmp.le.f32.partialorder %v3719_v19, 0.7853982 }
 0x2ae   :  { %v10254_v1 = vmul.u32.u64.low %v3663_v5, %v3658_v42  ;;  %v10255_v2 = vmul.u32.u64.high %v3663_v5, %v3658_v42, %v10254_v1  ;;  %v8278_v10 = vadd.s32 4294967294, %v3787_v43  ;;  %vm3502_vm12 = vcmp.lt.s32.totalorder %v10225_v52, 2 }
 0x2af   :  { %v10263_v37 = vmul.u32.u64.low %v3663_v5, %v3662_v22  ;;  %v10264_v40 = vmul.u32.u64.high %v3663_v5, %v3662_v22, %v10263_v37  ;;  %vm3503_vm13 = vcmp.eq.s32.totalorder %v10225_v52, 0  ;;  %v3654_v53 = vsel %vm3648_vm8, %v3651_v4, %v3653_v8 }
 0x2b0   :  { %v3930_v55 = vand.u32 2139095040, %v10245_v7  ;;  %vm3506_vm14 = vcmp.eq.s32.totalorder %v10225_v52, 2  ;;  %v3775_v19 = vadd.s32 %v10175_v56, %v10172_v6  ;;  %vm8279_vm15 = vcmp.lt.s32.totalorder %v8278_v10, 0 }
 0x2b1   :  { %v8801_v49 = vpop.eup %8800  ;;  %v3808_v21 = vsel %vm10259_vm11, 0, %v3806_v57  ;;  %v3790_v58 = vsel %vm8279_vm15, 0, %v8278_v10  ;;  %v3673_v63 = vadd.s32 1, %v10255_v2  ;;  %v3670_v60 = vmul.u32 %v3663_v5, %v3654_v53  ;;  %v1028_v5 = vpop.permute.xlu0 %1027 }
 0x2b2   :  { %v8803_v50 = vpop.eup %8802  ;;  %v3507_v15 = vxor.u32 2147483648, %v8801_v49  ;;  %v3931_v3 = vshrl.u32 %v3930_v55, 23  ;;  %v3791_v62 = vsub.s32 32, %v3790_v58  ;;  %v3795_v48 = vsub.s32 4294967266, %v3790_v58 }
 0x2b3   :  { %v3504_v44 = vxor.u32 2147483648, %v8803_v50  ;;  %v3792_v33 = vshll.u32 %v10227_v16, %v3790_v58  ;;  %vm3672_vm0 = vc.u32 %v10264_v40, %v10254_v1  ;;  %v3927_v42 = vand.u32 2147483647, %v10245_v7  ;;  %v10287_v16 = vld [vmem:[%s15203_s3] ss:$0 sm:$0xff] }
 0x2b4   :  { %v3508_v12 = vsel %vm3506_vm14, %v3507_v15, %v8803_v50  ;;  %v8284_v6 = vadd.s32 4294967169, %v3931_v3  ;;  %v3793_v45 = vshrl.u32 %v3775_v19, %v3791_v62  ;;  %v3796_v54 = vadd.s32 127, %v3795_v48 }
 0x2b5   :  { %v3505_v56 = vsel %vm3503_vm13, %v8801_v49, %v3504_v44  ;;  %v3674_v24 = vsel %vm3672_vm0, %v3673_v63, %v10255_v2  ;;  %v838_v43 = vmul.f32 %v10287_v16, %v9504_v20  ;;  %v3812_v52 = vadd.s32 3, %v3808_v21 }
 0x2b6   :  { %v3509_v47 = vsel %vm3502_vm12, %v3505_v56, %v3508_v12  ;;  %v3675_v9 = vadd.s32 %v3674_v24, %v3670_v60  ;;  %v3937_v38 = vadd.s32 1, %v8284_v6  ;;  %v3794_v8 = vor.u32 %v3793_v45, %v3792_v33 }
 0x2b7   :  { %v3510_v4 = vsel %vm3499_vm10, nan, %v3509_v47  ;;  %v3797_v57 = vshll.u32 %v3796_v54, 23  ;;  %v1322_v37 = vadd.f32 %v10208_v17, %v838_v43  ;;  %v1261_v53 = vmul.f32 %v10205_v31, %v1028_v5 }
 0x2b8   :  { %8106 = vst [vmem:[#allocation8 + $0x98] sm:$0xff] %v3510_v4  ;;  %v3676_v22 = vadd.s32 536870912, %v3675_v9  ;;  %vm3938_vm1 = vcmp.gt.s32.totalorder %v3937_v38, 0  ;;  %v3934_v49 = vand.u32 8388607, %v3927_v42  ;;  %v841_v51 = vmul.f32 %v10287_v16, %v9518_v26 }
 0x2b9   :  { %v3798_v2 = vor.u32 4788187, %v3797_v57  ;;  %v3939_v10 = vsel %vm3938_vm1, %v3937_v38, 0  ;;  %v3801_v50 = vcvt.s32.f32 %v3794_v8  ;;  %v10299_v15 = vand.u32 3, %v3812_v52 }
 0x2ba   :  { %v3677_v55 = vshrl.u32 %v3676_v22, 30  ;;  %v3941_v20 = vand.u32 31, %v3939_v10  ;;  %vm3617_vm2 = vcmp.lt.s32.totalorder %v10116_v36, 0  ;;  %v3671_v17 = vadd.s32 %v10254_v1, %v10264_v40 }
 0x2bb   :  { %v3799_v19 = vand.u32 2147483647, %v3798_v2  ;;  %v10304_v3 = vadd.f32 %v10242_v14, %v1322_v37  ;;  %v10306_v44 = vadd.f32 %v1261_v53, %v841_v51  ;;  %v3935_v48 = vor.u32 8388608, %v3934_v49 }
 0x2bc   :  { %v3678_v21 = vshll.u32 %v3677_v55, 30  ;;  %v3942_v58 = vsub.s32 32, %v3941_v20  ;;  %v10310_v26 = vshrl.u32 %v3939_v10, 5  ;;  %v3944_v33 = vshll.u32 %v15264_v28, %v3941_v20 }
 0x2bd   :  { %v3802_v63 = vmul.f32 %v3801_v50, %v3799_v19  ;;  %v3947_v40 = vshll.u32 %v15266_v39, %v3941_v20  ;;  %v3950_v45 = vshll.u32 %v15267_v41, %v3941_v20  ;;  %v3701_v47 = vsub.s32 4, %v3677_v55 }
 0x2be   :  { %v10308_v62 = vsub.s32 %v3675_v9, %v3678_v21  ;;  %v3945_v60 = vshrl.u32 %v15266_v39, %v3942_v58  ;;  %v3948_v6 = vshrl.u32 %v15267_v41, %v3942_v58  ;;  %v3951_v56 = vshrl.u32 %v15268_v35, %v3942_v58 }
 0x2bf   :  { %v3803_v12 = vxor.u32 2147483648, %v3802_v63  ;;  %v3954_v54 = vshrl.u32 %v15269_v13, %v3942_v58  ;;  %v3953_v38 = vshll.u32 %v15268_v35, %v3941_v20  ;;  %v3956_v52 = vshll.u32 %v15269_v13, %v3941_v20 }
 0x2c0   :  { %v3681_v1 = vsub.s32 0, %v10308_v62  ;;  %v3946_v9 = vor.u32 %v3945_v60, %v3944_v33  ;;  %v3949_v4 = vor.u32 %v3948_v6, %v3947_v40  ;;  %v3952_v8 = vor.u32 %v3951_v56, %v3950_v45 }
 0x2c1   :  { %v3804_v24 = vsel %vm3721_vm9, %v3803_v12, %v3802_v63  ;;  %v3955_v57 = vor.u32 %v3954_v54, %v3953_v38  ;;  %v3957_v22 = vshrl.u32 %v15270_v59, %v3942_v58  ;;  %vm10331_vm3 = vcmp.le.f32.partialorder %v3615_v18, 0.7853982 }
 0x2c2   :  { %v3807_v5 = vsel %vm10259_vm11, %v10069_v0, %v3804_v24  ;;  %v8273_v43 = vmin.u32 %v3681_v1, %v10308_v62  ;;  %v10335_v11 = vshll.u32 %v3935_v48, 8  ;;  %v3826_v37 = vand.u32 2139095040, %v10304_v3 }
 0x2c3   :  { %8804 = vcosq.f32 %v3807_v5  ;;  %v3702_v53 = vsel %vm3617_vm2, %v3701_v47, %v3677_v55  ;;  %v3943_v49 = vshrl.u32 %v15264_v28, %v3942_v58  ;;  %v3958_v20 = vor.u32 %v3957_v22, %v3956_v52 }
 0x2c4   :  { %8806 = vsinq.f32 %v3807_v5  ;;  %v3683_v10 = vclz %v8273_v43  ;;  %vm3959_vm4 = vcmp.lt.s32.totalorder %v10310_v26, 1  ;;  %vm3961_vm5 = vcmp.lt.s32.totalorder %v10310_v26, 3 }
 0x2c5   :  { %vm3962_vm6 = vcmp.lt.s32.totalorder %v10310_v26, 4  ;;  %v3967_v18 = vsel %vm3959_vm4, %v3946_v9, %v3949_v4  ;;  %v3971_v21 = vsel %vm3959_vm4, %v3949_v4, %v3952_v8  ;;  %vm3815_vm7 = vcmp.eq.s32.totalorder %v10299_v15, 0 }
 0x2c6   :  { %v8274_v51 = vadd.s32 4294967294, %v3683_v10  ;;  %v3964_v19 = vsel %vm3962_vm6, %v3952_v8, 2102212464  ;;  %v3968_v50 = vsel %vm3962_vm6, %v3955_v57, 920167782  ;;  %vm3960_vm9 = vcmp.lt.s32.totalorder %v10310_v26, 2 }
 0x2c7   :  { %v3972_v63 = vsel %vm3962_vm6, %v3958_v20, 1326507024  ;;  %v3969_v55 = vsel %vm3961_vm5, %v3952_v8, %v3968_v50  ;;  %vm3814_vm10 = vcmp.lt.s32.totalorder %v10299_v15, 2  ;;  %v3963_v60 = vsel %vm3959_vm4, %v3943_v49, %v3946_v9 }
 0x2c8   :  { %vm8275_vm8 = vcmp.lt.s32.totalorder %v8274_v51, 0  ;;  %v3973_v58 = vsel %vm3961_vm5, %v3955_v57, %v3972_v63  ;;  %v3970_v12 = vsel %vm3960_vm9, %v3967_v18, %v3969_v55  ;;  %vm3811_vm11 = vweird.f32 %v10069_v0  ;;  %v1021_v55 = vpop.permute.xlu1 %1020 }
 0x2c9   :  { %v3686_v48 = vsel %vm8275_vm8, 0, %v8274_v51  ;;  %v3974_v33 = vsel %vm3960_vm9, %v3971_v21, %v3973_v58  ;;  %v3965_v1 = vsel %vm3961_vm5, %v3949_v4, %v3964_v19  ;;  %v3827_v40 = vshrl.u32 %v3826_v37, 23 }
 0x2ca   :  { %v3687_v6 = vsub.s32 32, %v3686_v48  ;;  %v3691_v56 = vsub.s32 4294967266, %v3686_v48  ;;  %v10365_v45 = vmul.u32.u64.low %v10335_v11, %v3974_v33  ;;  %v10366_v54 = vmul.u32.u64.high %v10335_v11, %v3974_v33, %v10365_v45 }
 0x2cb   :  { %v10369_v24 = vmul.u32.u64.low %v10335_v11, %v3970_v12  ;;  %v10370_v47 = vmul.u32.u64.high %v10335_v11, %v3970_v12, %v10369_v24  ;;  %v3688_v9 = vshll.u32 %v10308_v62, %v3686_v48  ;;  %v8280_v43 = vadd.s32 4294967169, %v3827_v40 }
 0x2cc   :  { %v3689_v38 = vshrl.u32 %v3671_v17, %v3687_v6  ;;  %v3692_v5 = vadd.s32 127, %v3691_v56  ;;  %vm3818_vm12 = vcmp.eq.s32.totalorder %v10299_v15, 2  ;;  %v3704_v4 = vsel %vm10331_vm3, 0, %v3702_v53 }
 0x2cd   :  { %v8805_v8 = vpop.eup %8804  ;;  %v3966_v57 = vsel %vm3960_vm9, %v3963_v60, %v3965_v1  ;;  %v3823_v52 = vand.u32 2147483647, %v10304_v3  ;;  %v3833_v20 = vadd.s32 1, %v8280_v43  ;;  %vm3984_vm13 = vc.u32 %v10366_v54, %v10369_v24 }
 0x2ce   :  { %v8807_v22 = vpop.eup %8806  ;;  %v3819_v10 = vxor.u32 2147483648, %v8805_v8  ;;  %v3690_v37 = vor.u32 %v3689_v38, %v3688_v9  ;;  %v3693_v49 = vshll.u32 %v3692_v5, 23  ;;  %v3985_v17 = vadd.s32 1, %v10370_v47 }
 0x2cf   :  { %v3816_v62 = vxor.u32 2147483648, %v8807_v22  ;;  %v10385_v51 = vadd.f32 %v10242_v14, %v10306_v44  ;;  %v3982_v18 = vmul.u32 %v10335_v11, %v3966_v57  ;;  %vm3834_vm14 = vcmp.gt.s32.totalorder %v3833_v20, 0 }
 0x2d0   :  { %v3820_v53 = vsel %vm3818_vm12, %v3819_v10, %v8807_v22  ;;  %v3694_v26 = vor.u32 4788187, %v3693_v49  ;;  %v3708_v50 = vadd.s32 3, %v3704_v4  ;;  %v3986_v21 = vsel %vm3984_vm13, %v3985_v17, %v10370_v47 }
 0x2d1   :  { %v3817_v19 = vsel %vm3815_vm7, %v8805_v8, %v3816_v62  ;;  %v3835_v63 = vsel %vm3834_vm14, %v3833_v20, 0  ;;  %v3697_v60 = vcvt.s32.f32 %v3690_v37  ;;  %v3987_v44 = vadd.s32 %v3986_v21, %v3982_v18 }
 0x2d2   :  { %v3821_v58 = vsel %vm3814_vm10, %v3817_v19, %v3820_v53  ;;  %v3695_v48 = vand.u32 2147483647, %v3694_v26  ;;  %v10395_v12 = vmul.f32 %v10287_v16, %v9510_v23  ;;  %v3837_v33 = vand.u32 31, %v3835_v63 }
 0x2d3   :  { %v3822_v11 = vsel %vm3811_vm11, nan, %v3821_v58  ;;  %v3988_v56 = vadd.s32 536870912, %v3987_v44  ;;  %v3830_v1 = vand.u32 8388607, %v3823_v52  ;;  %v10402_v15 = vmul.f32 %v10205_v31, %v1021_v55 }
 0x2d4   :  { %8109 = vst [vmem:[#allocation8 + $0xb0] sm:$0xff] %v3822_v11  ;;  %v3698_v6 = vmul.f32 %v3697_v60, %v3695_v48  ;;  %v10404_v40 = vand.u32 3, %v3708_v50  ;;  %v3836_v45 = vshrl.u32 %v3835_v63, 5  ;;  %v3838_v47 = vsub.s32 32, %v3837_v33 }
 0x2d5   :  { %v4138_v23 = vand.u32 2139095040, %v10385_v51  ;;  %v10407_v38 = vshrl.u32 %v3988_v56, 30  ;;  %v3840_v0 = vshll.u32 %v15264_v28, %v3837_v33  ;;  %v3843_v5 = vshll.u32 %v15266_v39, %v3837_v33 }
 0x2d6   :  { %v3699_v9 = vxor.u32 2147483648, %v3698_v6  ;;  %v3841_v43 = vshrl.u32 %v15266_v39, %v3838_v47  ;;  %v3844_v8 = vshrl.u32 %v15267_v41, %v3838_v47  ;;  %v3846_v4 = vshll.u32 %v15267_v41, %v3837_v33 }
 0x2d7   :  { %v3847_v57 = vshrl.u32 %v15268_v35, %v3838_v47  ;;  %v3990_v10 = vshll.u32 %v10407_v38, 30  ;;  %v3849_v37 = vshll.u32 %v15268_v35, %v3837_v33  ;;  %v3850_v49 = vshrl.u32 %v15269_v13, %v3838_v47 }
 0x2d8   :  { %v3700_v22 = vsel %vm3617_vm2, %v3699_v9, %v3698_v6  ;;  %v3842_v62 = vor.u32 %v3841_v43, %v3840_v0  ;;  %v3845_v17 = vor.u32 %v3844_v8, %v3843_v5  ;;  %v3831_v18 = vor.u32 8388608, %v3830_v1 }
 0x2d9   :  { %v3703_v20 = vsel %vm10331_vm3, %v10116_v36, %v3700_v22  ;;  %v3848_v53 = vor.u32 %v3847_v57, %v3846_v4  ;;  %v10423_v26 = vsub.s32 %v3987_v44, %v3990_v10  ;;  %v3851_v19 = vor.u32 %v3850_v49, %v3849_v37 }
 0x2da   :  { %8808 = vcosq.f32 %v3703_v20  ;;  %v3852_v50 = vshll.u32 %v15269_v13, %v3837_v33  ;;  %v3853_v21 = vshrl.u32 %v15270_v59, %v3838_v47  ;;  %v4139_v63 = vshrl.u32 %v4138_v23, 23 }
 0x2db   :  { %8810 = vsinq.f32 %v3703_v20  ;;  %vm3929_vm15 = vcmp.lt.s32.totalorder %v10245_v7, 0  ;;  %v3993_v55 = vsub.s32 0, %v10423_v26  ;;  %vm3855_vm0 = vcmp.lt.s32.totalorder %v3836_v45, 1 }
 0x2dc   :  { %vm3857_vm1 = vcmp.lt.s32.totalorder %v3836_v45, 3  ;;  %vm3858_vm2 = vcmp.lt.s32.totalorder %v3836_v45, 4  ;;  %v3854_v2 = vor.u32 %v3853_v21, %v3852_v50  ;;  %v3863_v48 = vsel %vm3855_vm0, %v3842_v62, %v3845_v17 }
 0x2dd   :  { %v3860_v58 = vsel %vm3858_vm2, %v3848_v53, 2102212464  ;;  %v3864_v60 = vsel %vm3858_vm2, %v3851_v19, 920167782  ;;  %v8285_v44 = vmin.u32 %v3993_v55, %v10423_v26  ;;  %v3839_v11 = vshrl.u32 %v15264_v28, %v3838_v47 }
 0x2de   :  { %vm3856_vm3 = vcmp.lt.s32.totalorder %v3836_v45, 2  ;;  %v3865_v33 = vsel %vm3857_vm1, %v3848_v53, %v3864_v60  ;;  %v3867_v56 = vsel %vm3855_vm0, %v3845_v17, %v3848_v53  ;;  %v3868_v1 = vsel %vm3858_vm2, %v3854_v2, 1326507024 }
 0x2df   :  { %v3866_v6 = vsel %vm3856_vm3, %v3863_v48, %v3865_v33  ;;  %v3871_v23 = vshll.u32 %v3831_v18, 8  ;;  %vm3710_vm4 = vcmp.lt.s32.totalorder %v10404_v40, 2  ;;  %v3995_v9 = vclz %v8285_v44 }
 0x2e0   :  { %v3859_v0 = vsel %vm3855_vm0, %v3839_v11, %v3842_v62  ;;  %v3861_v5 = vsel %vm3857_vm1, %v3845_v17, %v3860_v58  ;;  %vm3707_vm5 = vweird.f32 %v10116_v36  ;;  %vm10441_vm6 = vcmp.le.f32.partialorder %v3927_v42, 0.7853982 }
 0x2e1   :  { %v4013_v43 = vsub.s32 4, %v10407_v38  ;;  %v3869_v8 = vsel %vm3857_vm1, %v3851_v19, %v3868_v1  ;;  %v10447_v4 = vmul.u32.u64.low %v3871_v23, %v3866_v6  ;;  %v10448_v57 = vmul.u32.u64.high %v3871_v23, %v3866_v6, %v10447_v4 }
 0x2e2   :  { %vm3711_vm7 = vcmp.eq.s32.totalorder %v10404_v40, 0  ;;  %v8286_v22 = vadd.s32 4294967294, %v3995_v9  ;;  %v3870_v10 = vsel %vm3856_vm3, %v3867_v56, %v3869_v8  ;;  %v8292_v37 = vadd.s32 4294967169, %v4139_v63 }
 0x2e3   :  { %vm3714_vm8 = vcmp.eq.s32.totalorder %v10404_v40, 2  ;;  %v3862_v42 = vsel %vm3856_vm3, %v3859_v0, %v3861_v5  ;;  %v10455_v49 = vmul.u32.u64.low %v3871_v23, %v3870_v10  ;;  %v10456_v20 = vmul.u32.u64.high %v3871_v23, %v3870_v10, %v10455_v49 }
 0x2e4   :  { %v8809_v62 = vpop.eup %8808  ;;  %v3983_v17 = vadd.s32 %v10369_v24, %v10366_v54  ;;  %vm8287_vm9 = vcmp.lt.s32.totalorder %v8286_v22, 0  ;;  %v4135_v53 = vand.u32 2147483647, %v10385_v51  ;;  %v4145_v18 = vadd.s32 1, %v8292_v37 }
 0x2e5   :  { %v8811_v19 = vpop.eup %8810  ;;  %v3715_v50 = vxor.u32 2147483648, %v8809_v62  ;;  %v3998_v21 = vsel %vm8287_vm9, 0, %v8286_v22  ;;  %v4014_v63 = vsel %vm3929_vm15, %v4013_v43, %v10407_v38  ;;  %v3881_v45 = vadd.s32 1, %v10448_v57 }
 0x2e6   :  { %v3712_v55 = vxor.u32 2147483648, %v8811_v19  ;;  %v3999_v2 = vsub.s32 32, %v3998_v21  ;;  %v4003_v58 = vsub.s32 4294967266, %v3998_v21  ;;  %v3878_v48 = vmul.u32 %v3871_v23, %v3862_v42 }
 0x2e7   :  { %v3716_v54 = vsel %vm3714_vm8, %v3715_v50, %v8811_v19  ;;  %v4000_v24 = vshll.u32 %v10423_v26, %v3998_v21  ;;  %vm3880_vm10 = vc.u32 %v10456_v20, %v10447_v4  ;;  %vm4146_vm11 = vcmp.gt.s32.totalorder %v4145_v18, 0  ;;  %v1039_v26 = vpop.permute.xlu0 %1038 }
 0x2e8   :  { %v3713_v60 = vsel %vm3711_vm7, %v8809_v62, %v3712_v55  ;;  %v4001_v44 = vshrl.u32 %v3983_v17, %v3999_v2  ;;  %v4004_v38 = vadd.s32 127, %v4003_v58  ;;  %v3882_v11 = vsel %vm3880_vm10, %v3881_v45, %v10448_v57 }
 0x2e9   :  { %v3717_v33 = vsel %vm3710_vm4, %v3713_v60, %v3716_v54  ;;  %v3883_v6 = vadd.s32 %v3882_v11, %v3878_v48  ;;  %v4142_v56 = vand.u32 8388607, %v4135_v53  ;;  %v4147_v1 = vsel %vm4146_vm11, %v4145_v18, 0 }
 0x2ea   :  { %v3718_v23 = vsel %vm3707_vm5, nan, %v3717_v33  ;;  %v4002_v9 = vor.u32 %v4001_v44, %v4000_v24  ;;  %v4005_v0 = vshll.u32 %v4004_v38, 23  ;;  %v4016_v5 = vsel %vm10441_vm6, 0, %v4014_v63 }
 0x2eb   :  { %8108 = vst [vmem:[#allocation8 + $0xa8] sm:$0xff] %v3718_v23  ;;  %v3884_v43 = vadd.s32 536870912, %v3883_v6  ;;  %v4149_v8 = vand.u32 31, %v4147_v1  ;;  %v10483_v40 = vmul.f32 %v10287_v16, %v9524_v29  ;;  %v1324_v22 = vadd.f32 %v10402_v15, %v10395_v12 }
 0x2ec   :  { %v4006_v57 = vor.u32 4788187, %v4005_v0  ;;  %v10488_v10 = vmul.f32 %v10205_v31, %v1039_v26  ;;  %v4020_v36 = vadd.s32 3, %v4016_v5  ;;  %v4143_v42 = vor.u32 8388608, %v4142_v56 }
 0x2ed   :  { %v10490_v37 = vshrl.u32 %v3884_v43, 30  ;;  %v4150_v49 = vsub.s32 32, %v4149_v8  ;;  %v4009_v17 = vcvt.s32.f32 %v4002_v9  ;;  %v10492_v18 = vshrl.u32 %v4147_v1, 5 }
 0x2ee   :  { %v4007_v62 = vand.u32 2147483647, %v4006_v57  ;;  %v4152_v19 = vshll.u32 %v15264_v28, %v4149_v8  ;;  %v4155_v12 = vshll.u32 %v15266_v39, %v4149_v8  ;;  %v4158_v15 = vshll.u32 %v15267_v41, %v4149_v8 }
 0x2ef   :  { %v3886_v29 = vshll.u32 %v10490_v37, 30  ;;  %v4153_v50 = vshrl.u32 %v15266_v39, %v4150_v49  ;;  %v4156_v63 = vshrl.u32 %v15267_v41, %v4150_v49  ;;  %v4159_v45 = vshrl.u32 %v15268_v35, %v4150_v49 }
 0x2f0   :  { %v4010_v21 = vmul.f32 %v4009_v17, %v4007_v62  ;;  %v4162_v55 = vshrl.u32 %v15269_v13, %v4150_v49  ;;  %v10502_v2 = vand.u32 3, %v4020_v36  ;;  %v4161_v48 = vshll.u32 %v15268_v35, %v4149_v8 }
 0x2f1   :  { %v10504_v58 = vsub.s32 %v3883_v6, %v3886_v29  ;;  %v4165_v54 = vshrl.u32 %v15270_v59, %v4150_v49  ;;  %v4154_v60 = vor.u32 %v4153_v50, %v4152_v19  ;;  %v4157_v44 = vor.u32 %v4156_v63, %v4155_v12 }
 0x2f2   :  { %v4011_v24 = vxor.u32 2147483648, %v4010_v21  ;;  %v4160_v38 = vor.u32 %v4159_v45, %v4158_v15  ;;  %v4163_v33 = vor.u32 %v4162_v55, %v4161_v48  ;;  %v4164_v56 = vshll.u32 %v15269_v13, %v4149_v8 }
 0x2f3   :  { %v3889_v11 = vsub.s32 0, %v10504_v58  ;;  %v10511_v1 = vadd.f32 %v10242_v14, %v1324_v22  ;;  %vm3825_vm12 = vcmp.lt.s32.totalorder %v10304_v3, 0  ;;  %v4151_v26 = vshrl.u32 %v15264_v28, %v4150_v49 }
 0x2f4   :  { %v4012_v6 = vsel %vm3929_vm15, %v4011_v24, %v4010_v21  ;;  %vm4167_vm13 = vcmp.lt.s32.totalorder %v10492_v18, 1  ;;  %v4183_v23 = vshll.u32 %v4143_v42, 8  ;;  %v4166_v5 = vor.u32 %v4165_v54, %v4164_v56 }
 0x2f5   :  { %v4015_v9 = vsel %vm10441_vm6, %v10245_v7, %v4012_v6  ;;  %v8281_v0 = vmin.u32 %v3889_v11, %v10504_v58  ;;  %vm4170_vm14 = vcmp.lt.s32.totalorder %v10492_v18, 4  ;;  %v4175_v8 = vsel %vm4167_vm13, %v4154_v60, %v4157_v44 }
 0x2f6   :  { %8812 = vcosq.f32 %v4015_v9  ;;  %v4172_v43 = vsel %vm4170_vm14, %v4160_v38, 2102212464  ;;  %v4176_v57 = vsel %vm4170_vm14, %v4163_v33, 920167782  ;;  %vm4168_vm15 = vcmp.lt.s32.totalorder %v10492_v18, 2 }
 0x2f7   :  { %8814 = vsinq.f32 %v4015_v9  ;;  %v3891_v22 = vclz %v8281_v0  ;;  %vm4169_vm0 = vcmp.lt.s32.totalorder %v10492_v18, 3  ;;  %v3909_v47 = vsub.s32 4, %v10490_v37 }
 0x2f8   :  { %v4171_v36 = vsel %vm4167_vm13, %v4151_v26, %v4154_v60  ;;  %v4177_v42 = vsel %vm4169_vm0, %v4160_v38, %v4176_v57  ;;  %v4179_v49 = vsel %vm4167_vm13, %v4157_v44, %v4160_v38  ;;  %v4173_v17 = vsel %vm4169_vm0, %v4157_v44, %v4172_v43 }
 0x2f9   :  { %v8282_v62 = vadd.s32 4294967294, %v3891_v22  ;;  %v4178_v19 = vsel %vm4168_vm15, %v4175_v8, %v4177_v42  ;;  %v4180_v29 = vsel %vm4170_vm14, %v4166_v5, 1326507024  ;;  %v4034_v21 = vand.u32 2139095040, %v10511_v1 }
 0x2fa   :  { %v4181_v50 = vsel %vm4169_vm0, %v4163_v33, %v4180_v29  ;;  %v10540_v12 = vmul.u32.u64.low %v4183_v23, %v4178_v19  ;;  %v10541_v15 = vmul.u32.u64.high %v4183_v23, %v4178_v19, %v10540_v12  ;;  %vm10547_vm1 = vcmp.le.f32.partialorder %v3823_v52, 0.7853982 }
 0x2fb   :  { %v3879_v45 = vadd.s32 %v10447_v4, %v10456_v20  ;;  %vm8283_vm2 = vcmp.lt.s32.totalorder %v8282_v62, 0  ;;  %v4182_v55 = vsel %vm4168_vm15, %v4179_v49, %v4181_v50  ;;  %vm4022_vm3 = vcmp.lt.s32.totalorder %v10502_v2, 2 }
 0x2fc   :  { %v3894_v48 = vsel %vm8283_vm2, 0, %v8282_v62  ;;  %v10556_v54 = vmul.u32.u64.low %v4183_v23, %v4182_v55  ;;  %v10557_v24 = vmul.u32.u64.high %v4183_v23, %v4182_v55, %v10556_v54  ;;  %v4035_v60 = vshrl.u32 %v4034_v21, 23 }
 0x2fd   :  { %v3895_v44 = vsub.s32 32, %v3894_v48  ;;  %v3899_v38 = vsub.s32 4294967266, %v3894_v48  ;;  %v3910_v52 = vsel %vm3825_vm12, %v3909_v47, %v10490_v37  ;;  %v4174_v4 = vsel %vm4168_vm15, %v4171_v36, %v4173_v17 }
 0x2fe   :  { %vm4023_vm4 = vcmp.eq.s32.totalorder %v10502_v2, 0  ;;  %v4193_v20 = vadd.s32 1, %v10541_v15  ;;  %v4031_v11 = vand.u32 2147483647, %v10511_v1  ;;  %v8288_v33 = vadd.s32 4294967169, %v4035_v60 }
 0x2ff   :  { %vm4026_vm5 = vcmp.eq.s32.totalorder %v10502_v2, 2  ;;  %v3896_v56 = vshll.u32 %v10504_v58, %v3894_v48  ;;  %v3897_v6 = vshrl.u32 %v3879_v45, %v3895_v44  ;;  %v3900_v26 = vadd.s32 127, %v3899_v38 }
 0x300   :  { %v8813_v9 = vpop.eup %8812  ;;  %v3912_v37 = vsel %vm10547_vm1, 0, %v3910_v52  ;;  %v4190_v0 = vmul.u32 %v4183_v23, %v4174_v4  ;;  %vm4192_vm6 = vc.u32 %v10557_v24, %v10540_v12  ;;  %v4041_v18 = vadd.s32 1, %v8288_v33 }
 0x301   :  { %v8815_v5 = vpop.eup %8814  ;;  %v4027_v43 = vxor.u32 2147483648, %v8813_v9  ;;  %v3898_v8 = vor.u32 %v3897_v6, %v3896_v56  ;;  %v3901_v57 = vshll.u32 %v3900_v26, 23  ;;  %v4194_v22 = vsel %vm4192_vm6, %v4193_v20, %v10541_v15  ;;  %v1032_v15 = vpop.permute.xlu1 %1031 }
 0x302   :  { %v4024_v47 = vxor.u32 2147483648, %v8815_v5  ;;  %v4195_v36 = vadd.s32 %v4194_v22, %v4190_v0  ;;  %v4038_v58 = vand.u32 8388607, %v4031_v11  ;;  %vm4042_vm7 = vcmp.gt.s32.totalorder %v4041_v18, 0 }
 0x303   :  { %v4028_v42 = vsel %vm4026_vm5, %v4027_v43, %v8815_v5  ;;  %v3902_v23 = vor.u32 4788187, %v3901_v57  ;;  %v3916_v49 = vadd.s32 3, %v3912_v37  ;;  %v4043_v62 = vsel %vm4042_vm7, %v4041_v18, 0 }
 0x304   :  { %v4025_v17 = vsel %vm4023_vm4, %v8813_v9, %v4024_v47  ;;  %v4196_v19 = vadd.s32 536870912, %v4195_v36  ;;  %v4045_v29 = vand.u32 31, %v4043_v62  ;;  %v1327_v50 = vadd.f32 %v10488_v10, %v10483_v40 }
 0x305   :  { %vm4019_vm8 = vweird.f32 %v10245_v7  ;;  %v4029_v21 = vsel %vm4022_vm3, %v4025_v17, %v4028_v42  ;;  %v3903_v45 = vand.u32 2147483647, %v3902_v23  ;;  %v3905_v55 = vcvt.s32.f32 %v3898_v8 }
 0x306   :  { %v4030_v48 = vsel %vm4019_vm8, nan, %v4029_v21  ;;  %v10585_v54 = vshrl.u32 %v4196_v19, 30  ;;  %v4039_v60 = vor.u32 8388608, %v4038_v58  ;;  %v4046_v44 = vsub.s32 32, %v4045_v29 }
 0x307   :  { %8111 = vst [vmem:[#allocation8 + $0xc0] sm:$0xff] %v4030_v48  ;;  %v3906_v38 = vmul.f32 %v3905_v55, %v3903_v45  ;;  %v10587_v52 = vand.u32 3, %v3916_v49  ;;  %v10590_v4 = vmul.f32 %v10205_v31, %v1032_v15  ;;  %v4048_v7 = vshll.u32 %v15264_v28, %v4045_v29 }
 0x308   :  { %v4198_v40 = vshll.u32 %v10585_v54, 30  ;;  %v4049_v10 = vshrl.u32 %v15266_v39, %v4046_v44  ;;  %v10596_v2 = vadd.f32 %v10242_v14, %v1327_v50  ;;  %v4052_v33 = vshrl.u32 %v15267_v41, %v4046_v44 }
 0x309   :  { %v3907_v20 = vxor.u32 2147483648, %v3906_v38  ;;  %v4055_v56 = vshrl.u32 %v15268_v35, %v4046_v44  ;;  %v4058_v6 = vshrl.u32 %v15269_v13, %v4046_v44  ;;  %v4044_v31 = vshrl.u32 %v4043_v62, 5 }
 0x30a   :  { %v10601_v26 = vsub.s32 %v4195_v36, %v4198_v40  ;;  %v4051_v9 = vshll.u32 %v15266_v39, %v4045_v29  ;;  %v10604_v37 = vshll.u32 %v4039_v60, 8  ;;  %v4050_v18 = vor.u32 %v4049_v10, %v4048_v7 }
 0x30b   :  { %v3908_v0 = vsel %vm3825_vm12, %v3907_v20, %v3906_v38  ;;  %v4054_v14 = vshll.u32 %v15267_v41, %v4045_v29  ;;  %v4057_v5 = vshll.u32 %v15268_v35, %v4045_v29  ;;  %v4060_v22 = vshll.u32 %v15269_v13, %v4045_v29 }
 0x30c   :  { %v3911_v43 = vsel %vm10547_vm1, %v10304_v3, %v3908_v0  ;;  %v4201_v8 = vsub.s32 0, %v10601_v26  ;;  %v4053_v57 = vor.u32 %v4052_v33, %v4051_v9  ;;  %v4061_v58 = vshrl.u32 %v15270_v59, %v4046_v44 }
 0x30d   :  { %8816 = vcosq.f32 %v3911_v43  ;;  %v4056_v47 = vor.u32 %v4055_v56, %v4054_v14  ;;  %v4059_v36 = vor.u32 %v4058_v6, %v4057_v5  ;;  %vm4137_vm9 = vcmp.lt.s32.totalorder %v10385_v51, 0 }
 0x30e   :  { %8818 = vsinq.f32 %v3911_v43  ;;  %v8293_v42 = vmin.u32 %v4201_v8, %v10601_v26  ;;  %v4221_v23 = vsub.s32 4, %v10585_v54  ;;  %v4346_v63 = vand.u32 2139095040, %v10596_v2 }
 0x30f   :  { %v4047_v49 = vshrl.u32 %v15264_v28, %v4046_v44  ;;  %v4062_v62 = vor.u32 %v4061_v58, %v4060_v22  ;;  %vm4063_vm10 = vcmp.lt.s32.totalorder %v4044_v31, 1  ;;  %vm4064_vm11 = vcmp.lt.s32.totalorder %v4044_v31, 2 }
 0x310   :  { %v4203_v17 = vclz %v8293_v42  ;;  %vm4065_vm12 = vcmp.lt.s32.totalorder %v4044_v31, 3  ;;  %vm4066_vm13 = vcmp.lt.s32.totalorder %v4044_v31, 4  ;;  %v4071_v19 = vsel %vm4063_vm10, %v4050_v18, %v4053_v57 }
 0x311   :  { %v4068_v29 = vsel %vm4066_vm13, %v4056_v47, 2102212464  ;;  %v4072_v50 = vsel %vm4066_vm13, %v4059_v36, 920167782  ;;  %v4075_v15 = vsel %vm4063_vm10, %v4053_v57, %v4056_v47  ;;  %v4076_v21 = vsel %vm4066_vm13, %v4062_v62, 1326507024 }
 0x312   :  { %vm10623_vm14 = vcmp.le.f32.partialorder %v4135_v53, 0.7853982  ;;  %v8294_v55 = vadd.s32 4294967294, %v4203_v17  ;;  %v4067_v48 = vsel %vm4063_vm10, %v4047_v49, %v4050_v18  ;;  %v4073_v60 = vsel %vm4065_vm12, %v4056_v47, %v4072_v50 }
 0x313   :  { %v4077_v44 = vsel %vm4065_vm12, %v4059_v36, %v4076_v21  ;;  %vm3918_vm15 = vcmp.lt.s32.totalorder %v10587_v52, 2  ;;  %v4069_v38 = vsel %vm4065_vm12, %v4053_v57, %v4068_v29  ;;  %v4074_v40 = vsel %vm4064_vm11, %v4071_v19, %v4073_v60 }
 0x314   :  { %v4078_v7 = vsel %vm4064_vm11, %v4075_v15, %v4077_v44  ;;  %v4347_v10 = vshrl.u32 %v4346_v63, 23  ;;  %vm3915_vm0 = vweird.f32 %v10304_v3  ;;  %vm3919_vm1 = vcmp.eq.s32.totalorder %v10587_v52, 0 }
 0x315   :  { %vm8295_vm2 = vcmp.lt.s32.totalorder %v8294_v55, 0  ;;  %v10633_v53 = vmul.u32.u64.low %v10604_v37, %v4078_v7  ;;  %v10634_v20 = vmul.u32.u64.high %v10604_v37, %v4078_v7, %v10633_v53  ;;  %v4191_v0 = vadd.s32 %v10540_v12, %v10557_v24 }
 0x316   :  { %v4206_v33 = vsel %vm8295_vm2, 0, %v8294_v55  ;;  %v10637_v56 = vmul.u32.u64.low %v10604_v37, %v4074_v40  ;;  %v10638_v6 = vmul.u32.u64.high %v10604_v37, %v4074_v40, %v10637_v56  ;;  %v8300_v9 = vadd.s32 4294967169, %v4347_v10 }
 0x317   :  { %v4207_v18 = vsub.s32 32, %v4206_v33  ;;  %v4211_v14 = vsub.s32 4294967266, %v4206_v33  ;;  %v4070_v5 = vsel %vm4064_vm11, %v4067_v48, %v4069_v38  ;;  %v8817_v43 = vpop.eup %8816  ;;  %vm3922_vm3 = vcmp.eq.s32.totalorder %v10587_v52, 2 }
 0x318   :  { %v4222_v8 = vsel %vm4137_vm9, %v4221_v23, %v10585_v54  ;;  %v4343_v57 = vand.u32 2147483647, %v10596_v2  ;;  %v4353_v22 = vadd.s32 1, %v8300_v9  ;;  %v8819_v47 = vpop.eup %8818  ;;  %v3923_v36 = vxor.u32 2147483648, %v8817_v43 }
 0x319   :  { %v4208_v58 = vshll.u32 %v10601_v26, %v4206_v33  ;;  %v4209_v42 = vshrl.u32 %v4191_v0, %v4207_v18  ;;  %v4212_v12 = vadd.s32 127, %v4211_v14  ;;  %v3920_v24 = vxor.u32 2147483648, %v8819_v47 }
 0x31a   :  { %v4086_v31 = vmul.u32 %v10604_v37, %v4070_v5  ;;  %vm4088_vm4 = vc.u32 %v10634_v20, %v10637_v56  ;;  %v4089_v63 = vadd.s32 1, %v10638_v6  ;;  %v3924_v49 = vsel %vm3922_vm3, %v3923_v36, %v8819_v47  ;;  %v1050_v47 = vpop.permute.xlu0 %1049 }
 0x31b   :  { %v4210_v62 = vor.u32 %v4209_v42, %v4208_v58  ;;  %v4213_v54 = vshll.u32 %v4212_v12, 23  ;;  %vm4354_vm5 = vcmp.gt.s32.totalorder %v4353_v22, 0  ;;  %v3921_v23 = vsel %vm3919_vm1, %v8817_v43, %v3920_v24 }
 0x31c   :  { %v4224_v26 = vsel %vm10623_vm14, 0, %v4222_v8  ;;  %v4090_v17 = vsel %vm4088_vm4, %v4089_v63, %v10638_v6  ;;  %v4355_v19 = vsel %vm4354_vm5, %v4353_v22, 0  ;;  %v3925_v37 = vsel %vm3918_vm15, %v3921_v23, %v3924_v49 }
 0x31d   :  { %v4214_v29 = vor.u32 4788187, %v4213_v54  ;;  %v4091_v50 = vadd.s32 %v4090_v17, %v4086_v31  ;;  %v4350_v15 = vand.u32 8388607, %v4343_v57  ;;  %v842_v21 = vmul.f32 %v10287_v16, %v9516_v25  ;;  %v10696_v54 = vld [vmem:[%s15203_s3 + $0x2] ss:$0 sm:$0xff] }
 0x31e   :  { %v3926_v55 = vsel %vm3915_vm0, nan, %v3925_v37  ;;  %v4357_v48 = vand.u32 31, %v4355_v19  ;;  %v4217_v44 = vcvt.s32.f32 %v4210_v62  ;;  %v10669_v52 = vmul.f32 %v10287_v16, %v9530_v34 }
 0x31f   :  { %8110 = vst [vmem:[#allocation8 + $0xb8] sm:$0xff] %v3926_v55  ;;  %v4215_v60 = vand.u32 2147483647, %v4214_v29  ;;  %v4092_v38 = vadd.s32 536870912, %v4091_v50  ;;  %v4228_v40 = vadd.s32 3, %v4224_v26  ;;  %v1326_v10 = vadd.f32 %v10590_v4, %v842_v21 }
 0x320   :  { %v4358_v7 = vsub.s32 32, %v4357_v48  ;;  %v4351_v25 = vor.u32 8388608, %v4350_v15  ;;  %v4356_v6 = vshrl.u32 %v4355_v19, 5  ;;  %v4360_v3 = vshll.u32 %v15264_v28, %v4357_v48  ;;  %v10704_v26 = vld [vmem:[%s15203_s3 + $0x1] ss:$0 sm:$0xff] }
 0x321   :  { %v4218_v53 = vmul.f32 %v4217_v44, %v4215_v60  ;;  %v10672_v33 = vshrl.u32 %v4092_v38, 30  ;;  %v4366_v16 = vshll.u32 %v15267_v41, %v4357_v48  ;;  %v4363_v5 = vshll.u32 %v15266_v39, %v4357_v48 }
 0x322   :  { %v4361_v9 = vshrl.u32 %v15266_v39, %v4358_v7  ;;  %v4364_v0 = vshrl.u32 %v15267_v41, %v4358_v7  ;;  %v4367_v18 = vshrl.u32 %v15268_v35, %v4358_v7  ;;  %v4370_v4 = vshrl.u32 %v15269_v13, %v4358_v7 }
 0x323   :  { %v4219_v14 = vxor.u32 2147483648, %v4218_v53  ;;  %v4094_v34 = vshll.u32 %v10672_v33, 30  ;;  %v4369_v43 = vshll.u32 %v15268_v35, %v4357_v48  ;;  %v4372_v8 = vshll.u32 %v15269_v13, %v4357_v48 }
 0x324   :  { %v4373_v22 = vshrl.u32 %v15270_v59, %v4358_v7  ;;  %v4362_v42 = vor.u32 %v4361_v9, %v4360_v3  ;;  %v4368_v12 = vor.u32 %v4367_v18, %v4366_v16  ;;  %v4365_v31 = vor.u32 %v4364_v0, %v4363_v5 }
 0x325   :  { %v4220_v36 = vsel %vm4137_vm9, %v4219_v14, %v4218_v53  ;;  %v10687_v58 = vsub.s32 %v4091_v50, %v4094_v34  ;;  %v4371_v63 = vor.u32 %v4370_v4, %v4369_v43  ;;  %v10699_v23 = vadd.f32 %v10696_v54, %v1326_v10 }
 0x326   :  { %v4223_v24 = vsel %vm10623_vm14, %v10385_v51, %v4220_v36  ;;  %v4374_v49 = vor.u32 %v4373_v22, %v4372_v8  ;;  %v1265_v45 = vmul.f32 %v10704_v26, %v1050_v47  ;;  %v10707_v17 = vand.u32 3, %v4228_v40 }
 0x327   :  { %8820 = vcosq.f32 %v4223_v24  ;;  %v4097_v62 = vsub.s32 0, %v10687_v58  ;;  %vm4033_vm6 = vcmp.lt.s32.totalorder %v10511_v1, 0  ;;  %vm4378_vm7 = vcmp.lt.s32.totalorder %v4356_v6, 4 }
 0x328   :  { %8822 = vsinq.f32 %v4223_v24  ;;  %v4391_v19 = vshll.u32 %v4351_v25, 8  ;;  %v4359_v29 = vshrl.u32 %v15264_v28, %v4358_v7  ;;  %vm4375_vm8 = vcmp.lt.s32.totalorder %v4356_v6, 1 }
 0x329   :  { %v8289_v37 = vmin.u32 %v4097_v62, %v10687_v58  ;;  %v4380_v50 = vsel %vm4378_vm7, %v4368_v12, 2102212464  ;;  %v4383_v15 = vsel %vm4375_vm8, %v4362_v42, %v4365_v31  ;;  %v4384_v21 = vsel %vm4378_vm7, %v4371_v63, 920167782 }
 0x32a   :  { %v4387_v55 = vsel %vm4375_vm8, %v4365_v31, %v4368_v12  ;;  %v4388_v48 = vsel %vm4378_vm7, %v4374_v49, 1326507024  ;;  %vm10714_vm9 = vcmp.le.f32.partialorder %v4031_v11, 0.7853982  ;;  %vm4376_vm10 = vcmp.lt.s32.totalorder %v4356_v6, 2 }
 0x32b   :  { %v4099_v44 = vclz %v8289_v37  ;;  %vm4377_vm11 = vcmp.lt.s32.totalorder %v4356_v6, 3  ;;  %v4242_v38 = vand.u32 2139095040, %v10699_v23  ;;  %vm4231_vm12 = vcmp.eq.s32.totalorder %v10707_v17, 0 }
 0x32c   :  { %v4379_v40 = vsel %vm4375_vm8, %v4359_v29, %v4362_v42  ;;  %v4381_v7 = vsel %vm4377_vm11, %v4365_v31, %v4380_v50  ;;  %v4385_v10 = vsel %vm4377_vm11, %v4368_v12, %v4384_v21  ;;  %v4389_v53 = vsel %vm4377_vm11, %v4371_v63, %v4388_v48 }
 0x32d   :  { %vm4230_vm13 = vcmp.lt.s32.totalorder %v10707_v17, 2  ;;  %v8290_v25 = vadd.s32 4294967294, %v4099_v44  ;;  %v4117_v3 = vsub.s32 4, %v10672_v33  ;;  %v4386_v11 = vsel %vm4376_vm10, %v4383_v15, %v4385_v10 }
 0x32e   :  { %v4390_v9 = vsel %vm4376_vm10, %v4387_v55, %v4389_v53  ;;  %v10727_v14 = vmul.u32.u64.low %v4391_v19, %v4386_v11  ;;  %v10728_v34 = vmul.u32.u64.high %v4391_v19, %v4386_v11, %v10727_v14  ;;  %vm4234_vm14 = vcmp.eq.s32.totalorder %v10707_v17, 2 }
 0x32f   :  { %v10724_v0 = vmul.u32.u64.low %v4391_v19, %v4390_v9  ;;  %v10725_v18 = vmul.u32.u64.high %v4391_v19, %v4390_v9, %v10724_v0  ;;  %vm8291_vm15 = vcmp.lt.s32.totalorder %v8290_v25, 0  ;;  %v4382_v16 = vsel %vm4376_vm10, %v4379_v40, %v4381_v7 }
 0x330   :  { %v4243_v4 = vshrl.u32 %v4242_v38, 23  ;;  %v4087_v5 = vadd.s32 %v10637_v56, %v10634_v20  ;;  %v4102_v43 = vsel %vm8291_vm15, 0, %v8290_v25  ;;  %v4239_v8 = vand.u32 2147483647, %v10699_v23  ;;  %v10765_v0 = vld [vmem:[%s15203_s3] ss:$0 sm:$0xff] }
 0x331   :  { %v1329_v22 = vadd.f32 %v1265_v45, %v10669_v52  ;;  %v8821_v47 = vpop.eup %8820  ;;  %v4103_v36 = vsub.s32 32, %v4102_v43  ;;  %v4107_v42 = vsub.s32 4294967266, %v4102_v43  ;;  %v4118_v12 = vsel %vm4033_vm6, %v4117_v3, %v10672_v33 }
 0x332   :  { %v8296_v24 = vadd.s32 4294967169, %v4243_v4  ;;  %v8823_v31 = vpop.eup %8822  ;;  %v4235_v6 = vxor.u32 2147483648, %v8821_v47  ;;  %v4398_v63 = vmul.u32 %v4391_v19, %v4382_v16  ;;  %vm4400_vm0 = vc.u32 %v10725_v18, %v10727_v14 }
 0x333   :  { %v4401_v20 = vadd.s32 1, %v10728_v34  ;;  %v4232_v56 = vxor.u32 2147483648, %v8823_v31  ;;  %v4104_v49 = vshll.u32 %v10687_v58, %v4102_v43  ;;  %v4105_v52 = vshrl.u32 %v4087_v5, %v4103_v36 }
 0x334   :  { %v4108_v62 = vadd.s32 127, %v4107_v42  ;;  %v4236_v45 = vsel %vm4234_vm14, %v4235_v6, %v8823_v31  ;;  %v4120_v33 = vsel %vm10714_vm9, 0, %v4118_v12  ;;  %v4249_v29 = vadd.s32 1, %v8296_v24 }
 0x335   :  { %v4402_v37 = vsel %vm4400_vm0, %v4401_v20, %v10728_v34  ;;  %v4233_v19 = vsel %vm4231_vm12, %v8821_v47, %v4232_v56  ;;  %v4106_v50 = vor.u32 %v4105_v52, %v4104_v49  ;;  %vm4227_vm1 = vweird.f32 %v10385_v51 }
 0x336   :  { %v4109_v15 = vshll.u32 %v4108_v62, 23  ;;  %v4403_v21 = vadd.s32 %v4402_v37, %v4398_v63  ;;  %v4237_v58 = vsel %vm4230_vm13, %v4233_v19, %v4236_v45  ;;  %vm4250_vm2 = vcmp.gt.s32.totalorder %v4249_v29, 0 }
 0x337   :  { %v4238_v55 = vsel %vm4227_vm1, nan, %v4237_v58  ;;  %v4124_v38 = vadd.s32 3, %v4120_v33  ;;  %v4246_v40 = vand.u32 8388607, %v4239_v8  ;;  %v4251_v7 = vsel %vm4250_vm2, %v4249_v29, 0 }
 0x338   :  { %v4110_v48 = vor.u32 4788187, %v4109_v15  ;;  %v4404_v44 = vadd.s32 536870912, %v4403_v21  ;;  %8113 = vst [vmem:[#allocation8 + $0xd0] sm:$0xff] %v4238_v55  ;;  %v10757_v10 = vadd.f32 %v10696_v54, %v1329_v22  ;;  %v4113_v25 = vcvt.s32.f32 %v4106_v50 }
 0x339   :  { %v4253_v51 = vand.u32 31, %v4251_v7  ;;  %v10769_v34 = vmul.f32 %v10765_v0, %v9522_v27  ;;  %v10773_v16 = vmul.f32 %v10765_v0, %v9584_v46  ;;  %v10775_v4 = vand.u32 3, %v4124_v38 }
 0x33a   :  { %v4111_v53 = vand.u32 2147483647, %v4110_v48  ;;  %v10759_v3 = vshrl.u32 %v4404_v44, 30  ;;  %v4247_v5 = vor.u32 8388608, %v4246_v40  ;;  %v4554_v36 = vand.u32 2139095040, %v10757_v10 }
 0x33b   :  { %v4254_v9 = vsub.s32 32, %v4253_v51  ;;  %v4256_v47 = vshll.u32 %v15264_v28, %v4253_v51  ;;  %v4259_v12 = vshll.u32 %v15266_v39, %v4253_v51  ;;  %v4262_v6 = vshll.u32 %v15267_v41, %v4253_v51 }
 0x33c   :  { %v4114_v17 = vmul.f32 %v4113_v25, %v4111_v53  ;;  %v4406_v11 = vshll.u32 %v10759_v3, 30  ;;  %v4252_v56 = vshrl.u32 %v4251_v7, 5  ;;  %v4265_v52 = vshll.u32 %v15268_v35, %v4253_v51 }
 0x33d   :  { %v4257_v42 = vshrl.u32 %v15266_v39, %v4254_v9  ;;  %v4260_v27 = vshrl.u32 %v15267_v41, %v4254_v9  ;;  %v4263_v24 = vshrl.u32 %v15268_v35, %v4254_v9  ;;  %v4266_v63 = vshrl.u32 %v15269_v13, %v4254_v9 }
 0x33e   :  { %v4115_v43 = vxor.u32 2147483648, %v4114_v17  ;;  %v10777_v22 = vsub.s32 %v4403_v21, %v4406_v11  ;;  %v4268_v29 = vshll.u32 %v15269_v13, %v4253_v51  ;;  %v4269_v19 = vshrl.u32 %v15270_v59, %v4254_v9 }
 0x33f   :  { %v4258_v49 = vor.u32 %v4257_v42, %v4256_v47  ;;  %v4261_v45 = vor.u32 %v4260_v27, %v4259_v12  ;;  %v4264_v33 = vor.u32 %v4263_v24, %v4262_v6  ;;  %v4267_v37 = vor.u32 %v4266_v63, %v4265_v52  ;;  %v1043_v42 = vpop.permute.xlu1 %1042 }
 0x340   :  { %v4116_v46 = vsel %vm4033_vm6, %v4115_v43, %v4114_v17  ;;  %v4409_v31 = vsub.s32 0, %v10777_v22  ;;  %v4399_v50 = vadd.s32 %v10727_v14, %v10725_v18  ;;  %v10799_v15 = vshll.u32 %v4247_v5, 8 }
 0x341   :  { %v4119_v20 = vsel %vm10714_vm9, %v10511_v1, %v4116_v46  ;;  %v4551_v21 = vand.u32 2147483647, %v10757_v10  ;;  %v4255_v58 = vshrl.u32 %v15264_v28, %v4254_v9  ;;  %v4270_v55 = vor.u32 %v4269_v19, %v4268_v29 }
 0x342   :  { %8824 = vcosq.f32 %v4119_v20  ;;  %v8301_v62 = vmin.u32 %v4409_v31, %v10777_v22  ;;  %vm4271_vm3 = vcmp.lt.s32.totalorder %v4252_v56, 1  ;;  %v4555_v48 = vshrl.u32 %v4554_v36, 23 }
 0x343   :  { %8826 = vsinq.f32 %v4119_v20  ;;  %vm4130_vm4 = vcmp.eq.s32.totalorder %v10775_v4, 2  ;;  %vm4273_vm5 = vcmp.lt.s32.totalorder %v4252_v56, 3  ;;  %vm4274_vm6 = vcmp.lt.s32.totalorder %v4252_v56, 4 }
 0x344   :  { %v4411_v60 = vclz %v8301_v62  ;;  %v4279_v38 = vsel %vm4271_vm3, %v4258_v49, %v4261_v45  ;;  %vm4127_vm7 = vcmp.eq.s32.totalorder %v10775_v4, 0  ;;  %v4276_v18 = vsel %vm4274_vm6, %v4264_v33, 2102212464 }
 0x345   :  { %v4280_v14 = vsel %vm4274_vm6, %v4267_v37, 920167782  ;;  %v4283_v40 = vsel %vm4271_vm3, %v4261_v45, %v4264_v33  ;;  %v4284_v7 = vsel %vm4274_vm6, %v4270_v55, 1326507024  ;;  %vm4126_vm8 = vcmp.lt.s32.totalorder %v10775_v4, 2 }
 0x346   :  { %v8302_v44 = vadd.s32 4294967294, %v4411_v60  ;;  %vm4345_vm9 = vcmp.lt.s32.totalorder %v10596_v2, 0  ;;  %vm4272_vm11 = vcmp.lt.s32.totalorder %v4252_v56, 2  ;;  %v4281_v53 = vsel %vm4273_vm5, %v4264_v33, %v4280_v14 }
 0x347   :  { %v4285_v25 = vsel %vm4273_vm5, %v4267_v37, %v4284_v7  ;;  %vm4123_vm12 = vweird.f32 %v10511_v1  ;;  %v4275_v17 = vsel %vm4271_vm3, %v4255_v58, %v4258_v49  ;;  %v4282_v11 = vsel %vm4272_vm11, %v4279_v38, %v4281_v53  ;;  %v885_v38 = vpop.permute.xlu0 %884 }
 0x348   :  { %vm8303_vm10 = vcmp.lt.s32.totalorder %v8302_v44, 0  ;;  %v4286_v9 = vsel %vm4272_vm11, %v4283_v40, %v4285_v25  ;;  %v4277_v47 = vsel %vm4273_vm5, %v4261_v45, %v4276_v18  ;;  %v8308_v36 = vadd.s32 4294967169, %v4555_v48 }
 0x349   :  { %v4414_v51 = vsel %vm8303_vm10, 0, %v8302_v44  ;;  %vm10818_vm13 = vcmp.le.f32.partialorder %v4343_v57, 0.7853982  ;;  %v10823_v27 = vmul.u32.u64.low %v10799_v15, %v4286_v9  ;;  %v10824_v24 = vmul.u32.u64.high %v10799_v15, %v4286_v9, %v10823_v27 }
 0x34a   :  { %v4415_v5 = vsub.s32 32, %v4414_v51  ;;  %v4419_v43 = vsub.s32 4294967266, %v4414_v51  ;;  %v10827_v46 = vmul.u32.u64.low %v10799_v15, %v4282_v11  ;;  %v10828_v31 = vmul.u32.u64.high %v10799_v15, %v4282_v11, %v10827_v46 }
 0x34b   :  { %v4416_v63 = vshll.u32 %v10777_v22, %v4414_v51  ;;  %v4561_v52 = vadd.s32 1, %v8308_v36  ;;  %v4429_v45 = vsub.s32 4, %v10759_v3  ;;  %v4278_v33 = vsel %vm4272_vm11, %v4275_v17, %v4277_v47 }
 0x34c   :  { %v8825_v6 = vpop.eup %8824  ;;  %v4417_v20 = vshrl.u32 %v4399_v50, %v4415_v5  ;;  %v4420_v49 = vadd.s32 127, %v4419_v43  ;;  %v1264_v37 = vmul.f32 %v10704_v26, %v1043_v42  ;;  %vm4296_vm15 = vc.u32 %v10824_v24, %v10827_v46 }
 0x34d   :  { %v8827_v62 = vpop.eup %8826  ;;  %v4131_v57 = vxor.u32 2147483648, %v8825_v6  ;;  %vm4562_vm14 = vcmp.gt.s32.totalorder %v4561_v52, 0  ;;  %v4297_v22 = vadd.s32 1, %v10828_v31  ;;  %v10842_v50 = vand.u32 8388607, %v4551_v21 }
 0x34e   :  { %v4128_v29 = vxor.u32 2147483648, %v8827_v62  ;;  %v4418_v19 = vor.u32 %v4417_v20, %v4416_v63  ;;  %v4421_v60 = vshll.u32 %v4420_v49, 23  ;;  %v4294_v48 = vmul.u32 %v10799_v15, %v4278_v33 }
 0x34f   :  { %v4132_v58 = vsel %vm4130_vm4, %v4131_v57, %v8827_v62  ;;  %v4563_v44 = vsel %vm4562_vm14, %v4561_v52, 0  ;;  %v4430_v14 = vsel %vm4345_vm9, %v4429_v45, %v10759_v3  ;;  %v4298_v40 = vsel %vm4296_vm15, %v4297_v22, %v10828_v31 }
 0x350   :  { %v4129_v56 = vsel %vm4127_vm7, %v8825_v6, %v4128_v29  ;;  %v4422_v55 = vor.u32 4788187, %v4421_v60  ;;  %v4565_v7 = vand.u32 31, %v4563_v44  ;;  %v4425_v51 = vcvt.s32.f32 %v4418_v19 }
 0x351   :  { %v4133_v18 = vsel %vm4126_vm8, %v4129_v56, %v4132_v58  ;;  %v4299_v17 = vadd.s32 %v4298_v40, %v4294_v48  ;;  %v4559_v15 = vor.u32 8388608, %v10842_v50  ;;  %v1328_v4 = vadd.f32 %v1264_v37, %v10769_v34 }
 0x352   :  { %v4134_v53 = vsel %vm4123_vm12, nan, %v4133_v18  ;;  %v4423_v25 = vand.u32 2147483647, %v4422_v55  ;;  %v4566_v11 = vsub.s32 32, %v4565_v7  ;;  %v10858_v9 = vmul.f32 %v10704_v26, %v885_v38 }
 0x353   :  { %8112 = vst [vmem:[#allocation8 + $0xc8] sm:$0xff] %v4134_v53  ;;  %v4432_v3 = vsel %vm10818_vm13, 0, %v4430_v14  ;;  %v4300_v43 = vadd.s32 536870912, %v4299_v17  ;;  %v4568_v1 = vshll.u32 %v15264_v28, %v4565_v7  ;;  %v4571_v36 = vshll.u32 %v15266_v39, %v4565_v7 }
 0x354   :  { %v4426_v5 = vmul.f32 %v4425_v51, %v4423_v25  ;;  %v4569_v47 = vshrl.u32 %v15266_v39, %v4566_v11  ;;  %v4572_v42 = vshrl.u32 %v15267_v41, %v4566_v11  ;;  %v4575_v27 = vshrl.u32 %v15268_v35, %v4566_v11 }
 0x355   :  { %v4301_v34 = vshrl.u32 %v4300_v43, 30  ;;  %v4578_v6 = vshrl.u32 %v15269_v13, %v4566_v11  ;;  %v4581_v63 = vshrl.u32 %v15270_v59, %v4566_v11  ;;  %v4564_v20 = vshrl.u32 %v4563_v44, 5 }
 0x356   :  { %v4427_v31 = vxor.u32 2147483648, %v4426_v5  ;;  %v4574_v49 = vshll.u32 %v15267_v41, %v4565_v7  ;;  %v4577_v52 = vshll.u32 %v15268_v35, %v4565_v7  ;;  %v4580_v62 = vshll.u32 %v15269_v13, %v4565_v7 }
 0x357   :  { %v4302_v45 = vshll.u32 %v4301_v34, 30  ;;  %v4570_v33 = vor.u32 %v4569_v47, %v4568_v1  ;;  %v4573_v37 = vor.u32 %v4572_v42, %v4571_v36  ;;  %v4436_v22 = vadd.s32 3, %v4432_v3 }
 0x358   :  { %v4428_v57 = vsel %vm4345_vm9, %v4427_v31, %v4426_v5  ;;  %v4576_v19 = vor.u32 %v4575_v27, %v4574_v49  ;;  %v4579_v60 = vor.u32 %v4578_v6, %v4577_v52  ;;  %v4582_v58 = vor.u32 %v4581_v63, %v4580_v62 }
 0x359   :  { %v4431_v29 = vsel %vm10818_vm13, %v10596_v2, %v4428_v57  ;;  %v10877_v50 = vsub.s32 %v4299_v17, %v4302_v45  ;;  %v10880_v56 = vadd.f32 %v10696_v54, %v1328_v4  ;;  %v4325_v55 = vsub.s32 4, %v4301_v34 }
 0x35a   :  { %8828 = vcosq.f32 %v4431_v29  ;;  %v4567_v48 = vshrl.u32 %v15264_v28, %v4566_v11  ;;  %vm4583_vm0 = vcmp.lt.s32.totalorder %v4564_v20, 1  ;;  %vm4585_vm1 = vcmp.lt.s32.totalorder %v4564_v20, 3 }
 0x35b   :  { %8830 = vsinq.f32 %v4431_v29  ;;  %v4305_v44 = vsub.s32 0, %v10877_v50  ;;  %vm4586_vm2 = vcmp.lt.s32.totalorder %v4564_v20, 4  ;;  %v4591_v12 = vsel %vm4583_vm0, %v4570_v33, %v4573_v37 }
 0x35c   :  { %v4588_v38 = vsel %vm4586_vm2, %v4576_v19, 2102212464  ;;  %v4592_v18 = vsel %vm4586_vm2, %v4579_v60, 920167782  ;;  %v4595_v14 = vsel %vm4583_vm0, %v4573_v37, %v4576_v19  ;;  %v4596_v40 = vsel %vm4586_vm2, %v4582_v58, 1326507024 }
 0x35d   :  { %v8297_v7 = vmin.u32 %v4305_v44, %v10877_v50  ;;  %vm4584_vm3 = vcmp.lt.s32.totalorder %v4564_v20, 2  ;;  %v4593_v53 = vsel %vm4585_vm1, %v4576_v19, %v4592_v18  ;;  %v4597_v25 = vsel %vm4585_vm1, %v4579_v60, %v4596_v40 }
 0x35e   :  { %v4437_v51 = vand.u32 3, %v4436_v22  ;;  %v4594_v17 = vsel %vm4584_vm3, %v4591_v12, %v4593_v53  ;;  %v4598_v11 = vsel %vm4584_vm3, %v4595_v14, %v4597_v25  ;;  %v4599_v4 = vshll.u32 %v4559_v15, 8 }
 0x35f   :  { %vm4241_vm4 = vcmp.lt.s32.totalorder %v10699_v23, 0  ;;  %v4307_v5 = vclz %v8297_v7  ;;  %v4587_v3 = vsel %vm4583_vm0, %v4567_v48, %v4570_v33  ;;  %v4589_v43 = vsel %vm4585_vm1, %v4573_v37, %v4588_v38 }
 0x360   :  { %v10894_v1 = vmul.u32.u64.low %v4599_v4, %v4598_v11  ;;  %v10895_v47 = vmul.u32.u64.high %v4599_v4, %v4598_v11, %v10894_v1  ;;  %v10897_v36 = vmul.u32.u64.low %v4599_v4, %v4594_v17  ;;  %v10898_v42 = vmul.u32.u64.high %v4599_v4, %v4594_v17, %v10897_v36 }
 0x361   :  { %vm10903_vm5 = vcmp.le.f32.partialorder %v4239_v8, 0.7853982  ;;  %v8298_v15 = vadd.s32 4294967294, %v4307_v5  ;;  %v4326_v31 = vsel %vm4241_vm4, %v4325_v55, %v4301_v34  ;;  %v4450_v6 = vand.u32 2139095040, %v10880_v56 }
 0x362   :  { %vm4438_vm6 = vcmp.lt.s32.totalorder %v4437_v51, 2  ;;  %vm4439_vm7 = vcmp.eq.s32.totalorder %v4437_v51, 0  ;;  %vm4442_vm8 = vcmp.eq.s32.totalorder %v4437_v51, 2  ;;  %v1299_v63 = vadd.f32 %v10858_v9, %v10773_v16  ;;  %v1054_v51 = vpop.permute.xlu1 %1053 }
 0x363   :  { %v4295_v52 = vadd.s32 %v10827_v46, %v10824_v24  ;;  %vm8299_vm9 = vcmp.lt.s32.totalorder %v8298_v15, 0  ;;  %v4590_v8 = vsel %vm4584_vm3, %v4587_v3, %v4589_v43  ;;  %v4451_v62 = vshrl.u32 %v4450_v6, 23 }
 0x364   :  { %v8829_v49 = vpop.eup %8828  ;;  %v4310_v33 = vsel %vm8299_vm9, 0, %v8298_v15  ;;  %v4328_v34 = vsel %vm10903_vm5, 0, %v4326_v31  ;;  %v4447_v37 = vand.u32 2147483647, %v10880_v56  ;;  %vm4608_vm10 = vc.u32 %v10895_v47, %v10897_v36 }
 0x365   :  { %v8831_v57 = vpop.eup %8830  ;;  %v4443_v45 = vxor.u32 2147483648, %v8829_v49  ;;  %v4311_v19 = vsub.s32 32, %v4310_v33  ;;  %v4315_v60 = vsub.s32 4294967266, %v4310_v33  ;;  %v4606_v24 = vmul.u32 %v4599_v4, %v4590_v8 }
 0x366   :  { %v4440_v29 = vxor.u32 2147483648, %v8831_v57  ;;  %v4609_v46 = vadd.s32 1, %v10898_v42  ;;  %v8304_v9 = vadd.s32 4294967169, %v4451_v62  ;;  %v4312_v58 = vshll.u32 %v10877_v50, %v4310_v33 }
 0x367   :  { %v4444_v16 = vsel %vm4442_vm8, %v4443_v45, %v8831_v57  ;;  %v4313_v22 = vshrl.u32 %v4295_v52, %v4311_v19  ;;  %v4316_v55 = vadd.s32 127, %v4315_v60  ;;  %vm4435_vm11 = vweird.f32 %v10596_v2 }
 0x368   :  { %v4441_v20 = vsel %vm4439_vm7, %v8829_v49, %v4440_v29  ;;  %v4610_v44 = vsel %vm4608_vm10, %v4609_v46, %v10898_v42  ;;  %v4457_v12 = vadd.s32 1, %v8304_v9  ;;  %v4332_v7 = vadd.s32 3, %v4328_v34 }
 0x369   :  { %v4445_v48 = vsel %vm4438_vm6, %v4441_v20, %v4444_v16  ;;  %v4314_v18 = vor.u32 %v4313_v22, %v4312_v58  ;;  %v4317_v14 = vshll.u32 %v4316_v55, 23  ;;  %v4611_v40 = vadd.s32 %v4610_v44, %v4606_v24 }
 0x36a   :  { %v4446_v38 = vsel %vm4435_vm11, nan, %v4445_v48  ;;  %v4454_v53 = vand.u32 8388607, %v4447_v37  ;;  %vm4458_vm12 = vcmp.gt.s32.totalorder %v4457_v12, 0  ;;  %v10930_v2 = vadd.f32 %v10696_v54, %v1299_v63 }
 0x36b   :  { %8115 = vst [vmem:[#allocation8 + $0xe0] sm:$0xff] %v4446_v38  ;;  %v4318_v50 = vor.u32 4788187, %v4317_v14  ;;  %v4612_v25 = vadd.s32 536870912, %v4611_v40  ;;  %v4459_v17 = vsel %vm4458_vm12, %v4457_v12, 0  ;;  %v10934_v4 = vmul.f32 %v10765_v0, %v9528_v32 }
 0x36c   :  { %v4461_v11 = vand.u32 31, %v4459_v17  ;;  %v4321_v3 = vcvt.s32.f32 %v4314_v18  ;;  %v10938_v1 = vand.u32 3, %v4332_v7  ;;  %v4455_v42 = vor.u32 8388608, %v4454_v53 }
 0x36d   :  { %v4319_v5 = vand.u32 2147483647, %v4318_v50  ;;  %v10936_v43 = vshrl.u32 %v4612_v25, 30  ;;  %v10941_v31 = vmul.f32 %v10704_v26, %v1054_v51  ;;  %v1434_v52 = vand.u32 2139095040, %v10930_v2 }
 0x36e   :  { %v4462_v15 = vsub.s32 32, %v4461_v11  ;;  %v4464_v49 = vshll.u32 %v15264_v28, %v4461_v11  ;;  %v4467_v8 = vshll.u32 %v15266_v39, %v4461_v11  ;;  %v4470_v34 = vshll.u32 %v15267_v41, %v4461_v11 }
 0x36f   :  { %v4322_v6 = vmul.f32 %v4321_v3, %v4319_v5  ;;  %v4614_v63 = vshll.u32 %v10936_v43, 30  ;;  %v4607_v19 = vadd.s32 %v10897_v36, %v10895_v47  ;;  %v4460_v60 = vshrl.u32 %v4459_v17, 5 }
 0x370   :  { %v4465_v32 = vshrl.u32 %v15266_v39, %v4462_v15  ;;  %v4468_v62 = vshrl.u32 %v15267_v41, %v4462_v15  ;;  %v4471_v57 = vshrl.u32 %v15268_v35, %v4462_v15  ;;  %v4474_v29 = vshrl.u32 %v15269_v13, %v4462_v15 }
 0x371   :  { %v4323_v45 = vxor.u32 2147483648, %v4322_v6  ;;  %v10950_v33 = vsub.s32 %v4611_v40, %v4614_v63  ;;  %v4473_v24 = vshll.u32 %v15268_v35, %v4461_v11  ;;  %vm4553_vm13 = vcmp.lt.s32.totalorder %v10757_v10, 0 }
 0x372   :  { %v4466_v16 = vor.u32 %v4465_v32, %v4464_v49  ;;  %v4469_v20 = vor.u32 %v4468_v62, %v4467_v8  ;;  %v4472_v58 = vor.u32 %v4471_v57, %v4470_v34  ;;  %v4476_v47 = vshll.u32 %v15269_v13, %v4461_v11 }
 0x373   :  { %v4324_v46 = vsel %vm4241_vm4, %v4323_v45, %v4322_v6  ;;  %v4617_v9 = vsub.s32 0, %v10950_v33  ;;  %v4475_v55 = vor.u32 %v4474_v29, %v4473_v24  ;;  %v4477_v36 = vshrl.u32 %v15270_v59, %v4462_v15 }
 0x374   :  { %v4327_v22 = vsel %vm10903_vm5, %v10699_v23, %v4324_v46  ;;  %v10967_v44 = vshll.u32 %v4455_v42, 8  ;;  %v1435_v12 = vshrl.u32 %v1434_v52, 23  ;;  %v4637_v38 = vsub.s32 4, %v10936_v43 }
 0x375   :  { %8832 = vcosq.f32 %v4327_v22  ;;  %v8309_v48 = vmin.u32 %v4617_v9, %v10950_v33  ;;  %v4463_v18 = vshrl.u32 %v15264_v28, %v4462_v15  ;;  %v4478_v27 = vor.u32 %v4477_v36, %v4476_v47 }
 0x376   :  { %8834 = vsinq.f32 %v4327_v22  ;;  %vm4479_vm14 = vcmp.lt.s32.totalorder %v4460_v60, 1  ;;  %vm4480_vm15 = vcmp.lt.s32.totalorder %v4460_v60, 2  ;;  %vm4482_vm0 = vcmp.lt.s32.totalorder %v4460_v60, 4 }
 0x377   :  { %v4619_v14 = vclz %v8309_v48  ;;  %vm10973_vm1 = vcmp.le.f32.partialorder %v4551_v21, 0.7853982  ;;  %vm4481_vm2 = vcmp.lt.s32.totalorder %v4460_v60, 3  ;;  %v4484_v7 = vsel %vm4482_vm0, %v4472_v58, 2102212464 }
 0x378   :  { %v4487_v53 = vsel %vm4479_vm14, %v4466_v16, %v4469_v20  ;;  %v4488_v50 = vsel %vm4482_vm0, %v4475_v55, 920167782  ;;  %v4483_v17 = vsel %vm4479_vm14, %v4463_v18, %v4466_v16  ;;  %v4491_v11 = vsel %vm4479_vm14, %v4469_v20, %v4472_v58 }
 0x379   :  { %v8310_v25 = vadd.s32 4294967294, %v4619_v14  ;;  %v4489_v51 = vsel %vm4481_vm2, %v4472_v58, %v4488_v50  ;;  %vm4335_vm3 = vcmp.eq.s32.totalorder %v10938_v1, 0  ;;  %v4485_v5 = vsel %vm4481_vm2, %v4469_v20, %v4484_v7 }
 0x37a   :  { %v4490_v3 = vsel %vm4480_vm15, %v4487_v53, %v4489_v51  ;;  %v4492_v42 = vsel %vm4482_vm0, %v4478_v27, 1326507024  ;;  %v8188_v15 = vadd.s32 4294967169, %v1435_v12  ;;  %vm4334_vm4 = vcmp.lt.s32.totalorder %v10938_v1, 2 }
 0x37b   :  { %vm8311_vm5 = vcmp.lt.s32.totalorder %v8310_v25, 0  ;;  %v4493_v21 = vsel %vm4481_vm2, %v4475_v55, %v4492_v42  ;;  %v10981_v6 = vmul.u32.u64.low %v10967_v44, %v4490_v3  ;;  %v10982_v63 = vmul.u32.u64.high %v10967_v44, %v4490_v3, %v10981_v6 }
 0x37c   :  { %vm4331_vm6 = vweird.f32 %v10699_v23  ;;  %v4622_v49 = vsel %vm8311_vm5, 0, %v8310_v25  ;;  %v4494_v52 = vsel %vm4480_vm15, %v4491_v11, %v4493_v21  ;;  %v1431_v32 = vand.u32 2147483647, %v10930_v2 }
 0x37d   :  { %v1441_v8 = vadd.s32 1, %v8188_v15  ;;  %v4623_v62 = vsub.s32 32, %v4622_v49  ;;  %v4627_v57 = vsub.s32 4294967266, %v4622_v49  ;;  %v4638_v45 = vsel %vm4553_vm13, %v4637_v38, %v10936_v43 }
 0x37e   :  { %v4486_v34 = vsel %vm4480_vm15, %v4483_v17, %v4485_v5  ;;  %v4624_v29 = vshll.u32 %v10950_v33, %v4622_v49  ;;  %v10994_v16 = vmul.u32.u64.low %v10967_v44, %v4494_v52  ;;  %v10995_v24 = vmul.u32.u64.high %v10967_v44, %v4494_v52, %v10994_v16 }
 0x37f   :  { %vm1442_vm7 = vcmp.gt.s32.totalorder %v1441_v8, 0  ;;  %v8833_v46 = vpop.eup %8832  ;;  %v4625_v9 = vshrl.u32 %v4607_v19, %v4623_v62  ;;  %v4628_v20 = vadd.s32 127, %v4627_v57  ;;  %v4505_v58 = vadd.s32 1, %v10982_v63 }
 0x380   :  { %v1443_v22 = vsel %vm1442_vm7, %v1441_v8, 0  ;;  %v8835_v55 = vpop.eup %8834  ;;  %vm4338_vm8 = vcmp.eq.s32.totalorder %v10938_v1, 2  ;;  %v4339_v47 = vxor.u32 2147483648, %v8833_v46  ;;  %v11001_v43 = vand.u32 8388607, %v1431_v32 }
 0x381   :  { %v1445_v33 = vand.u32 31, %v1443_v22  ;;  %v4336_v60 = vxor.u32 2147483648, %v8835_v55  ;;  %v4626_v36 = vor.u32 %v4625_v9, %v4624_v29  ;;  %v4629_v48 = vshll.u32 %v4628_v20, 23 }
 0x382   :  { %v4640_v12 = vsel %vm10973_vm1, 0, %v4638_v45  ;;  %v4340_v19 = vsel %vm4338_vm8, %v4339_v47, %v8835_v55  ;;  %v4502_v38 = vmul.u32 %v10967_v44, %v4486_v34  ;;  %vm4504_vm9 = vc.u32 %v10995_v24, %v10981_v6 }
 0x383   :  { %v1446_v18 = vsub.s32 32, %v1445_v33  ;;  %v4337_v27 = vsel %vm4335_vm3, %v8833_v46, %v4336_v60  ;;  %v4630_v14 = vor.u32 4788187, %v4629_v48  ;;  %v4506_v7 = vsel %vm4504_vm9, %v4505_v58, %v10982_v63 }
 0x384   :  { %v1330_v53 = vadd.f32 %v10941_v31, %v10934_v4  ;;  %v4341_v50 = vsel %vm4334_vm4, %v4337_v27, %v4340_v19  ;;  %v4644_v25 = vadd.s32 3, %v4640_v12  ;;  %v4507_v17 = vadd.s32 %v4506_v7, %v4502_v38 }
 0x385   :  { %v1439_v44 = vor.u32 8388608, %v11001_v43  ;;  %v4342_v51 = vsel %vm4331_vm6, nan, %v4341_v50  ;;  %v4631_v11 = vand.u32 2147483647, %v4630_v14  ;;  %v4633_v5 = vcvt.s32.f32 %v4626_v36 }
 0x386   :  { %v1449_v3 = vshrl.u32 %v15266_v39, %v1446_v18  ;;  %8114 = vst [vmem:[#allocation8 + $0xd8] sm:$0xff] %v4342_v51  ;;  %v4508_v42 = vadd.s32 536870912, %v4507_v17  ;;  %v1452_v15 = vshrl.u32 %v15267_v41, %v1446_v18  ;;  %v1454_v4 = vshll.u32 %v15267_v41, %v1445_v33 }
 0x387   :  { %v1455_v1 = vshrl.u32 %v15268_v35, %v1446_v18  ;;  %v4634_v31 = vmul.f32 %v4633_v5, %v4631_v11  ;;  %v1444_v21 = vshrl.u32 %v1443_v22, 5  ;;  %v1458_v63 = vshrl.u32 %v15269_v13, %v1446_v18  ;;  %v896_v11 = vpop.permute.xlu0 %895 }
 0x388   :  { %v11024_v49 = vadd.f32 %v10696_v54, %v1330_v53  ;;  %v4509_v23 = vshrl.u32 %v4508_v42, 30  ;;  %v1448_v52 = vshll.u32 %v15264_v28, %v1445_v33  ;;  %v1451_v8 = vshll.u32 %v15266_v39, %v1445_v33 }
 0x389   :  { %v1456_v62 = vor.u32 %v1455_v1, %v1454_v4  ;;  %v4635_v57 = vxor.u32 2147483648, %v4634_v31  ;;  %vm4449_vm10 = vcmp.lt.s32.totalorder %v10880_v56, 0  ;;  %v1457_v45 = vshll.u32 %v15268_v35, %v1445_v33 }
 0x38a   :  { %v1460_v34 = vshll.u32 %v15269_v13, %v1445_v33  ;;  %v1461_v29 = vshrl.u32 %v15270_v59, %v1446_v18  ;;  %v11032_v16 = vand.u32 3, %v4644_v25  ;;  %v4510_v46 = vshll.u32 %v4509_v23, 30 }
 0x38b   :  { %v1450_v9 = vor.u32 %v1449_v3, %v1448_v52  ;;  %v1453_v20 = vor.u32 %v1452_v15, %v1451_v8  ;;  %v4636_v58 = vsel %vm4553_vm13, %v4635_v57, %v4634_v31  ;;  %v1459_v22 = vor.u32 %v1458_v63, %v1457_v45 }
 0x38c   :  { %v1462_v55 = vor.u32 %v1461_v29, %v1460_v34  ;;  %vm1466_vm11 = vcmp.lt.s32.totalorder %v1444_v21, 4  ;;  %v4639_v47 = vsel %vm10973_vm1, %v10757_v10, %v4636_v58  ;;  %v11039_v43 = vsub.s32 %v4507_v17, %v4510_v46 }
 0x38d   :  { %v1447_v33 = vshrl.u32 %v15264_v28, %v1446_v18  ;;  %v1468_v60 = vsel %vm1466_vm11, %v1456_v62, 2102212464  ;;  %8836 = vcosq.f32 %v4639_v47  ;;  %v4533_v36 = vsub.s32 4, %v4509_v23 }
 0x38e   :  { %vm1463_vm12 = vcmp.lt.s32.totalorder %v1444_v21, 1  ;;  %vm1465_vm14 = vcmp.lt.s32.totalorder %v1444_v21, 3  ;;  %8838 = vsinq.f32 %v4639_v47  ;;  %v4513_v48 = vsub.s32 0, %v11039_v43 }
 0x38f   :  { %v1467_v12 = vsel %vm1463_vm12, %v1447_v33, %v1450_v9  ;;  %v1471_v19 = vsel %vm1463_vm12, %v1450_v9, %v1453_v20  ;;  %v1469_v38 = vsel %vm1465_vm14, %v1453_v20, %v1468_v60  ;;  %v1472_v27 = vsel %vm1466_vm11, %v1459_v22, 920167782 }
 0x390   :  { %v1475_v40 = vsel %vm1463_vm12, %v1453_v20, %v1456_v62  ;;  %v1476_v14 = vsel %vm1466_vm11, %v1462_v55, 1326507024  ;;  %v8305_v7 = vmin.u32 %v4513_v48, %v11039_v43  ;;  %vm1464_vm13 = vcmp.lt.s32.totalorder %v1444_v21, 2 }
 0x391   :  { %v1473_v18 = vsel %vm1465_vm14, %v1456_v62, %v1472_v27  ;;  %v1477_v53 = vsel %vm1465_vm14, %v1459_v22, %v1476_v14  ;;  %v1479_v17 = vshll.u32 %v1439_v44, 8  ;;  %v4658_v51 = vand.u32 2139095040, %v11024_v49 }
 0x392   :  { %v1474_v50 = vsel %vm1464_vm13, %v1471_v19, %v1473_v18  ;;  %v1478_v25 = vsel %vm1464_vm13, %v1475_v40, %v1477_v53  ;;  %v4515_v5 = vclz %v8305_v7  ;;  %v4534_v3 = vsel %vm4449_vm10, %v4533_v36, %v4509_v23 }
 0x393   :  { %v1470_v42 = vsel %vm1464_vm13, %v1467_v12, %v1469_v38  ;;  %v4655_v15 = vand.u32 2147483647, %v11024_v49  ;;  %v11051_v4 = vmul.u32.u64.low %v1479_v17, %v1478_v25  ;;  %v11052_v1 = vmul.u32.u64.high %v1479_v17, %v1478_v25, %v11051_v4 }
 0x394   :  { %v11054_v31 = vmul.u32.u64.low %v1479_v17, %v1474_v50  ;;  %v11055_v21 = vmul.u32.u64.high %v1479_v17, %v1474_v50, %v11054_v31  ;;  %v817_v44 = vmul.f32 %v10765_v0, %v9588_v30  ;;  %v8306_v63 = vadd.s32 4294967294, %v4515_v5 }
 0x395   :  { %v4659_v52 = vshrl.u32 %v4658_v51, 23  ;;  %v1237_v8 = vmul.f32 %v10704_v26, %v896_v11  ;;  %vm4647_vm15 = vcmp.eq.s32.totalorder %v11032_v16, 0  ;;  %vm4650_vm0 = vcmp.eq.s32.totalorder %v11032_v16, 2 }
 0x396   :  { %vm11065_vm1 = vcmp.le.f32.partialorder %v4447_v37, 0.7853982  ;;  %v4503_v62 = vadd.s32 %v10981_v6, %v10995_v24  ;;  %vm8307_vm2 = vcmp.lt.s32.totalorder %v8306_v63, 0  ;;  %v1486_v57 = vmul.u32 %v1479_v17, %v1470_v42  ;;  %v889_v17 = vpop.permute.xlu1 %888  ;;  %v15306_v42 = vld [vmem:[#allocation28_spill] sm:$0xff] }
 0x397   :  { %v4536_v30 = vsel %vm11065_vm1, 0, %v4534_v3  ;;  %v8312_v45 = vadd.s32 4294967169, %v4659_v52  ;;  %v8837_v34 = vpop.eup %8836  ;;  %v4518_v29 = vsel %vm8307_vm2, 0, %v8306_v63  ;;  %vm1488_vm3 = vc.u32 %v11052_v1, %v11054_v31 }
 0x398   :  { %v1489_v46 = vadd.s32 1, %v11055_v21  ;;  %v4662_v37 = vand.u32 8388607, %v4655_v15  ;;  %v8839_v9 = vpop.eup %8838  ;;  %v4651_v20 = vxor.u32 2147483648, %v8837_v34  ;;  %v4519_v58 = vsub.s32 32, %v4518_v29 }
 0x399   :  { %v4523_v6 = vsub.s32 4294967266, %v4518_v29  ;;  %v1301_v24 = vadd.f32 %v1237_v8, %v817_v44  ;;  %v4648_v22 = vxor.u32 2147483648, %v8839_v9  ;;  %v4520_v55 = vshll.u32 %v11039_v43, %v4518_v29 }
 0x39a   :  { %v1490_v47 = vsel %vm1488_vm3, %v1489_v46, %v11055_v21  ;;  %v4665_v33 = vadd.s32 1, %v8312_v45  ;;  %v4652_v60 = vsel %vm4650_vm0, %v4651_v20, %v8839_v9  ;;  %v4521_v36 = vshrl.u32 %v4503_v62, %v4519_v58 }
 0x39b   :  { %v4524_v48 = vadd.s32 127, %v4523_v6  ;;  %v1491_v12 = vadd.s32 %v1490_v47, %v1486_v57  ;;  %vm4643_vm4 = vweird.f32 %v10757_v10  ;;  %vm4646_vm5 = vcmp.lt.s32.totalorder %v11032_v16, 2 }
 0x39c   :  { %v4649_v19 = vsel %vm4647_vm15, %v8837_v34, %v4648_v22  ;;  %vm4666_vm6 = vcmp.gt.s32.totalorder %v4665_v33, 0  ;;  %v4522_v27 = vor.u32 %v4521_v36, %v4520_v55  ;;  %v4540_v7 = vadd.s32 3, %v4536_v30 }
 0x39d   :  { %v4653_v38 = vsel %vm4646_vm5, %v4649_v19, %v4652_v60  ;;  %v4525_v43 = vshll.u32 %v4524_v48, 23  ;;  %v1492_v40 = vadd.s32 536870912, %v1491_v12  ;;  %v4667_v18 = vsel %vm4666_vm6, %v4665_v33, 0 }
 0x39e   :  { %v4654_v14 = vsel %vm4643_vm4, nan, %v4653_v38  ;;  %v4663_v25 = vor.u32 8388608, %v4662_v37  ;;  %v11089_v10 = vadd.f32 %v10696_v54, %v1301_v24  ;;  %v4669_v51 = vand.u32 31, %v4667_v18 }
 0x39f   :  { %8117 = vst [vmem:[#allocation8 + $0xf0] sm:$0xff] %v4654_v14  ;;  %v4526_v53 = vor.u32 4788187, %v4525_v43  ;;  %v11086_v50 = vshrl.u32 %v1492_v40, 30  ;;  %v11093_v16 = vmul.f32 %v10765_v0, %v9582_v61  ;;  %v4529_v5 = vcvt.s32.f32 %v4522_v27 }
 0x3a0   :  { %v11098_v4 = vmul.f32 %v10765_v0, %v15306_v42  ;;  %v11100_v21 = vand.u32 3, %v4540_v7  ;;  %v4670_v44 = vsub.s32 32, %v4669_v51  ;;  %v11103_v54 = vmul.f32 %v10704_v26, %v889_v17 }
 0x3a1   :  { %v4527_v11 = vand.u32 2147483647, %v4526_v53  ;;  %v1494_v3 = vshll.u32 %v11086_v50, 30  ;;  %v11107_v8 = vshll.u32 %v4663_v25, 8  ;;  %v1642_v61 = vand.u32 2139095040, %v11089_v10 }
 0x3a2   :  { %v4668_v62 = vshrl.u32 %v4667_v18, 5  ;;  %v4672_v30 = vshll.u32 %v15264_v28, %v4669_v51  ;;  %v4673_v57 = vshrl.u32 %v15266_v39, %v4670_v44  ;;  %v4676_v0 = vshrl.u32 %v15267_v41, %v4670_v44 }
 0x3a3   :  { %v4530_v63 = vmul.f32 %v4529_v5, %v4527_v11  ;;  %v11105_v52 = vsub.s32 %v1491_v12, %v1494_v3  ;;  %v4675_v26 = vshll.u32 %v15266_v39, %v4669_v51  ;;  %v4679_v29 = vshrl.u32 %v15268_v35, %v4670_v44 }
 0x3a4   :  { %v4674_v46 = vor.u32 %v4673_v57, %v4672_v30  ;;  %v4678_v37 = vshll.u32 %v15267_v41, %v4669_v51  ;;  %v4681_v9 = vshll.u32 %v15268_v35, %v4669_v51  ;;  %v4682_v20 = vshrl.u32 %v15269_v13, %v4670_v44 }
 0x3a5   :  { %v4531_v45 = vxor.u32 2147483648, %v4530_v63  ;;  %v1497_v34 = vsub.s32 0, %v11105_v52  ;;  %v4677_v24 = vor.u32 %v4676_v0, %v4675_v26  ;;  %v4684_v22 = vshll.u32 %v15269_v13, %v4669_v51 }
 0x3a6   :  { %v4680_v47 = vor.u32 %v4679_v29, %v4678_v37  ;;  %v4683_v33 = vor.u32 %v4682_v20, %v4681_v9  ;;  %v4685_v60 = vshrl.u32 %v15270_v59, %v4670_v44  ;;  %v1487_v36 = vadd.s32 %v11054_v31, %v11052_v1 }
 0x3a7   :  { %v4532_v58 = vsel %vm4449_vm10, %v4531_v45, %v4530_v63  ;;  %v8189_v6 = vmin.u32 %v1497_v34, %v11105_v52  ;;  %v1643_v12 = vshrl.u32 %v1642_v61, 23  ;;  %vm1433_vm7 = vcmp.lt.s32.totalorder %v10930_v2, 0 }
 0x3a8   :  { %v4535_v55 = vsel %vm11065_vm1, %v10880_v56, %v4532_v58  ;;  %v4671_v19 = vshrl.u32 %v15264_v28, %v4670_v44  ;;  %v4686_v38 = vor.u32 %v4685_v60, %v4684_v22  ;;  %vm4687_vm8 = vcmp.lt.s32.totalorder %v4668_v62, 1  ;;  %v907_v60 = vpop.permute.xlu0 %906 }
 0x3a9   :  { %8840 = vcosq.f32 %v4535_v55  ;;  %v1499_v48 = vclz %v8189_v6  ;;  %vm4689_vm9 = vcmp.lt.s32.totalorder %v4668_v62, 3  ;;  %vm4690_vm10 = vcmp.lt.s32.totalorder %v4668_v62, 4 }
 0x3aa   :  { %8842 = vsinq.f32 %v4535_v55  ;;  %v4695_v23 = vsel %vm4687_vm8, %v4674_v46, %v4677_v24  ;;  %v4692_v43 = vsel %vm4690_vm10, %v4680_v47, 2102212464  ;;  %v4696_v40 = vsel %vm4690_vm10, %v4683_v33, 920167782 }
 0x3ab   :  { %v8190_v27 = vadd.s32 4294967294, %v1499_v48  ;;  %v4699_v14 = vsel %vm4687_vm8, %v4677_v24, %v4680_v47  ;;  %v4700_v7 = vsel %vm4690_vm10, %v4686_v38, 1326507024  ;;  %vm11135_vm11 = vcmp.le.f32.partialorder %v1431_v32, 0.7853982 }
 0x3ac   :  { %vm4688_vm14 = vcmp.lt.s32.totalorder %v4668_v62, 2  ;;  %v4697_v31 = vsel %vm4689_vm9, %v4680_v47, %v4696_v40  ;;  %v4701_v18 = vsel %vm4689_vm9, %v4683_v33, %v4700_v7  ;;  %v1517_v25 = vsub.s32 4, %v11086_v50 }
 0x3ad   :  { %vm8191_vm12 = vcmp.lt.s32.totalorder %v8190_v27, 0  ;;  %v4698_v17 = vsel %vm4688_vm14, %v4695_v23, %v4697_v31  ;;  %v4702_v51 = vsel %vm4688_vm14, %v4699_v14, %v4701_v18  ;;  %v4691_v32 = vsel %vm4687_vm8, %v4671_v19, %v4674_v46  ;;  %v11183_v14 = vld [vmem:[%s15203_s3 + $0x1] ss:$0 sm:$0xff] }
 0x3ae   :  { %v1502_v53 = vsel %vm8191_vm12, 0, %v8190_v27  ;;  %v4693_v3 = vsel %vm4689_vm9, %v4677_v24, %v4692_v43  ;;  %v11147_v42 = vmul.u32.u64.low %v11107_v8, %v4702_v51  ;;  %v11148_v44 = vmul.u32.u64.high %v11107_v8, %v4702_v51, %v11147_v42 }
 0x3af   :  { %v1503_v11 = vsub.s32 32, %v1502_v53  ;;  %v1507_v5 = vsub.s32 4294967266, %v1502_v53  ;;  %v11151_v63 = vmul.u32.u64.low %v11107_v8, %v4698_v17  ;;  %v11152_v61 = vmul.u32.u64.high %v11107_v8, %v4698_v17, %v11151_v63 }
 0x3b0   :  { %v1504_v30 = vshll.u32 %v11105_v52, %v1502_v53  ;;  %v8196_v45 = vadd.s32 4294967169, %v1643_v12  ;;  %vm4542_vm13 = vcmp.lt.s32.totalorder %v11100_v21, 2  ;;  %vm4543_vm15 = vcmp.eq.s32.totalorder %v11100_v21, 0 }
 0x3b1   :  { %v1505_v57 = vshrl.u32 %v1487_v36, %v1503_v11  ;;  %v1508_v0 = vadd.s32 127, %v1507_v5  ;;  %vm4546_vm0 = vcmp.eq.s32.totalorder %v11100_v21, 2  ;;  %v4694_v34 = vsel %vm4688_vm14, %v4691_v32, %v4693_v3 }
 0x3b2   :  { %v1518_v37 = vsel %vm1433_vm7, %v1517_v25, %v11086_v50  ;;  %v1649_v9 = vadd.s32 1, %v8196_v45  ;;  %vm4712_vm1 = vc.u32 %v11148_v44, %v11151_v63  ;;  %v4713_v58 = vadd.s32 1, %v11152_v61 }
 0x3b3   :  { %v8841_v26 = vpop.eup %8840  ;;  %v1506_v29 = vor.u32 %v1505_v57, %v1504_v30  ;;  %v1509_v46 = vshll.u32 %v1508_v0, 23  ;;  %v1639_v6 = vand.u32 2147483647, %v11089_v10  ;;  %v4710_v22 = vmul.u32 %v11107_v8, %v4694_v34 }
 0x3b4   :  { %v8843_v52 = vpop.eup %8842  ;;  %v4547_v20 = vxor.u32 2147483648, %v8841_v26  ;;  %vm1650_vm2 = vcmp.gt.s32.totalorder %v1649_v9, 0  ;;  %v1520_v50 = vsel %vm11135_vm11, 0, %v1518_v37  ;;  %v4714_v47 = vsel %vm4712_vm1, %v4713_v58, %v11152_v61 }
 0x3b5   :  { %v4544_v24 = vxor.u32 2147483648, %v8843_v52  ;;  %v1510_v62 = vor.u32 4788187, %v1509_v46  ;;  %v1651_v33 = vsel %vm1650_vm2, %v1649_v9, 0  ;;  %v1513_v12 = vcvt.s32.f32 %v1506_v29 }
 0x3b6   :  { %v4548_v55 = vsel %vm4546_vm0, %v4547_v20, %v8843_v52  ;;  %v4715_v19 = vadd.s32 %v4714_v47, %v4710_v22  ;;  %vm4539_vm3 = vweird.f32 %v10880_v56  ;;  %v1653_v38 = vand.u32 31, %v1651_v33  ;;  %v11220_v20 = vld [vmem:[%s15203_s3 + $0x2] ss:$0 sm:$0xff] }
 0x3b7   :  { %v4545_v36 = vsel %vm4543_vm15, %v8841_v26, %v4544_v24  ;;  %v1511_v48 = vand.u32 2147483647, %v1510_v62  ;;  %v1300_v27 = vadd.f32 %v11103_v54, %v11093_v16  ;;  %v11186_v7 = vmul.f32 %v11183_v14, %v907_v60 }
 0x3b8   :  { %v4549_v8 = vsel %vm4542_vm13, %v4545_v36, %v4548_v55  ;;  %v4716_v40 = vadd.s32 536870912, %v4715_v19  ;;  %v1524_v56 = vadd.s32 3, %v1520_v50  ;;  %v1646_v21 = vand.u32 8388607, %v1639_v6 }
 0x3b9   :  { %v4550_v23 = vsel %vm4539_vm3, nan, %v4549_v8  ;;  %v1514_v43 = vmul.f32 %v1513_v12, %v1511_v48  ;;  %v1652_v31 = vshrl.u32 %v1651_v33, 5  ;;  %v1654_v18 = vsub.s32 32, %v1653_v38 }
 0x3ba   :  { %8116 = vst [vmem:[#allocation8 + $0xe8] sm:$0xff] %v4550_v23  ;;  %v4717_v16 = vshrl.u32 %v4716_v40, 30  ;;  %v1656_v54 = vshll.u32 %v15264_v28, %v1653_v38  ;;  %v1659_v25 = vshll.u32 %v15266_v39, %v1653_v38  ;;  %v1662_v11 = vshll.u32 %v15267_v41, %v1653_v38 }
 0x3bb   :  { %v1515_v53 = vxor.u32 2147483648, %v1514_v43  ;;  %v1657_v17 = vshrl.u32 %v15266_v39, %v1654_v18  ;;  %v1660_v51 = vshrl.u32 %v15267_v41, %v1654_v18  ;;  %v1663_v5 = vshrl.u32 %v15268_v35, %v1654_v18 }
 0x3bc   :  { %vm4657_vm4 = vcmp.lt.s32.totalorder %v11024_v49, 0  ;;  %v4718_v3 = vshll.u32 %v4717_v16, 30  ;;  %v1665_v42 = vshll.u32 %v15268_v35, %v1653_v38  ;;  %v1666_v61 = vshrl.u32 %v15269_v13, %v1654_v18 }
 0x3bd   :  { %v1516_v32 = vsel %vm1433_vm7, %v1515_v53, %v1514_v43  ;;  %v11204_v57 = vand.u32 3, %v1524_v56  ;;  %v1658_v0 = vor.u32 %v1657_v17, %v1656_v54  ;;  %v1664_v45 = vor.u32 %v1663_v5, %v1662_v11 }
 0x3be   :  { %v1519_v30 = vsel %vm11135_vm11, %v10930_v2, %v1516_v32  ;;  %v11206_v34 = vsub.s32 %v4715_v19, %v4718_v3  ;;  %v1661_v26 = vor.u32 %v1660_v51, %v1659_v25  ;;  %v1667_v29 = vor.u32 %v1666_v61, %v1665_v42 }
 0x3bf   :  { %8844 = vcosq.f32 %v1519_v30  ;;  %v1647_v46 = vor.u32 8388608, %v1646_v21  ;;  %v1668_v37 = vshll.u32 %v15269_v13, %v1653_v38  ;;  %v1669_v9 = vshrl.u32 %v15270_v59, %v1654_v18 }
 0x3c0   :  { %8846 = vsinq.f32 %v1519_v30  ;;  %vm11212_vm5 = vcmp.le.f32.partialorder %v4655_v15, 0.7853982  ;;  %v4721_v52 = vsub.s32 0, %v11206_v34  ;;  %vm1671_vm6 = vcmp.lt.s32.totalorder %v1652_v31, 1 }
 0x3c1   :  { %vm1674_vm7 = vcmp.lt.s32.totalorder %v1652_v31, 4  ;;  %v11223_v58 = vadd.f32 %v11220_v20, %v1300_v27  ;;  %v4741_v24 = vsub.s32 4, %v4717_v16  ;;  %v1655_v62 = vshrl.u32 %v15264_v28, %v1654_v18 }
 0x3c2   :  { %v1670_v22 = vor.u32 %v1669_v9, %v1668_v37  ;;  %v1676_v15 = vsel %vm1674_vm7, %v1664_v45, 2102212464  ;;  %vm1530_vm8 = vcmp.eq.s32.totalorder %v11204_v57, 2  ;;  %v8313_v55 = vmin.u32 %v4721_v52, %v11206_v34  ;;  %v900_v9 = vpop.permute.xlu1 %899 }
 0x3c3   :  { %vm1673_vm9 = vcmp.lt.s32.totalorder %v1652_v31, 3  ;;  %v1679_v50 = vsel %vm1671_vm6, %v1658_v0, %v1661_v26  ;;  %v1680_v47 = vsel %vm1674_vm7, %v1667_v29, 920167782  ;;  %vm1527_vm10 = vcmp.eq.s32.totalorder %v11204_v57, 0 }
 0x3c4   :  { %v1681_v33 = vsel %vm1673_vm9, %v1664_v45, %v1680_v47  ;;  %v1683_v60 = vsel %vm1671_vm6, %v1661_v26, %v1664_v45  ;;  %v1684_v36 = vsel %vm1674_vm7, %v1670_v22, 1326507024  ;;  %v1687_v48 = vshll.u32 %v1647_v46, 8 }
 0x3c5   :  { %vm1526_vm11 = vcmp.lt.s32.totalorder %v11204_v57, 2  ;;  %v4723_v12 = vclz %v8313_v55  ;;  %vm1672_vm12 = vcmp.lt.s32.totalorder %v1652_v31, 2  ;;  %v1675_v19 = vsel %vm1671_vm6, %v1655_v62, %v1658_v0  ;;  %v918_v55 = vpop.permute.xlu0 %917 }
 0x3c6   :  { %v1677_v8 = vsel %vm1673_vm9, %v1661_v26, %v1676_v15  ;;  %v4742_v38 = vsel %vm4657_vm4, %v4741_v24, %v4717_v16  ;;  %v1682_v27 = vsel %vm1672_vm12, %v1679_v50, %v1681_v33  ;;  %v1685_v23 = vsel %vm1673_vm9, %v1667_v29, %v1684_v36 }
 0x3c7   :  { %v1538_v43 = vand.u32 2139095040, %v11223_v58  ;;  %v8314_v40 = vadd.s32 4294967294, %v4723_v12  ;;  %v1686_v56 = vsel %vm1672_vm12, %v1683_v60, %v1685_v23  ;;  %v1678_v53 = vsel %vm1672_vm12, %v1675_v19, %v1677_v8  ;;  %v15311_v12 = vld [vmem:[#allocation29_spill] sm:$0xff]  ;;  %v15312_v8 = vld [vmem:[#allocation30_spill] sm:$0xff] }
 0x3c8   :  { %v11236_v21 = vmul.u32.u64.low %v1687_v48, %v1682_v27  ;;  %v11237_v18 = vmul.u32.u64.high %v1687_v48, %v1682_v27, %v11236_v21  ;;  %v11240_v54 = vmul.u32.u64.low %v1687_v48, %v1686_v56  ;;  %v11241_v25 = vmul.u32.u64.high %v1687_v48, %v1686_v56, %v11240_v54 }
 0x3c9   :  { %v1539_v31 = vshrl.u32 %v1538_v43, 23  ;;  %v8845_v17 = vpop.eup %8844  ;;  %v4711_v51 = vadd.s32 %v11151_v63, %v11148_v44  ;;  %vm8315_vm14 = vcmp.lt.s32.totalorder %v8314_v40, 0  ;;  %v1535_v16 = vand.u32 2147483647, %v11223_v58 }
 0x3ca   :  { %v1303_v11 = vadd.f32 %v11186_v7, %v11098_v4  ;;  %v8847_v5 = vpop.eup %8846  ;;  %v1531_v32 = vxor.u32 2147483648, %v8845_v17  ;;  %v4726_v3 = vsel %vm8315_vm14, 0, %v8314_v40  ;;  %v4744_v42 = vsel %vm11212_vm5, 0, %v4742_v38 }
 0x3cb   :  { %v8192_v61 = vadd.s32 4294967169, %v1539_v31  ;;  %v1528_v30 = vxor.u32 2147483648, %v8847_v5  ;;  %v4727_v0 = vsub.s32 32, %v4726_v3  ;;  %v4731_v45 = vsub.s32 4294967266, %v4726_v3 }
 0x3cc   :  { %v1694_v26 = vmul.u32 %v1687_v48, %v1678_v53  ;;  %v1532_v44 = vsel %vm1530_vm8, %v1531_v32, %v8847_v5  ;;  %v4728_v63 = vshll.u32 %v11206_v34, %v4726_v3  ;;  %vm1696_vm13 = vc.u32 %v11241_v25, %v11236_v21  ;;  %v11271_v48 = vld [vmem:[%s15203_s3] ss:$0 sm:$0xff] }
 0x3cd   :  { %v1697_v4 = vadd.s32 1, %v11237_v18  ;;  %v1529_v7 = vsel %vm1527_vm10, %v8845_v17, %v1528_v30  ;;  %v4729_v29 = vshrl.u32 %v4711_v51, %v4727_v0  ;;  %v4732_v46 = vadd.s32 127, %v4731_v45 }
 0x3ce   :  { %v1545_v37 = vadd.s32 1, %v8192_v61  ;;  %vm1523_vm15 = vweird.f32 %v10930_v2  ;;  %v1533_v52 = vsel %vm1526_vm11, %v1529_v7, %v1532_v44  ;;  %v4748_v50 = vadd.s32 3, %v4744_v42 }
 0x3cf   :  { %v1698_v24 = vsel %vm1696_vm13, %v1697_v4, %v11237_v18  ;;  %v1534_v34 = vsel %vm1523_vm15, nan, %v1533_v52  ;;  %v4730_v62 = vor.u32 %v4729_v29, %v4728_v63  ;;  %v4733_v22 = vshll.u32 %v4732_v46, 23 }
 0x3d0   :  { %v1699_v15 = vadd.s32 %v1698_v24, %v1694_v26  ;;  %8087 = vst [vmem:[#allocation8] sm:$0xff] %v1534_v34  ;;  %v1542_v47 = vand.u32 8388607, %v1535_v16  ;;  %vm1546_vm0 = vcmp.gt.s32.totalorder %v1545_v37, 0  ;;  %v1238_v33 = vmul.f32 %v11183_v14, %v900_v9 }
 0x3d1   :  { %v4734_v60 = vor.u32 4788187, %v4733_v22  ;;  %v1547_v36 = vsel %vm1546_vm0, %v1545_v37, 0  ;;  %v11266_v57 = vadd.f32 %v11220_v20, %v1303_v11  ;;  %v818_v19 = vmul.f32 %v11271_v48, %v15311_v12 }
 0x3d2   :  { %v1700_v2 = vadd.s32 536870912, %v1699_v15  ;;  %v11277_v38 = vmul.f32 %v11271_v48, %v15312_v8  ;;  %v1549_v27 = vand.u32 31, %v1547_v36  ;;  %v11280_v23 = vmul.f32 %v11183_v14, %v918_v55 }
 0x3d3   :  { %v4735_v43 = vand.u32 2147483647, %v4734_v60  ;;  %v4737_v40 = vcvt.s32.f32 %v4730_v62  ;;  %vm1641_vm1 = vcmp.lt.s32.totalorder %v11089_v10, 0  ;;  %v11283_v18 = vand.u32 3, %v4748_v50 }
 0x3d4   :  { %v1701_v56 = vshrl.u32 %v1700_v2, 30  ;;  %v1543_v53 = vor.u32 8388608, %v1542_v47  ;;  %v1550_v54 = vsub.s32 32, %v1549_v27  ;;  %v11285_v31 = vadd.f32 %v1238_v33, %v818_v19 }
 0x3d5   :  { %v4738_v17 = vmul.f32 %v4737_v40, %v4735_v43  ;;  %v1552_v11 = vshll.u32 %v15264_v28, %v1549_v27  ;;  %v1850_v5 = vand.u32 2139095040, %v11266_v57  ;;  %v1555_v3 = vshll.u32 %v15266_v39, %v1549_v27 }
 0x3d6   :  { %v1702_v51 = vshll.u32 %v1701_v56, 30  ;;  %v1553_v32 = vshrl.u32 %v15266_v39, %v1550_v54  ;;  %v1556_v42 = vshrl.u32 %v15267_v41, %v1550_v54  ;;  %v1559_v61 = vshrl.u32 %v15268_v35, %v1550_v54 }
 0x3d7   :  { %v4739_v30 = vxor.u32 2147483648, %v4738_v17  ;;  %v1558_v45 = vshll.u32 %v15267_v41, %v1549_v27  ;;  %v1562_v26 = vshrl.u32 %v15269_v13, %v1550_v54  ;;  %v1725_v44 = vsub.s32 4, %v1701_v56 }
 0x3d8   :  { %v11293_v0 = vsub.s32 %v1699_v15, %v1702_v51  ;;  %v1548_v63 = vshrl.u32 %v1547_v36, 5  ;;  %v1554_v4 = vor.u32 %v1553_v32, %v1552_v11  ;;  %v1561_v7 = vshll.u32 %v15268_v35, %v1549_v27 }
 0x3d9   :  { %v4740_v29 = vsel %vm4657_vm4, %v4739_v30, %v4738_v17  ;;  %v1557_v37 = vor.u32 %v1556_v42, %v1555_v3  ;;  %v1560_v9 = vor.u32 %v1559_v61, %v1558_v45  ;;  %vm11306_vm2 = vcmp.le.f32.partialorder %v1639_v6, 0.7853982 }
 0x3da   :  { %v1705_v46 = vsub.s32 0, %v11293_v0  ;;  %v4743_v52 = vsel %vm11212_vm5, %v11024_v49, %v4740_v29  ;;  %v1563_v34 = vor.u32 %v1562_v26, %v1561_v7  ;;  %v1564_v62 = vshll.u32 %v15269_v13, %v1549_v27 }
 0x3db   :  { %v1565_v22 = vshrl.u32 %v15270_v59, %v1550_v54  ;;  %8848 = vcosq.f32 %v4743_v52  ;;  %v11313_v55 = vshll.u32 %v1543_v53, 8  ;;  %v1851_v50 = vshrl.u32 %v1850_v5, 23 }
 0x3dc   :  { %v8197_v15 = vmin.u32 %v1705_v46, %v11293_v0  ;;  %8850 = vsinq.f32 %v4743_v52  ;;  %v1726_v1 = vsel %vm1641_vm1, %v1725_v44, %v1701_v56  ;;  %v1551_v6 = vshrl.u32 %v15264_v28, %v1550_v54 }
 0x3dd   :  { %v1566_v47 = vor.u32 %v1565_v22, %v1564_v62  ;;  %vm1567_vm3 = vcmp.lt.s32.totalorder %v1548_v63, 1  ;;  %vm1568_vm4 = vcmp.lt.s32.totalorder %v1548_v63, 2  ;;  %vm1570_vm5 = vcmp.lt.s32.totalorder %v1548_v63, 4 }
 0x3de   :  { %v1707_v33 = vclz %v8197_v15  ;;  %vm1569_vm6 = vcmp.lt.s32.totalorder %v1548_v63, 3  ;;  %v1572_v60 = vsel %vm1570_vm5, %v1560_v9, 2102212464  ;;  %v1575_v2 = vsel %vm1567_vm3, %v1554_v4, %v1557_v37 }
 0x3df   :  { %v1576_v36 = vsel %vm1570_vm5, %v1563_v34, 920167782  ;;  %v1571_v19 = vsel %vm1567_vm3, %v1551_v6, %v1554_v4  ;;  %v1579_v27 = vsel %vm1567_vm3, %v1557_v37, %v1560_v9  ;;  %v1573_v43 = vsel %vm1569_vm6, %v1557_v37, %v1572_v60 }
 0x3e0   :  { %v8198_v12 = vadd.s32 4294967294, %v1707_v33  ;;  %v1577_v8 = vsel %vm1569_vm6, %v1560_v9, %v1576_v36  ;;  %v1580_v53 = vsel %vm1570_vm5, %v1566_v47, 1326507024  ;;  %v8204_v56 = vadd.s32 4294967169, %v1851_v50 }
 0x3e1   :  { %v1578_v40 = vsel %vm1568_vm4, %v1575_v2, %v1577_v8  ;;  %v1581_v54 = vsel %vm1569_vm6, %v1563_v34, %v1580_v53  ;;  %vm4747_vm8 = vweird.f32 %v11024_v49  ;;  %vm4751_vm9 = vcmp.eq.s32.totalorder %v11283_v18, 0 }
 0x3e2   :  { %vm8199_vm7 = vcmp.lt.s32.totalorder %v8198_v12, 0  ;;  %v11320_v17 = vmul.u32.u64.low %v11313_v55, %v1578_v40  ;;  %v11321_v51 = vmul.u32.u64.high %v11313_v55, %v1578_v40, %v11320_v17  ;;  %v1695_v11 = vadd.s32 %v11236_v21, %v11241_v25 }
 0x3e3   :  { %v1710_v5 = vsel %vm8199_vm7, 0, %v8198_v12  ;;  %v1582_v32 = vsel %vm1568_vm4, %v1579_v27, %v1581_v54  ;;  %v1728_v61 = vsel %vm11306_vm2, 0, %v1726_v1  ;;  %v1857_v30 = vadd.s32 1, %v8204_v56 }
 0x3e4   :  { %v1711_v3 = vsub.s32 32, %v1710_v5  ;;  %v1715_v42 = vsub.s32 4294967266, %v1710_v5  ;;  %v1712_v45 = vshll.u32 %v11293_v0, %v1710_v5  ;;  %v1574_v26 = vsel %vm1568_vm4, %v1571_v19, %v1573_v43 }
 0x3e5   :  { %v11334_v44 = vmul.u32.u64.low %v11313_v55, %v1582_v32  ;;  %v11335_v4 = vmul.u32.u64.high %v11313_v55, %v1582_v32, %v11334_v44  ;;  %v8849_v7 = vpop.eup %8848  ;;  %v1593_v25 = vadd.s32 1, %v11321_v51  ;;  %vm1858_vm10 = vcmp.gt.s32.totalorder %v1857_v30, 0 }
 0x3e6   :  { %v1713_v29 = vshrl.u32 %v1695_v11, %v1711_v3  ;;  %v1716_v21 = vadd.s32 127, %v1715_v42  ;;  %v8851_v46 = vpop.eup %8850  ;;  %vm4754_vm11 = vcmp.eq.s32.totalorder %v11283_v18, 2  ;;  %v4755_v37 = vxor.u32 2147483648, %v8849_v7 }
 0x3e7   :  { %v1847_v9 = vand.u32 2147483647, %v11266_v57  ;;  %v1859_v52 = vsel %vm1858_vm10, %v1857_v30, 0  ;;  %v4752_v0 = vxor.u32 2147483648, %v8851_v46  ;;  %v1732_v62 = vadd.s32 3, %v1728_v61 }
 0x3e8   :  { %v1714_v63 = vor.u32 %v1713_v29, %v1712_v45  ;;  %v1717_v34 = vshll.u32 %v1716_v21, 23  ;;  %v4756_v22 = vsel %vm4754_vm11, %v4755_v37, %v8851_v46  ;;  %v1590_v15 = vmul.u32 %v11313_v55, %v1574_v26 }
 0x3e9   :  { %vm1592_vm12 = vc.u32 %v11335_v4, %v11320_v17  ;;  %v1861_v50 = vand.u32 31, %v1859_v52  ;;  %vm4750_vm14 = vcmp.lt.s32.totalorder %v11283_v18, 2  ;;  %v4753_v1 = vsel %vm4751_vm9, %v8849_v7, %v4752_v0 }
 0x3ea   :  { %v1718_v6 = vor.u32 4788187, %v1717_v34  ;;  %v1594_v47 = vsel %vm1592_vm12, %v1593_v25, %v11321_v51  ;;  %v4757_v33 = vsel %vm4750_vm14, %v4753_v1, %v4756_v22  ;;  %v11349_v36 = vadd.f32 %v11220_v20, %v11285_v31 }
 0x3eb   :  { %v1595_v60 = vadd.s32 %v1594_v47, %v1590_v15  ;;  %v1862_v2 = vsub.s32 32, %v1861_v50  ;;  %v4758_v55 = vsel %vm4747_vm8, nan, %v4757_v33  ;;  %v1721_v19 = vcvt.s32.f32 %v1714_v63 }
 0x3ec   :  { %v1719_v12 = vand.u32 2147483647, %v1718_v6  ;;  %v1854_v8 = vand.u32 8388607, %v1847_v9  ;;  %8118 = vst [vmem:[#allocation8 + $0xf8] sm:$0xff] %v4758_v55  ;;  %v11355_v18 = vand.u32 3, %v1732_v62  ;;  %v1864_v51 = vshll.u32 %v15264_v28, %v1861_v50 }
 0x3ed   :  { %v1596_v27 = vadd.s32 536870912, %v1595_v60  ;;  %v1865_v43 = vshrl.u32 %v15266_v39, %v1862_v2  ;;  %v1868_v40 = vshrl.u32 %v15267_v41, %v1862_v2  ;;  %v1860_v56 = vshrl.u32 %v1859_v52, 5 }
 0x3ee   :  { %v1722_v53 = vmul.f32 %v1721_v19, %v1719_v12  ;;  %v1871_v31 = vshrl.u32 %v15268_v35, %v1862_v2  ;;  %v1874_v49 = vshrl.u32 %v15269_v13, %v1862_v2  ;;  %v1867_v11 = vshll.u32 %v15266_v39, %v1861_v50 }
 0x3ef   :  { %v1597_v54 = vshrl.u32 %v1596_v27, 30  ;;  %v1870_v5 = vshll.u32 %v15267_v41, %v1861_v50  ;;  %v1873_v3 = vshll.u32 %v15268_v35, %v1861_v50  ;;  %v1876_v42 = vshll.u32 %v15269_v13, %v1861_v50 }
 0x3f0   :  { %v1723_v32 = vxor.u32 2147483648, %v1722_v53  ;;  %v1877_v61 = vshrl.u32 %v15270_v59, %v1862_v2  ;;  %v1855_v45 = vor.u32 8388608, %v1854_v8  ;;  %v1866_v26 = vor.u32 %v1865_v43, %v1864_v51 }
 0x3f1   :  { %v1598_v30 = vshll.u32 %v1597_v54, 30  ;;  %v1869_v44 = vor.u32 %v1868_v40, %v1867_v11  ;;  %v1872_v29 = vor.u32 %v1871_v31, %v1870_v5  ;;  %v1875_v21 = vor.u32 %v1874_v49, %v1873_v3 }
 0x3f2   :  { %v1724_v7 = vsel %vm1641_vm1, %v1723_v32, %v1722_v53  ;;  %v1878_v25 = vor.u32 %v1877_v61, %v1876_v42  ;;  %v1863_v52 = vshrl.u32 %v15264_v28, %v1862_v2  ;;  %v1746_v0 = vand.u32 2139095040, %v11349_v36 }
 0x3f3   :  { %v1727_v46 = vsel %vm11306_vm2, %v11089_v10, %v1724_v7  ;;  %v11372_v37 = vsub.s32 %v1595_v60, %v1598_v30  ;;  %v1621_v63 = vsub.s32 4, %v1597_v54  ;;  %vm1879_vm13 = vcmp.lt.s32.totalorder %v1860_v56, 1 }
 0x3f4   :  { %8852 = vcosq.f32 %v1727_v46  ;;  %vm1881_vm15 = vcmp.lt.s32.totalorder %v1860_v56, 3  ;;  %vm1882_vm0 = vcmp.lt.s32.totalorder %v1860_v56, 4  ;;  %v1887_v62 = vsel %vm1879_vm13, %v1866_v26, %v1869_v44 }
 0x3f5   :  { %8854 = vsinq.f32 %v1727_v46  ;;  %v1601_v34 = vsub.s32 0, %v11372_v37  ;;  %v1884_v22 = vsel %vm1882_vm0, %v1872_v29, 2102212464  ;;  %v1888_v15 = vsel %vm1882_vm0, %v1875_v21, 920167782 }
 0x3f6   :  { %v1891_v24 = vsel %vm1879_vm13, %v1869_v44, %v1872_v29  ;;  %v1892_v50 = vsel %vm1882_vm0, %v1878_v25, 1326507024  ;;  %vm1880_vm1 = vcmp.lt.s32.totalorder %v1860_v56, 2  ;;  %v1889_v6 = vsel %vm1881_vm15, %v1872_v29, %v1888_v15 }
 0x3f7   :  { %v8193_v1 = vmin.u32 %v1601_v34, %v11372_v37  ;;  %v1893_v47 = vsel %vm1881_vm15, %v1875_v21, %v1892_v50  ;;  %v1890_v33 = vsel %vm1880_vm1, %v1887_v62, %v1889_v6  ;;  %v1895_v2 = vshll.u32 %v1855_v45, 8 }
 0x3f8   :  { %v1894_v60 = vsel %vm1880_vm1, %v1891_v24, %v1893_v47  ;;  %v1747_v55 = vshrl.u32 %v1746_v0, 23  ;;  %vm1537_vm2 = vcmp.lt.s32.totalorder %v11223_v58, 0  ;;  %v1883_v19 = vsel %vm1879_vm13, %v1863_v52, %v1866_v26 }
 0x3f9   :  { %v1603_v12 = vclz %v8193_v1  ;;  %v1885_v8 = vsel %vm1881_vm15, %v1869_v44, %v1884_v22  ;;  %v11387_v27 = vmul.u32.u64.low %v1895_v2, %v1894_v60  ;;  %v11388_v43 = vmul.u32.u64.high %v1895_v2, %v1894_v60, %v11387_v27  ;;  %v15317_v60 = vld [vmem:[#allocation31_spill] sm:$0xff] }
 0x3fa   :  { %v11390_v40 = vmul.u32.u64.low %v1895_v2, %v1890_v33  ;;  %v11391_v53 = vmul.u32.u64.high %v1895_v2, %v1890_v33, %v11390_v40  ;;  %vm1731_vm3 = vweird.f32 %v11089_v10  ;;  %vm11397_vm4 = vcmp.le.f32.partialorder %v1535_v16, 0.7853982 }
 0x3fb   :  { %v8194_v49 = vadd.s32 4294967294, %v1603_v12  ;;  %v1622_v51 = vsel %vm1537_vm2, %v1621_v63, %v1597_v54  ;;  %v8200_v11 = vadd.s32 4294967169, %v1747_v55  ;;  %vm1734_vm5 = vcmp.lt.s32.totalorder %v11355_v18, 2 }
 0x3fc   :  { %vm1735_vm6 = vcmp.eq.s32.totalorder %v11355_v18, 0  ;;  %v1886_v5 = vsel %vm1880_vm1, %v1883_v19, %v1885_v8  ;;  %v1743_v32 = vand.u32 2147483647, %v11349_v36  ;;  %vm1738_vm7 = vcmp.eq.s32.totalorder %v11355_v18, 2  ;;  %v15318_v18 = vld [vmem:[#allocation32_spill] sm:$0xff] }
 0x3fd   :  { %v1591_v16 = vadd.s32 %v11320_v17, %v11335_v4  ;;  %vm8195_vm8 = vcmp.lt.s32.totalorder %v8194_v49, 0  ;;  %v1753_v3 = vadd.s32 1, %v8200_v11  ;;  %v1624_v54 = vsel %vm11397_vm4, 0, %v1622_v51 }
 0x3fe   :  { %v8853_v42 = vpop.eup %8852  ;;  %v1606_v61 = vsel %vm8195_vm8, 0, %v8194_v49  ;;  %vm1904_vm9 = vc.u32 %v11388_v43, %v11390_v40  ;;  %v1905_v56 = vadd.s32 1, %v11391_v53  ;;  %v1902_v7 = vmul.u32 %v1895_v2, %v1886_v5 }
 0x3ff   :  { %v8855_v30 = vpop.eup %8854  ;;  %v1739_v45 = vxor.u32 2147483648, %v8853_v42  ;;  %v1607_v26 = vsub.s32 32, %v1606_v61  ;;  %v1611_v44 = vsub.s32 4294967266, %v1606_v61  ;;  %v1608_v17 = vshll.u32 %v11372_v37, %v1606_v61 }
 0x400   :  { %v1736_v29 = vxor.u32 2147483648, %v8855_v30  ;;  %v1906_v4 = vsel %vm1904_vm9, %v1905_v56, %v11391_v53  ;;  %vm1754_vm10 = vcmp.gt.s32.totalorder %v1753_v3, 0  ;;  %v1628_v63 = vadd.s32 3, %v1624_v54 }
 0x401   :  { %v1740_v21 = vsel %vm1738_vm7, %v1739_v45, %v8855_v30  ;;  %v1609_v25 = vshrl.u32 %v1591_v16, %v1607_v26  ;;  %v1612_v46 = vadd.s32 127, %v1611_v44  ;;  %v1907_v52 = vadd.s32 %v1906_v4, %v1902_v7 }
 0x402   :  { %v1737_v0 = vsel %vm1735_vm6, %v8853_v42, %v1736_v29  ;;  %v1750_v34 = vand.u32 8388607, %v1743_v32  ;;  %v1755_v62 = vsel %vm1754_vm10, %v1753_v3, 0  ;;  %v1305_v6 = vadd.f32 %v11280_v23, %v11277_v38 }
 0x403   :  { %v1741_v37 = vsel %vm1734_vm5, %v1737_v0, %v1740_v21  ;;  %v1610_v22 = vor.u32 %v1609_v25, %v1608_v17  ;;  %v1613_v15 = vshll.u32 %v1612_v46, 23  ;;  %v1908_v24 = vadd.s32 536870912, %v1907_v52 }
 0x404   :  { %v1742_v50 = vsel %vm1731_vm3, nan, %v1741_v37  ;;  %v1757_v1 = vand.u32 31, %v1755_v62  ;;  %v11433_v2 = vmul.f32 %v11271_v48, %v15317_v60  ;;  %v11437_v55 = vmul.f32 %v11271_v48, %v15318_v18 }
 0x405   :  { %8089 = vst [vmem:[#allocation8 + $0x10] sm:$0xff] %v1742_v50  ;;  %v1614_v47 = vor.u32 4788187, %v1613_v15  ;;  %v11429_v33 = vshrl.u32 %v1908_v24, 30  ;;  %v1751_v12 = vor.u32 8388608, %v1750_v34  ;;  %v1617_v8 = vcvt.s32.f32 %v1610_v22 }
 0x406   :  { %v1758_v19 = vsub.s32 32, %v1757_v1  ;;  %v11439_v27 = vand.u32 3, %v1628_v63  ;;  %v11446_v51 = vadd.f32 %v11220_v20, %v1305_v6  ;;  %v1760_v16 = vshll.u32 %v15264_v28, %v1757_v1 }
 0x407   :  { %v1615_v10 = vand.u32 2147483647, %v1614_v47  ;;  %v1910_v38 = vshll.u32 %v11429_v33, 30  ;;  %v1756_v42 = vshrl.u32 %v1755_v62, 5  ;;  %v1763_v61 = vshll.u32 %v15266_v39, %v1757_v1 }
 0x408   :  { %v1761_v23 = vshrl.u32 %v15266_v39, %v1758_v19  ;;  %v1764_v53 = vshrl.u32 %v15267_v41, %v1758_v19  ;;  %v1767_v49 = vshrl.u32 %v15268_v35, %v1758_v19  ;;  %v1770_v3 = vshrl.u32 %v15269_v13, %v1758_v19 }
 0x409   :  { %v1618_v11 = vmul.f32 %v1617_v8, %v1615_v10  ;;  %v11448_v5 = vsub.s32 %v1907_v52, %v1910_v38  ;;  %v1766_v54 = vshll.u32 %v15267_v41, %v1757_v1  ;;  %v11454_v56 = vshll.u32 %v1751_v12, 8 }
 0x40a   :  { %v1762_v26 = vor.u32 %v1761_v23, %v1760_v16  ;;  %v1769_v44 = vshll.u32 %v15268_v35, %v1757_v1  ;;  %v1765_v7 = vor.u32 %v1764_v53, %v1763_v61  ;;  %v1772_v17 = vshll.u32 %v15269_v13, %v1757_v1 }
 0x40b   :  { %v1619_v30 = vxor.u32 2147483648, %v1618_v11  ;;  %v1913_v45 = vsub.s32 0, %v11448_v5  ;;  %v1768_v29 = vor.u32 %v1767_v49, %v1766_v54  ;;  %v1773_v4 = vshrl.u32 %v15270_v59, %v1758_v19 }
 0x40c   :  { %vm1849_vm11 = vcmp.lt.s32.totalorder %v11266_v57, 0  ;;  %v1771_v46 = vor.u32 %v1770_v3, %v1769_v44  ;;  %v2058_v52 = vand.u32 2139095040, %v11446_v51  ;;  %v1933_v63 = vsub.s32 4, %v11429_v33 }
 0x40d   :  { %v1620_v21 = vsel %vm1537_vm2, %v1619_v30, %v1618_v11  ;;  %v8205_v25 = vmin.u32 %v1913_v45, %v11448_v5  ;;  %v1759_v34 = vshrl.u32 %v15264_v28, %v1758_v19  ;;  %v1774_v62 = vor.u32 %v1773_v4, %v1772_v17  ;;  %v911_v4 = vpop.permute.xlu1 %910 }
 0x40e   :  { %v1623_v0 = vsel %vm11397_vm4, %v11223_v58, %v1620_v21  ;;  %vm1775_vm12 = vcmp.lt.s32.totalorder %v1756_v42, 1  ;;  %vm1778_vm14 = vcmp.lt.s32.totalorder %v1756_v42, 4  ;;  %vm11472_vm13 = vcmp.le.f32.partialorder %v1847_v9, 0.7853982 }
 0x40f   :  { %8856 = vcosq.f32 %v1623_v0  ;;  %v1915_v37 = vclz %v8205_v25  ;;  %vm1776_vm15 = vcmp.lt.s32.totalorder %v1756_v42, 2  ;;  %v1780_v15 = vsel %vm1778_vm14, %v1768_v29, 2102212464 }
 0x410   :  { %8858 = vsinq.f32 %v1623_v0  ;;  %v1783_v31 = vsel %vm1775_vm12, %v1762_v26, %v1765_v7  ;;  %vm1777_vm0 = vcmp.lt.s32.totalorder %v1756_v42, 3  ;;  %v1784_v50 = vsel %vm1778_vm14, %v1771_v46, 920167782 }
 0x411   :  { %v8206_v24 = vadd.s32 4294967294, %v1915_v37  ;;  %v1787_v1 = vsel %vm1775_vm12, %v1765_v7, %v1768_v29  ;;  %v1779_v6 = vsel %vm1775_vm12, %v1759_v34, %v1762_v26  ;;  %v1785_v47 = vsel %vm1777_vm0, %v1768_v29, %v1784_v50 }
 0x412   :  { %v1788_v60 = vsel %vm1778_vm14, %v1774_v62, 1326507024  ;;  %v2059_v18 = vshrl.u32 %v2058_v52, 23  ;;  %v1781_v12 = vsel %vm1777_vm0, %v1765_v7, %v1780_v15  ;;  %v1786_v19 = vsel %vm1776_vm15, %v1783_v31, %v1785_v47 }
 0x413   :  { %vm8207_vm1 = vcmp.lt.s32.totalorder %v8206_v24, 0  ;;  %v1789_v10 = vsel %vm1777_vm0, %v1771_v46, %v1788_v60  ;;  %v11479_v38 = vmul.u32.u64.low %v11454_v56, %v1786_v19  ;;  %v11480_v23 = vmul.u32.u64.high %v11454_v56, %v1786_v19, %v11479_v38 }
 0x414   :  { %v1918_v9 = vsel %vm8207_vm1, 0, %v8206_v24  ;;  %v1790_v8 = vsel %vm1776_vm15, %v1787_v1, %v1789_v10  ;;  %v1903_v53 = vadd.s32 %v11390_v40, %v11388_v43  ;;  %v8212_v16 = vadd.s32 4294967169, %v2059_v18 }
 0x415   :  { %v1919_v49 = vsub.s32 32, %v1918_v9  ;;  %v1923_v11 = vsub.s32 4294967266, %v1918_v9  ;;  %vm1627_vm2 = vweird.f32 %v11223_v58  ;;  %v1934_v3 = vsel %vm1849_vm11, %v1933_v63, %v11429_v33 }
 0x416   :  { %v1782_v61 = vsel %vm1776_vm15, %v1779_v6, %v1781_v12  ;;  %v11491_v54 = vmul.u32.u64.low %v11454_v56, %v1790_v8  ;;  %v11492_v30 = vmul.u32.u64.high %v11454_v56, %v1790_v8, %v11491_v54  ;;  %v1920_v45 = vshll.u32 %v11448_v5, %v1918_v9 }
 0x417   :  { %v1921_v26 = vshrl.u32 %v1903_v53, %v1919_v49  ;;  %v1924_v44 = vadd.s32 127, %v1923_v11  ;;  %v2065_v43 = vadd.s32 1, %v8212_v16  ;;  %vm1630_vm3 = vcmp.lt.s32.totalorder %v11439_v27, 2 }
 0x418   :  { %vm1631_vm4 = vcmp.eq.s32.totalorder %v11439_v27, 0  ;;  %v1801_v40 = vadd.s32 1, %v11480_v23  ;;  %v2055_v7 = vand.u32 2147483647, %v11446_v51  ;;  %v1936_v17 = vsel %vm11472_vm13, 0, %v1934_v3 }
 0x419   :  { %v8857_v33 = vpop.eup %8856  ;;  %v1922_v42 = vor.u32 %v1921_v26, %v1920_v45  ;;  %v1925_v29 = vshll.u32 %v1924_v44, 23  ;;  %vm2066_vm5 = vcmp.gt.s32.totalorder %v2065_v43, 0  ;;  %v1798_v25 = vmul.u32 %v11454_v56, %v1782_v61  ;;  %v929_v45 = vpop.permute.xlu0 %928 }
 0x41a   :  { %v8859_v5 = vpop.eup %8858  ;;  %v1635_v21 = vxor.u32 2147483648, %v8857_v33  ;;  %vm1800_vm6 = vc.u32 %v11492_v30, %v11479_v38  ;;  %v2067_v46 = vsel %vm2066_vm5, %v2065_v43, 0  ;;  %vm1634_vm7 = vcmp.eq.s32.totalorder %v11439_v27, 2 }
 0x41b   :  { %v1632_v52 = vxor.u32 2147483648, %v8859_v5  ;;  %v1926_v0 = vor.u32 4788187, %v1925_v29  ;;  %v1802_v63 = vsel %vm1800_vm6, %v1801_v40, %v11480_v23  ;;  %v2069_v37 = vand.u32 31, %v2067_v46 }
 0x41c   :  { %v1636_v34 = vsel %vm1634_vm7, %v1635_v21, %v8859_v5  ;;  %v1803_v62 = vadd.s32 %v1802_v63, %v1798_v25  ;;  %v1240_v15 = vmul.f32 %v11183_v14, %v911_v4  ;;  %v1929_v56 = vcvt.s32.f32 %v1922_v42 }
 0x41d   :  { %v1633_v31 = vsel %vm1631_vm4, %v8857_v33, %v1632_v52  ;;  %v1927_v24 = vand.u32 2147483647, %v1926_v0  ;;  %v1940_v50 = vadd.s32 3, %v1936_v17  ;;  %v2062_v47 = vand.u32 8388607, %v2055_v7 }
 0x41e   :  { %v1637_v1 = vsel %vm1630_vm3, %v1633_v31, %v1636_v34  ;;  %v1804_v6 = vadd.s32 536870912, %v1803_v62  ;;  %v2070_v60 = vsub.s32 32, %v2069_v37  ;;  %v2072_v19 = vshll.u32 %v15264_v28, %v2069_v37 }
 0x41f   :  { %v1638_v18 = vsel %vm1627_vm2, nan, %v1637_v1  ;;  %v1930_v12 = vmul.f32 %v1929_v56, %v1927_v24  ;;  %v2075_v10 = vshll.u32 %v15266_v39, %v2069_v37  ;;  %v2078_v23 = vshll.u32 %v15267_v41, %v2069_v37 }
 0x420   :  { %8088 = vst [vmem:[#allocation8 + $0x8] sm:$0xff] %v1638_v18  ;;  %v11517_v9 = vshrl.u32 %v1804_v6, 30  ;;  %v2073_v8 = vshrl.u32 %v15266_v39, %v2070_v60  ;;  %v2076_v27 = vshrl.u32 %v15267_v41, %v2070_v60  ;;  %v2079_v49 = vshrl.u32 %v15268_v35, %v2070_v60 }
 0x421   :  { %v1931_v53 = vxor.u32 2147483648, %v1930_v12  ;;  %v2081_v58 = vshll.u32 %v15268_v35, %v2069_v37  ;;  %v2082_v11 = vshrl.u32 %v15269_v13, %v2070_v60  ;;  %v2068_v3 = vshrl.u32 %v2067_v46, 5 }
 0x422   :  { %v1806_v16 = vshll.u32 %v11517_v9, 30  ;;  %v2074_v61 = vor.u32 %v2073_v8, %v2072_v19  ;;  %v1304_v54 = vadd.f32 %v1240_v15, %v11433_v2  ;;  %v2077_v44 = vor.u32 %v2076_v27, %v2075_v10 }
 0x423   :  { %v1932_v26 = vsel %vm1849_vm11, %v1931_v53, %v1930_v12  ;;  %v2080_v43 = vor.u32 %v2079_v49, %v2078_v23  ;;  %v2083_v40 = vor.u32 %v2082_v11, %v2081_v58  ;;  %v2084_v29 = vshll.u32 %v15269_v13, %v2069_v37 }
 0x424   :  { %v1935_v33 = vsel %vm11472_vm13, %v11266_v57, %v1932_v26  ;;  %v11532_v42 = vsub.s32 %v1803_v62, %v1806_v16  ;;  %v2085_v17 = vshrl.u32 %v15270_v59, %v2070_v60  ;;  %v11536_v4 = vand.u32 3, %v1940_v50  ;;  %v922_v62 = vpop.permute.xlu1 %921 }
 0x425   :  { %8860 = vcosq.f32 %v1935_v33  ;;  %v2063_v2 = vor.u32 8388608, %v2062_v47  ;;  %v1243_v5 = vmul.f32 %v11183_v14, %v929_v45  ;;  %vm1745_vm8 = vcmp.lt.s32.totalorder %v11349_v36, 0 }
 0x426   :  { %8862 = vsinq.f32 %v1935_v33  ;;  %v1809_v21 = vsub.s32 0, %v11532_v42  ;;  %v2086_v25 = vor.u32 %v2085_v17, %v2084_v29  ;;  %v11542_v22 = vadd.f32 %v11220_v20, %v1304_v54 }
 0x427   :  { %v2071_v46 = vshrl.u32 %v15264_v28, %v2070_v60  ;;  %vm2087_vm9 = vcmp.lt.s32.totalorder %v2068_v3, 1  ;;  %vm2089_vm10 = vcmp.lt.s32.totalorder %v2068_v3, 3  ;;  %vm2090_vm11 = vcmp.lt.s32.totalorder %v2068_v3, 4 }
 0x428   :  { %v8201_v52 = vmin.u32 %v1809_v21, %v11532_v42  ;;  %v2092_v0 = vsel %vm2090_vm11, %v2080_v43, 2102212464  ;;  %v2095_v63 = vsel %vm2087_vm9, %v2074_v61, %v2077_v44  ;;  %v2096_v34 = vsel %vm2090_vm11, %v2083_v40, 920167782 }
 0x429   :  { %v2097_v37 = vsel %vm2089_vm10, %v2080_v43, %v2096_v34  ;;  %v2099_v15 = vsel %vm2087_vm9, %v2077_v44, %v2080_v43  ;;  %v2100_v31 = vsel %vm2090_vm11, %v2086_v25, 1326507024  ;;  %v2103_v24 = vshll.u32 %v2063_v2, 8 }
 0x42a   :  { %vm11549_vm12 = vcmp.le.f32.partialorder %v1743_v32, 0.7853982  ;;  %v1811_v50 = vclz %v8201_v52  ;;  %vm2088_vm14 = vcmp.lt.s32.totalorder %v2068_v3, 2  ;;  %v2091_v1 = vsel %vm2087_vm9, %v2071_v46, %v2074_v61 }
 0x42b   :  { %v2093_v6 = vsel %vm2089_vm10, %v2077_v44, %v2092_v0  ;;  %v1829_v47 = vsub.s32 4, %v11517_v9  ;;  %v2098_v60 = vsel %vm2088_vm14, %v2095_v63, %v2097_v37  ;;  %v2101_v18 = vsel %vm2089_vm10, %v2083_v40, %v2100_v31 }
 0x42c   :  { %v1242_v12 = vmul.f32 %v11183_v14, %v922_v62  ;;  %vm1939_vm13 = vweird.f32 %v11266_v57  ;;  %v8202_v19 = vadd.s32 4294967294, %v1811_v50  ;;  %v2102_v10 = vsel %vm2088_vm14, %v2099_v15, %v2101_v18 }
 0x42d   :  { %v11558_v32 = vmul.u32.u64.low %v2103_v24, %v2098_v60  ;;  %v11559_v8 = vmul.u32.u64.high %v2103_v24, %v2098_v60, %v11558_v32  ;;  %vm1943_vm15 = vcmp.eq.s32.totalorder %v11536_v4, 0  ;;  %v2094_v27 = vsel %vm2088_vm14, %v2091_v1, %v2093_v6 }
 0x42e   :  { %v11563_v23 = vmul.u32.u64.low %v2103_v24, %v2102_v10  ;;  %v11564_v53 = vmul.u32.u64.high %v2103_v24, %v2102_v10, %v11563_v23  ;;  %vm1946_vm0 = vcmp.eq.s32.totalorder %v11536_v4, 2  ;;  %vm8203_vm1 = vcmp.lt.s32.totalorder %v8202_v19, 0 }
 0x42f   :  { %v1954_v49 = vand.u32 2139095040, %v11542_v22  ;;  %v1307_v14 = vadd.f32 %v1243_v5, %v11437_v55  ;;  %v8861_v58 = vpop.eup %8860  ;;  %v1799_v11 = vadd.s32 %v11479_v38, %v11492_v30  ;;  %v1814_v16 = vsel %vm8203_vm1, 0, %v8202_v19  ;;  %v11604_v23 = vld [vmem:[%s15203_s3 + $0x1] ss:$0 sm:$0xff] }
 0x430   :  { %v1830_v3 = vsel %vm1745_vm8, %v1829_v47, %v11517_v9  ;;  %v1951_v61 = vand.u32 2147483647, %v11542_v22  ;;  %v8863_v54 = vpop.eup %8862  ;;  %v1947_v45 = vxor.u32 2147483648, %v8861_v58  ;;  %v1815_v26 = vsub.s32 32, %v1814_v16  ;;  %v940_v47 = vpop.permute.xlu0 %939 }
 0x431   :  { %v1819_v44 = vsub.s32 4294967266, %v1814_v16  ;;  %v2110_v43 = vmul.u32 %v2103_v24, %v2094_v27  ;;  %v1944_v40 = vxor.u32 2147483648, %v8863_v54  ;;  %v1816_v33 = vshll.u32 %v11532_v42, %v1814_v16 }
 0x432   :  { %vm2112_vm2 = vc.u32 %v11564_v53, %v11558_v32  ;;  %v2113_v55 = vadd.s32 1, %v11559_v8  ;;  %v1948_v38 = vsel %vm1946_vm0, %v1947_v45, %v8863_v54  ;;  %v1817_v30 = vshrl.u32 %v1799_v11, %v1815_v26  ;;  %v11616_v11 = vld [vmem:[%s15203_s3 + $0x2] ss:$0 sm:$0xff] }
 0x433   :  { %v1820_v9 = vadd.s32 127, %v1819_v44  ;;  %v1955_v29 = vshrl.u32 %v1954_v49, 23  ;;  %vm1942_vm3 = vcmp.lt.s32.totalorder %v11536_v4, 2  ;;  %v1945_v17 = vsel %vm1943_vm15, %v8861_v58, %v1944_v40  ;;  %v15323_v4 = vld [vmem:[#allocation33_spill] sm:$0xff] }
 0x434   :  { %v1832_v2 = vsel %vm11549_vm12, 0, %v1830_v3  ;;  %v2114_v42 = vsel %vm2112_vm2, %v2113_v55, %v11559_v8  ;;  %v1949_v5 = vsel %vm1942_vm3, %v1945_v17, %v1948_v38  ;;  %v1818_v21 = vor.u32 %v1817_v30, %v1816_v33 }
 0x435   :  { %v1821_v25 = vshll.u32 %v1820_v9, 23  ;;  %v2115_v46 = vadd.s32 %v2114_v42, %v2110_v43  ;;  %v1950_v52 = vsel %vm1939_vm13, nan, %v1949_v5  ;;  %v8208_v0 = vadd.s32 4294967169, %v1955_v29 }
 0x436   :  { %v1958_v63 = vand.u32 8388607, %v1951_v61  ;;  %v11592_v34 = vadd.f32 %v11220_v20, %v1307_v14  ;;  %v822_v62 = vmul.f32 %v11271_v48, %v15323_v4  ;;  %8091 = vst [vmem:[#allocation8 + $0x20] sm:$0xff] %v1950_v52  ;;  %v1836_v31 = vadd.s32 3, %v1832_v2 }
 0x437   :  { %v1822_v37 = vor.u32 4788187, %v1821_v25  ;;  %v2116_v15 = vadd.s32 536870912, %v2115_v46  ;;  %v1961_v24 = vadd.s32 1, %v8208_v0  ;;  %v1825_v1 = vcvt.s32.f32 %v1818_v21 }
 0x438   :  { %v1306_v57 = vadd.f32 %v1242_v12, %v822_v62  ;;  %v1959_v60 = vor.u32 8388608, %v1958_v63  ;;  %v2263_v18 = vand.u32 2147483647, %v11592_v34  ;;  %v2266_v20 = vand.u32 2139095040, %v11592_v34 }
 0x439   :  { %v1823_v50 = vand.u32 2147483647, %v1822_v37  ;;  %v2117_v6 = vshrl.u32 %v2116_v15, 30  ;;  %vm1962_vm4 = vcmp.gt.s32.totalorder %v1961_v24, 0  ;;  %v11598_v48 = vand.u32 3, %v1836_v31 }
 0x43a   :  { %v1963_v8 = vsel %vm1962_vm4, %v1961_v24, 0  ;;  %vm2057_vm5 = vcmp.lt.s32.totalorder %v11446_v51, 0  ;;  %v11607_v12 = vmul.f32 %v11604_v23, %v940_v47  ;;  %v2111_v14 = vadd.s32 %v11558_v32, %v11564_v53 }
 0x43b   :  { %v1826_v19 = vmul.f32 %v1825_v1, %v1823_v50  ;;  %v2118_v10 = vshll.u32 %v2117_v6, 30  ;;  %v1965_v27 = vand.u32 31, %v1963_v8  ;;  %v11619_v16 = vadd.f32 %v11616_v11, %v1306_v57 }
 0x43c   :  { %v11621_v54 = vshll.u32 %v1959_v60, 8  ;;  %v2267_v45 = vshrl.u32 %v2266_v20, 23  ;;  %v11625_v26 = vand.u32 8388607, %v2263_v18  ;;  %v2141_v44 = vsub.s32 4, %v2117_v6 }
 0x43d   :  { %v1827_v49 = vxor.u32 2147483648, %v1826_v19  ;;  %v11611_v58 = vsub.s32 %v2115_v46, %v2118_v10  ;;  %v1966_v3 = vsub.s32 32, %v1965_v27  ;;  %v1964_v43 = vshrl.u32 %v1963_v8, 5 }
 0x43e   :  { %v1968_v33 = vshll.u32 %v15264_v28, %v1965_v27  ;;  %v1971_v9 = vshll.u32 %v15266_v39, %v1965_v27  ;;  %v1974_v2 = vshll.u32 %v15267_v41, %v1965_v27  ;;  %v8220_v42 = vadd.s32 4294967169, %v2267_v45 }
 0x43f   :  { %v1828_v32 = vsel %vm1745_vm8, %v1827_v49, %v1826_v19  ;;  %v2121_v53 = vsub.s32 0, %v11611_v58  ;;  %v1969_v55 = vshrl.u32 %v15266_v39, %v1966_v3  ;;  %v1972_v38 = vshrl.u32 %v15267_v41, %v1966_v3 }
 0x440   :  { %v1831_v40 = vsel %vm11549_vm12, %v11349_v36, %v1828_v32  ;;  %v1975_v29 = vshrl.u32 %v15268_v35, %v1966_v3  ;;  %v1967_v5 = vshrl.u32 %v15264_v28, %v1966_v3  ;;  %v1977_v25 = vshll.u32 %v15268_v35, %v1965_v27 }
 0x441   :  { %8864 = vcosq.f32 %v1831_v40  ;;  %v8213_v30 = vmin.u32 %v2121_v53, %v11611_v58  ;;  %v1970_v17 = vor.u32 %v1969_v55, %v1968_v33  ;;  %v1973_v21 = vor.u32 %v1972_v38, %v1971_v9 }
 0x442   :  { %8866 = vsinq.f32 %v1831_v40  ;;  %v1976_v46 = vor.u32 %v1975_v29, %v1974_v2  ;;  %v1978_v52 = vshrl.u32 %v15269_v13, %v1966_v3  ;;  %v1980_v0 = vshll.u32 %v15269_v13, %v1965_v27 }
 0x443   :  { %v2123_v56 = vclz %v8213_v30  ;;  %v1981_v63 = vshrl.u32 %v15270_v59, %v1966_v3  ;;  %vm1842_vm6 = vcmp.eq.s32.totalorder %v11598_v48, 2  ;;  %v11648_v62 = vsel %vm2057_vm5, %v2141_v44, %v2117_v6 }
 0x444   :  { %vm1983_vm7 = vcmp.lt.s32.totalorder %v1964_v43, 1  ;;  %vm1985_vm8 = vcmp.lt.s32.totalorder %v1964_v43, 3  ;;  %vm1839_vm9 = vcmp.eq.s32.totalorder %v11598_v48, 0  ;;  %v1979_v37 = vor.u32 %v1978_v52, %v1977_v25 }
 0x445   :  { %v8214_v4 = vadd.s32 4294967294, %v2123_v56  ;;  %v1982_v15 = vor.u32 %v1981_v63, %v1980_v0  ;;  %vm1986_vm10 = vcmp.lt.s32.totalorder %v1964_v43, 4  ;;  %v1987_v31 = vsel %vm1983_vm7, %v1967_v5, %v1970_v17 }
 0x446   :  { %vm1838_vm11 = vcmp.lt.s32.totalorder %v11598_v48, 2  ;;  %vm11654_vm12 = vcmp.le.f32.partialorder %v2055_v7, 0.7853982  ;;  %v1988_v50 = vsel %vm1986_vm10, %v1976_v46, 2102212464  ;;  %v1991_v1 = vsel %vm1983_vm7, %v1970_v17, %v1973_v21 }
 0x447   :  { %vm8215_vm14 = vcmp.lt.s32.totalorder %v8214_v4, 0  ;;  %v1995_v6 = vsel %vm1983_vm7, %v1973_v21, %v1976_v46  ;;  %vm1835_vm13 = vweird.f32 %v11349_v36  ;;  %v1989_v47 = vsel %vm1985_vm8, %v1973_v21, %v1988_v50 }
 0x448   :  { %v2126_v57 = vsel %vm8215_vm14, 0, %v8214_v4  ;;  %v1992_v60 = vsel %vm1986_vm10, %v1979_v37, 920167782  ;;  %v1996_v20 = vsel %vm1986_vm10, %v1982_v15, 1326507024  ;;  %vm1984_vm15 = vcmp.lt.s32.totalorder %v1964_v43, 2 }
 0x449   :  { %v2127_v19 = vsub.s32 32, %v2126_v57  ;;  %v2128_v10 = vshll.u32 %v11611_v58, %v2126_v57  ;;  %v2131_v8 = vsub.s32 4294967266, %v2126_v57  ;;  %v1990_v7 = vsel %vm1984_vm15, %v1987_v31, %v1989_v47 }
 0x44a   :  { %v1993_v27 = vsel %vm1985_vm8, %v1976_v46, %v1992_v60  ;;  %v1997_v49 = vsel %vm1985_vm8, %v1979_v37, %v1996_v20  ;;  %v2273_v3 = vadd.s32 1, %v8220_v42  ;;  %v2271_v42 = vor.u32 8388608, %v11625_v26 }
 0x44b   :  { %v8865_v45 = vpop.eup %8864  ;;  %v2129_v32 = vshrl.u32 %v2111_v14, %v2127_v19  ;;  %v2132_v53 = vadd.s32 127, %v2131_v8  ;;  %v1994_v44 = vsel %vm1984_vm15, %v1991_v1, %v1993_v27  ;;  %v1998_v40 = vsel %vm1984_vm15, %v1995_v6, %v1997_v49 }
 0x44c   :  { %v8867_v33 = vpop.eup %8866  ;;  %v1843_v55 = vxor.u32 2147483648, %v8865_v45  ;;  %v11664_v38 = vmul.u32.u64.low %v11621_v54, %v1998_v40  ;;  %v11665_v30 = vmul.u32.u64.high %v11621_v54, %v1998_v40, %v11664_v38  ;;  %vm2274_vm0 = vcmp.gt.s32.totalorder %v2273_v3, 0 }
 0x44d   :  { %v1840_v58 = vxor.u32 2147483648, %v8867_v33  ;;  %v2130_v9 = vor.u32 %v2129_v32, %v2128_v10  ;;  %v2133_v29 = vshll.u32 %v2132_v53, 23  ;;  %v2275_v17 = vsel %vm2274_vm0, %v2273_v3, 0 }
 0x44e   :  { %v1844_v43 = vsel %vm1842_vm6, %v1843_v55, %v8867_v33  ;;  %v11670_v2 = vmul.u32.u64.low %v11621_v54, %v1994_v44  ;;  %v11671_v14 = vmul.u32.u64.high %v11621_v54, %v1994_v44, %v11670_v2  ;;  %v2277_v21 = vand.u32 31, %v2275_v17 }
 0x44f   :  { %v1841_v56 = vsel %vm1839_vm9, %v8865_v45, %v1840_v58  ;;  %v2134_v5 = vor.u32 4788187, %v2133_v29  ;;  %v2162_v25 = vand.u32 2139095040, %v11619_v16  ;;  %v2137_v52 = vcvt.s32.f32 %v2130_v9 }
 0x450   :  { %v1845_v46 = vsel %vm1838_vm11, %v1841_v56, %v1844_v43  ;;  %v2144_v0 = vsel %vm11654_vm12, 0, %v11648_v62  ;;  %v2006_v63 = vmul.u32 %v11621_v54, %v1990_v7  ;;  %vm2008_vm1 = vc.u32 %v11665_v30, %v11670_v2 }
 0x451   :  { %v1846_v26 = vsel %vm1835_vm13, nan, %v1845_v46  ;;  %v2135_v4 = vand.u32 2147483647, %v2134_v5  ;;  %v2278_v37 = vsub.s32 32, %v2277_v21  ;;  %v2009_v15 = vadd.s32 1, %v11671_v14 }
 0x452   :  { %8090 = vst [vmem:[#allocation8 + $0x18] sm:$0xff] %v1846_v26  ;;  %v2276_v48 = vshrl.u32 %v2275_v17, 5  ;;  %v2280_v31 = vshll.u32 %v15264_v28, %v2277_v21  ;;  %v2283_v50 = vshll.u32 %v15266_v39, %v2277_v21  ;;  %v2286_v36 = vshll.u32 %v15267_v41, %v2277_v21 }
 0x453   :  { %v2138_v1 = vmul.f32 %v2137_v52, %v2135_v4  ;;  %v2281_v62 = vshrl.u32 %v15266_v39, %v2278_v37  ;;  %v2284_v54 = vshrl.u32 %v15267_v41, %v2278_v37  ;;  %v2010_v6 = vsel %vm2008_vm1, %v2009_v15, %v11671_v14 }
 0x454   :  { %v2287_v57 = vshrl.u32 %v15268_v35, %v2278_v37  ;;  %v2289_v47 = vshll.u32 %v15268_v35, %v2277_v21  ;;  %v2290_v60 = vshrl.u32 %v15269_v13, %v2278_v37  ;;  %v2011_v19 = vadd.s32 %v2010_v6, %v2006_v63 }
 0x455   :  { %v2139_v20 = vxor.u32 2147483648, %v2138_v1  ;;  %v2282_v10 = vor.u32 %v2281_v62, %v2280_v31  ;;  %v2285_v8 = vor.u32 %v2284_v54, %v2283_v50  ;;  %v2292_v49 = vshll.u32 %v15269_v13, %v2277_v21 }
 0x456   :  { %v2288_v7 = vor.u32 %v2287_v57, %v2286_v36  ;;  %v2291_v27 = vor.u32 %v2290_v60, %v2289_v47  ;;  %v2293_v3 = vshrl.u32 %v15270_v59, %v2278_v37  ;;  %v2148_v32 = vadd.s32 3, %v2144_v0  ;;  %v15327_v47 = vld [vmem:[#allocation35_spill] sm:$0xff] }
 0x457   :  { %v2140_v45 = vsel %vm2057_vm5, %v2139_v20, %v2138_v1  ;;  %v2012_v53 = vadd.s32 536870912, %v2011_v19  ;;  %vm2295_vm2 = vcmp.lt.s32.totalorder %v2276_v48, 1  ;;  %v2279_v40 = vshrl.u32 %v15264_v28, %v2278_v37 }
 0x458   :  { %v2143_v44 = vsel %vm11654_vm12, %v11446_v51, %v2140_v45  ;;  %v2294_v33 = vor.u32 %v2293_v3, %v2292_v49  ;;  %vm2297_vm3 = vcmp.lt.s32.totalorder %v2276_v48, 3  ;;  %vm2298_vm4 = vcmp.lt.s32.totalorder %v2276_v48, 4 }
 0x459   :  { %8868 = vcosq.f32 %v2143_v44  ;;  %v2013_v55 = vshrl.u32 %v2012_v53, 30  ;;  %v2303_v38 = vsel %vm2295_vm2, %v2282_v10, %v2285_v8  ;;  %v2300_v58 = vsel %vm2298_vm4, %v2288_v7, 2102212464 }
 0x45a   :  { %8870 = vsinq.f32 %v2143_v44  ;;  %v2304_v9 = vsel %vm2298_vm4, %v2291_v27, 920167782  ;;  %v2307_v29 = vsel %vm2295_vm2, %v2285_v8, %v2288_v7  ;;  %vm2296_vm5 = vcmp.lt.s32.totalorder %v2276_v48, 2 }
 0x45b   :  { %v2014_v17 = vshll.u32 %v2013_v55, 30  ;;  %v2305_v43 = vsel %vm2297_vm3, %v2288_v7, %v2304_v9  ;;  %v2308_v24 = vsel %vm2298_vm4, %v2294_v33, 1326507024  ;;  %v2311_v5 = vshll.u32 %v2271_v42, 8  ;;  %v11727_v42 = vld [vmem:[%s15203_s3] ss:$0 sm:$0xff] }
 0x45c   :  { %v2306_v14 = vsel %vm2296_vm5, %v2303_v38, %v2305_v43  ;;  %v2309_v56 = vsel %vm2297_vm3, %v2291_v27, %v2308_v24  ;;  %v2163_v21 = vshrl.u32 %v2162_v25, 23  ;;  %v2299_v52 = vsel %vm2295_vm2, %v2279_v40, %v2282_v10  ;;  %v15326_v25 = vld [vmem:[#allocation34_spill] sm:$0xff] }
 0x45d   :  { %v11711_v46 = vsub.s32 %v2011_v19, %v2014_v17  ;;  %v2301_v0 = vsel %vm2297_vm3, %v2285_v8, %v2300_v58  ;;  %v2310_v63 = vsel %vm2296_vm5, %v2307_v29, %v2309_v56  ;;  %v2037_v26 = vsub.s32 4, %v2013_v55 }
 0x45e   :  { %v11716_v4 = vmul.u32.u64.low %v2311_v5, %v2310_v63  ;;  %v11717_v37 = vmul.u32.u64.high %v2311_v5, %v2310_v63, %v11716_v4  ;;  %v8216_v15 = vadd.s32 4294967169, %v2163_v21  ;;  %v2149_v31 = vand.u32 3, %v2148_v32 }
 0x45f   :  { %v2017_v50 = vsub.s32 0, %v11711_v46  ;;  %v11720_v1 = vmul.u32.u64.low %v2311_v5, %v2306_v14  ;;  %v11721_v62 = vmul.u32.u64.high %v2311_v5, %v2306_v14, %v11720_v1  ;;  %v825_v54 = vmul.f32 %v11727_v42, %v15326_v25 }
 0x460   :  { %v2302_v36 = vsel %vm2296_vm5, %v2299_v52, %v2301_v0  ;;  %v2159_v6 = vand.u32 2147483647, %v11619_v16  ;;  %v2169_v57 = vadd.s32 1, %v8216_v15  ;;  %v11735_v60 = vmul.f32 %v11727_v42, %v15327_v47  ;;  %v933_v47 = vpop.permute.xlu1 %932 }
 0x461   :  { %vm2147_vm6 = vweird.f32 %v11446_v51  ;;  %vm1953_vm7 = vcmp.lt.s32.totalorder %v11542_v22, 0  ;;  %v8209_v20 = vmin.u32 %v2017_v50, %v11711_v46  ;;  %vm11742_vm8 = vcmp.le.f32.partialorder %v1951_v61, 0.7853982 }
 0x462   :  { %v2038_v48 = vsel %vm1953_vm7, %v2037_v26, %v2013_v55  ;;  %vm2170_vm9 = vcmp.gt.s32.totalorder %v2169_v57, 0  ;;  %v1309_v10 = vadd.f32 %v11607_v12, %v825_v54  ;;  %vm2154_vm10 = vcmp.eq.s32.totalorder %v2149_v31, 2 }
 0x463   :  { %v8869_v8 = vpop.eup %8868  ;;  %v2019_v7 = vclz %v8209_v20  ;;  %v2318_v27 = vmul.u32 %v2311_v5, %v2302_v36  ;;  %vm2320_vm11 = vc.u32 %v11717_v37, %v11720_v1  ;;  %v2321_v61 = vadd.s32 1, %v11721_v62 }
 0x464   :  { %v8871_v49 = vpop.eup %8870  ;;  %v2155_v3 = vxor.u32 2147483648, %v8869_v8  ;;  %v2166_v45 = vand.u32 8388607, %v2159_v6  ;;  %v2171_v32 = vsel %vm2170_vm9, %v2169_v57, 0  ;;  %v2040_v12 = vsel %vm11742_vm8, 0, %v2038_v48 }
 0x465   :  { %v2152_v53 = vxor.u32 2147483648, %v8871_v49  ;;  %v8210_v44 = vadd.s32 4294967294, %v2019_v7  ;;  %v2173_v40 = vand.u32 31, %v2171_v32  ;;  %vm2150_vm12 = vcmp.lt.s32.totalorder %v2149_v31, 2 }
 0x466   :  { %vm2151_vm14 = vcmp.eq.s32.totalorder %v2149_v31, 0  ;;  %v2156_v33 = vsel %vm2154_vm10, %v2155_v3, %v8871_v49  ;;  %v2322_v55 = vsel %vm2320_vm11, %v2321_v61, %v11721_v62  ;;  %v2007_v17 = vadd.s32 %v11670_v2, %v11665_v30 }
 0x467   :  { %v2153_v38 = vsel %vm2151_vm14, %v8869_v8, %v2152_v53  ;;  %vm8211_vm13 = vcmp.lt.s32.totalorder %v8210_v44, 0  ;;  %v2323_v58 = vadd.s32 %v2322_v55, %v2318_v27  ;;  %v2174_v9 = vsub.s32 32, %v2173_v40 }
 0x468   :  { %v2157_v29 = vsel %vm2150_vm12, %v2153_v38, %v2156_v33  ;;  %v2022_v43 = vsel %vm8211_vm13, 0, %v8210_v44  ;;  %v11759_v24 = vadd.s32 3, %v2040_v12  ;;  %v2167_v21 = vor.u32 8388608, %v2166_v45 }
 0x469   :  { %v2158_v14 = vsel %vm2147_vm6, nan, %v2157_v29  ;;  %v2023_v56 = vsub.s32 32, %v2022_v43  ;;  %v2027_v5 = vsub.s32 4294967266, %v2022_v43  ;;  %v2324_v52 = vadd.s32 536870912, %v2323_v58 }
 0x46a   :  { %8093 = vst [vmem:[#allocation8 + $0x30] sm:$0xff] %v2158_v14  ;;  %v11763_v0 = vshrl.u32 %v2171_v32, 5  ;;  %v2177_v63 = vshrl.u32 %v15266_v39, %v2174_v9  ;;  %v2180_v26 = vshrl.u32 %v15267_v41, %v2174_v9  ;;  %v2024_v4 = vshll.u32 %v11711_v46, %v2022_v43 }
 0x46b   :  { %v2025_v30 = vshrl.u32 %v2007_v17, %v2023_v56  ;;  %v2028_v2 = vadd.s32 127, %v2027_v5  ;;  %v2183_v15 = vshrl.u32 %v15268_v35, %v2174_v9  ;;  %v2325_v31 = vshrl.u32 %v2324_v52, 30 }
 0x46c   :  { %v2176_v51 = vshll.u32 %v15264_v28, %v2173_v40  ;;  %v2179_v50 = vshll.u32 %v15266_v39, %v2173_v40  ;;  %v2182_v62 = vshll.u32 %v15267_v41, %v2173_v40  ;;  %v2185_v36 = vshll.u32 %v15268_v35, %v2173_v40 }
 0x46d   :  { %v2026_v25 = vor.u32 %v2025_v30, %v2024_v4  ;;  %v2029_v54 = vshll.u32 %v2028_v2, 23  ;;  %v2186_v57 = vshrl.u32 %v15269_v13, %v2174_v9  ;;  %v2326_v20 = vshll.u32 %v2325_v31, 30 }
 0x46e   :  { %v2178_v46 = vor.u32 %v2177_v63, %v2176_v51  ;;  %v2181_v48 = vor.u32 %v2180_v26, %v2179_v50  ;;  %v2189_v8 = vshrl.u32 %v15270_v59, %v2174_v9  ;;  %vm2265_vm15 = vcmp.lt.s32.totalorder %v11592_v34, 0 }
 0x46f   :  { %v2030_v7 = vor.u32 4788187, %v2029_v54  ;;  %v2184_v27 = vor.u32 %v2183_v15, %v2182_v62  ;;  %v2187_v49 = vor.u32 %v2186_v57, %v2185_v36  ;;  %v2188_v3 = vshll.u32 %v15269_v13, %v2173_v40 }
 0x470   :  { %v11777_v61 = vsub.s32 %v2323_v58, %v2326_v20  ;;  %v11779_v45 = vshll.u32 %v2167_v21, 8  ;;  %v11782_v32 = vadd.f32 %v11616_v11, %v1309_v10  ;;  %v1244_v53 = vmul.f32 %v11604_v23, %v933_v47 }
 0x471   :  { %v2031_v44 = vand.u32 2147483647, %v2030_v7  ;;  %v2033_v12 = vcvt.s32.f32 %v2026_v25  ;;  %v2175_v33 = vshrl.u32 %v15264_v28, %v2174_v9  ;;  %v2190_v55 = vor.u32 %v2189_v8, %v2188_v3 }
 0x472   :  { %v2329_v38 = vsub.s32 0, %v11777_v61  ;;  %vm2191_vm0 = vcmp.lt.s32.totalorder %v11763_v0, 1  ;;  %vm2193_vm1 = vcmp.lt.s32.totalorder %v11763_v0, 3  ;;  %vm2194_vm2 = vcmp.lt.s32.totalorder %v11763_v0, 4 }
 0x473   :  { %v2034_v40 = vmul.f32 %v2033_v12, %v2031_v44  ;;  %vm11792_vm3 = vcmp.le.f32.partialorder %v2263_v18, 0.7853982  ;;  %v2196_v58 = vsel %vm2194_vm2, %v2184_v27, 2102212464  ;;  %v2199_v9 = vsel %vm2191_vm0, %v2178_v46, %v2181_v48  ;;  %v951_v12 = vpop.permute.xlu0 %950 }
 0x474   :  { %v2200_v29 = vsel %vm2194_vm2, %v2187_v49, 920167782  ;;  %v8221_v17 = vmin.u32 %v2329_v38, %v11777_v61  ;;  %v2349_v43 = vsub.s32 4, %v2325_v31  ;;  %vm2192_vm4 = vcmp.lt.s32.totalorder %v11763_v0, 2 }
 0x475   :  { %v2201_v14 = vsel %vm2193_vm1, %v2184_v27, %v2200_v29  ;;  %v2035_v56 = vxor.u32 2147483648, %v2034_v40  ;;  %v2203_v5 = vsel %vm2191_vm0, %v2181_v48, %v2184_v27  ;;  %v2204_v21 = vsel %vm2194_vm2, %v2190_v55, 1326507024 }
 0x476   :  { %v2202_v18 = vsel %vm2192_vm4, %v2199_v9, %v2201_v14  ;;  %v2331_v52 = vclz %v8221_v17  ;;  %v2195_v63 = vsel %vm2191_vm0, %v2175_v33, %v2178_v46  ;;  %v2197_v26 = vsel %vm2193_vm1, %v2181_v48, %v2196_v58 }
 0x477   :  { %v2471_v4 = vand.u32 2147483647, %v11782_v32  ;;  %v2036_v30 = vsel %vm1953_vm7, %v2035_v56, %v2034_v40  ;;  %v2205_v2 = vsel %vm2193_vm1, %v2187_v49, %v2204_v21  ;;  %v2350_v25 = vsel %vm2265_vm15, %v2349_v43, %v2325_v31 }
 0x478   :  { %v11816_v15 = vmul.u32.u64.low %v11779_v45, %v2202_v18  ;;  %v11817_v51 = vmul.u32.u64.high %v11779_v45, %v2202_v18, %v11816_v15  ;;  %v2039_v50 = vsel %vm11742_vm8, %v11542_v22, %v2036_v30  ;;  %v8222_v62 = vadd.s32 4294967294, %v2331_v52 }
 0x479   :  { %v2206_v54 = vsel %vm2192_vm4, %v2203_v5, %v2205_v2  ;;  %8872 = vcosq.f32 %v2039_v50  ;;  %v2474_v47 = vand.u32 2139095040, %v11782_v32  ;;  %v2045_v20 = vand.u32 3, %v11759_v24 }
 0x47a   :  { %v11828_v36 = vmul.u32.u64.low %v11779_v45, %v2206_v54  ;;  %v11829_v57 = vmul.u32.u64.high %v11779_v45, %v2206_v54, %v11828_v36  ;;  %8874 = vsinq.f32 %v2039_v50  ;;  %vm8223_vm5 = vcmp.lt.s32.totalorder %v8222_v62, 0 }
 0x47b   :  { %v2198_v19 = vsel %vm2192_vm4, %v2195_v63, %v2197_v26  ;;  %v2334_v46 = vsel %vm8223_vm5, 0, %v8222_v62  ;;  %v2217_v31 = vadd.s32 1, %v11817_v51  ;;  %v2475_v48 = vshrl.u32 %v2474_v47, 23 }
 0x47c   :  { %v1308_v8 = vadd.f32 %v1244_v53, %v11735_v60  ;;  %v2319_v7 = vadd.s32 %v11720_v1, %v11717_v37  ;;  %v2335_v27 = vsub.s32 32, %v2334_v46  ;;  %v2339_v49 = vsub.s32 4294967266, %v2334_v46  ;;  %v15332_v1 = vld [vmem:[#allocation36_spill] sm:$0xff] }
 0x47d   :  { %v2352_v3 = vsel %vm11792_vm3, 0, %v2350_v25  ;;  %v2214_v24 = vmul.u32 %v11779_v45, %v2198_v19  ;;  %vm2216_vm6 = vc.u32 %v11829_v57, %v11816_v15  ;;  %v8228_v0 = vadd.s32 4294967169, %v2475_v48 }
 0x47e   :  { %v2478_v44 = vand.u32 8388607, %v2471_v4  ;;  %v2336_v60 = vshll.u32 %v11777_v61, %v2334_v46  ;;  %v2337_v53 = vshrl.u32 %v2319_v7, %v2335_v27  ;;  %v2340_v33 = vadd.s32 127, %v2339_v49 }
 0x47f   :  { %v2218_v37 = vsel %vm2216_vm6, %v2217_v31, %v11817_v51  ;;  %v11850_v55 = vmul.f32 %v11727_v42, %v15332_v1  ;;  %v2481_v45 = vadd.s32 1, %v8228_v0  ;;  %v11853_v40 = vadd.f32 %v11616_v11, %v1308_v8 }
 0x480   :  { %v2219_v38 = vadd.s32 %v2218_v37, %v2214_v24  ;;  %vm2043_vm7 = vweird.f32 %v11542_v22  ;;  %v2338_v58 = vor.u32 %v2337_v53, %v2336_v60  ;;  %v2341_v9 = vshll.u32 %v2340_v33, 23 }
 0x481   :  { %v11857_v29 = vmul.f32 %v11604_v23, %v951_v12  ;;  %vm2046_vm8 = vcmp.lt.s32.totalorder %v2045_v20, 2  ;;  %v2356_v61 = vadd.s32 3, %v2352_v3  ;;  %vm2482_vm9 = vcmp.gt.s32.totalorder %v2481_v45, 0 }
 0x482   :  { %v2220_v17 = vadd.s32 536870912, %v2219_v38  ;;  %vm2047_vm10 = vcmp.eq.s32.totalorder %v2045_v20, 0  ;;  %v2342_v43 = vor.u32 4788187, %v2341_v9  ;;  %v2479_v14 = vor.u32 8388608, %v2478_v44 }
 0x483   :  { %v2483_v56 = vsel %vm2482_vm9, %v2481_v45, 0  ;;  %v8873_v18 = vpop.eup %8872  ;;  %v2367_v52 = vand.u32 2147483647, %v11853_v40  ;;  %v2370_v63 = vand.u32 2139095040, %v11853_v40  ;;  %vm2050_vm11 = vcmp.eq.s32.totalorder %v2045_v20, 2 }
 0x484   :  { %v2221_v5 = vshrl.u32 %v2220_v17, 30  ;;  %v2485_v21 = vand.u32 31, %v2483_v56  ;;  %v8875_v26 = vpop.eup %8874  ;;  %v2051_v30 = vxor.u32 2147483648, %v8873_v18  ;;  %v2343_v2 = vand.u32 2147483647, %v2342_v43 }
 0x485   :  { %v2345_v51 = vcvt.s32.f32 %v2338_v58  ;;  %v2048_v50 = vxor.u32 2147483648, %v8875_v26  ;;  %v11861_v62 = vand.u32 3, %v2356_v61  ;;  %vm2161_vm12 = vcmp.lt.s32.totalorder %v11619_v16, 0 }
 0x486   :  { %v2222_v25 = vshll.u32 %v2221_v5, 30  ;;  %v2486_v54 = vsub.s32 32, %v2485_v21  ;;  %v2052_v36 = vsel %vm2050_vm11, %v2051_v30, %v8875_v26  ;;  %v11866_v19 = vadd.s32 %v11816_v15, %v11829_v57 }
 0x487   :  { %v2346_v47 = vmul.f32 %v2345_v51, %v2343_v2  ;;  %v11868_v46 = vshll.u32 %v2479_v14, 8  ;;  %v2049_v31 = vsel %vm2047_vm10, %v8873_v18, %v2048_v50  ;;  %v2371_v8 = vshrl.u32 %v2370_v63, 23 }
 0x488   :  { %v11871_v48 = vsub.s32 %v2219_v38, %v2222_v25  ;;  %v11875_v7 = vand.u32 8388607, %v2367_v52  ;;  %v2053_v27 = vsel %vm2046_vm8, %v2049_v31, %v2052_v36  ;;  %v2484_v3 = vshrl.u32 %v2483_v56, 5 }
 0x489   :  { %v2347_v49 = vxor.u32 2147483648, %v2346_v47  ;;  %v2489_v24 = vshrl.u32 %v15266_v39, %v2486_v54  ;;  %v2054_v15 = vsel %vm2043_vm7, nan, %v2053_v27  ;;  %v2488_v0 = vshll.u32 %v15264_v28, %v2485_v21 }
 0x48a   :  { %v2225_v57 = vsub.s32 0, %v11871_v48  ;;  %v2492_v44 = vshrl.u32 %v15267_v41, %v2486_v54  ;;  %8092 = vst [vmem:[#allocation8 + $0x28] sm:$0xff] %v2054_v15  ;;  %vm11888_vm14 = vcmp.le.f32.partialorder %v2159_v6, 0.7853982  ;;  %v2245_v60 = vsub.s32 4, %v2221_v5 }
 0x48b   :  { %v2348_v12 = vsel %vm2265_vm15, %v2347_v49, %v2346_v47  ;;  %v2491_v22 = vshll.u32 %v15266_v39, %v2485_v21  ;;  %v2495_v53 = vshrl.u32 %v15268_v35, %v2486_v54  ;;  %v2490_v1 = vor.u32 %v2489_v24, %v2488_v0 }
 0x48c   :  { %v2351_v33 = vsel %vm11792_vm3, %v11592_v34, %v2348_v12  ;;  %v8217_v37 = vmin.u32 %v2225_v57, %v11871_v48  ;;  %v2494_v38 = vshll.u32 %v15267_v41, %v2485_v21  ;;  %v2497_v6 = vshll.u32 %v15268_v35, %v2485_v21 }
 0x48d   :  { %8876 = vcosq.f32 %v2351_v33  ;;  %v2493_v45 = vor.u32 %v2492_v44, %v2491_v22  ;;  %v2498_v58 = vshrl.u32 %v15269_v13, %v2486_v54  ;;  %v8224_v17 = vadd.s32 4294967169, %v2371_v8 }
 0x48e   :  { %8878 = vsinq.f32 %v2351_v33  ;;  %v2227_v9 = vclz %v8217_v37  ;;  %v2496_v61 = vor.u32 %v2495_v53, %v2494_v38  ;;  %v2487_v43 = vshrl.u32 %v15264_v28, %v2486_v54 }
 0x48f   :  { %v2499_v14 = vor.u32 %v2498_v58, %v2497_v6  ;;  %v2500_v10 = vshll.u32 %v15269_v13, %v2485_v21  ;;  %v2501_v56 = vshrl.u32 %v15270_v59, %v2486_v54  ;;  %v2246_v63 = vsel %vm2161_vm12, %v2245_v60, %v2221_v5 }
 0x490   :  { %v8218_v18 = vadd.s32 4294967294, %v2227_v9  ;;  %vm2503_vm13 = vcmp.lt.s32.totalorder %v2484_v3, 1  ;;  %vm2505_vm15 = vcmp.lt.s32.totalorder %v2484_v3, 3  ;;  %vm2362_vm0 = vcmp.eq.s32.totalorder %v11861_v62, 2 }
 0x491   :  { %v2502_v26 = vor.u32 %v2501_v56, %v2500_v10  ;;  %vm2506_vm1 = vcmp.lt.s32.totalorder %v2484_v3, 4  ;;  %v2507_v30 = vsel %vm2503_vm13, %v2487_v43, %v2490_v1  ;;  %v2511_v2 = vsel %vm2503_vm13, %v2490_v1, %v2493_v45 }
 0x492   :  { %vm8219_vm2 = vcmp.lt.s32.totalorder %v8218_v18, 0  ;;  %v2508_v51 = vsel %vm2506_vm1, %v2496_v61, 2102212464  ;;  %v2512_v50 = vsel %vm2506_vm1, %v2499_v14, 920167782  ;;  %v2515_v25 = vsel %vm2503_vm13, %v2493_v45, %v2496_v61 }
 0x493   :  { %vm2358_vm3 = vcmp.lt.s32.totalorder %v11861_v62, 2  ;;  %v2230_v21 = vsel %vm8219_vm2, 0, %v8218_v18  ;;  %v2509_v54 = vsel %vm2505_vm15, %v2493_v45, %v2508_v51  ;;  %v2513_v36 = vsel %vm2505_vm15, %v2496_v61, %v2512_v50 }
 0x494   :  { %v2516_v5 = vsel %vm2506_vm1, %v2502_v26, 1326507024  ;;  %vm2355_vm4 = vweird.f32 %v11592_v34  ;;  %v2231_v47 = vsub.s32 32, %v2230_v21  ;;  %v2235_v31 = vsub.s32 4294967266, %v2230_v21 }
 0x495   :  { %v2248_v8 = vsel %vm11888_vm14, 0, %v2246_v63  ;;  %vm2504_vm5 = vcmp.lt.s32.totalorder %v2484_v3, 2  ;;  %v2232_v27 = vshll.u32 %v11871_v48, %v2230_v21  ;;  %v2517_v24 = vsel %vm2505_vm15, %v2499_v14, %v2516_v5 }
 0x496   :  { %v2514_v49 = vsel %vm2504_vm5, %v2511_v2, %v2513_v36  ;;  %v2377_v15 = vadd.s32 1, %v8224_v17  ;;  %v2233_v57 = vshrl.u32 %v11866_v19, %v2231_v47  ;;  %v2236_v0 = vadd.s32 127, %v2235_v31 }
 0x497   :  { %v2510_v44 = vsel %vm2504_vm5, %v2507_v30, %v2509_v54  ;;  %v2518_v12 = vsel %vm2504_vm5, %v2515_v25, %v2517_v24  ;;  %v8877_v60 = vpop.eup %8876  ;;  %v11921_v33 = vmul.u32.u64.low %v11868_v46, %v2514_v49  ;;  %v11922_v37 = vmul.u32.u64.high %v11868_v46, %v2514_v49, %v11921_v33 }
 0x498   :  { %v11917_v22 = vmul.u32.u64.low %v11868_v46, %v2518_v12  ;;  %v11918_v53 = vmul.u32.u64.high %v11868_v46, %v2518_v12, %v11917_v22  ;;  %v8879_v48 = vpop.eup %8878  ;;  %v2363_v1 = vxor.u32 2147483648, %v8877_v60  ;;  %v2234_v3 = vor.u32 %v2233_v57, %v2232_v27 }
 0x499   :  { %v2237_v38 = vshll.u32 %v2236_v0, 23  ;;  %vm2378_vm6 = vcmp.gt.s32.totalorder %v2377_v15, 0  ;;  %v2360_v45 = vxor.u32 2147483648, %v8879_v48  ;;  %v2252_v19 = vadd.s32 3, %v2248_v8 }
 0x49a   :  { %v2375_v6 = vor.u32 8388608, %v11875_v7  ;;  %v2379_v58 = vsel %vm2378_vm6, %v2377_v15, 0  ;;  %vm2359_vm7 = vcmp.eq.s32.totalorder %v11861_v62, 0  ;;  %v2364_v9 = vsel %vm2362_vm0, %v2363_v1, %v8879_v48 }
 0x49b   :  { %v2238_v61 = vor.u32 4788187, %v2237_v38  ;;  %v1311_v17 = vadd.f32 %v11857_v29, %v11850_v55  ;;  %v2361_v43 = vsel %vm2359_vm7, %v8877_v60, %v2360_v45  ;;  %v2526_v14 = vmul.u32 %v11868_v46, %v2510_v44 }
 0x49c   :  { %vm2528_vm8 = vc.u32 %v11918_v53, %v11921_v33  ;;  %v2529_v10 = vadd.s32 1, %v11922_v37  ;;  %v2365_v7 = vsel %vm2358_vm3, %v2361_v43, %v2364_v9  ;;  %v2241_v18 = vcvt.s32.f32 %v2234_v3 }
 0x49d   :  { %v2239_v56 = vand.u32 2147483647, %v2238_v61  ;;  %v2381_v63 = vand.u32 31, %v2379_v58  ;;  %v2366_v26 = vsel %vm2355_vm4, nan, %v2365_v7  ;;  %v11939_v30 = vand.u32 3, %v2252_v19 }
 0x49e   :  { %v2530_v55 = vsel %vm2528_vm8, %v2529_v10, %v11922_v37  ;;  %v11942_v29 = vshll.u32 %v2375_v6, 8  ;;  %8095 = vst [vmem:[#allocation8 + $0x40] sm:$0xff] %v2366_v26  ;;  %v11945_v50 = vadd.f32 %v11616_v11, %v1311_v17  ;;  %v2380_v62 = vshrl.u32 %v2379_v58, 5 }
 0x49f   :  { %v2242_v46 = vmul.f32 %v2241_v18, %v2239_v56  ;;  %v2531_v2 = vadd.s32 %v2530_v55, %v2526_v14  ;;  %v2382_v51 = vsub.s32 32, %v2381_v63  ;;  %v2384_v25 = vshll.u32 %v15264_v28, %v2381_v63 }
 0x4a0   :  { %v2387_v21 = vshll.u32 %v15266_v39, %v2381_v63  ;;  %v2390_v34 = vshll.u32 %v15267_v41, %v2381_v63  ;;  %v2393_v47 = vshll.u32 %v15268_v35, %v2381_v63  ;;  %v2396_v57 = vshll.u32 %v15269_v13, %v2381_v63 }
 0x4a1   :  { %v2243_v54 = vxor.u32 2147483648, %v2242_v46  ;;  %v2532_v36 = vadd.s32 536870912, %v2531_v2  ;;  %v2385_v5 = vshrl.u32 %v15266_v39, %v2382_v51  ;;  %v2388_v31 = vshrl.u32 %v15267_v41, %v2382_v51 }
 0x4a2   :  { %v2391_v8 = vshrl.u32 %v15268_v35, %v2382_v51  ;;  %v2394_v11 = vshrl.u32 %v15269_v13, %v2382_v51  ;;  %v2397_v27 = vshrl.u32 %v15270_v59, %v2382_v51  ;;  %vm2399_vm9 = vcmp.lt.s32.totalorder %v2380_v62, 1 }
 0x4a3   :  { %v2244_v49 = vsel %vm2161_vm12, %v2243_v54, %v2242_v46  ;;  %v2533_v24 = vshrl.u32 %v2532_v36, 30  ;;  %v2386_v15 = vor.u32 %v2385_v5, %v2384_v25  ;;  %v2389_v44 = vor.u32 %v2388_v31, %v2387_v21 }
 0x4a4   :  { %v2247_v0 = vsel %vm11888_vm14, %v11619_v16, %v2244_v49  ;;  %v2392_v12 = vor.u32 %v2391_v8, %v2390_v34  ;;  %v2395_v60 = vor.u32 %v2394_v11, %v2393_v47  ;;  %v2398_v37 = vor.u32 %v2397_v27, %v2396_v57 }
 0x4a5   :  { %8880 = vcosq.f32 %v2247_v0  ;;  %v2534_v22 = vshll.u32 %v2533_v24, 30  ;;  %vm2401_vm10 = vcmp.lt.s32.totalorder %v2380_v62, 3  ;;  %vm2402_vm11 = vcmp.lt.s32.totalorder %v2380_v62, 4 }
 0x4a6   :  { %8882 = vsinq.f32 %v2247_v0  ;;  %v2407_v48 = vsel %vm2399_vm9, %v2386_v15, %v2389_v44  ;;  %v2383_v3 = vshrl.u32 %v15264_v28, %v2382_v51  ;;  %v2404_v38 = vsel %vm2402_vm11, %v2392_v12, 2102212464 }
 0x4a7   :  { %v11962_v1 = vsub.s32 %v2531_v2, %v2534_v22  ;;  %v2408_v45 = vsel %vm2402_vm11, %v2395_v60, 920167782  ;;  %v2557_v19 = vsub.s32 4, %v2533_v24  ;;  %vm2400_vm12 = vcmp.lt.s32.totalorder %v2380_v62, 2  ;;  %v944_v2 = vpop.permute.xlu1 %943 }
 0x4a8   :  { %v2409_v20 = vsel %vm2401_vm10, %v2392_v12, %v2408_v45  ;;  %v2411_v6 = vsel %vm2399_vm9, %v2389_v44, %v2392_v12  ;;  %v2403_v9 = vsel %vm2399_vm9, %v2383_v3, %v2386_v15  ;;  %v2412_v17 = vsel %vm2402_vm11, %v2398_v37, 1326507024 }
 0x4a9   :  { %v2537_v58 = vsub.s32 0, %v11962_v1  ;;  %v2410_v61 = vsel %vm2400_vm12, %v2407_v48, %v2409_v20  ;;  %v2405_v43 = vsel %vm2401_vm10, %v2389_v44, %v2404_v38  ;;  %v2413_v14 = vsel %vm2401_vm10, %v2395_v60, %v2412_v17 }
 0x4aa   :  { %v11971_v10 = vmul.u32.u64.low %v11942_v29, %v2410_v61  ;;  %v11972_v7 = vmul.u32.u64.high %v11942_v29, %v2410_v61, %v11971_v10  ;;  %vm11977_vm14 = vcmp.le.f32.partialorder %v2471_v4, 0.7853982  ;;  %vm2473_vm13 = vcmp.lt.s32.totalorder %v11782_v32, 0  ;;  %v15337_v61 = vld [vmem:[#allocation37_spill] sm:$0xff] }
 0x4ab   :  { %v8229_v18 = vmin.u32 %v2537_v58, %v11962_v1  ;;  %v2414_v63 = vsel %vm2400_vm12, %v2411_v6, %v2413_v14  ;;  %vm2251_vm15 = vweird.f32 %v11619_v16  ;;  %v2558_v26 = vsel %vm2473_vm13, %v2557_v19, %v2533_v24 }
 0x4ac   :  { %v11988_v55 = vmul.u32.u64.low %v11942_v29, %v2414_v63  ;;  %v11989_v46 = vmul.u32.u64.high %v11942_v29, %v2414_v63, %v11988_v55  ;;  %v2682_v4 = vand.u32 2139095040, %v11945_v50  ;;  %vm2254_vm0 = vcmp.lt.s32.totalorder %v11939_v30, 2  ;;  %v12028_v63 = vld [vmem:[%s15203_s3 + $0x1] ss:$0 sm:$0xff] }
 0x4ad   :  { %v2539_v51 = vclz %v8229_v18  ;;  %v2406_v25 = vsel %vm2400_vm12, %v2403_v9, %v2405_v43  ;;  %v2679_v21 = vand.u32 2147483647, %v11945_v50  ;;  %vm2255_vm1 = vcmp.eq.s32.totalorder %v11939_v30, 0  ;;  %v962_v9 = vpop.permute.xlu0 %961 }
 0x4ae   :  { %vm2258_vm2 = vcmp.eq.s32.totalorder %v11939_v30, 2  ;;  %v2425_v34 = vadd.s32 1, %v11972_v7  ;;  %v2683_v54 = vshrl.u32 %v2682_v4, 23  ;;  %v2527_v5 = vadd.s32 %v11921_v33, %v11918_v53 }
 0x4af   :  { %v8881_v36 = vpop.eup %8880  ;;  %v8230_v47 = vadd.s32 4294967294, %v2539_v51  ;;  %v2560_v31 = vsel %vm11977_vm14, 0, %v2558_v26  ;;  %v1246_v62 = vmul.f32 %v11604_v23, %v944_v2  ;;  %v2422_v27 = vmul.u32 %v11942_v29, %v2406_v25 }
 0x4b0   :  { %v8883_v8 = vpop.eup %8882  ;;  %v2259_v11 = vxor.u32 2147483648, %v8881_v36  ;;  %vm2424_vm3 = vc.u32 %v11989_v46, %v11971_v10  ;;  %v8236_v49 = vadd.s32 4294967169, %v2683_v54  ;;  %v2686_v53 = vand.u32 8388607, %v2679_v21 }
 0x4b1   :  { %v2256_v24 = vxor.u32 2147483648, %v8883_v8  ;;  %vm8231_vm4 = vcmp.lt.s32.totalorder %v8230_v47, 0  ;;  %v2426_v15 = vsel %vm2424_vm3, %v2425_v34, %v11972_v7  ;;  %v2564_v60 = vadd.s32 3, %v2560_v31 }
 0x4b2   :  { %v2260_v33 = vsel %vm2258_vm2, %v2259_v11, %v8883_v8  ;;  %v2542_v57 = vsel %vm8231_vm4, 0, %v8230_v47  ;;  %v2427_v23 = vadd.s32 %v2426_v15, %v2422_v27  ;;  %v2689_v0 = vadd.s32 1, %v8236_v49 }
 0x4b3   :  { %v2257_v29 = vsel %vm2255_vm1, %v8881_v36, %v2256_v24  ;;  %v2543_v44 = vsub.s32 32, %v2542_v57  ;;  %v2547_v12 = vsub.s32 4294967266, %v2542_v57  ;;  %v2544_v37 = vshll.u32 %v11962_v1, %v2542_v57 }
 0x4b4   :  { %v2261_v22 = vsel %vm2254_vm0, %v2257_v29, %v2260_v33  ;;  %v2428_v48 = vadd.s32 536870912, %v2427_v23  ;;  %vm2690_vm5 = vcmp.gt.s32.totalorder %v2689_v0, 0  ;;  %v2687_v6 = vor.u32 8388608, %v2686_v53 }
 0x4b5   :  { %v2262_v3 = vsel %vm2251_vm15, nan, %v2261_v22  ;;  %v2545_v38 = vshrl.u32 %v2527_v5, %v2543_v44  ;;  %v2548_v45 = vadd.s32 127, %v2547_v12  ;;  %v2691_v19 = vsel %vm2690_vm5, %v2689_v0, 0  ;;  %v12056_v12 = vld [vmem:[%s15203_s3 + $0x2] ss:$0 sm:$0xff] }
 0x4b6   :  { %8094 = vst [vmem:[#allocation8 + $0x38] sm:$0xff] %v2262_v3  ;;  %v12018_v20 = vshrl.u32 %v2428_v48, 30  ;;  %v2693_v58 = vand.u32 31, %v2691_v19  ;;  %v826_v30 = vmul.f32 %v11727_v42, %v15337_v61  ;;  %v12023_v16 = vand.u32 3, %v2564_v60 }
 0x4b7   :  { %v2546_v17 = vor.u32 %v2545_v38, %v2544_v37  ;;  %v2549_v43 = vshll.u32 %v2548_v45, 23  ;;  %v12031_v26 = vmul.f32 %v12028_v63, %v962_v9  ;;  %v2423_v55 = vadd.s32 %v11971_v10, %v11989_v46 }
 0x4b8   :  { %v2430_v1 = vshll.u32 %v12018_v20, 30  ;;  %v2694_v14 = vsub.s32 32, %v2693_v58  ;;  %v1310_v18 = vadd.f32 %v1246_v62, %v826_v30  ;;  %v12038_v51 = vshll.u32 %v2687_v6, 8 }
 0x4b9   :  { %v2550_v7 = vor.u32 4788187, %v2549_v43  ;;  %v2553_v34 = vcvt.s32.f32 %v2546_v17  ;;  %v2692_v47 = vshrl.u32 %v2691_v19, 5  ;;  %v2696_v31 = vshll.u32 %v15264_v28, %v2693_v58 }
 0x4ba   :  { %v12035_v4 = vsub.s32 %v2427_v23, %v2430_v1  ;;  %v2697_v2 = vshrl.u32 %v15266_v39, %v2694_v14  ;;  %v2700_v54 = vshrl.u32 %v15267_v41, %v2694_v14  ;;  %v2703_v36 = vshrl.u32 %v15268_v35, %v2694_v14 }
 0x4bb   :  { %v2551_v25 = vand.u32 2147483647, %v2550_v7  ;;  %v2699_v62 = vshll.u32 %v15266_v39, %v2693_v58  ;;  %v2702_v46 = vshll.u32 %v15267_v41, %v2693_v58  ;;  %v2705_v8 = vshll.u32 %v15268_v35, %v2693_v58 }
 0x4bc   :  { %v2433_v5 = vsub.s32 0, %v12035_v4  ;;  %v2706_v11 = vshrl.u32 %v15269_v13, %v2694_v14  ;;  %v2698_v49 = vor.u32 %v2697_v2, %v2696_v31  ;;  %v2709_v15 = vshrl.u32 %v15270_v59, %v2694_v14  ;;  %v15338_v31 = vld [vmem:[#allocation38_spill] sm:$0xff] }
 0x4bd   :  { %v2554_v10 = vmul.f32 %v2553_v34, %v2551_v25  ;;  %v2701_v24 = vor.u32 %v2700_v54, %v2699_v62  ;;  %v2704_v33 = vor.u32 %v2703_v36, %v2702_v46  ;;  %v2708_v23 = vshll.u32 %v15269_v13, %v2693_v58 }
 0x4be   :  { %v8225_v27 = vmin.u32 %v2433_v5, %v12035_v4  ;;  %v2707_v57 = vor.u32 %v2706_v11, %v2705_v8  ;;  %v2453_v29 = vsub.s32 4, %v12018_v20  ;;  %v2695_v44 = vshrl.u32 %v15264_v28, %v2694_v14 }
 0x4bf   :  { %v2555_v53 = vxor.u32 2147483648, %v2554_v10  ;;  %v12059_v60 = vadd.f32 %v12056_v12, %v1310_v18  ;;  %v2710_v37 = vor.u32 %v2709_v15, %v2708_v23  ;;  %vm2711_vm6 = vcmp.lt.s32.totalorder %v2692_v47, 1 }
 0x4c0   :  { %v2435_v0 = vclz %v8225_v27  ;;  %vm2712_vm7 = vcmp.lt.s32.totalorder %v2692_v47, 2  ;;  %vm2713_vm8 = vcmp.lt.s32.totalorder %v2692_v47, 3  ;;  %vm2714_vm9 = vcmp.lt.s32.totalorder %v2692_v47, 4 }
 0x4c1   :  { %v2556_v22 = vsel %vm2473_vm13, %v2555_v53, %v2554_v10  ;;  %v2716_v38 = vsel %vm2714_vm9, %v2704_v33, 2102212464  ;;  %v2719_v45 = vsel %vm2711_vm6, %v2698_v49, %v2701_v24  ;;  %v2720_v19 = vsel %vm2714_vm9, %v2707_v57, 920167782 }
 0x4c2   :  { %v2559_v48 = vsel %vm11977_vm14, %v11782_v32, %v2556_v22  ;;  %v8226_v3 = vadd.s32 4294967294, %v2435_v0  ;;  %v2715_v6 = vsel %vm2711_vm6, %v2695_v44, %v2698_v49  ;;  %v2721_v58 = vsel %vm2713_vm8, %v2704_v33, %v2720_v19 }
 0x4c3   :  { %8884 = vcosq.f32 %v2559_v48  ;;  %v2722_v61 = vsel %vm2712_vm7, %v2719_v45, %v2721_v58  ;;  %v2723_v56 = vsel %vm2711_vm6, %v2701_v24, %v2704_v33  ;;  %v2724_v30 = vsel %vm2714_vm9, %v2710_v37, 1326507024  ;;  %v955_v58 = vpop.permute.xlu1 %954 }
 0x4c4   :  { %8886 = vsinq.f32 %v2559_v48  ;;  %vm8227_vm10 = vcmp.lt.s32.totalorder %v8226_v3, 0  ;;  %v2717_v1 = vsel %vm2713_vm8, %v2701_v24, %v2716_v38  ;;  %v2725_v14 = vsel %vm2713_vm8, %v2707_v57, %v2724_v30 }
 0x4c5   :  { %v2438_v9 = vsel %vm8227_vm10, 0, %v8226_v3  ;;  %v2726_v18 = vsel %vm2712_vm7, %v2723_v56, %v2725_v14  ;;  %v12076_v2 = vmul.u32.u64.low %v12038_v51, %v2722_v61  ;;  %v12077_v25 = vmul.u32.u64.high %v12038_v51, %v2722_v61, %v12076_v2 }
 0x4c6   :  { %v2439_v17 = vsub.s32 32, %v2438_v9  ;;  %v2443_v43 = vsub.s32 4294967266, %v2438_v9  ;;  %v2440_v7 = vshll.u32 %v12035_v4, %v2438_v9  ;;  %v829_v62 = vmul.f32 %v11727_v42, %v15338_v31 }
 0x4c7   :  { %v12080_v36 = vmul.u32.u64.low %v12038_v51, %v2726_v18  ;;  %v12081_v5 = vmul.u32.u64.high %v12038_v51, %v2726_v18, %v12080_v36  ;;  %vm2369_vm11 = vcmp.lt.s32.totalorder %v11853_v40, 0  ;;  %v2718_v10 = vsel %vm2712_vm7, %v2715_v6, %v2717_v1 }
 0x4c8   :  { %v2441_v34 = vshrl.u32 %v2423_v55, %v2439_v17  ;;  %v2444_v54 = vadd.s32 127, %v2443_v43  ;;  %v2578_v4 = vand.u32 2139095040, %v12059_v60  ;;  %vm2563_vm12 = vweird.f32 %v11782_v32  ;;  %v15341_v17 = vld [vmem:[#allocation39_spill] sm:$0xff] }
 0x4c9   :  { %v2454_v55 = vsel %vm2369_vm11, %v2453_v29, %v12018_v20  ;;  %vm2566_vm14 = vcmp.lt.s32.totalorder %v12023_v16, 2  ;;  %vm12095_vm13 = vcmp.le.f32.partialorder %v2367_v52, 0.7853982  ;;  %v2737_v47 = vadd.s32 1, %v12077_v25 }
 0x4ca   :  { %v2442_v46 = vor.u32 %v2441_v34, %v2440_v7  ;;  %v2445_v8 = vshll.u32 %v2444_v54, 23  ;;  %v2579_v27 = vshrl.u32 %v2578_v4, 23  ;;  %v2734_v24 = vmul.u32 %v12038_v51, %v2718_v10 }
 0x4cb   :  { %vm2736_vm15 = vc.u32 %v12081_v5, %v12076_v2  ;;  %v1313_v15 = vadd.f32 %v12031_v26, %v829_v62  ;;  %v2456_v20 = vsel %vm12095_vm13, 0, %v2454_v55  ;;  %v2575_v52 = vand.u32 2147483647, %v12059_v60 }
 0x4cc   :  { %v2446_v49 = vor.u32 4788187, %v2445_v8  ;;  %v2738_v33 = vsel %vm2736_vm15, %v2737_v47, %v12077_v25  ;;  %v8232_v57 = vadd.s32 4294967169, %v2579_v27  ;;  %v2449_v44 = vcvt.s32.f32 %v2442_v46 }
 0x4cd   :  { %v8885_v53 = vpop.eup %8884  ;;  %v2739_v22 = vadd.s32 %v2738_v33, %v2734_v24  ;;  %vm2567_vm0 = vcmp.eq.s32.totalorder %v12023_v16, 0  ;;  %vm2570_vm1 = vcmp.eq.s32.totalorder %v12023_v16, 2  ;;  %v2460_v3 = vadd.s32 3, %v2456_v20 }
 0x4ce   :  { %v8887_v23 = vpop.eup %8886  ;;  %v2571_v0 = vxor.u32 2147483648, %v8885_v53  ;;  %v2447_v29 = vand.u32 2147483647, %v2446_v49  ;;  %v2585_v26 = vadd.s32 1, %v8232_v57  ;;  %v2582_v19 = vand.u32 8388607, %v2575_v52 }
 0x4cf   :  { %v2568_v51 = vxor.u32 2147483648, %v8887_v23  ;;  %v2740_v38 = vadd.s32 536870912, %v2739_v22  ;;  %v12112_v6 = vadd.f32 %v12056_v12, %v1313_v15  ;;  %v12118_v43 = vmul.f32 %v11727_v42, %v15341_v17 }
 0x4d0   :  { %v2572_v37 = vsel %vm2570_vm1, %v2571_v0, %v8887_v23  ;;  %v2450_v48 = vmul.f32 %v2449_v44, %v2447_v29  ;;  %vm2586_vm2 = vcmp.gt.s32.totalorder %v2585_v26, 0  ;;  %vm2681_vm3 = vcmp.lt.s32.totalorder %v11945_v50, 0 }
 0x4d1   :  { %v2569_v45 = vsel %vm2567_vm0, %v8885_v53, %v2568_v51  ;;  %v2741_v56 = vshrl.u32 %v2740_v38, 30  ;;  %v2587_v30 = vsel %vm2586_vm2, %v2585_v26, 0  ;;  %v12125_v18 = vand.u32 3, %v2460_v3 }
 0x4d2   :  { %v2573_v9 = vsel %vm2566_vm14, %v2569_v45, %v2572_v37  ;;  %v2451_v61 = vxor.u32 2147483648, %v2450_v48  ;;  %v2589_v14 = vand.u32 31, %v2587_v30  ;;  %v12128_v25 = vmul.f32 %v12028_v63, %v955_v58 }
 0x4d3   :  { %v2574_v1 = vsel %vm2563_vm12, nan, %v2573_v9  ;;  %v2742_v16 = vshll.u32 %v2741_v56, 30  ;;  %v12134_v32 = vadd.s32 %v12076_v2, %v12081_v5  ;;  %v2583_v34 = vor.u32 8388608, %v2582_v19 }
 0x4d4   :  { %8097 = vst [vmem:[#allocation8 + $0x50] sm:$0xff] %v2574_v1  ;;  %v2452_v7 = vsel %vm2369_vm11, %v2451_v61, %v2450_v48  ;;  %v2590_v54 = vsub.s32 32, %v2589_v14  ;;  %v2887_v31 = vand.u32 2147483647, %v12112_v6  ;;  %v2890_v62 = vand.u32 2139095040, %v12112_v6 }
 0x4d5   :  { %v2455_v42 = vsel %vm12095_vm13, %v11853_v40, %v2452_v7  ;;  %v12136_v36 = vsub.s32 %v2739_v22, %v2742_v16  ;;  %v2765_v10 = vsub.s32 4, %v2741_v56  ;;  %v2592_v4 = vshll.u32 %v15264_v28, %v2589_v14 }
 0x4d6   :  { %8888 = vcosq.f32 %v2455_v42  ;;  %v2593_v46 = vshrl.u32 %v15266_v39, %v2590_v54  ;;  %v2596_v2 = vshrl.u32 %v15267_v41, %v2590_v54  ;;  %v2598_v5 = vshll.u32 %v15267_v41, %v2589_v14 }
 0x4d7   :  { %8890 = vsinq.f32 %v2455_v42  ;;  %v2745_v8 = vsub.s32 0, %v12136_v36  ;;  %v2599_v55 = vshrl.u32 %v15268_v35, %v2590_v54  ;;  %v12146_v11 = vshrl.u32 %v2587_v30, 5 }
 0x4d8   :  { %v2595_v47 = vshll.u32 %v15266_v39, %v2589_v14  ;;  %v2601_v27 = vshll.u32 %v15268_v35, %v2589_v14  ;;  %v2602_v49 = vshrl.u32 %v15269_v13, %v2590_v54  ;;  %vm2466_vm4 = vcmp.eq.s32.totalorder %v12125_v18, 2 }
 0x4d9   :  { %v8237_v24 = vmin.u32 %v2745_v8, %v12136_v36  ;;  %v2594_v15 = vor.u32 %v2593_v46, %v2592_v4  ;;  %v2600_v53 = vor.u32 %v2599_v55, %v2598_v5  ;;  %v12153_v20 = vshll.u32 %v2583_v34, 8 }
 0x4da   :  { %vm2463_vm5 = vcmp.eq.s32.totalorder %v12125_v18, 0  ;;  %v2597_v33 = vor.u32 %v2596_v2, %v2595_v47  ;;  %v2603_v57 = vor.u32 %v2602_v49, %v2601_v27  ;;  %v2604_v23 = vshll.u32 %v15269_v13, %v2589_v14 }
 0x4db   :  { %v2605_v0 = vshrl.u32 %v15270_v59, %v2590_v54  ;;  %vm2462_vm6 = vcmp.lt.s32.totalorder %v12125_v18, 2  ;;  %v2747_v29 = vclz %v8237_v24  ;;  %v2766_v44 = vsel %vm2681_vm3, %v2765_v10, %v2741_v56 }
 0x4dc   :  { %v2891_v22 = vshrl.u32 %v2890_v62, 23  ;;  %v12163_v51 = vand.u32 8388607, %v2887_v31  ;;  %vm2459_vm7 = vweird.f32 %v11853_v40  ;;  %v2591_v26 = vshrl.u32 %v15264_v28, %v2590_v54 }
 0x4dd   :  { %v2606_v37 = vor.u32 %v2605_v0, %v2604_v23  ;;  %vm2607_vm8 = vcmp.lt.s32.totalorder %v12146_v11, 1  ;;  %vm2610_vm9 = vcmp.lt.s32.totalorder %v12146_v11, 4  ;;  %v8238_v48 = vadd.s32 4294967294, %v2747_v29  ;;  %v12211_v0 = vld [vmem:[%s15203_s3] ss:$0 sm:$0xff] }
 0x4de   :  { %vm2609_vm10 = vcmp.lt.s32.totalorder %v12146_v11, 3  ;;  %v2612_v3 = vsel %vm2610_vm9, %v2600_v53, 2102212464  ;;  %v2616_v38 = vsel %vm2610_vm9, %v2603_v57, 920167782  ;;  %v2615_v45 = vsel %vm2607_vm8, %v2594_v15, %v2597_v33  ;;  %v15344_v29 = vld [vmem:[#allocation40_spill] sm:$0xff] }
 0x4df   :  { %v2617_v19 = vsel %vm2609_vm10, %v2600_v53, %v2616_v38  ;;  %v2619_v58 = vsel %vm2607_vm8, %v2597_v33, %v2600_v53  ;;  %v2620_v9 = vsel %vm2610_vm9, %v2606_v37, 1326507024  ;;  %vm8239_vm11 = vcmp.lt.s32.totalorder %v8238_v48, 0 }
 0x4e0   :  { %v8889_v61 = vpop.eup %8888  ;;  %vm2608_vm12 = vcmp.lt.s32.totalorder %v12146_v11, 2  ;;  %v2611_v56 = vsel %vm2607_vm8, %v2591_v26, %v2594_v15  ;;  %v2621_v30 = vsel %vm2609_vm10, %v2603_v57, %v2620_v9  ;;  %v2750_v14 = vsel %vm8239_vm11, 0, %v8238_v48 }
 0x4e1   :  { %v8891_v17 = vpop.eup %8890  ;;  %v2467_v1 = vxor.u32 2147483648, %v8889_v61  ;;  %v2613_v7 = vsel %vm2609_vm10, %v2597_v33, %v2612_v3  ;;  %v2622_v16 = vsel %vm2608_vm12, %v2619_v58, %v2621_v30  ;;  %v2751_v34 = vsub.s32 32, %v2750_v14 }
 0x4e2   :  { %v2464_v42 = vxor.u32 2147483648, %v8891_v17  ;;  %v2755_v54 = vsub.s32 4294967266, %v2750_v14  ;;  %v2618_v62 = vsel %vm2608_vm12, %v2615_v45, %v2617_v19  ;;  %v8244_v8 = vadd.s32 4294967169, %v2891_v22 }
 0x4e3   :  { %v2468_v10 = vsel %vm2466_vm4, %v2467_v1, %v8891_v17  ;;  %v12178_v4 = vmul.u32.u64.low %v12153_v20, %v2622_v16  ;;  %v12179_v46 = vmul.u32.u64.high %v12153_v20, %v2622_v16, %v12178_v4  ;;  %v2752_v5 = vshll.u32 %v12136_v36, %v2750_v14 }
 0x4e4   :  { %v2465_v2 = vsel %vm2463_vm5, %v8889_v61, %v2464_v42  ;;  %v2753_v55 = vshrl.u32 %v12134_v32, %v2751_v34  ;;  %v2756_v47 = vadd.s32 127, %v2755_v54  ;;  %v2897_v15 = vadd.s32 1, %v8244_v8 }
 0x4e5   :  { %v2469_v27 = vsel %vm2462_vm6, %v2465_v2, %v2468_v10  ;;  %v12188_v49 = vmul.u32.u64.low %v12153_v20, %v2618_v62  ;;  %v12189_v24 = vmul.u32.u64.high %v12153_v20, %v2618_v62, %v12188_v49  ;;  %vm12196_vm14 = vcmp.le.f32.partialorder %v2679_v21, 0.7853982 }
 0x4e6   :  { %v2470_v53 = vsel %vm2459_vm7, nan, %v2469_v27  ;;  %v2754_v32 = vor.u32 %v2753_v55, %v2752_v5  ;;  %v2757_v36 = vshll.u32 %v2756_v47, 23  ;;  %v2768_v18 = vsel %vm12196_vm14, 0, %v2766_v44 }
 0x4e7   :  { %8096 = vst [vmem:[#allocation8 + $0x48] sm:$0xff] %v2470_v53  ;;  %v2614_v57 = vsel %vm2608_vm12, %v2611_v56, %v2613_v7  ;;  %vm2898_vm13 = vcmp.gt.s32.totalorder %v2897_v15, 0  ;;  %v1312_v40 = vadd.f32 %v12128_v25, %v12118_v43  ;;  %vm2632_vm15 = vc.u32 %v12179_v46, %v12188_v49 }
 0x4e8   :  { %v2758_v23 = vor.u32 4788187, %v2757_v36  ;;  %v2899_v21 = vsel %vm2898_vm13, %v2897_v15, 0  ;;  %v12215_v44 = vmul.f32 %v12211_v0, %v15344_v29  ;;  %v2633_v11 = vadd.s32 1, %v12189_v24 }
 0x4e9   :  { %v2895_v22 = vor.u32 8388608, %v12163_v51  ;;  %v2901_v26 = vand.u32 31, %v2899_v21  ;;  %v2761_v25 = vcvt.s32.f32 %v2754_v32  ;;  %v2772_v37 = vadd.s32 3, %v2768_v18 }
 0x4ea   :  { %v2759_v43 = vand.u32 2147483647, %v2758_v23  ;;  %v2630_v48 = vmul.u32 %v12153_v20, %v2614_v57  ;;  %v2634_v3 = vsel %vm2632_vm15, %v2633_v11, %v12189_v24  ;;  %v2900_v38 = vshrl.u32 %v2899_v21, 5 }
 0x4eb   :  { %v2902_v45 = vsub.s32 32, %v2901_v26  ;;  %v12222_v19 = vadd.f32 %v12056_v12, %v1312_v40  ;;  %v2904_v61 = vshll.u32 %v15264_v28, %v2901_v26  ;;  %v2907_v56 = vshll.u32 %v15266_v39, %v2901_v26 }
 0x4ec   :  { %v2762_v58 = vmul.f32 %v2761_v25, %v2759_v43  ;;  %v2635_v9 = vadd.s32 %v2634_v3, %v2630_v48  ;;  %v2910_v17 = vshll.u32 %v15267_v41, %v2901_v26  ;;  %v2913_v7 = vshll.u32 %v15268_v35, %v2901_v26  ;;  %v1061_v3 = vpop.permute.xlu0 %1060 }
 0x4ed   :  { %v2905_v51 = vshrl.u32 %v15266_v39, %v2902_v45  ;;  %v2908_v30 = vshrl.u32 %v15267_v41, %v2902_v45  ;;  %v2911_v20 = vshrl.u32 %v15268_v35, %v2902_v45  ;;  %v2914_v16 = vshrl.u32 %v15269_v13, %v2902_v45 }
 0x4ee   :  { %v2763_v1 = vxor.u32 2147483648, %v2762_v58  ;;  %v2636_v14 = vadd.s32 536870912, %v2635_v9  ;;  %v2917_v62 = vshrl.u32 %v15270_v59, %v2902_v45  ;;  %vm2577_vm0 = vcmp.lt.s32.totalorder %v12059_v60, 0 }
 0x4ef   :  { %v2906_v42 = vor.u32 %v2905_v51, %v2904_v61  ;;  %v2909_v34 = vor.u32 %v2908_v30, %v2907_v56  ;;  %v2912_v54 = vor.u32 %v2911_v20, %v2910_v17  ;;  %v2915_v8 = vor.u32 %v2914_v16, %v2913_v7 }
 0x4f0   :  { %v2764_v10 = vsel %vm2681_vm3, %v2763_v1, %v2762_v58  ;;  %v2637_v4 = vshrl.u32 %v2636_v14, 30  ;;  %v2916_v2 = vshll.u32 %v15269_v13, %v2901_v26  ;;  %vm2919_vm1 = vcmp.lt.s32.totalorder %v2900_v38, 1 }
 0x4f1   :  { %v2767_v5 = vsel %vm12196_vm14, %v11945_v50, %v2764_v10  ;;  %v2935_v55 = vshll.u32 %v2895_v22, 8  ;;  %v2786_v47 = vand.u32 2139095040, %v12222_v19  ;;  %vm2922_vm2 = vcmp.lt.s32.totalorder %v2900_v38, 4 }
 0x4f2   :  { %8892 = vcosq.f32 %v2767_v5  ;;  %v2638_v27 = vshll.u32 %v2637_v4, 30  ;;  %v2918_v24 = vor.u32 %v2917_v62, %v2916_v2  ;;  %v2903_v15 = vshrl.u32 %v15264_v28, %v2902_v45 }
 0x4f3   :  { %8894 = vsinq.f32 %v2767_v5  ;;  %v2924_v53 = vsel %vm2922_vm2, %v2912_v54, 2102212464  ;;  %v2927_v32 = vsel %vm2919_vm1, %v2906_v42, %v2909_v34  ;;  %vm2920_vm3 = vcmp.lt.s32.totalorder %v2900_v38, 2 }
 0x4f4   :  { %v12244_v36 = vsub.s32 %v2635_v9, %v2638_v27  ;;  %vm2921_vm4 = vcmp.lt.s32.totalorder %v2900_v38, 3  ;;  %v2928_v33 = vsel %vm2922_vm2, %v2915_v8, 920167782  ;;  %v2661_v18 = vsub.s32 4, %v2637_v4 }
 0x4f5   :  { %v2923_v57 = vsel %vm2919_vm1, %v2903_v15, %v2906_v42  ;;  %v2929_v40 = vsel %vm2921_vm4, %v2912_v54, %v2928_v33  ;;  %v2931_v23 = vsel %vm2919_vm1, %v2909_v34, %v2912_v54  ;;  %v2925_v29 = vsel %vm2921_vm4, %v2909_v34, %v2924_v53 }
 0x4f6   :  { %v2641_v21 = vsub.s32 0, %v12244_v36  ;;  %v2930_v11 = vsel %vm2920_vm3, %v2927_v32, %v2929_v40  ;;  %v2932_v22 = vsel %vm2922_vm2, %v2918_v24, 1326507024  ;;  %v2773_v26 = vand.u32 3, %v2772_v37 }
 0x4f7   :  { %v2933_v43 = vsel %vm2921_vm4, %v2915_v8, %v2932_v22  ;;  %v12252_v25 = vmul.u32.u64.low %v2935_v55, %v2930_v11  ;;  %v12253_v48 = vmul.u32.u64.high %v2935_v55, %v2930_v11, %v12252_v25  ;;  %v2783_v9 = vand.u32 2147483647, %v12222_v19 }
 0x4f8   :  { %v8233_v45 = vmin.u32 %v2641_v21, %v12244_v36  ;;  %v2934_v58 = vsel %vm2920_vm3, %v2931_v23, %v2933_v43  ;;  %v2787_v61 = vshrl.u32 %v2786_v47, 23  ;;  %v2662_v56 = vsel %vm2577_vm0, %v2661_v18, %v2637_v4 }
 0x4f9   :  { %v2926_v51 = vsel %vm2920_vm3, %v2923_v57, %v2925_v29  ;;  %v12262_v30 = vmul.u32.u64.low %v2935_v55, %v2934_v58  ;;  %v12263_v37 = vmul.u32.u64.high %v2935_v55, %v2934_v58, %v12262_v30  ;;  %vm2771_vm5 = vweird.f32 %v11945_v50  ;;  %v15348_v50 = vld [vmem:[#allocation42_spill] sm:$0xff] }
 0x4fa   :  { %vm12268_vm6 = vcmp.le.f32.partialorder %v2575_v52, 0.7853982  ;;  %v2643_v20 = vclz %v8233_v45  ;;  %v1267_v1 = vmul.f32 %v12028_v63, %v1061_v3  ;;  %vm2774_vm7 = vcmp.lt.s32.totalorder %v2773_v26, 2 }
 0x4fb   :  { %vm2775_vm8 = vcmp.eq.s32.totalorder %v2773_v26, 0  ;;  %v2945_v14 = vadd.s32 1, %v12253_v48  ;;  %v8240_v38 = vadd.s32 4294967169, %v2787_v61  ;;  %vm2778_vm9 = vcmp.eq.s32.totalorder %v2773_v26, 2 }
 0x4fc   :  { %v8893_v7 = vpop.eup %8892  ;;  %v8234_v16 = vadd.s32 4294967294, %v2643_v20  ;;  %v2664_v42 = vsel %vm12268_vm6, 0, %v2662_v56  ;;  %v2942_v34 = vmul.u32 %v2935_v55, %v2926_v51  ;;  %vm2944_vm10 = vc.u32 %v12263_v37, %v12252_v25 }
 0x4fd   :  { %v8895_v54 = vpop.eup %8894  ;;  %v2779_v52 = vxor.u32 2147483648, %v8893_v7  ;;  %v2790_v62 = vand.u32 8388607, %v2783_v9  ;;  %v2793_v10 = vadd.s32 1, %v8240_v38  ;;  %v2946_v8 = vsel %vm2944_vm10, %v2945_v14, %v12253_v48  ;;  %v15347_v48 = vld [vmem:[#allocation41_spill] sm:$0xff] }
 0x4fe   :  { %v2776_v4 = vxor.u32 2147483648, %v8895_v54  ;;  %vm8235_vm11 = vcmp.lt.s32.totalorder %v8234_v16, 0  ;;  %v1331_v2 = vadd.f32 %v1267_v1, %v12215_v44  ;;  %v2947_v27 = vadd.s32 %v2946_v8, %v2942_v34 }
 0x4ff   :  { %v2780_v5 = vsel %vm2778_vm9, %v2779_v52, %v8895_v54  ;;  %v2646_v47 = vsel %vm8235_vm11, 0, %v8234_v16  ;;  %vm2794_vm12 = vcmp.gt.s32.totalorder %v2793_v10, 0  ;;  %v2631_v24 = vadd.s32 %v12188_v49, %v12179_v46  ;;  %v966_v49 = vpop.permute.xlu1 %965 }
 0x500   :  { %v2777_v55 = vsel %vm2775_vm8, %v8893_v7, %v2776_v4  ;;  %v2647_v15 = vsub.s32 32, %v2646_v47  ;;  %v2651_v53 = vsub.s32 4294967266, %v2646_v47  ;;  %v2668_v33 = vadd.s32 3, %v2664_v42 }
 0x501   :  { %v2781_v32 = vsel %vm2774_vm7, %v2777_v55, %v2780_v5  ;;  %v2948_v18 = vadd.s32 536870912, %v2947_v27  ;;  %v2795_v57 = vsel %vm2794_vm12, %v2793_v10, 0  ;;  %v2648_v44 = vshll.u32 %v12244_v36, %v2646_v47 }
 0x502   :  { %v2782_v40 = vsel %vm2771_vm5, nan, %v2781_v32  ;;  %v2649_v23 = vshrl.u32 %v2631_v24, %v2647_v15  ;;  %v2652_v21 = vadd.s32 127, %v2651_v53  ;;  %v2791_v11 = vor.u32 8388608, %v2790_v62 }
 0x503   :  { %8099 = vst [vmem:[#allocation8 + $0x60] sm:$0xff] %v2782_v40  ;;  %v12289_v29 = vshrl.u32 %v2948_v18, 30  ;;  %v2797_v22 = vand.u32 31, %v2795_v57  ;;  %v12292_v46 = vadd.f32 %v12056_v12, %v1331_v2  ;;  %v12296_v3 = vmul.f32 %v12211_v0, %v15347_v48 }
 0x504   :  { %v2650_v26 = vor.u32 %v2649_v23, %v2648_v44  ;;  %v2653_v43 = vshll.u32 %v2652_v21, 23  ;;  %v12300_v36 = vmul.f32 %v12211_v0, %v15348_v50  ;;  %v12303_v56 = vand.u32 3, %v2668_v33 }
 0x505   :  { %v2950_v45 = vshll.u32 %v12289_v29, 30  ;;  %v2798_v58 = vsub.s32 32, %v2797_v22  ;;  %v2943_v51 = vadd.s32 %v12252_v25, %v12263_v37  ;;  %v12308_v30 = vmul.f32 %v12028_v63, %v966_v49 }
 0x506   :  { %v2654_v61 = vor.u32 4788187, %v2653_v43  ;;  %v12313_v14 = vshll.u32 %v2791_v11, 8  ;;  %v4759_v38 = vand.u32 2147483647, %v12292_v46  ;;  %v2657_v16 = vcvt.s32.f32 %v2650_v26 }
 0x507   :  { %v12310_v20 = vsub.s32 %v2947_v27, %v2950_v45  ;;  %v2801_v1 = vshrl.u32 %v15266_v39, %v2798_v58  ;;  %v2804_v42 = vshrl.u32 %v15267_v41, %v2798_v58  ;;  %v2807_v34 = vshrl.u32 %v15268_v35, %v2798_v58 }
 0x508   :  { %v2655_v7 = vand.u32 2147483647, %v2654_v61  ;;  %v2796_v25 = vshrl.u32 %v2795_v57, 5  ;;  %v2800_v37 = vshll.u32 %v15264_v28, %v2797_v22  ;;  %v2803_v52 = vshll.u32 %v15266_v39, %v2797_v22 }
 0x509   :  { %v2953_v54 = vsub.s32 0, %v12310_v20  ;;  %v2806_v10 = vshll.u32 %v15267_v41, %v2797_v22  ;;  %v2809_v4 = vshll.u32 %v15268_v35, %v2797_v22  ;;  %v2810_v8 = vshrl.u32 %v15269_v13, %v2798_v58 }
 0x50a   :  { %v2658_v62 = vmul.f32 %v2657_v16, %v2655_v7  ;;  %v2802_v5 = vor.u32 %v2801_v1, %v2800_v37  ;;  %v2805_v47 = vor.u32 %v2804_v42, %v2803_v52  ;;  %v2813_v27 = vshrl.u32 %v15270_v59, %v2798_v58 }
 0x50b   :  { %v8245_v2 = vmin.u32 %v2953_v54, %v12310_v20  ;;  %v2808_v24 = vor.u32 %v2807_v34, %v2806_v10  ;;  %v2811_v15 = vor.u32 %v2810_v8, %v2809_v4  ;;  %v2812_v53 = vshll.u32 %v15269_v13, %v2797_v22 }
 0x50c   :  { %v2659_v55 = vxor.u32 2147483648, %v2658_v62  ;;  %vm2889_vm14 = vcmp.lt.s32.totalorder %v12112_v6, 0  ;;  %v2973_v33 = vsub.s32 4, %v12289_v29  ;;  %vm2815_vm13 = vcmp.lt.s32.totalorder %v2796_v25, 1 }
 0x50d   :  { %v2955_v32 = vclz %v8245_v2  ;;  %vm2816_vm15 = vcmp.lt.s32.totalorder %v2796_v25, 2  ;;  %v2799_v57 = vshrl.u32 %v15264_v28, %v2798_v58  ;;  %v2814_v40 = vor.u32 %v2813_v27, %v2812_v53 }
 0x50e   :  { %v2660_v18 = vsel %vm2577_vm0, %v2659_v55, %v2658_v62  ;;  %vm2817_vm1 = vcmp.lt.s32.totalorder %v2796_v25, 3  ;;  %vm2818_vm2 = vcmp.lt.s32.totalorder %v2796_v25, 4  ;;  %v2823_v21 = vsel %vm2815_vm13, %v2802_v5, %v2805_v47 }
 0x50f   :  { %v2663_v44 = vsel %vm12268_vm6, %v12059_v60, %v2660_v18  ;;  %v8246_v23 = vadd.s32 4294967294, %v2955_v32  ;;  %vm12338_vm3 = vcmp.le.f32.partialorder %v2887_v31, 0.7853982  ;;  %v2820_v22 = vsel %vm2818_vm2, %v2808_v24, 2102212464 }
 0x510   :  { %8896 = vcosq.f32 %v2663_v44  ;;  %v2824_v49 = vsel %vm2818_vm2, %v2811_v15, 920167782  ;;  %v2827_v26 = vsel %vm2815_vm13, %v2805_v47, %v2808_v24  ;;  %v2828_v43 = vsel %vm2818_vm2, %v2814_v40, 1326507024 }
 0x511   :  { %8898 = vsinq.f32 %v2663_v44  ;;  %vm8247_vm0 = vcmp.lt.s32.totalorder %v8246_v23, 0  ;;  %v2825_v17 = vsel %vm2817_vm1, %v2808_v24, %v2824_v49  ;;  %v2819_v50 = vsel %vm2815_vm13, %v2799_v57, %v2802_v5  ;;  %v1072_v24 = vpop.permute.xlu0 %1071 }
 0x512   :  { %v2958_v48 = vsel %vm8247_vm0, 0, %v8246_v23  ;;  %v2826_v45 = vsel %vm2816_vm15, %v2823_v21, %v2825_v17  ;;  %v2829_v58 = vsel %vm2817_vm1, %v2811_v15, %v2828_v43  ;;  %v2821_v1 = vsel %vm2817_vm1, %v2805_v47, %v2820_v22  ;;  %v1065_v21 = vpop.permute.xlu1 %1064 }
 0x513   :  { %v2959_v31 = vsub.s32 32, %v2958_v48  ;;  %v2963_v61 = vsub.s32 4294967266, %v2958_v48  ;;  %v2830_v7 = vsel %vm2816_vm15, %v2827_v26, %v2829_v58  ;;  %v2960_v37 = vshll.u32 %v12310_v20, %v2958_v48 }
 0x514   :  { %v12350_v16 = vmul.u32.u64.low %v12313_v14, %v2830_v7  ;;  %v12351_v42 = vmul.u32.u64.high %v12313_v14, %v2830_v7, %v12350_v16  ;;  %v12354_v34 = vmul.u32.u64.low %v12313_v14, %v2826_v45  ;;  %v12355_v54 = vmul.u32.u64.high %v12313_v14, %v2826_v45, %v12354_v34 }
 0x515   :  { %v2961_v52 = vshrl.u32 %v2943_v51, %v2959_v31  ;;  %v2964_v62 = vadd.s32 127, %v2963_v61  ;;  %v4762_v10 = vand.u32 2139095040, %v12292_v46  ;;  %vm2670_vm4 = vcmp.lt.s32.totalorder %v12303_v56, 2 }
 0x516   :  { %vm2671_vm5 = vcmp.eq.s32.totalorder %v12303_v56, 0  ;;  %v2974_v4 = vsel %vm2889_vm14, %v2973_v33, %v12289_v29  ;;  %v2822_v8 = vsel %vm2816_vm15, %v2819_v50, %v2821_v1  ;;  %v1314_v2 = vadd.f32 %v12308_v30, %v12296_v3 }
 0x517   :  { %vm2667_vm6 = vweird.f32 %v12059_v60  ;;  %vm2674_vm7 = vcmp.eq.s32.totalorder %v12303_v56, 2  ;;  %v2962_v51 = vor.u32 %v2961_v52, %v2960_v37  ;;  %v2965_v20 = vshll.u32 %v2964_v62, 23  ;;  %v15353_v52 = vld [vmem:[#allocation43_spill] sm:$0xff] }
 0x518   :  { %v4763_v5 = vshrl.u32 %v4762_v10, 23  ;;  %vm2840_vm8 = vc.u32 %v12351_v42, %v12354_v34  ;;  %v2841_v47 = vadd.s32 1, %v12355_v54  ;;  %v4766_v27 = vand.u32 8388607, %v4759_v38 }
 0x519   :  { %v12374_v29 = vadd.f32 %v12056_v12, %v1314_v2  ;;  %v2966_v25 = vor.u32 4788187, %v2965_v20  ;;  %v2976_v3 = vsel %vm12338_vm3, 0, %v2974_v4  ;;  %v2838_v30 = vmul.u32 %v12313_v14, %v2822_v8 }
 0x51a   :  { %v8316_v55 = vadd.s32 4294967169, %v4763_v5  ;;  %v8897_v15 = vpop.eup %8896  ;;  %v2969_v53 = vcvt.s32.f32 %v2962_v51  ;;  %v2842_v32 = vsel %vm2840_vm8, %v2841_v47, %v12355_v54  ;;  %v2980_v49 = vadd.s32 3, %v2976_v3 }
 0x51b   :  { %v2991_v33 = vand.u32 2147483647, %v12374_v29  ;;  %v2994_v18 = vand.u32 2139095040, %v12374_v29  ;;  %v8899_v57 = vpop.eup %8898  ;;  %v2675_v40 = vxor.u32 2147483648, %v8897_v15  ;;  %v2967_v12 = vand.u32 2147483647, %v2966_v25 }
 0x51c   :  { %v2843_v44 = vadd.s32 %v2842_v32, %v2838_v30  ;;  %v4769_v23 = vadd.s32 1, %v8316_v55  ;;  %v2672_v22 = vxor.u32 2147483648, %v8899_v57  ;;  %v4767_v26 = vor.u32 8388608, %v4766_v27 }
 0x51d   :  { %v1269_v14 = vmul.f32 %v12028_v63, %v1072_v24  ;;  %v2676_v17 = vsel %vm2674_vm7, %v2675_v40, %v8899_v57  ;;  %v2970_v43 = vmul.f32 %v2969_v53, %v2967_v12  ;;  %vm2785_vm9 = vcmp.lt.s32.totalorder %v12222_v19, 0 }
 0x51e   :  { %v2844_v48 = vadd.s32 536870912, %v2843_v44  ;;  %vm4770_vm10 = vcmp.gt.s32.totalorder %v4769_v23, 0  ;;  %v2673_v50 = vsel %vm2671_vm5, %v8897_v15, %v2672_v22  ;;  %v2995_v58 = vshrl.u32 %v2994_v18, 23 }
 0x51f   :  { %v4771_v45 = vsel %vm4770_vm10, %v4769_v23, 0  ;;  %v12389_v31 = vmul.f32 %v12028_v63, %v1065_v21  ;;  %v2677_v61 = vsel %vm2670_vm4, %v2673_v50, %v2676_v17  ;;  %v2971_v1 = vxor.u32 2147483648, %v2970_v43 }
 0x520   :  { %v2845_v7 = vshrl.u32 %v2844_v48, 30  ;;  %v2998_v16 = vand.u32 8388607, %v2991_v33  ;;  %v2678_v54 = vsel %vm2667_vm6, nan, %v2677_v61  ;;  %v12397_v37 = vand.u32 3, %v2980_v49 }
 0x521   :  { %vm12401_vm11 = vcmp.le.f32.partialorder %v2783_v9, 0.7853982  ;;  %v4773_v63 = vand.u32 31, %v4771_v45  ;;  %v12406_v56 = vadd.f32 %v1269_v14, %v12300_v36  ;;  %8098 = vst [vmem:[#allocation8 + $0x58] sm:$0xff] %v2678_v54  ;;  %v2972_v62 = vsel %vm2889_vm14, %v2971_v1, %v2970_v43 }
 0x522   :  { %v12411_v10 = vadd.s32 %v12354_v34, %v12351_v42  ;;  %v2846_v60 = vshll.u32 %v2845_v7, 30  ;;  %v12413_v4 = vshll.u32 %v4767_v26, 8  ;;  %v2975_v9 = vsel %vm12338_vm3, %v12112_v6, %v2972_v62 }
 0x523   :  { %v2869_v8 = vsub.s32 4, %v2845_v7  ;;  %v4774_v2 = vsub.s32 32, %v4773_v63  ;;  %v8248_v51 = vadd.s32 4294967169, %v2995_v58  ;;  %8900 = vcosq.f32 %v2975_v9 }
 0x524   :  { %v12418_v36 = vsub.s32 %v2843_v44, %v2846_v60  ;;  %v4772_v20 = vshrl.u32 %v4771_v45, 5  ;;  %v2999_v5 = vor.u32 8388608, %v2998_v16  ;;  %8902 = vsinq.f32 %v2975_v9 }
 0x525   :  { %v4776_v47 = vshll.u32 %v15264_v28, %v4773_v63  ;;  %v4777_v42 = vshrl.u32 %v15266_v39, %v4774_v2  ;;  %v4779_v34 = vshll.u32 %v15266_v39, %v4773_v63  ;;  %v4780_v11 = vshrl.u32 %v15267_v41, %v4774_v2 }
 0x526   :  { %v2849_v27 = vsub.s32 0, %v12418_v36  ;;  %v4782_v25 = vshll.u32 %v15267_v41, %v4773_v63  ;;  %v4783_v3 = vshrl.u32 %v15268_v35, %v4774_v2  ;;  %v2870_v30 = vsel %vm2785_vm9, %v2869_v8, %v2845_v7 }
 0x527   :  { %v4778_v55 = vor.u32 %v4777_v42, %v4776_v47  ;;  %v4785_v24 = vshll.u32 %v15268_v35, %v4773_v63  ;;  %v4786_v15 = vshrl.u32 %v15269_v13, %v4774_v2  ;;  %vm2986_vm12 = vcmp.eq.s32.totalorder %v12397_v37, 2 }
 0x528   :  { %v8241_v53 = vmin.u32 %v2849_v27, %v12418_v36  ;;  %v4781_v32 = vor.u32 %v4780_v11, %v4779_v34  ;;  %v4784_v18 = vor.u32 %v4783_v3, %v4782_v25  ;;  %v3001_v57 = vadd.s32 1, %v8248_v51 }
 0x529   :  { %vm2983_vm14 = vcmp.eq.s32.totalorder %v12397_v37, 0  ;;  %v4775_v40 = vshrl.u32 %v15264_v28, %v4774_v2  ;;  %v4787_v12 = vor.u32 %v4786_v15, %v4785_v24  ;;  %v4788_v44 = vshll.u32 %v15269_v13, %v4773_v63 }
 0x52a   :  { %v4789_v23 = vshrl.u32 %v15270_v59, %v4774_v2  ;;  %vm2982_vm13 = vcmp.lt.s32.totalorder %v12397_v37, 2  ;;  %v2851_v21 = vclz %v8241_v53  ;;  %v2872_v22 = vsel %vm12401_vm11, 0, %v2870_v30 }
 0x52b   :  { %vm4791_vm15 = vcmp.lt.s32.totalorder %v4772_v20, 1  ;;  %v12440_v49 = vshll.u32 %v2999_v5, 8  ;;  %vm2979_vm1 = vweird.f32 %v12112_v6  ;;  %vm4793_vm2 = vcmp.lt.s32.totalorder %v4772_v20, 3 }
 0x52c   :  { %v4790_v26 = vor.u32 %v4789_v23, %v4788_v44  ;;  %vm4794_vm3 = vcmp.lt.s32.totalorder %v4772_v20, 4  ;;  %v4795_v14 = vsel %vm4791_vm15, %v4775_v40, %v4778_v55  ;;  %v8242_v17 = vadd.s32 4294967294, %v2851_v21 }
 0x52d   :  { %v4796_v43 = vsel %vm4794_vm3, %v4784_v18, 2102212464  ;;  %v4800_v48 = vsel %vm4794_vm3, %v4787_v12, 920167782  ;;  %v4803_v50 = vsel %vm4791_vm15, %v4781_v32, %v4784_v18  ;;  %v4799_v58 = vsel %vm4791_vm15, %v4778_v55, %v4781_v32  ;;  %v8901_v7 = vpop.eup %8900 }
 0x52e   :  { %v4797_v45 = vsel %vm4793_vm2, %v4781_v32, %v4796_v43  ;;  %v4801_v61 = vsel %vm4793_vm2, %v4784_v18, %v4800_v48  ;;  %v4804_v1 = vsel %vm4794_vm3, %v4790_v26, 1326507024  ;;  %vm8243_vm0 = vcmp.lt.s32.totalorder %v8242_v17, 0  ;;  %v8903_v54 = vpop.eup %8902 }
 0x52f   :  { %vm4792_vm4 = vcmp.lt.s32.totalorder %v4772_v20, 2  ;;  %v4805_v16 = vsel %vm4793_vm2, %v4787_v12, %v4804_v1  ;;  %vm3002_vm5 = vcmp.gt.s32.totalorder %v3001_v57, 0  ;;  %v2987_v63 = vxor.u32 2147483648, %v8901_v7 }
 0x530   :  { %v2854_v62 = vsel %vm8243_vm0, 0, %v8242_v17  ;;  %v4798_v60 = vsel %vm4792_vm4, %v4795_v14, %v4797_v45  ;;  %v4806_v9 = vsel %vm4792_vm4, %v4803_v50, %v4805_v16  ;;  %v2984_v8 = vxor.u32 2147483648, %v8903_v54 }
 0x531   :  { %v2855_v2 = vsub.s32 32, %v2854_v62  ;;  %v2859_v51 = vsub.s32 4294967266, %v2854_v62  ;;  %v4802_v5 = vsel %vm4792_vm4, %v4799_v58, %v4801_v61  ;;  %v2988_v47 = vsel %vm2986_vm12, %v2987_v63, %v8903_v54 }
 0x532   :  { %v12446_v42 = vmul.u32.u64.low %v12413_v4, %v4806_v9  ;;  %v12447_v34 = vmul.u32.u64.high %v12413_v4, %v4806_v9, %v12446_v42  ;;  %v3003_v27 = vsel %vm3002_vm5, %v3001_v57, 0  ;;  %v2985_v20 = vsel %vm2983_vm14, %v8901_v7, %v2984_v8 }
 0x533   :  { %v2856_v11 = vshll.u32 %v12418_v36, %v2854_v62  ;;  %v2857_v25 = vshrl.u32 %v12411_v10, %v2855_v2  ;;  %v2860_v3 = vadd.s32 127, %v2859_v51  ;;  %v2989_v30 = vsel %vm2982_vm13, %v2985_v20, %v2988_v47 }
 0x534   :  { %v12456_v55 = vmul.u32.u64.low %v12413_v4, %v4802_v5  ;;  %v12457_v24 = vmul.u32.u64.high %v12413_v4, %v4802_v5, %v12456_v55  ;;  %v3005_v15 = vand.u32 31, %v3003_v27  ;;  %v2990_v53 = vsel %vm2979_vm1, nan, %v2989_v30 }
 0x535   :  { %v2858_v32 = vor.u32 %v2857_v25, %v2856_v11  ;;  %v2861_v18 = vshll.u32 %v2860_v3, 23  ;;  %v12462_v57 = vadd.s32 3, %v2872_v22  ;;  %8101 = vst [vmem:[#allocation8 + $0x70] sm:$0xff] %v2990_v53  ;;  %v4814_v10 = vmul.u32 %v12413_v4, %v4798_v60 }
 0x536   :  { %vm4816_vm6 = vc.u32 %v12447_v34, %v12456_v55  ;;  %v3004_v37 = vshrl.u32 %v3003_v27, 5  ;;  %v3006_v36 = vsub.s32 32, %v3005_v15  ;;  %v3008_v44 = vshll.u32 %v15264_v28, %v3005_v15 }
 0x537   :  { %v2862_v40 = vor.u32 4788187, %v2861_v18  ;;  %v2865_v12 = vcvt.s32.f32 %v2858_v32  ;;  %v3011_v23 = vshll.u32 %v15266_v39, %v3005_v15  ;;  %v4817_v6 = vadd.s32 1, %v12457_v24 }
 0x538   :  { %v3009_v21 = vshrl.u32 %v15266_v39, %v3006_v36  ;;  %v3012_v22 = vshrl.u32 %v15267_v41, %v3006_v36  ;;  %v3014_v26 = vshll.u32 %v15267_v41, %v3005_v15  ;;  %v3015_v14 = vshrl.u32 %v15268_v35, %v3006_v36 }
 0x539   :  { %v2863_v4 = vand.u32 2147483647, %v2862_v40  ;;  %v3017_v17 = vshll.u32 %v15268_v35, %v3005_v15  ;;  %v3018_v43 = vshrl.u32 %v15269_v13, %v3006_v36  ;;  %v4818_v48 = vsel %vm4816_vm6, %v4817_v6, %v12457_v24 }
 0x53a   :  { %v3010_v50 = vor.u32 %v3009_v21, %v3008_v44  ;;  %v3013_v45 = vor.u32 %v3012_v22, %v3011_v23  ;;  %vm3023_vm7 = vcmp.lt.s32.totalorder %v3004_v37, 1  ;;  %v4819_v61 = vadd.s32 %v4818_v48, %v4814_v10  ;;  %v12509_v44 = vld [vmem:[%s15203_s3 + $0x2] ss:$0 sm:$0xff] }
 0x53b   :  { %v2866_v58 = vmul.f32 %v2865_v12, %v2863_v4  ;;  %v3016_v1 = vor.u32 %v3015_v14, %v3014_v26  ;;  %v3019_v7 = vor.u32 %v3018_v43, %v3017_v17  ;;  %v3007_v16 = vshrl.u32 %v15264_v28, %v3006_v36 }
 0x53c   :  { %v3020_v54 = vshll.u32 %v15269_v13, %v3005_v15  ;;  %v3021_v63 = vshrl.u32 %v15270_v59, %v3006_v36  ;;  %vm3024_vm8 = vcmp.lt.s32.totalorder %v3004_v37, 2  ;;  %v4820_v60 = vadd.s32 536870912, %v4819_v61 }
 0x53d   :  { %v2867_v62 = vxor.u32 2147483648, %v2866_v58  ;;  %vm3025_vm10 = vcmp.lt.s32.totalorder %v3004_v37, 3  ;;  %vm3026_vm12 = vcmp.lt.s32.totalorder %v3004_v37, 4  ;;  %v3031_v2 = vsel %vm3023_vm7, %v3010_v50, %v3013_v45 }
 0x53e   :  { %v3022_v9 = vor.u32 %v3021_v63, %v3020_v54  ;;  %v3028_v8 = vsel %vm3026_vm12, %v3016_v1, 2102212464  ;;  %v3032_v51 = vsel %vm3026_vm12, %v3019_v7, 920167782  ;;  %v4821_v47 = vshrl.u32 %v4820_v60, 30 }
 0x53f   :  { %v2868_v5 = vsel %vm2785_vm9, %v2867_v62, %v2866_v58  ;;  %v3027_v42 = vsel %vm3023_vm7, %v3007_v16, %v3010_v50  ;;  %v3033_v27 = vsel %vm3025_vm10, %v3016_v1, %v3032_v51  ;;  %v3035_v25 = vsel %vm3023_vm7, %v3013_v45, %v3016_v1 }
 0x540   :  { %v2871_v20 = vsel %vm12401_vm11, %v12222_v19, %v2868_v5  ;;  %v3034_v11 = vsel %vm3024_vm8, %v3031_v2, %v3033_v27  ;;  %v3036_v3 = vsel %vm3026_vm12, %v3022_v9, 1326507024  ;;  %v4822_v30 = vshll.u32 %v4821_v47, 30 }
 0x541   :  { %8904 = vcosq.f32 %v2871_v20  ;;  %v3029_v24 = vsel %vm3025_vm10, %v3013_v45, %v3028_v8  ;;  %v3037_v15 = vsel %vm3025_vm10, %v3019_v7, %v3036_v3  ;;  %v848_v10 = vmul.f32 %v12211_v0, %v15353_v52 }
 0x542   :  { %8906 = vsinq.f32 %v2871_v20  ;;  %v3038_v53 = vsel %vm3024_vm8, %v3035_v25, %v3037_v15  ;;  %v12494_v32 = vmul.u32.u64.low %v12440_v49, %v3034_v11  ;;  %v12495_v18 = vmul.u32.u64.high %v12440_v49, %v3034_v11, %v12494_v32 }
 0x543   :  { %v12500_v36 = vsub.s32 %v4819_v61, %v4822_v30  ;;  %v12503_v40 = vmul.u32.u64.low %v12440_v49, %v3038_v53  ;;  %v12504_v12 = vmul.u32.u64.high %v12440_v49, %v3038_v53, %v12503_v40  ;;  %v12513_v23 = vadd.f32 %v12509_v44, %v12406_v56 }
 0x544   :  { %v3030_v21 = vsel %vm3024_vm8, %v3027_v42, %v3029_v24  ;;  %v1332_v22 = vadd.f32 %v12389_v31, %v848_v10  ;;  %v2877_v26 = vand.u32 3, %v12462_v57  ;;  %v3049_v4 = vadd.s32 1, %v12495_v18 }
 0x545   :  { %v4825_v6 = vsub.s32 0, %v12500_v36  ;;  %v4970_v14 = vand.u32 2139095040, %v12513_v23  ;;  %vm3048_vm9 = vc.u32 %v12504_v12, %v12494_v32  ;;  %v4967_v56 = vand.u32 2147483647, %v12513_v23 }
 0x546   :  { %vm2875_vm11 = vweird.f32 %v12222_v19  ;;  %v3046_v37 = vmul.u32 %v12440_v49, %v3030_v21  ;;  %v3050_v43 = vsel %vm3048_vm9, %v3049_v4, %v12495_v18  ;;  %vm12530_vm14 = vcmp.le.f32.partialorder %v4759_v38, 0.7853982 }
 0x547   :  { %v8317_v17 = vmin.u32 %v4825_v6, %v12500_v36  ;;  %v4971_v31 = vshrl.u32 %v4970_v14, 23  ;;  %vm4761_vm13 = vcmp.lt.s32.totalorder %v12292_v46, 0  ;;  %v4845_v50 = vsub.s32 4, %v4821_v47 }
 0x548   :  { %v12536_v45 = vadd.f32 %v12509_v44, %v1332_v22  ;;  %vm2878_vm15 = vcmp.lt.s32.totalorder %v2877_v26, 2  ;;  %vm2993_vm1 = vcmp.lt.s32.totalorder %v12374_v29, 0  ;;  %v3051_v49 = vadd.s32 %v3050_v43, %v3046_v37 }
 0x549   :  { %v4827_v48 = vclz %v8317_v17  ;;  %v8324_v58 = vadd.s32 4294967169, %v4971_v31  ;;  %vm2879_vm2 = vcmp.eq.s32.totalorder %v2877_v26, 0  ;;  %vm2882_vm3 = vcmp.eq.s32.totalorder %v2877_v26, 2 }
 0x54a   :  { %v4974_v38 = vand.u32 8388607, %v4967_v56  ;;  %v4815_v54 = vadd.s32 %v12456_v55, %v12447_v34  ;;  %v3052_v63 = vadd.s32 536870912, %v3051_v49  ;;  %v4846_v9 = vsel %vm4761_vm13, %v4845_v50, %v4821_v47 }
 0x54b   :  { %v8905_v61 = vpop.eup %8904  ;;  %v8318_v1 = vadd.s32 4294967294, %v4827_v48  ;;  %v4977_v62 = vadd.s32 1, %v8324_v58  ;;  %v4866_v8 = vand.u32 2139095040, %v12536_v45  ;;  %v4848_v53 = vsel %vm12530_vm14, 0, %v4846_v9 }
 0x54c   :  { %v8907_v7 = vpop.eup %8906  ;;  %v2883_v16 = vxor.u32 2147483648, %v8905_v61  ;;  %v3053_v5 = vshrl.u32 %v3052_v63, 30  ;;  %v4975_v11 = vor.u32 8388608, %v4974_v38  ;;  %vm12561_vm5 = vcmp.le.f32.partialorder %v2991_v33, 0.7853982 }
 0x54d   :  { %v2880_v60 = vxor.u32 2147483648, %v8907_v7  ;;  %vm8319_vm0 = vcmp.lt.s32.totalorder %v8318_v1, 0  ;;  %vm4978_vm4 = vcmp.gt.s32.totalorder %v4977_v62, 0  ;;  %v4867_v10 = vshrl.u32 %v4866_v8, 23 }
 0x54e   :  { %v2884_v2 = vsel %vm2882_vm3, %v2883_v16, %v8907_v7  ;;  %v4830_v51 = vsel %vm8319_vm0, 0, %v8318_v1  ;;  %v3054_v55 = vshll.u32 %v3053_v5, 30  ;;  %v3077_v25 = vsub.s32 4, %v3053_v5 }
 0x54f   :  { %v2881_v42 = vsel %vm2879_vm2, %v8905_v61, %v2880_v60  ;;  %v4831_v27 = vsub.s32 32, %v4830_v51  ;;  %v4835_v20 = vsub.s32 4294967266, %v4830_v51  ;;  %v4979_v3 = vsel %vm4978_vm4, %v4977_v62, 0 }
 0x550   :  { %v2885_v34 = vsel %vm2878_vm15, %v2881_v42, %v2884_v2  ;;  %v4832_v47 = vshll.u32 %v12500_v36, %v4830_v51  ;;  %v12553_v18 = vsub.s32 %v3051_v49, %v3054_v55  ;;  %v4981_v52 = vand.u32 31, %v4979_v3 }
 0x551   :  { %v2886_v30 = vsel %vm2875_vm11, nan, %v2885_v34  ;;  %v4833_v24 = vshrl.u32 %v4815_v54, %v4831_v27  ;;  %v4836_v15 = vadd.s32 127, %v4835_v20  ;;  %v12557_v21 = vsel %vm2993_vm1, %v3077_v25, %v3053_v5 }
 0x552   :  { %8100 = vst [vmem:[#allocation8 + $0x68] sm:$0xff] %v2886_v30  ;;  %v3057_v36 = vsub.s32 0, %v12553_v18  ;;  %v12566_v22 = vshrl.u32 %v4979_v3, 5  ;;  %v4982_v26 = vsub.s32 32, %v4981_v52  ;;  %v4852_v14 = vadd.s32 3, %v4848_v53 }
 0x553   :  { %v4834_v40 = vor.u32 %v4833_v24, %v4832_v47  ;;  %v4837_v6 = vshll.u32 %v4836_v15, 23  ;;  %v3047_v17 = vadd.s32 %v12494_v32, %v12504_v12  ;;  %v12570_v37 = vshll.u32 %v4975_v11, 8 }
 0x554   :  { %v8249_v31 = vmin.u32 %v3057_v36, %v12553_v18  ;;  %v3080_v33 = vsel %vm12561_vm5, 0, %v12557_v21  ;;  %v8320_v48 = vadd.s32 4294967169, %v4867_v10  ;;  %v4985_v49 = vshrl.u32 %v15266_v39, %v4982_v26 }
 0x555   :  { %v4838_v4 = vor.u32 4788187, %v4837_v6  ;;  %v4841_v43 = vcvt.s32.f32 %v4834_v40  ;;  %v4988_v58 = vshrl.u32 %v15267_v41, %v4982_v26  ;;  %v4991_v61 = vshrl.u32 %v15268_v35, %v4982_v26 }
 0x556   :  { %v3059_v1 = vclz %v8249_v31  ;;  %v4984_v32 = vshll.u32 %v15264_v28, %v4981_v52  ;;  %v4990_v12 = vshll.u32 %v15267_v41, %v4981_v52  ;;  %vm4999_vm6 = vcmp.lt.s32.totalorder %v12566_v22, 1 }
 0x557   :  { %v4839_v50 = vand.u32 2147483647, %v4838_v4  ;;  %v4983_v7 = vshrl.u32 %v15264_v28, %v4982_v26  ;;  %v4987_v16 = vshll.u32 %v15266_v39, %v4981_v52  ;;  %v4993_v54 = vshll.u32 %v15268_v35, %v4981_v52 }
 0x558   :  { %v8250_v63 = vadd.s32 4294967294, %v3059_v1  ;;  %v4992_v62 = vor.u32 %v4991_v61, %v4990_v12  ;;  %v4994_v60 = vshrl.u32 %v15269_v13, %v4982_v26  ;;  %v4997_v9 = vshrl.u32 %v15270_v59, %v4982_v26  ;;  %v15358_v1 = vld [vmem:[#allocation44_spill] sm:$0xff] }
 0x559   :  { %v4842_v38 = vmul.f32 %v4841_v43, %v4839_v50  ;;  %v4986_v2 = vor.u32 %v4985_v49, %v4984_v32  ;;  %v4989_v51 = vor.u32 %v4988_v58, %v4987_v16  ;;  %v4996_v5 = vshll.u32 %v15269_v13, %v4981_v52  ;;  %v1083_v50 = vpop.permute.xlu0 %1082 }
 0x55a   :  { %vm8251_vm7 = vcmp.lt.s32.totalorder %v8250_v63, 0  ;;  %v4995_v42 = vor.u32 %v4994_v60, %v4993_v54  ;;  %vm5000_vm8 = vcmp.lt.s32.totalorder %v12566_v22, 2  ;;  %vm5001_vm10 = vcmp.lt.s32.totalorder %v12566_v22, 3 }
 0x55b   :  { %v4843_v8 = vxor.u32 2147483648, %v4842_v38  ;;  %v3062_v20 = vsel %vm8251_vm7, 0, %v8250_v63  ;;  %v4998_v11 = vor.u32 %v4997_v9, %v4996_v5  ;;  %vm5002_vm12 = vcmp.lt.s32.totalorder %v12566_v22, 4  ;;  %v12637_v63 = vld [vmem:[%s15203_s3 + $0x1] ss:$0 sm:$0xff] }
 0x55c   :  { %v3063_v55 = vsub.s32 32, %v3062_v20  ;;  %v3067_v25 = vsub.s32 4294967266, %v3062_v20  ;;  %v5004_v3 = vsel %vm5002_vm12, %v4992_v62, 2102212464  ;;  %v3064_v30 = vshll.u32 %v12553_v18, %v3062_v20 }
 0x55d   :  { %v4844_v27 = vsel %vm4761_vm13, %v4843_v8, %v4842_v38  ;;  %v5007_v47 = vsel %vm4999_vm6, %v4986_v2, %v4989_v51  ;;  %v5008_v24 = vsel %vm5002_vm12, %v4995_v42, 920167782  ;;  %v5011_v57 = vsel %vm4999_vm6, %v4989_v51, %v4992_v62 }
 0x55e   :  { %v4847_v34 = vsel %vm12530_vm14, %v12292_v46, %v4844_v27  ;;  %v3065_v15 = vshrl.u32 %v3047_v17, %v3063_v55  ;;  %v3068_v53 = vadd.s32 127, %v3067_v25  ;;  %v5003_v52 = vsel %vm4999_vm6, %v4983_v7, %v4986_v2 }
 0x55f   :  { %8908 = vcosq.f32 %v4847_v34  ;;  %v5005_v10 = vsel %vm5001_vm10, %v4989_v51, %v5004_v3  ;;  %v5009_v18 = vsel %vm5001_vm10, %v4992_v62, %v5008_v24  ;;  %v5012_v40 = vsel %vm5002_vm12, %v4998_v11, 1326507024 }
 0x560   :  { %8910 = vsinq.f32 %v4847_v34  ;;  %v3066_v6 = vor.u32 %v3065_v15, %v3064_v30  ;;  %v3069_v21 = vshll.u32 %v3068_v53, 23  ;;  %v5010_v36 = vsel %vm5000_vm8, %v5007_v47, %v5009_v18 }
 0x561   :  { %v5013_v26 = vsel %vm5001_vm10, %v4995_v42, %v5012_v40  ;;  %v4853_v4 = vand.u32 3, %v4852_v14  ;;  %v12620_v43 = vmul.u32.u64.low %v12570_v37, %v5010_v36  ;;  %v12621_v31 = vmul.u32.u64.high %v12570_v37, %v5010_v36, %v12620_v43 }
 0x562   :  { %v5014_v17 = vsel %vm5000_vm8, %v5011_v57, %v5013_v26  ;;  %v3070_v49 = vor.u32 4788187, %v3069_v21  ;;  %v851_v32 = vmul.f32 %v12211_v0, %v15358_v1  ;;  %v3084_v12 = vadd.s32 3, %v3080_v33 }
 0x563   :  { %v12625_v58 = vmul.u32.u64.low %v12570_v37, %v5014_v17  ;;  %v12626_v61 = vmul.u32.u64.high %v12570_v37, %v5014_v17, %v12625_v58  ;;  %v5006_v14 = vsel %vm5000_vm8, %v5003_v52, %v5005_v10  ;;  %v4873_v38 = vadd.s32 1, %v8320_v48 }
 0x564   :  { %vm4851_vm9 = vweird.f32 %v12292_v46  ;;  %v3071_v7 = vand.u32 2147483647, %v3070_v49  ;;  %v3073_v16 = vcvt.s32.f32 %v3066_v6  ;;  %v4863_v54 = vand.u32 2147483647, %v12536_v45 }
 0x565   :  { %v1271_v62 = vmul.f32 %v12637_v63, %v1083_v50  ;;  %vm4854_vm11 = vcmp.lt.s32.totalorder %v4853_v4, 2  ;;  %vm4855_vm14 = vcmp.eq.s32.totalorder %v4853_v4, 0  ;;  %v5025_v0 = vadd.s32 1, %v12621_v31 }
 0x566   :  { %vm4874_vm13 = vcmp.gt.s32.totalorder %v4873_v38, 0  ;;  %v3074_v22 = vmul.f32 %v3073_v16, %v3071_v7  ;;  %v5022_v33 = vmul.u32 %v12570_v37, %v5006_v14  ;;  %vm5024_vm15 = vc.u32 %v12626_v61, %v12620_v43 }
 0x567   :  { %v4875_v48 = vsel %vm4874_vm13, %v4873_v38, 0  ;;  %vm4858_vm2 = vcmp.eq.s32.totalorder %v4853_v4, 2  ;;  %v12644_v9 = vand.u32 3, %v3084_v12  ;;  %v5026_v8 = vsel %vm5024_vm15, %v5025_v0, %v12621_v31 }
 0x568   :  { %v4877_v2 = vand.u32 31, %v4875_v48  ;;  %v3075_v42 = vxor.u32 2147483648, %v3074_v22  ;;  %v5027_v27 = vadd.s32 %v5026_v8, %v5022_v33  ;;  %v4870_v20 = vand.u32 8388607, %v4863_v54 }
 0x569   :  { %v8909_v60 = vpop.eup %8908  ;;  %v12649_v37 = vshrl.u32 %v4875_v48, 5  ;;  %v1335_v55 = vadd.f32 %v1271_v62, %v851_v32  ;;  %vm3090_vm3 = vcmp.eq.s32.totalorder %v12644_v9, 2  ;;  %vm3086_vm0 = vcmp.lt.s32.totalorder %v12644_v9, 2 }
 0x56a   :  { %v8911_v51 = vpop.eup %8910  ;;  %v4859_v5 = vxor.u32 2147483648, %v8909_v60  ;;  %v4878_v34 = vsub.s32 32, %v4877_v2  ;;  %v3076_v3 = vsel %vm2993_vm1, %v3075_v42, %v3074_v22  ;;  %v5028_v30 = vadd.s32 536870912, %v5027_v27 }
 0x56b   :  { %v4856_v11 = vxor.u32 2147483648, %v8911_v51  ;;  %v4880_v47 = vshll.u32 %v15264_v28, %v4877_v2  ;;  %v3079_v15 = vsel %vm12561_vm5, %v12374_v29, %v3076_v3  ;;  %v4883_v57 = vshll.u32 %v15266_v39, %v4877_v2 }
 0x56c   :  { %v4860_v25 = vsel %vm4858_vm2, %v4859_v5, %v8911_v51  ;;  %v4881_v53 = vshrl.u32 %v15266_v39, %v4878_v34  ;;  %8912 = vcosq.f32 %v3079_v15  ;;  %v12661_v10 = vshrl.u32 %v5028_v30, 30 }
 0x56d   :  { %v4857_v24 = vsel %vm4855_vm14, %v8909_v60, %v4856_v11  ;;  %v4884_v18 = vshrl.u32 %v15267_v41, %v4878_v34  ;;  %8914 = vsinq.f32 %v3079_v15  ;;  %v4886_v6 = vshll.u32 %v15267_v41, %v4877_v2 }
 0x56e   :  { %v4861_v52 = vsel %vm4854_vm11, %v4857_v24, %v4860_v25  ;;  %v4887_v19 = vshrl.u32 %v15268_v35, %v4878_v34  ;;  %v5030_v21 = vshll.u32 %v12661_v10, 30  ;;  %v4882_v36 = vor.u32 %v4881_v53, %v4880_v47 }
 0x56f   :  { %v4862_v40 = vsel %vm4851_vm9, nan, %v4861_v52  ;;  %v4885_v26 = vor.u32 %v4884_v18, %v4883_v57  ;;  %v4889_v4 = vshll.u32 %v15268_v35, %v4877_v2  ;;  %v4890_v31 = vshrl.u32 %v15269_v13, %v4878_v34 }
 0x570   :  { %8119 = vst [vmem:[#allocation8 + $0x100] sm:$0xff] %v4862_v40  ;;  %v4888_v17 = vor.u32 %v4887_v19, %v4886_v6  ;;  %v4892_v50 = vshll.u32 %v15269_v13, %v4877_v2  ;;  %v4893_v46 = vshrl.u32 %v15270_v59, %v4878_v34  ;;  %v12673_v49 = vsub.s32 %v5027_v27, %v5030_v21 }
 0x571   :  { %vm3087_vm1 = vcmp.eq.s32.totalorder %v12644_v9, 0  ;;  %v4871_v58 = vor.u32 8388608, %v4870_v20  ;;  %v4891_v1 = vor.u32 %v4890_v31, %v4889_v4  ;;  %vm4895_vm4 = vcmp.lt.s32.totalorder %v12649_v37, 1 }
 0x572   :  { %v4894_v32 = vor.u32 %v4893_v46, %v4892_v50  ;;  %v5033_v12 = vsub.s32 0, %v12673_v49  ;;  %vm4898_vm5 = vcmp.lt.s32.totalorder %v12649_v37, 4  ;;  %v12682_v14 = vadd.f32 %v12509_v44, %v1335_v55 }
 0x573   :  { %vm3083_vm6 = vweird.f32 %v12374_v29  ;;  %vm4969_vm7 = vcmp.lt.s32.totalorder %v12513_v23, 0  ;;  %vm4897_vm8 = vcmp.lt.s32.totalorder %v12649_v37, 3  ;;  %v4900_v38 = vsel %vm4898_vm5, %v4888_v17, 2102212464 }
 0x574   :  { %v4903_v7 = vsel %vm4895_vm4, %v4882_v36, %v4885_v26  ;;  %v4904_v16 = vsel %vm4898_vm5, %v4891_v1, 920167782  ;;  %v8325_v62 = vmin.u32 %v5033_v12, %v12673_v49  ;;  %v4879_v0 = vshrl.u32 %v15264_v28, %v4878_v34 }
 0x575   :  { %vm4896_vm10 = vcmp.lt.s32.totalorder %v12649_v37, 2  ;;  %v4905_v22 = vsel %vm4897_vm8, %v4888_v17, %v4904_v16  ;;  %v4907_v48 = vsel %vm4895_vm4, %v4885_v26, %v4888_v17  ;;  %v4908_v60 = vsel %vm4898_vm5, %v4894_v32, 1326507024 }
 0x576   :  { %v4906_v33 = vsel %vm4896_vm10, %v4903_v7, %v4905_v22  ;;  %v4911_v8 = vshll.u32 %v4871_v58, 8  ;;  %v8913_v2 = vpop.eup %8912  ;;  %vm12700_vm12 = vcmp.le.f32.partialorder %v4967_v56, 0.7853982  ;;  %v5035_v5 = vclz %v8325_v62  ;;  %v12748_v62 = vld [vmem:[%s15203_s3] ss:$0 sm:$0xff] }
 0x577   :  { %v4899_v42 = vsel %vm4895_vm4, %v4879_v0, %v4882_v36  ;;  %v4901_v27 = vsel %vm4897_vm8, %v4885_v26, %v4900_v38  ;;  %v5175_v20 = vand.u32 2147483647, %v12682_v14  ;;  %v8915_v11 = vpop.eup %8914  ;;  %v3091_v34 = vxor.u32 2147483648, %v8913_v2  ;;  %v15361_v0 = vld [vmem:[#allocation45_spill] sm:$0xff] }
 0x578   :  { %v4909_v55 = vsel %vm4897_vm8, %v4891_v1, %v4908_v60  ;;  %v12711_v25 = vmul.u32.u64.low %v4911_v8, %v4906_v33  ;;  %v12712_v3 = vmul.u32.u64.high %v4911_v8, %v4906_v33, %v12711_v25  ;;  %v3088_v56 = vxor.u32 2147483648, %v8915_v11 }
 0x579   :  { %v8326_v30 = vadd.s32 4294967294, %v5035_v5  ;;  %v5053_v47 = vsub.s32 4, %v12661_v10  ;;  %v4910_v24 = vsel %vm4896_vm10, %v4907_v48, %v4909_v55  ;;  %v3092_v15 = vsel %vm3090_vm3, %v3091_v34, %v8915_v11  ;;  %v15362_v11 = vld [vmem:[#allocation46_spill] sm:$0xff] }
 0x57a   :  { %v12719_v53 = vmul.u32.u64.low %v4911_v8, %v4910_v24  ;;  %v12720_v57 = vmul.u32.u64.high %v4911_v8, %v4910_v24, %v12719_v53  ;;  %v5178_v52 = vand.u32 2139095040, %v12682_v14  ;;  %v3089_v18 = vsel %vm3087_vm1, %v8913_v2, %v3088_v56  ;;  %v1094_v2 = vpop.permute.xlu0 %1093 }
 0x57b   :  { %v5023_v40 = vadd.s32 %v12620_v43, %v12626_v61  ;;  %vm8327_vm9 = vcmp.lt.s32.totalorder %v8326_v30, 0  ;;  %v4902_v6 = vsel %vm4896_vm10, %v4899_v42, %v4901_v27  ;;  %v3093_v19 = vsel %vm3086_vm0, %v3089_v18, %v3092_v15  ;;  %v1076_v61 = vpop.permute.xlu1 %1075 }
 0x57c   :  { %v5038_v21 = vsel %vm8327_vm9, 0, %v8326_v30  ;;  %v4921_v36 = vadd.s32 1, %v12712_v3  ;;  %v5179_v26 = vshrl.u32 %v5178_v52, 23  ;;  %v3094_v4 = vsel %vm3083_vm6, nan, %v3093_v19 }
 0x57d   :  { %v5039_v17 = vsub.s32 32, %v5038_v21  ;;  %v5043_v31 = vsub.s32 4294967266, %v5038_v21  ;;  %v5054_v43 = vsel %vm4969_vm7, %v5053_v47, %v12661_v10  ;;  %8102 = vst [vmem:[#allocation8 + $0x78] sm:$0xff] %v3094_v4  ;;  %v4918_v37 = vmul.u32 %v4911_v8, %v4902_v6 }
 0x57e   :  { %vm4920_vm11 = vc.u32 %v12720_v57, %v12711_v25  ;;  %v8332_v9 = vadd.s32 4294967169, %v5179_v26  ;;  %v5182_v50 = vand.u32 8388607, %v5175_v20  ;;  %v5040_v46 = vshll.u32 %v12673_v49, %v5038_v21 }
 0x57f   :  { %v5041_v58 = vshrl.u32 %v5023_v40, %v5039_v17  ;;  %v5044_v29 = vadd.s32 127, %v5043_v31  ;;  %v4922_v1 = vsel %vm4920_vm11, %v4921_v36, %v12712_v3  ;;  %v5056_v32 = vsel %vm12700_vm12, 0, %v5054_v43 }
 0x580   :  { %v4923_v12 = vadd.s32 %v4922_v1, %v4918_v37  ;;  %v5185_v10 = vadd.s32 1, %v8332_v9  ;;  %v1270_v38 = vmul.f32 %v12637_v63, %v1076_v61  ;;  %v850_v49 = vmul.f32 %v12748_v62, %v15361_v0 }
 0x581   :  { %v5042_v7 = vor.u32 %v5041_v58, %v5040_v46  ;;  %v5045_v16 = vshll.u32 %v5044_v29, 23  ;;  %v5060_v48 = vadd.s32 3, %v5056_v32  ;;  %v5183_v60 = vor.u32 8388608, %v5182_v50 }
 0x582   :  { %v4924_v22 = vadd.s32 536870912, %v4923_v12  ;;  %vm5186_vm14 = vcmp.gt.s32.totalorder %v5185_v10, 0  ;;  %v1334_v27 = vadd.f32 %v1270_v38, %v850_v49  ;;  %v853_v34 = vmul.f32 %v12748_v62, %v15362_v11 }
 0x583   :  { %v5046_v33 = vor.u32 4788187, %v5045_v16  ;;  %v5187_v8 = vsel %vm5186_vm14, %v5185_v10, 0  ;;  %v5049_v3 = vcvt.s32.f32 %v5042_v7  ;;  %vm4865_vm13 = vcmp.lt.s32.totalorder %v12536_v45, 0 }
 0x584   :  { %v4925_v5 = vshrl.u32 %v4924_v22, 30  ;;  %v5189_v42 = vand.u32 31, %v5187_v8  ;;  %v1273_v47 = vmul.f32 %v12637_v63, %v1094_v2  ;;  %v12756_v15 = vand.u32 3, %v5060_v48 }
 0x585   :  { %v5047_v55 = vand.u32 2147483647, %v5046_v33  ;;  %v4919_v53 = vadd.s32 %v12711_v25, %v12720_v57  ;;  %v12759_v52 = vshll.u32 %v5183_v60, 8  ;;  %v12763_v40 = vshrl.u32 %v5187_v8, 5 }
 0x586   :  { %v4926_v56 = vshll.u32 %v4925_v5, 30  ;;  %v5190_v30 = vsub.s32 32, %v5189_v42  ;;  %v12767_v19 = vadd.f32 %v12509_v44, %v1334_v27  ;;  %v5192_v36 = vshll.u32 %v15264_v28, %v5189_v42 }
 0x587   :  { %v5050_v24 = vmul.f32 %v5049_v3, %v5047_v55  ;;  %v5195_v57 = vshll.u32 %v15266_v39, %v5189_v42  ;;  %v5198_v17 = vshll.u32 %v15267_v41, %v5189_v42  ;;  %v4949_v61 = vsub.s32 4, %v4925_v5 }
 0x588   :  { %v12761_v18 = vsub.s32 %v4923_v12, %v4926_v56  ;;  %v5193_v6 = vshrl.u32 %v15266_v39, %v5190_v30  ;;  %v5196_v26 = vshrl.u32 %v15267_v41, %v5190_v30  ;;  %v5199_v4 = vshrl.u32 %v15268_v35, %v5190_v30 }
 0x589   :  { %v5051_v21 = vxor.u32 2147483648, %v5050_v24  ;;  %v5202_v31 = vshrl.u32 %v15269_v13, %v5190_v30  ;;  %v5201_v9 = vshll.u32 %v15268_v35, %v5189_v42  ;;  %v5204_v32 = vshll.u32 %v15269_v13, %v5189_v42 }
 0x58a   :  { %v4929_v25 = vsub.s32 0, %v12761_v18  ;;  %v5194_v37 = vor.u32 %v5193_v6, %v5192_v36  ;;  %v5197_v58 = vor.u32 %v5196_v26, %v5195_v57  ;;  %v5200_v29 = vor.u32 %v5199_v4, %v5198_v17 }
 0x58b   :  { %v5052_v43 = vsel %vm4969_vm7, %v5051_v21, %v5050_v24  ;;  %v5203_v1 = vor.u32 %v5202_v31, %v5201_v9  ;;  %v5205_v12 = vshrl.u32 %v15270_v59, %v5190_v30  ;;  %v5074_v38 = vand.u32 2139095040, %v12767_v19 }
 0x58c   :  { %v5055_v50 = vsel %vm12700_vm12, %v12513_v23, %v5052_v43  ;;  %v8321_v46 = vmin.u32 %v4929_v25, %v12761_v18  ;;  %v1337_v7 = vadd.f32 %v1273_v47, %v853_v34  ;;  %vm12788_vm15 = vcmp.le.f32.partialorder %v4863_v54, 0.7853982 }
 0x58d   :  { %8916 = vcosq.f32 %v5055_v50  ;;  %v4950_v16 = vsel %vm4865_vm13, %v4949_v61, %v4925_v5  ;;  %v5191_v0 = vshrl.u32 %v15264_v28, %v5190_v30  ;;  %v5206_v49 = vor.u32 %v5205_v12, %v5204_v32 }
 0x58e   :  { %8918 = vsinq.f32 %v5055_v50  ;;  %v4931_v10 = vclz %v8321_v46  ;;  %vm5207_vm2 = vcmp.lt.s32.totalorder %v12763_v40, 1  ;;  %vm5209_vm1 = vcmp.lt.s32.totalorder %v12763_v40, 3 }
 0x58f   :  { %vm5210_vm3 = vcmp.lt.s32.totalorder %v12763_v40, 4  ;;  %v5215_v33 = vsel %vm5207_vm2, %v5194_v37, %v5197_v58  ;;  %v5219_v54 = vsel %vm5207_vm2, %v5197_v58, %v5200_v29  ;;  %vm5208_vm4 = vcmp.lt.s32.totalorder %v12763_v40, 2 }
 0x590   :  { %v8322_v22 = vadd.s32 4294967294, %v4931_v10  ;;  %v5212_v48 = vsel %vm5210_vm3, %v5200_v29, 2102212464  ;;  %v5216_v60 = vsel %vm5210_vm3, %v5203_v1, 920167782  ;;  %vm5062_vm5 = vcmp.lt.s32.totalorder %v12756_v15, 2 }
 0x591   :  { %v5220_v8 = vsel %vm5210_vm3, %v5206_v49, 1326507024  ;;  %v5217_v2 = vsel %vm5209_vm1, %v5200_v29, %v5216_v60  ;;  %v5211_v27 = vsel %vm5207_vm2, %v5191_v0, %v5194_v37  ;;  %vm5059_vm6 = vweird.f32 %v12513_v23  ;;  %v1087_v49 = vpop.permute.xlu1 %1086 }
 0x592   :  { %vm8323_vm0 = vcmp.lt.s32.totalorder %v8322_v22, 0  ;;  %v5221_v5 = vsel %vm5209_vm1, %v5203_v1, %v5220_v8  ;;  %v5218_v11 = vsel %vm5208_vm4, %v5215_v33, %v5217_v2  ;;  %v5213_v56 = vsel %vm5209_vm1, %v5197_v58, %v5212_v48  ;;  %v15365_v2 = vld [vmem:[#allocation47_spill] sm:$0xff] }
 0x593   :  { %v4934_v42 = vsel %vm8323_vm0, 0, %v8322_v22  ;;  %v5222_v34 = vsel %vm5208_vm4, %v5219_v54, %v5221_v5  ;;  %v5075_v30 = vshrl.u32 %v5074_v38, 23  ;;  %vm5063_vm7 = vcmp.eq.s32.totalorder %v12756_v15, 0  ;;  %v15366_v5 = vld [vmem:[#allocation48_spill] sm:$0xff] }
 0x594   :  { %v4935_v55 = vsub.s32 32, %v4934_v42  ;;  %v4939_v3 = vsub.s32 4294967266, %v4934_v42  ;;  %v12812_v47 = vmul.u32.u64.low %v12759_v52, %v5222_v34  ;;  %v12813_v24 = vmul.u32.u64.high %v12759_v52, %v5222_v34, %v12812_v47 }
 0x595   :  { %v12816_v6 = vmul.u32.u64.low %v12759_v52, %v5218_v11  ;;  %v12817_v21 = vmul.u32.u64.high %v12759_v52, %v5218_v11, %v12816_v6  ;;  %v4936_v36 = vshll.u32 %v12761_v18, %v4934_v42  ;;  %v8328_v25 = vadd.s32 4294967169, %v5075_v30 }
 0x596   :  { %v4937_v26 = vshrl.u32 %v4919_v53, %v4935_v55  ;;  %v4940_v4 = vadd.s32 127, %v4939_v3  ;;  %vm5066_vm8 = vcmp.eq.s32.totalorder %v12756_v15, 2  ;;  %v5214_v17 = vsel %vm5208_vm4, %v5211_v27, %v5213_v56 }
 0x597   :  { %v8917_v57 = vpop.eup %8916  ;;  %v12826_v31 = vadd.f32 %v12509_v44, %v1337_v7  ;;  %v4952_v53 = vsel %vm12788_vm15, 0, %v4950_v16  ;;  %vm5232_vm10 = vc.u32 %v12813_v24, %v12816_v6  ;;  %v5233_v50 = vadd.s32 1, %v12817_v21 }
 0x598   :  { %v8919_v43 = vpop.eup %8918  ;;  %v5067_v61 = vxor.u32 2147483648, %v8917_v57  ;;  %v4938_v37 = vor.u32 %v4937_v26, %v4936_v36  ;;  %v4941_v9 = vshll.u32 %v4940_v4, 23  ;;  %v5071_v46 = vand.u32 2147483647, %v12767_v19 }
 0x599   :  { %v5064_v18 = vxor.u32 2147483648, %v8919_v43  ;;  %v5230_v29 = vmul.u32 %v12759_v52, %v5214_v17  ;;  %v5081_v1 = vadd.s32 1, %v8328_v25  ;;  %v4956_v10 = vadd.s32 3, %v4952_v53  ;;  %v1105_v25 = vpop.permute.xlu0 %1104 }
 0x59a   :  { %v5068_v40 = vsel %vm5066_vm8, %v5067_v61, %v8919_v43  ;;  %v4942_v58 = vor.u32 4788187, %v4941_v9  ;;  %v4945_v12 = vcvt.s32.f32 %v4938_v37  ;;  %v5234_v38 = vsel %vm5232_vm10, %v5233_v50, %v12817_v21 }
 0x59b   :  { %v5065_v32 = vsel %vm5063_vm7, %v8917_v57, %v5064_v18  ;;  %v5235_v0 = vadd.s32 %v5234_v38, %v5230_v29  ;;  %vm5082_vm12 = vcmp.gt.s32.totalorder %v5081_v1, 0  ;;  %v5078_v52 = vand.u32 8388607, %v5071_v46 }
 0x59c   :  { %v5069_v7 = vsel %vm5062_vm5, %v5065_v32, %v5068_v40  ;;  %v4943_v16 = vand.u32 2147483647, %v4942_v58  ;;  %v5083_v33 = vsel %vm5082_vm12, %v5081_v1, 0  ;;  %v5386_v48 = vand.u32 2139095040, %v12826_v31 }
 0x59d   :  { %v5070_v22 = vsel %vm5059_vm6, nan, %v5069_v7  ;;  %v5236_v54 = vadd.s32 536870912, %v5235_v0  ;;  %v5085_v8 = vand.u32 31, %v5083_v33  ;;  %v852_v15 = vmul.f32 %v12748_v62, %v15365_v2 }
 0x59e   :  { %8121 = vst [vmem:[#allocation8 + $0x110] sm:$0xff] %v5070_v22  ;;  %v4946_v60 = vmul.f32 %v4945_v12, %v4943_v16  ;;  %v12849_v42 = vmul.f32 %v12748_v62, %v15366_v5  ;;  %v1272_v23 = vmul.f32 %v12637_v63, %v1087_v49  ;;  %v12852_v11 = vand.u32 3, %v4956_v10 }
 0x59f   :  { %v12854_v34 = vshrl.u32 %v5236_v54, 30  ;;  %v5086_v55 = vsub.s32 32, %v5085_v8  ;;  %v5079_v3 = vor.u32 8388608, %v5078_v52  ;;  %v12856_v56 = vshrl.u32 %v5083_v33, 5 }
 0x5a0   :  { %v4947_v27 = vxor.u32 2147483648, %v4946_v60  ;;  %v5088_v30 = vshll.u32 %v15264_v28, %v5085_v8  ;;  %v5387_v47 = vshrl.u32 %v5386_v48, 23  ;;  %v5091_v26 = vshll.u32 %v15266_v39, %v5085_v8 }
 0x5a1   :  { %v5238_v36 = vshll.u32 %v12854_v34, 30  ;;  %v5094_v4 = vshll.u32 %v15267_v41, %v5085_v8  ;;  %v5089_v17 = vshrl.u32 %v15266_v39, %v5086_v55  ;;  %v5092_v43 = vshrl.u32 %v15267_v41, %v5086_v55 }
 0x5a2   :  { %v4948_v21 = vsel %vm4865_vm13, %v4947_v27, %v4946_v60  ;;  %v5095_v61 = vshrl.u32 %v15268_v35, %v5086_v55  ;;  %v5097_v9 = vshll.u32 %v15268_v35, %v5085_v8  ;;  %v5098_v53 = vshrl.u32 %v15269_v13, %v5086_v55 }
 0x5a3   :  { %v4951_v57 = vsel %vm12788_vm15, %v12536_v45, %v4948_v21  ;;  %v12870_v37 = vsub.s32 %v5235_v0, %v5238_v36  ;;  %v5090_v18 = vor.u32 %v5089_v17, %v5088_v30  ;;  %v5093_v50 = vor.u32 %v5092_v43, %v5091_v26 }
 0x5a4   :  { %8920 = vcosq.f32 %v4951_v57  ;;  %v12875_v40 = vmul.f32 %v12637_v63, %v1105_v25  ;;  %v5096_v58 = vor.u32 %v5095_v61, %v5094_v4  ;;  %v5099_v29 = vor.u32 %v5098_v53, %v5097_v9 }
 0x5a5   :  { %8922 = vsinq.f32 %v4951_v57  ;;  %v5241_v51 = vsub.s32 0, %v12870_v37  ;;  %v12878_v1 = vadd.f32 %v1272_v23, %v852_v15  ;;  %v5100_v32 = vshll.u32 %v15269_v13, %v5085_v8 }
 0x5a6   :  { %v5101_v12 = vshrl.u32 %v15270_v59, %v5086_v55  ;;  %v12882_v10 = vshll.u32 %v5079_v3, 8  ;;  %v5383_v38 = vand.u32 2147483647, %v12826_v31  ;;  %vm4962_vm9 = vcmp.eq.s32.totalorder %v12852_v11, 2 }
 0x5a7   :  { %vm5177_vm11 = vcmp.lt.s32.totalorder %v12682_v14, 0  ;;  %v8333_v63 = vmin.u32 %v5241_v51, %v12870_v37  ;;  %vm5103_vm14 = vcmp.lt.s32.totalorder %v12856_v56, 1  ;;  %vm5106_vm13 = vcmp.lt.s32.totalorder %v12856_v56, 4 }
 0x5a8   :  { %v8340_v7 = vadd.s32 4294967169, %v5387_v47  ;;  %vm4959_vm15 = vcmp.eq.s32.totalorder %v12852_v11, 0  ;;  %v5261_v16 = vsub.s32 4, %v12854_v34  ;;  %v5102_v0 = vor.u32 %v5101_v12, %v5100_v32 }
 0x5a9   :  { %v5111_v49 = vsel %vm5103_vm14, %v5090_v18, %v5093_v50  ;;  %v5112_v22 = vsel %vm5106_vm13, %v5099_v29, 920167782  ;;  %vm4958_vm2 = vcmp.lt.s32.totalorder %v12852_v11, 2  ;;  %v5243_v52 = vclz %v8333_v63 }
 0x5aa   :  { %v5087_v33 = vshrl.u32 %v15264_v28, %v5086_v55  ;;  %vm5105_vm1 = vcmp.lt.s32.totalorder %v12856_v56, 3  ;;  %v5108_v48 = vsel %vm5106_vm13, %v5096_v58, 2102212464  ;;  %vm4955_vm3 = vweird.f32 %v12536_v45 }
 0x5ab   :  { %vm5104_vm0 = vcmp.lt.s32.totalorder %v12856_v56, 2  ;;  %v5113_v60 = vsel %vm5105_vm1, %v5096_v58, %v5112_v22  ;;  %v5115_v54 = vsel %vm5103_vm14, %v5093_v50, %v5096_v58  ;;  %v5116_v8 = vsel %vm5106_vm13, %v5102_v0, 1326507024 }
 0x5ac   :  { %vm12909_vm4 = vcmp.le.f32.partialorder %v5175_v20, 0.7853982  ;;  %v8334_v15 = vadd.s32 4294967294, %v5243_v52  ;;  %v5107_v5 = vsel %vm5103_vm14, %v5087_v33, %v5090_v18  ;;  %v5114_v23 = vsel %vm5104_vm0, %v5111_v49, %v5113_v60 }
 0x5ad   :  { %v5117_v27 = vsel %vm5105_vm1, %v5099_v29, %v5116_v8  ;;  %v5109_v55 = vsel %vm5105_vm1, %v5093_v50, %v5108_v48  ;;  %v12920_v30 = vmul.u32.u64.low %v12882_v10, %v5114_v23  ;;  %v12921_v47 = vmul.u32.u64.high %v12882_v10, %v5114_v23, %v12920_v30 }
 0x5ae   :  { %v5118_v3 = vsel %vm5104_vm0, %v5115_v54, %v5117_v27  ;;  %v8921_v20 = vpop.eup %8920  ;;  %vm8335_vm5 = vcmp.lt.s32.totalorder %v8334_v15, 0  ;;  %v5393_v26 = vadd.s32 1, %v8340_v7  ;;  %v5231_v57 = vadd.s32 %v12816_v6, %v12813_v24 }
 0x5af   :  { %v12925_v21 = vmul.u32.u64.low %v12882_v10, %v5118_v3  ;;  %v12926_v36 = vmul.u32.u64.high %v12882_v10, %v5118_v3, %v12925_v21  ;;  %v8923_v4 = vpop.eup %8922  ;;  %v4963_v25 = vxor.u32 2147483648, %v8921_v20  ;;  %v5246_v17 = vsel %vm8335_vm5, 0, %v8334_v15 }
 0x5b0   :  { %v12932_v43 = vand.u32 8388607, %v5383_v38  ;;  %v4960_v61 = vxor.u32 2147483648, %v8923_v4  ;;  %v5247_v9 = vsub.s32 32, %v5246_v17  ;;  %v5251_v53 = vsub.s32 4294967266, %v5246_v17 }
 0x5b1   :  { %v5110_v18 = vsel %vm5104_vm0, %v5107_v5, %v5109_v55  ;;  %v4964_v50 = vsel %vm4962_vm9, %v4963_v25, %v8923_v4  ;;  %v5262_v51 = vsel %vm5177_vm11, %v5261_v16, %v12854_v34  ;;  %v5129_v24 = vadd.s32 1, %v12921_v47 }
 0x5b2   :  { %vm5394_vm6 = vcmp.gt.s32.totalorder %v5393_v26, 0  ;;  %v4961_v6 = vsel %vm4959_vm15, %v8921_v20, %v4960_v61  ;;  %v5248_v58 = vshll.u32 %v12870_v37, %v5246_v17  ;;  %v5249_v29 = vshrl.u32 %v5231_v57, %v5247_v9 }
 0x5b3   :  { %v5252_v32 = vadd.s32 127, %v5251_v53  ;;  %v4965_v56 = vsel %vm4958_vm2, %v4961_v6, %v4964_v50  ;;  %v5126_v12 = vmul.u32 %v12882_v10, %v5110_v18  ;;  %vm5128_vm7 = vc.u32 %v12926_v36, %v12920_v30 }
 0x5b4   :  { %v5395_v63 = vsel %vm5394_vm6, %v5393_v26, 0  ;;  %v4966_v34 = vsel %vm4955_vm3, nan, %v4965_v56  ;;  %v5250_v7 = vor.u32 %v5249_v29, %v5248_v58  ;;  %v5130_v0 = vsel %vm5128_vm7, %v5129_v24, %v12921_v47 }
 0x5b5   :  { %v5253_v16 = vshll.u32 %v5252_v32, 23  ;;  %8120 = vst [vmem:[#allocation8 + $0x108] sm:$0xff] %v4966_v34  ;;  %v5264_v37 = vsel %vm12909_vm4, 0, %v5262_v51  ;;  %v5131_v49 = vadd.s32 %v5130_v0, %v5126_v12  ;;  %v5397_v11 = vand.u32 31, %v5395_v63 }
 0x5b6   :  { %v1339_v10 = vadd.f32 %v12875_v40, %v12849_v42  ;;  %v5391_v33 = vor.u32 8388608, %v12932_v43  ;;  %v12960_v45 = vadd.f32 %v12509_v44, %v12878_v1  ;;  %v5257_v54 = vcvt.s32.f32 %v5250_v7 }
 0x5b7   :  { %v5254_v22 = vor.u32 4788187, %v5253_v16  ;;  %v5132_v52 = vadd.s32 536870912, %v5131_v49  ;;  %v5398_v48 = vsub.s32 32, %v5397_v11  ;;  %v5268_v8 = vadd.s32 3, %v5264_v37 }
 0x5b8   :  { %v12962_v15 = vshrl.u32 %v5395_v63, 5  ;;  %v5409_v42 = vshll.u32 %v15268_v35, %v5397_v11  ;;  %v5400_v20 = vshll.u32 %v15264_v28, %v5397_v11  ;;  %v5403_v21 = vshll.u32 %v15266_v39, %v5397_v11 }
 0x5b9   :  { %v5255_v60 = vand.u32 2147483647, %v5254_v22  ;;  %v5133_v5 = vshrl.u32 %v5132_v52, 30  ;;  %v5401_v23 = vshrl.u32 %v15266_v39, %v5398_v48  ;;  %v5404_v27 = vshrl.u32 %v15267_v41, %v5398_v48 }
 0x5ba   :  { %v5407_v55 = vshrl.u32 %v15268_v35, %v5398_v48  ;;  %v5410_v3 = vshrl.u32 %v15269_v13, %v5398_v48  ;;  %v5413_v1 = vshrl.u32 %v15270_v59, %v5398_v48  ;;  %v5406_v26 = vshll.u32 %v15267_v41, %v5397_v11 }
 0x5bb   :  { %v5258_v40 = vmul.f32 %v5257_v54, %v5255_v60  ;;  %v5134_v47 = vshll.u32 %v5133_v5, 30  ;;  %v5412_v57 = vshll.u32 %v15269_v13, %v5397_v11  ;;  %v12975_v17 = vadd.f32 %v12509_v44, %v1339_v10 }
 0x5bc   :  { %v5411_v25 = vor.u32 %v5410_v3, %v5409_v42  ;;  %vm5073_vm8 = vcmp.lt.s32.totalorder %v12767_v19, 0  ;;  %v5402_v61 = vor.u32 %v5401_v23, %v5400_v20  ;;  %v5405_v9 = vor.u32 %v5404_v27, %v5403_v21 }
 0x5bd   :  { %v5259_v4 = vxor.u32 2147483648, %v5258_v40  ;;  %v12978_v43 = vsub.s32 %v5131_v49, %v5134_v47  ;;  %v5408_v53 = vor.u32 %v5407_v55, %v5406_v26  ;;  %v12982_v50 = vand.u32 3, %v5268_v8 }
 0x5be   :  { %v5414_v51 = vor.u32 %v5413_v1, %v5412_v57  ;;  %v5282_v24 = vand.u32 2139095040, %v12960_v45  ;;  %v5399_v58 = vshrl.u32 %v15264_v28, %v5398_v48  ;;  %vm5418_vm10 = vcmp.lt.s32.totalorder %v12962_v15, 4 }
 0x5bf   :  { %v5260_v18 = vsel %vm5177_vm11, %v5259_v4, %v5258_v40  ;;  %v5137_v6 = vsub.s32 0, %v12978_v43  ;;  %vm12993_vm12 = vcmp.le.f32.partialorder %v5071_v46, 0.7853982  ;;  %vm5415_vm9 = vcmp.lt.s32.totalorder %v12962_v15, 1 }
 0x5c0   :  { %v5263_v44 = vsel %vm12909_vm4, %v12682_v14, %v5260_v18  ;;  %vm5417_vm11 = vcmp.lt.s32.totalorder %v12962_v15, 3  ;;  %v5424_v32 = vsel %vm5418_vm10, %v5411_v25, 920167782  ;;  %v5420_v56 = vsel %vm5418_vm10, %v5408_v53, 2102212464 }
 0x5c1   :  { %8924 = vcosq.f32 %v5263_v44  ;;  %v8329_v2 = vmin.u32 %v5137_v6, %v12978_v43  ;;  %v5423_v12 = vsel %vm5415_vm9, %v5402_v61, %v5405_v9  ;;  %v5157_v63 = vsub.s32 4, %v5133_v5 }
 0x5c2   :  { %8926 = vsinq.f32 %v5263_v44  ;;  %v5425_v34 = vsel %vm5417_vm11, %v5408_v53, %v5424_v32  ;;  %v5427_v7 = vsel %vm5415_vm9, %v5405_v9, %v5408_v53  ;;  %v5428_v16 = vsel %vm5418_vm10, %v5414_v51, 1326507024 }
 0x5c3   :  { %v5139_v46 = vclz %v8329_v2  ;;  %vm5416_vm14 = vcmp.lt.s32.totalorder %v12962_v15, 2  ;;  %v5419_v0 = vsel %vm5415_vm9, %v5399_v58, %v5402_v61  ;;  %v5431_v37 = vshll.u32 %v5391_v33, 8 }
 0x5c4   :  { %v5421_v49 = vsel %vm5417_vm11, %v5405_v9, %v5420_v56  ;;  %v5426_v11 = vsel %vm5416_vm14, %v5423_v12, %v5425_v34  ;;  %v5429_v22 = vsel %vm5417_vm11, %v5411_v25, %v5428_v16  ;;  %v5283_v10 = vshrl.u32 %v5282_v24, 23  ;;  %v15371_v12 = vld [vmem:[#allocation49_spill] sm:$0xff]  ;;  %v15372_v16 = vld [vmem:[#allocation50_spill] sm:$0xff] }
 0x5c5   :  { %v8330_v52 = vadd.s32 4294967294, %v5139_v46  ;;  %v5430_v48 = vsel %vm5416_vm14, %v5427_v7, %v5429_v22  ;;  %v13011_v60 = vmul.u32.u64.low %v5431_v37, %v5426_v11  ;;  %v13012_v54 = vmul.u32.u64.high %v5431_v37, %v5426_v11, %v13011_v60 }
 0x5c6   :  { %vm5270_vm13 = vcmp.lt.s32.totalorder %v12982_v50, 2  ;;  %v5158_v33 = vsel %vm5073_vm8, %v5157_v63, %v5133_v5  ;;  %v13018_v8 = vmul.u32.u64.low %v5431_v37, %v5430_v48  ;;  %v13019_v23 = vmul.u32.u64.high %v5431_v37, %v5430_v48, %v13018_v8 }
 0x5c7   :  { %v8336_v27 = vadd.s32 4294967169, %v5283_v10  ;;  %vm5271_vm15 = vcmp.eq.s32.totalorder %v12982_v50, 0  ;;  %vm5274_vm2 = vcmp.eq.s32.totalorder %v12982_v50, 2  ;;  %vm8331_vm1 = vcmp.lt.s32.totalorder %v8330_v52, 0 }
 0x5c8   :  { %v5422_v42 = vsel %vm5416_vm14, %v5419_v0, %v5421_v49  ;;  %v5127_v40 = vadd.s32 %v12920_v30, %v12926_v36  ;;  %v5142_v55 = vsel %vm8331_vm1, 0, %v8330_v52  ;;  %v5279_v3 = vand.u32 2147483647, %v12960_v45 }
 0x5c9   :  { %v5289_v1 = vadd.s32 1, %v8336_v27  ;;  %v5143_v5 = vsub.s32 32, %v5142_v55  ;;  %v5147_v47 = vsub.s32 4294967266, %v5142_v55  ;;  %v5160_v20 = vsel %vm12993_vm12, 0, %v5158_v33 }
 0x5ca   :  { %v5441_v21 = vadd.s32 1, %v13012_v54  ;;  %v5144_v4 = vshll.u32 %v12978_v43, %v5142_v55  ;;  %v5438_v25 = vmul.u32 %v5431_v37, %v5422_v42  ;;  %vm5440_vm3 = vc.u32 %v13019_v23, %v13011_v60 }
 0x5cb   :  { %v8925_v26 = vpop.eup %8924  ;;  %vm5290_vm0 = vcmp.gt.s32.totalorder %v5289_v1, 0  ;;  %v5145_v15 = vshrl.u32 %v5127_v40, %v5143_v5  ;;  %v5148_v57 = vadd.s32 127, %v5147_v47  ;;  %v5286_v18 = vand.u32 8388607, %v5279_v3 }
 0x5cc   :  { %v8927_v30 = vpop.eup %8926  ;;  %v5275_v36 = vxor.u32 2147483648, %v8925_v26  ;;  %v5442_v61 = vsel %vm5440_vm3, %v5441_v21, %v13012_v54  ;;  %v5291_v51 = vsel %vm5290_vm0, %v5289_v1, 0  ;;  %v5164_v6 = vadd.s32 3, %v5160_v20 }
 0x5cd   :  { %v5272_v9 = vxor.u32 2147483648, %v8927_v30  ;;  %v5443_v53 = vadd.s32 %v5442_v61, %v5438_v25  ;;  %v5146_v24 = vor.u32 %v5145_v15, %v5144_v4  ;;  %v5149_v44 = vshll.u32 %v5148_v57, 23 }
 0x5ce   :  { %v5276_v43 = vsel %vm5274_vm2, %v5275_v36, %v8927_v30  ;;  %v5293_v2 = vand.u32 31, %v5291_v51  ;;  %v5594_v56 = vand.u32 2139095040, %v12975_v17  ;;  %v13044_v63 = vmul.f32 %v12748_v62, %v15371_v12 }
 0x5cf   :  { %v5273_v58 = vsel %vm5271_vm15, %v8925_v26, %v5272_v9  ;;  %v5444_v32 = vadd.s32 536870912, %v5443_v53  ;;  %vm5267_vm4 = vweird.f32 %v12682_v14  ;;  %v5150_v7 = vor.u32 4788187, %v5149_v44 }
 0x5d0   :  { %v5277_v34 = vsel %vm5270_vm13, %v5273_v58, %v5276_v43  ;;  %v13051_v46 = vmul.f32 %v12748_v62, %v15372_v16  ;;  %v5294_v49 = vsub.s32 32, %v5293_v2  ;;  %v5153_v22 = vcvt.s32.f32 %v5146_v24 }
 0x5d1   :  { %v5278_v0 = vsel %vm5267_vm4, nan, %v5277_v34  ;;  %v5445_v37 = vshrl.u32 %v5444_v32, 30  ;;  %v5151_v11 = vand.u32 2147483647, %v5150_v7  ;;  %v13053_v10 = vand.u32 3, %v5164_v6 }
 0x5d2   :  { %8123 = vst [vmem:[#allocation8 + $0x120] sm:$0xff] %v5278_v0  ;;  %v5287_v52 = vor.u32 8388608, %v5286_v18  ;;  %v5296_v14 = vshll.u32 %v15264_v28, %v5293_v2  ;;  %v5297_v50 = vshrl.u32 %v15266_v39, %v5294_v49  ;;  %v5595_v54 = vshrl.u32 %v5594_v56, 23 }
 0x5d3   :  { %v5446_v48 = vshll.u32 %v5445_v37, 30  ;;  %v5154_v33 = vmul.f32 %v5153_v22, %v5151_v11  ;;  %v5300_v8 = vshrl.u32 %v15267_v41, %v5294_v49  ;;  %v5303_v62 = vshrl.u32 %v15268_v35, %v5294_v49 }
 0x5d4   :  { %v5306_v27 = vshrl.u32 %v15269_v13, %v5294_v49  ;;  %v5292_v40 = vshrl.u32 %v5291_v51, 5  ;;  %v5299_v55 = vshll.u32 %v15266_v39, %v5293_v2  ;;  %v5302_v1 = vshll.u32 %v15267_v41, %v5293_v2 }
 0x5d5   :  { %v13060_v42 = vsub.s32 %v5443_v53, %v5446_v48  ;;  %v5155_v5 = vxor.u32 2147483648, %v5154_v33  ;;  %v5298_v47 = vor.u32 %v5297_v50, %v5296_v14  ;;  %v5305_v20 = vshll.u32 %v15268_v35, %v5293_v2 }
 0x5d6   :  { %v5308_v21 = vshll.u32 %v15269_v13, %v5293_v2  ;;  %vm5385_vm5 = vcmp.lt.s32.totalorder %v12826_v31, 0  ;;  %v5301_v4 = vor.u32 %v5300_v8, %v5299_v55  ;;  %v5304_v25 = vor.u32 %v5303_v62, %v5302_v1 }
 0x5d7   :  { %v5449_v26 = vsub.s32 0, %v13060_v42  ;;  %v5309_v30 = vshrl.u32 %v15270_v59, %v5294_v49  ;;  %v5156_v36 = vsel %vm5073_vm8, %v5155_v5, %v5154_v33  ;;  %v5439_v15 = vadd.s32 %v13011_v60, %v13019_v23 }
 0x5d8   :  { %v5307_v57 = vor.u32 %v5306_v27, %v5305_v20  ;;  %v5327_v61 = vshll.u32 %v5287_v52, 8  ;;  %v5159_v9 = vsel %vm12993_vm12, %v12767_v19, %v5156_v36  ;;  %v8348_v51 = vadd.s32 4294967169, %v5595_v54  ;;  %v1098_v20 = vpop.permute.xlu1 %1097 }
 0x5d9   :  { %v8341_v53 = vmin.u32 %v5449_v26, %v13060_v42  ;;  %v5310_v18 = vor.u32 %v5309_v30, %v5308_v21  ;;  %8928 = vcosq.f32 %v5159_v9  ;;  %v5469_v43 = vsub.s32 4, %v5445_v37 }
 0x5da   :  { %vm5311_vm6 = vcmp.lt.s32.totalorder %v5292_v40, 1  ;;  %vm5314_vm7 = vcmp.lt.s32.totalorder %v5292_v40, 4  ;;  %8930 = vsinq.f32 %v5159_v9  ;;  %v5295_v60 = vshrl.u32 %v15264_v28, %v5294_v49 }
 0x5db   :  { %v5451_v24 = vclz %v8341_v53  ;;  %v5316_v44 = vsel %vm5314_vm7, %v5304_v25, 2102212464  ;;  %v5319_v6 = vsel %vm5311_vm6, %v5298_v47, %v5301_v4  ;;  %vm5313_vm8 = vcmp.lt.s32.totalorder %v5292_v40, 3  ;;  %v13114_v53 = vld [vmem:[%s15203_s3 + $0x1] ss:$0 sm:$0xff] }
 0x5dc   :  { %v5320_v23 = vsel %vm5314_vm7, %v5307_v57, 920167782  ;;  %v5323_v58 = vsel %vm5311_vm6, %v5301_v4, %v5304_v25  ;;  %vm5312_vm10 = vcmp.lt.s32.totalorder %v5292_v40, 2  ;;  %v5324_v2 = vsel %vm5314_vm7, %v5310_v18, 1326507024 }
 0x5dd   :  { %v8342_v32 = vadd.s32 4294967294, %v5451_v24  ;;  %v5321_v29 = vsel %vm5313_vm8, %v5304_v25, %v5320_v23  ;;  %v5315_v56 = vsel %vm5311_vm6, %v5295_v60, %v5298_v47  ;;  %v5317_v12 = vsel %vm5313_vm8, %v5301_v4, %v5316_v44 }
 0x5de   :  { %v5322_v34 = vsel %vm5312_vm10, %v5319_v6, %v5321_v29  ;;  %v5325_v7 = vsel %vm5313_vm8, %v5307_v57, %v5324_v2  ;;  %v5470_v22 = vsel %vm5385_vm5, %v5469_v43, %v5445_v37  ;;  %vm5163_vm9 = vweird.f32 %v12767_v19 }
 0x5df   :  { %vm8343_vm12 = vcmp.lt.s32.totalorder %v8342_v32, 0  ;;  %v5326_v16 = vsel %vm5312_vm10, %v5323_v58, %v5325_v7  ;;  %v13080_v0 = vmul.u32.u64.low %v5327_v61, %v5322_v34  ;;  %v13081_v11 = vmul.u32.u64.high %v5327_v61, %v5322_v34, %v13080_v0 }
 0x5e0   :  { %v5454_v49 = vsel %vm8343_vm12, 0, %v8342_v32  ;;  %v13086_v52 = vmul.u32.u64.low %v5327_v61, %v5326_v16  ;;  %v13087_v48 = vmul.u32.u64.high %v5327_v61, %v5326_v16, %v13086_v52  ;;  %v5318_v54 = vsel %vm5312_vm10, %v5315_v56, %v5317_v12 }
 0x5e1   :  { %v5455_v14 = vsub.s32 32, %v5454_v49  ;;  %v5459_v50 = vsub.s32 4294967266, %v5454_v49  ;;  %v5601_v33 = vadd.s32 1, %v8348_v51  ;;  %vm5170_vm11 = vcmp.eq.s32.totalorder %v13053_v10, 2 }
 0x5e2   :  { %vm13094_vm14 = vcmp.le.f32.partialorder %v5383_v38, 0.7853982  ;;  %v5456_v37 = vshll.u32 %v13060_v42, %v5454_v49  ;;  %v5591_v62 = vand.u32 2147483647, %v12975_v17  ;;  %v5337_v1 = vadd.s32 1, %v13081_v11 }
 0x5e3   :  { %v5457_v27 = vshrl.u32 %v5439_v15, %v5455_v14  ;;  %v5460_v55 = vadd.s32 127, %v5459_v50  ;;  %vm5602_vm13 = vcmp.gt.s32.totalorder %v5601_v33, 0  ;;  %v8929_v40 = vpop.eup %8928  ;;  %v5472_v5 = vsel %vm13094_vm14, 0, %v5470_v22 }
 0x5e4   :  { %v5334_v47 = vmul.u32 %v5327_v61, %v5318_v54  ;;  %vm5336_vm15 = vc.u32 %v13087_v48, %v13080_v0  ;;  %v5603_v38 = vsel %vm5602_vm13, %v5601_v33, 0  ;;  %v8931_v21 = vpop.eup %8930  ;;  %v5171_v26 = vxor.u32 2147483648, %v8929_v40 }
 0x5e5   :  { %v5458_v42 = vor.u32 %v5457_v27, %v5456_v37  ;;  %v5461_v4 = vshll.u32 %v5460_v55, 23  ;;  %v5338_v25 = vsel %vm5336_vm15, %v5337_v1, %v13081_v11  ;;  %v5168_v30 = vxor.u32 2147483648, %v8931_v21 }
 0x5e6   :  { %v5339_v36 = vadd.s32 %v5338_v25, %v5334_v47  ;;  %v5598_v15 = vand.u32 8388607, %v5591_v62  ;;  %v5605_v57 = vand.u32 31, %v5603_v38  ;;  %vm5167_vm2 = vcmp.eq.s32.totalorder %v13053_v10, 0 }
 0x5e7   :  { %v5172_v61 = vsel %vm5170_vm11, %v5171_v26, %v8931_v21  ;;  %v5462_v9 = vor.u32 4788187, %v5461_v4  ;;  %v1274_v18 = vmul.f32 %v13114_v53, %v1098_v20  ;;  %vm5166_vm1 = vcmp.lt.s32.totalorder %v13053_v10, 2  ;;  %v13147_v21 = vld [vmem:[%s15203_s3 + $0x2] ss:$0 sm:$0xff] }
 0x5e8   :  { %v5169_v51 = vsel %vm5167_vm2, %v8929_v40, %v5168_v30  ;;  %v5340_v43 = vadd.s32 536870912, %v5339_v36  ;;  %v5606_v24 = vsub.s32 32, %v5605_v57  ;;  %v5465_v60 = vcvt.s32.f32 %v5458_v42 }
 0x5e9   :  { %v5173_v44 = vsel %vm5166_vm1, %v5169_v51, %v5172_v61  ;;  %v5463_v6 = vand.u32 2147483647, %v5462_v9  ;;  %v5476_v23 = vadd.s32 3, %v5472_v5  ;;  %v5599_v29 = vor.u32 8388608, %v5598_v15 }
 0x5ea   :  { %v5174_v58 = vsel %vm5163_vm9, nan, %v5173_v44  ;;  %v5341_v32 = vshrl.u32 %v5340_v43, 30  ;;  %v5609_v2 = vshrl.u32 %v15266_v39, %v5606_v24  ;;  %v5612_v12 = vshrl.u32 %v15267_v41, %v5606_v24 }
 0x5eb   :  { %8122 = vst [vmem:[#allocation8 + $0x118] sm:$0xff] %v5174_v58  ;;  %v5466_v56 = vmul.f32 %v5465_v60, %v5463_v6  ;;  %v5615_v10 = vshrl.u32 %v15268_v35, %v5606_v24  ;;  %v1338_v34 = vadd.f32 %v1274_v18, %v13044_v63  ;;  %v5608_v16 = vshll.u32 %v15264_v28, %v5605_v57 }
 0x5ec   :  { %v5342_v7 = vshll.u32 %v5341_v32, 30  ;;  %v5614_v11 = vshll.u32 %v15267_v41, %v5605_v57  ;;  %v5618_v19 = vshrl.u32 %v15269_v13, %v5606_v24  ;;  %v5604_v22 = vshrl.u32 %v5603_v38, 5 }
 0x5ed   :  { %v5467_v49 = vxor.u32 2147483648, %v5466_v56  ;;  %v5611_v52 = vshll.u32 %v15266_v39, %v5605_v57  ;;  %v5617_v14 = vshll.u32 %v15268_v35, %v5605_v57  ;;  %vm5281_vm3 = vcmp.lt.s32.totalorder %v12960_v45, 0 }
 0x5ee   :  { %v13130_v50 = vsub.s32 %v5339_v36, %v5342_v7  ;;  %v5610_v54 = vor.u32 %v5609_v2, %v5608_v16  ;;  %v5616_v33 = vor.u32 %v5615_v10, %v5614_v11  ;;  %v5621_v63 = vshrl.u32 %v15270_v59, %v5606_v24 }
 0x5ef   :  { %v5468_v37 = vsel %vm5385_vm5, %v5467_v49, %v5466_v56  ;;  %v5613_v27 = vor.u32 %v5612_v12, %v5611_v52  ;;  %v5619_v55 = vor.u32 %v5618_v19, %v5617_v14  ;;  %v5620_v1 = vshll.u32 %v15269_v13, %v5605_v57 }
 0x5f0   :  { %v5471_v40 = vsel %vm13094_vm14, %v12826_v31, %v5468_v37  ;;  %v13139_v5 = vand.u32 3, %v5476_v23  ;;  %v5345_v47 = vsub.s32 0, %v13130_v50  ;;  %v13142_v38 = vshll.u32 %v5599_v29, 8  ;;  %v1116_v29 = vpop.permute.xlu0 %1115 }
 0x5f1   :  { %8932 = vcosq.f32 %v5471_v40  ;;  %v5622_v20 = vor.u32 %v5621_v63, %v5620_v1  ;;  %vm5626_vm0 = vcmp.lt.s32.totalorder %v5604_v22, 4  ;;  %v13150_v26 = vadd.f32 %v13147_v21, %v1338_v34 }
 0x5f2   :  { %8934 = vsinq.f32 %v5471_v40  ;;  %vm13154_vm4 = vcmp.le.f32.partialorder %v5279_v3, 0.7853982  ;;  %v8337_v42 = vmin.u32 %v5345_v47, %v13130_v50  ;;  %vm5623_vm5 = vcmp.lt.s32.totalorder %v5604_v22, 1  ;;  %v1109_v40 = vpop.permute.xlu1 %1108 }
 0x5f3   :  { %v5628_v4 = vsel %vm5626_vm0, %v5616_v33, 2102212464  ;;  %v5365_v25 = vsub.s32 4, %v5341_v32  ;;  %v5607_v30 = vshrl.u32 %v15264_v28, %v5606_v24  ;;  %v5631_v36 = vsel %vm5623_vm5, %v5610_v54, %v5613_v27 }
 0x5f4   :  { %v5632_v15 = vsel %vm5626_vm0, %v5619_v55, 920167782  ;;  %v5347_v57 = vclz %v8337_v42  ;;  %vm5624_vm6 = vcmp.lt.s32.totalorder %v5604_v22, 2  ;;  %vm5625_vm7 = vcmp.lt.s32.totalorder %v5604_v22, 3 }
 0x5f5   :  { %v5635_v61 = vsel %vm5623_vm5, %v5613_v27, %v5616_v33  ;;  %v5627_v9 = vsel %vm5623_vm5, %v5607_v30, %v5610_v54  ;;  %v5629_v3 = vsel %vm5625_vm7, %v5613_v27, %v5628_v4  ;;  %v5633_v18 = vsel %vm5625_vm7, %v5616_v33, %v5632_v15 }
 0x5f6   :  { %v5636_v51 = vsel %vm5626_vm0, %v5622_v20, 1326507024  ;;  %vm5479_vm8 = vcmp.eq.s32.totalorder %v13139_v5, 0  ;;  %v8338_v43 = vadd.s32 4294967294, %v5347_v57  ;;  %v5634_v44 = vsel %vm5624_vm6, %v5631_v36, %v5633_v18 }
 0x5f7   :  { %v5637_v6 = vsel %vm5625_vm7, %v5619_v55, %v5636_v51  ;;  %vm5478_vm10 = vcmp.lt.s32.totalorder %v13139_v5, 2  ;;  %v5366_v24 = vsel %vm5281_vm3, %v5365_v25, %v5341_v32  ;;  %v5630_v2 = vsel %vm5624_vm6, %v5627_v9, %v5629_v3 }
 0x5f8   :  { %v5638_v60 = vsel %vm5624_vm6, %v5635_v61, %v5637_v6  ;;  %v13170_v23 = vmul.u32.u64.low %v13142_v38, %v5634_v44  ;;  %v13171_v58 = vmul.u32.u64.high %v13142_v38, %v5634_v44, %v13170_v23  ;;  %vm8339_vm12 = vcmp.lt.s32.totalorder %v8338_v43, 0 }
 0x5f9   :  { %v13176_v56 = vmul.u32.u64.low %v13142_v38, %v5638_v60  ;;  %v13177_v12 = vmul.u32.u64.high %v13142_v38, %v5638_v60, %v13176_v56  ;;  %vm5482_vm9 = vcmp.eq.s32.totalorder %v13139_v5, 2  ;;  %v5350_v10 = vsel %vm8339_vm12, 0, %v8338_v43  ;;  %v13212_v5 = vld [vmem:[%s15203_s3] ss:$0 sm:$0xff] }
 0x5fa   :  { %v5487_v32 = vand.u32 2147483647, %v13150_v26  ;;  %v5490_v34 = vand.u32 2139095040, %v13150_v26  ;;  %v5335_v7 = vadd.s32 %v13080_v0, %v13087_v48  ;;  %v5351_v16 = vsub.s32 32, %v5350_v10 }
 0x5fb   :  { %v5355_v11 = vsub.s32 4294967266, %v5350_v10  ;;  %v1277_v19 = vmul.f32 %v13114_v53, %v1116_v29  ;;  %v8933_v49 = vpop.eup %8932  ;;  %v5368_v22 = vsel %vm13154_vm4, 0, %v5366_v24  ;;  %v5646_v52 = vmul.u32 %v13142_v38, %v5630_v2  ;;  %v15377_v24 = vld [vmem:[#allocation51_spill] sm:$0xff] }
 0x5fc   :  { %v5649_v14 = vadd.s32 1, %v13171_v58  ;;  %v5491_v54 = vshrl.u32 %v5490_v34, 23  ;;  %v8935_v33 = vpop.eup %8934  ;;  %v5483_v63 = vxor.u32 2147483648, %v8933_v49  ;;  %v5352_v37 = vshll.u32 %v13130_v50, %v5350_v10 }
 0x5fd   :  { %v5353_v27 = vshrl.u32 %v5335_v7, %v5351_v16  ;;  %v5356_v55 = vadd.s32 127, %v5355_v11  ;;  %v5480_v0 = vxor.u32 2147483648, %v8935_v33  ;;  %vm5648_vm11 = vc.u32 %v13177_v12, %v13170_v23 }
 0x5fe   :  { %v8344_v48 = vadd.s32 4294967169, %v5491_v54  ;;  %v5494_v1 = vand.u32 8388607, %v5487_v32  ;;  %v5484_v47 = vsel %vm5482_vm9, %v5483_v63, %v8935_v33  ;;  %v5650_v42 = vsel %vm5648_vm11, %v5649_v14, %v13171_v58 }
 0x5ff   :  { %v5354_v38 = vor.u32 %v5353_v27, %v5352_v37  ;;  %v5357_v20 = vshll.u32 %v5356_v55, 23  ;;  %v5481_v50 = vsel %vm5479_vm8, %v8933_v49, %v5480_v0  ;;  %v5651_v4 = vadd.s32 %v5650_v42, %v5646_v52 }
 0x600   :  { %v5497_v25 = vadd.s32 1, %v8344_v48  ;;  %v1341_v30 = vadd.f32 %v1277_v19, %v13051_v46  ;;  %vm5475_vm14 = vweird.f32 %v12826_v31  ;;  %v5485_v36 = vsel %vm5478_vm10, %v5481_v50, %v5484_v47 }
 0x601   :  { %v5358_v15 = vor.u32 4788187, %v5357_v20  ;;  %v1276_v57 = vmul.f32 %v13114_v53, %v1109_v40  ;;  %v5486_v61 = vsel %vm5475_vm14, nan, %v5485_v36  ;;  %v5372_v9 = vadd.s32 3, %v5368_v22 }
 0x602   :  { %v5652_v3 = vadd.s32 536870912, %v5651_v4  ;;  %vm5498_vm13 = vcmp.gt.s32.totalorder %v5497_v25, 0  ;;  %8125 = vst [vmem:[#allocation8 + $0x130] sm:$0xff] %v5486_v61  ;;  %v5361_v51 = vcvt.s32.f32 %v5354_v38  ;;  %v5495_v43 = vor.u32 8388608, %v5494_v1 }
 0x603   :  { %v5359_v18 = vand.u32 2147483647, %v5358_v15  ;;  %v5499_v44 = vsel %vm5498_vm13, %v5497_v25, 0  ;;  %v13207_v31 = vadd.f32 %v13147_v21, %v1341_v30  ;;  %v856_v60 = vmul.f32 %v13212_v5, %v15377_v24 }
 0x604   :  { %v13204_v6 = vshrl.u32 %v5652_v3, 30  ;;  %v5501_v46 = vand.u32 31, %v5499_v44  ;;  %v13217_v10 = vand.u32 3, %v5372_v9  ;;  %v13219_v34 = vshll.u32 %v5495_v43, 8 }
 0x605   :  { %v5362_v58 = vmul.f32 %v5361_v51, %v5359_v18  ;;  %v13221_v7 = vadd.f32 %v1276_v57, %v856_v60  ;;  %v5500_v11 = vshrl.u32 %v5499_v44, 5  ;;  %v5802_v49 = vand.u32 2139095040, %v13207_v31 }
 0x606   :  { %v5654_v29 = vshll.u32 %v13204_v6, 30  ;;  %v5502_v2 = vsub.s32 32, %v5501_v46  ;;  %v5504_v52 = vshll.u32 %v15264_v28, %v5501_v46  ;;  %v5507_v37 = vshll.u32 %v15266_v39, %v5501_v46 }
 0x607   :  { %v5363_v56 = vxor.u32 2147483648, %v5362_v58  ;;  %v5510_v27 = vshll.u32 %v15267_v41, %v5501_v46  ;;  %vm5593_vm15 = vcmp.lt.s32.totalorder %v12975_v17, 0  ;;  %v5513_v0 = vshll.u32 %v15268_v35, %v5501_v46 }
 0x608   :  { %v13223_v16 = vsub.s32 %v5651_v4, %v5654_v29  ;;  %v5505_v19 = vshrl.u32 %v15266_v39, %v5502_v2  ;;  %v5508_v14 = vshrl.u32 %v15267_v41, %v5502_v2  ;;  %v5511_v54 = vshrl.u32 %v15268_v35, %v5502_v2 }
 0x609   :  { %v5364_v22 = vsel %vm5281_vm3, %v5363_v56, %v5362_v58  ;;  %v5514_v48 = vshrl.u32 %v15269_v13, %v5502_v2  ;;  %v5516_v38 = vshll.u32 %v15269_v13, %v5501_v46  ;;  %v5517_v20 = vshrl.u32 %v15270_v59, %v5502_v2 }
 0x60a   :  { %v5367_v33 = vsel %vm13154_vm4, %v12960_v45, %v5364_v22  ;;  %v5657_v63 = vsub.s32 0, %v13223_v16  ;;  %v5506_v55 = vor.u32 %v5505_v19, %v5504_v52  ;;  %v5509_v40 = vor.u32 %v5508_v14, %v5507_v37 }
 0x60b   :  { %8936 = vcosq.f32 %v5367_v33  ;;  %v5512_v8 = vor.u32 %v5511_v54, %v5510_v27  ;;  %v5515_v47 = vor.u32 %v5514_v48, %v5513_v0  ;;  %v5803_v42 = vshrl.u32 %v5802_v49, 23 }
 0x60c   :  { %8938 = vsinq.f32 %v5367_v33  ;;  %v8349_v1 = vmin.u32 %v5657_v63, %v13223_v16  ;;  %vm13246_vm2 = vcmp.le.f32.partialorder %v5591_v62, 0.7853982  ;;  %v5677_v25 = vsub.s32 4, %v13204_v6 }
 0x60d   :  { %v5503_v30 = vshrl.u32 %v15264_v28, %v5502_v2  ;;  %vm5519_vm1 = vcmp.lt.s32.totalorder %v5500_v11, 1  ;;  %vm5378_vm3 = vcmp.eq.s32.totalorder %v13217_v10, 2  ;;  %v5518_v36 = vor.u32 %v5517_v20, %v5516_v38 }
 0x60e   :  { %v5659_v4 = vclz %v8349_v1  ;;  %vm5520_vm0 = vcmp.lt.s32.totalorder %v5500_v11, 2  ;;  %vm5521_vm4 = vcmp.lt.s32.totalorder %v5500_v11, 3  ;;  %vm5522_vm5 = vcmp.lt.s32.totalorder %v5500_v11, 4 }
 0x60f   :  { %vm5375_vm6 = vcmp.eq.s32.totalorder %v13217_v10, 0  ;;  %v5524_v57 = vsel %vm5522_vm5, %v5512_v8, 2102212464  ;;  %v5527_v62 = vsel %vm5519_vm1, %v5506_v55, %v5509_v40  ;;  %v5528_v61 = vsel %vm5522_vm5, %v5515_v47, 920167782 }
 0x610   :  { %v8350_v15 = vadd.s32 4294967294, %v5659_v4  ;;  %vm5374_vm7 = vcmp.lt.s32.totalorder %v13217_v10, 2  ;;  %v5523_v9 = vsel %vm5519_vm1, %v5503_v30, %v5506_v55  ;;  %v5529_v3 = vsel %vm5521_vm4, %v5512_v8, %v5528_v61 }
 0x611   :  { %v5531_v18 = vsel %vm5519_vm1, %v5509_v40, %v5512_v8  ;;  %v5532_v51 = vsel %vm5522_vm5, %v5518_v36, 1326507024  ;;  %vm5371_vm8 = vweird.f32 %v12960_v45  ;;  %v5525_v43 = vsel %vm5521_vm4, %v5509_v40, %v5524_v57 }
 0x612   :  { %vm8351_vm10 = vcmp.lt.s32.totalorder %v8350_v15, 0  ;;  %v5530_v44 = vsel %vm5520_vm0, %v5527_v62, %v5529_v3  ;;  %v5533_v46 = vsel %vm5521_vm4, %v5515_v47, %v5532_v51  ;;  %v5647_v2 = vadd.s32 %v13170_v23, %v13177_v12  ;;  %v15380_v62 = vld [vmem:[#allocation52_spill] sm:$0xff] }
 0x613   :  { %v5662_v24 = vsel %vm8351_vm10, 0, %v8350_v15  ;;  %v5534_v60 = vsel %vm5520_vm0, %v5531_v18, %v5533_v46  ;;  %v13262_v58 = vmul.u32.u64.low %v13219_v34, %v5530_v44  ;;  %v13263_v29 = vmul.u32.u64.high %v13219_v34, %v5530_v44, %v13262_v58 }
 0x614   :  { %v5663_v56 = vsub.s32 32, %v5662_v24  ;;  %v5667_v19 = vsub.s32 4294967266, %v5662_v24  ;;  %v5678_v49 = vsel %vm5593_vm15, %v5677_v25, %v13204_v6  ;;  %v5526_v52 = vsel %vm5520_vm0, %v5523_v9, %v5525_v43 }
 0x615   :  { %v8937_v22 = vpop.eup %8936  ;;  %v13273_v14 = vmul.u32.u64.low %v13219_v34, %v5534_v60  ;;  %v13274_v54 = vmul.u32.u64.high %v13219_v34, %v5534_v60, %v13273_v14  ;;  %v8356_v33 = vadd.s32 4294967169, %v5803_v42  ;;  %v5664_v27 = vshll.u32 %v13223_v16, %v5662_v24 }
 0x616   :  { %v8939_v63 = vpop.eup %8938  ;;  %v5379_v37 = vxor.u32 2147483648, %v8937_v22  ;;  %v5665_v55 = vshrl.u32 %v5647_v2, %v5663_v56  ;;  %v5668_v23 = vadd.s32 127, %v5667_v19  ;;  %v5680_v0 = vsel %vm13246_vm2, 0, %v5678_v49 }
 0x617   :  { %v5376_v12 = vxor.u32 2147483648, %v8939_v63  ;;  %v5545_v6 = vadd.s32 1, %v13263_v29  ;;  %v5809_v48 = vadd.s32 1, %v8356_v33  ;;  %v5799_v8 = vand.u32 2147483647, %v13207_v31 }
 0x618   :  { %v5380_v11 = vsel %vm5378_vm3, %v5379_v37, %v8939_v63  ;;  %v5666_v1 = vor.u32 %v5665_v55, %v5664_v27  ;;  %v5669_v40 = vshll.u32 %v5668_v23, 23  ;;  %v5542_v16 = vmul.u32 %v13219_v34, %v5526_v52 }
 0x619   :  { %v5377_v47 = vsel %vm5375_vm6, %v8937_v22, %v5376_v12  ;;  %vm5544_vm12 = vc.u32 %v13274_v54, %v13262_v58  ;;  %vm5810_vm9 = vcmp.gt.s32.totalorder %v5809_v48, 0  ;;  %v5684_v42 = vadd.s32 3, %v5680_v0 }
 0x61a   :  { %v5381_v38 = vsel %vm5374_vm7, %v5377_v47, %v5380_v11  ;;  %v5670_v20 = vor.u32 4788187, %v5669_v40  ;;  %v5546_v4 = vsel %vm5544_vm12, %v5545_v6, %v13263_v29  ;;  %v5811_v36 = vsel %vm5810_vm9, %v5809_v48, 0 }
 0x61b   :  { %v5382_v25 = vsel %vm5371_vm8, nan, %v5381_v38  ;;  %v5547_v30 = vadd.s32 %v5546_v4, %v5542_v16  ;;  %v5673_v57 = vcvt.s32.f32 %v5666_v1  ;;  %v5813_v34 = vand.u32 31, %v5811_v36 }
 0x61c   :  { %8124 = vst [vmem:[#allocation8 + $0x128] sm:$0xff] %v5382_v25  ;;  %v5671_v15 = vand.u32 2147483647, %v5670_v20  ;;  %v13295_v61 = vmul.f32 %v13212_v5, %v15380_v62  ;;  %v13299_v10 = vadd.f32 %v13147_v21, %v13221_v7  ;;  %v13301_v18 = vand.u32 3, %v5684_v42 }
 0x61d   :  { %v5548_v9 = vadd.s32 536870912, %v5547_v30  ;;  %v5806_v45 = vand.u32 8388607, %v5799_v8  ;;  %v5814_v51 = vsub.s32 32, %v5813_v34  ;;  %v5812_v44 = vshrl.u32 %v5811_v36, 5 }
 0x61e   :  { %v5674_v3 = vmul.f32 %v5673_v57, %v5671_v15  ;;  %v5816_v46 = vshll.u32 %v15264_v28, %v5813_v34  ;;  %v5819_v24 = vshll.u32 %v15266_v39, %v5813_v34  ;;  %vm5489_vm11 = vcmp.lt.s32.totalorder %v13150_v26, 0 }
 0x61f   :  { %v5549_v43 = vshrl.u32 %v5548_v9, 30  ;;  %v5817_v29 = vshrl.u32 %v15266_v39, %v5814_v51  ;;  %v5820_v7 = vshrl.u32 %v15267_v41, %v5814_v51  ;;  %v5822_v2 = vshll.u32 %v15267_v41, %v5813_v34 }
 0x620   :  { %v5675_v60 = vxor.u32 2147483648, %v5674_v3  ;;  %v5823_v19 = vshrl.u32 %v15268_v35, %v5814_v51  ;;  %v5825_v49 = vshll.u32 %v15268_v35, %v5813_v34  ;;  %v5826_v22 = vshrl.u32 %v15269_v13, %v5814_v51 }
 0x621   :  { %v5550_v56 = vshll.u32 %v5549_v43, 30  ;;  %v5818_v14 = vor.u32 %v5817_v29, %v5816_v46  ;;  %v5828_v33 = vshll.u32 %v15269_v13, %v5813_v34  ;;  %v5829_v63 = vshrl.u32 %v15270_v59, %v5814_v51  ;;  %v1127_v46 = vpop.permute.xlu0 %1126 }
 0x622   :  { %v5676_v52 = vsel %vm5593_vm15, %v5675_v60, %v5674_v3  ;;  %v5821_v55 = vor.u32 %v5820_v7, %v5819_v24  ;;  %v5824_v23 = vor.u32 %v5823_v19, %v5822_v2  ;;  %v5807_v12 = vor.u32 8388608, %v5806_v45 }
 0x623   :  { %v5679_v37 = vsel %vm13246_vm2, %v12975_v17, %v5676_v52  ;;  %v13321_v27 = vsub.s32 %v5547_v30, %v5550_v56  ;;  %v5827_v0 = vor.u32 %v5826_v22, %v5825_v49  ;;  %v5830_v6 = vor.u32 %v5829_v63, %v5828_v33 }
 0x624   :  { %8940 = vcosq.f32 %v5679_v37  ;;  %vm13325_vm14 = vcmp.le.f32.partialorder %v5487_v32, 0.7853982  ;;  %v5573_v1 = vsub.s32 4, %v5549_v43  ;;  %v5815_v50 = vshrl.u32 %v15264_v28, %v5814_v51 }
 0x625   :  { %8942 = vsinq.f32 %v5679_v37  ;;  %v5553_v11 = vsub.s32 0, %v13321_v27  ;;  %vm5831_vm13 = vcmp.lt.s32.totalorder %v5812_v44, 1  ;;  %vm5833_vm15 = vcmp.lt.s32.totalorder %v5812_v44, 3 }
 0x626   :  { %vm5834_vm2 = vcmp.lt.s32.totalorder %v5812_v44, 4  ;;  %v5698_v40 = vand.u32 2139095040, %v13299_v10  ;;  %v5835_v16 = vsel %vm5831_vm13, %v5815_v50, %v5818_v14  ;;  %v5839_v20 = vsel %vm5831_vm13, %v5818_v14, %v5821_v55 }
 0x627   :  { %v8345_v47 = vmin.u32 %v5553_v11, %v13321_v27  ;;  %v5836_v38 = vsel %vm5834_vm2, %v5824_v23, 2102212464  ;;  %v5840_v42 = vsel %vm5834_vm2, %v5827_v0, 920167782  ;;  %v5843_v4 = vsel %vm5831_vm13, %v5821_v55, %v5824_v23 }
 0x628   :  { %v5837_v32 = vsel %vm5833_vm15, %v5821_v55, %v5836_v38  ;;  %v5844_v25 = vsel %vm5834_vm2, %v5830_v6, 1326507024  ;;  %vm5687_vm1 = vcmp.eq.s32.totalorder %v13301_v18, 0  ;;  %v5574_v36 = vsel %vm5489_vm11, %v5573_v1, %v5549_v43 }
 0x629   :  { %v5555_v30 = vclz %v8345_v47  ;;  %v5847_v15 = vshll.u32 %v5807_v12, 8  ;;  %vm5832_vm3 = vcmp.lt.s32.totalorder %v5812_v44, 2  ;;  %v5841_v57 = vsel %vm5833_vm15, %v5824_v23, %v5840_v42 }
 0x62a   :  { %v5845_v34 = vsel %vm5833_vm15, %v5827_v0, %v5844_v25  ;;  %v5699_v62 = vshrl.u32 %v5698_v40, 23  ;;  %v5838_v3 = vsel %vm5832_vm3, %v5835_v16, %v5837_v32  ;;  %v5842_v45 = vsel %vm5832_vm3, %v5839_v20, %v5841_v57  ;;  %v15383_v25 = vld [vmem:[#allocation53_spill] sm:$0xff] }
 0x62b   :  { %v8346_v9 = vadd.s32 4294967294, %v5555_v30  ;;  %v5846_v51 = vsel %vm5832_vm3, %v5843_v4, %v5845_v34  ;;  %v13342_v29 = vmul.u32.u64.low %v5847_v15, %v5842_v45  ;;  %v13343_v7 = vmul.u32.u64.high %v5847_v15, %v5842_v45, %v13342_v29 }
 0x62c   :  { %v13339_v24 = vmul.u32.u64.low %v5847_v15, %v5846_v51  ;;  %v13340_v60 = vmul.u32.u64.high %v5847_v15, %v5846_v51, %v13339_v24  ;;  %vm5690_vm0 = vcmp.eq.s32.totalorder %v13301_v18, 2  ;;  %v5695_v43 = vand.u32 2147483647, %v13299_v10 }
 0x62d   :  { %vm8347_vm4 = vcmp.lt.s32.totalorder %v8346_v9, 0  ;;  %v8352_v44 = vadd.s32 4294967169, %v5699_v62  ;;  %v5543_v56 = vadd.s32 %v13262_v58, %v13274_v54  ;;  %v5576_v49 = vsel %vm13325_vm14, 0, %v5574_v36 }
 0x62e   :  { %v8941_v2 = vpop.eup %8940  ;;  %v5558_v19 = vsel %vm8347_vm4, 0, %v8346_v9  ;;  %v1279_v22 = vmul.f32 %v13114_v53, %v1127_v46  ;;  %v5854_v37 = vmul.u32 %v5847_v15, %v5838_v3  ;;  %vm5856_vm5 = vc.u32 %v13340_v60, %v13342_v29 }
 0x62f   :  { %v8943_v52 = vpop.eup %8942  ;;  %v5691_v14 = vxor.u32 2147483648, %v8941_v2  ;;  %v5559_v33 = vsub.s32 32, %v5558_v19  ;;  %v5563_v63 = vsub.s32 4294967266, %v5558_v19  ;;  %v5560_v23 = vshll.u32 %v13321_v27, %v5558_v19 }
 0x630   :  { %v5688_v55 = vxor.u32 2147483648, %v8943_v52  ;;  %v5857_v12 = vadd.s32 1, %v13343_v7  ;;  %v5705_v6 = vadd.s32 1, %v8352_v44  ;;  %vm5683_vm6 = vweird.f32 %v12975_v17 }
 0x631   :  { %v5692_v58 = vsel %vm5690_vm0, %v5691_v14, %v8943_v52  ;;  %v5561_v54 = vshrl.u32 %v5543_v56, %v5559_v33  ;;  %v5564_v0 = vadd.s32 127, %v5563_v63  ;;  %vm5686_vm7 = vcmp.lt.s32.totalorder %v13301_v18, 2 }
 0x632   :  { %v5689_v11 = vsel %vm5687_vm1, %v8941_v2, %v5688_v55  ;;  %v5858_v27 = vsel %vm5856_vm5, %v5857_v12, %v13343_v7  ;;  %v5580_v38 = vadd.s32 3, %v5576_v49  ;;  %v5702_v20 = vand.u32 8388607, %v5695_v43 }
 0x633   :  { %v5693_v1 = vsel %vm5686_vm7, %v5689_v11, %v5692_v58  ;;  %v5562_v50 = vor.u32 %v5561_v54, %v5560_v23  ;;  %v5565_v40 = vshll.u32 %v5564_v0, 23  ;;  %v5859_v47 = vadd.s32 %v5858_v27, %v5854_v37 }
 0x634   :  { %v5694_v16 = vsel %vm5683_vm6, nan, %v5693_v1  ;;  %vm5706_vm8 = vcmp.gt.s32.totalorder %v5705_v6, 0  ;;  %v1343_v4 = vadd.f32 %v1279_v22, %v13295_v61  ;;  %v13369_v30 = vmul.f32 %v13212_v5, %v15383_v25 }
 0x635   :  { %8127 = vst [vmem:[#allocation8 + $0x140] sm:$0xff] %v5694_v16  ;;  %v5566_v32 = vor.u32 4788187, %v5565_v40  ;;  %v5860_v17 = vadd.s32 536870912, %v5859_v47  ;;  %v5707_v42 = vsel %vm5706_vm8, %v5705_v6, 0  ;;  %v5569_v15 = vcvt.s32.f32 %v5562_v50 }
 0x636   :  { %v5709_v18 = vand.u32 31, %v5707_v42  ;;  %v13371_v34 = vand.u32 3, %v5580_v38  ;;  %vm5801_vm10 = vcmp.lt.s32.totalorder %v13207_v31, 0  ;;  %v5703_v62 = vor.u32 8388608, %v5702_v20 }
 0x637   :  { %v5567_v36 = vand.u32 2147483647, %v5566_v32  ;;  %v5861_v57 = vshrl.u32 %v5860_v17, 30  ;;  %v13376_v61 = vadd.f32 %v13147_v21, %v1343_v4  ;;  %v5708_v52 = vshrl.u32 %v5707_v42, 5 }
 0x638   :  { %v5710_v9 = vsub.s32 32, %v5709_v18  ;;  %v5712_v51 = vshll.u32 %v15264_v28, %v5709_v18  ;;  %v5715_v24 = vshll.u32 %v15266_v39, %v5709_v18  ;;  %v5718_v19 = vshll.u32 %v15267_v41, %v5709_v18 }
 0x639   :  { %v5570_v3 = vmul.f32 %v5569_v15, %v5567_v36  ;;  %v5862_v45 = vshll.u32 %v5861_v57, 30  ;;  %v5885_v22 = vsub.s32 4, %v5861_v57  ;;  %v5721_v33 = vshll.u32 %v15268_v35, %v5709_v18 }
 0x63a   :  { %v5713_v46 = vshrl.u32 %v15266_v39, %v5710_v9  ;;  %v5716_v7 = vshrl.u32 %v15267_v41, %v5710_v9  ;;  %v5719_v44 = vshrl.u32 %v15268_v35, %v5710_v9  ;;  %v5722_v49 = vshrl.u32 %v15269_v13, %v5710_v9 }
 0x63b   :  { %v5571_v2 = vxor.u32 2147483648, %v5570_v3  ;;  %v13382_v56 = vsub.s32 %v5859_v47, %v5862_v45  ;;  %vm13395_vm12 = vcmp.le.f32.partialorder %v5799_v8, 0.7853982  ;;  %v5724_v0 = vshll.u32 %v15269_v13, %v5709_v18 }
 0x63c   :  { %v5714_v14 = vor.u32 %v5713_v46, %v5712_v51  ;;  %v5717_v55 = vor.u32 %v5716_v7, %v5715_v24  ;;  %v5720_v23 = vor.u32 %v5719_v44, %v5718_v19  ;;  %v5723_v54 = vor.u32 %v5722_v49, %v5721_v33 }
 0x63d   :  { %v5572_v63 = vsel %vm5489_vm11, %v5571_v2, %v5570_v3  ;;  %v5865_v37 = vsub.s32 0, %v13382_v56  ;;  %v5725_v6 = vshrl.u32 %v15270_v59, %v5710_v9  ;;  %v13402_v27 = vshll.u32 %v5703_v62, 8 }
 0x63e   :  { %v5575_v12 = vsel %vm13325_vm14, %v13150_v26, %v5572_v63  ;;  %v6010_v1 = vand.u32 2139095040, %v13376_v61  ;;  %v5886_v48 = vsel %vm5801_vm10, %v5885_v22, %v5861_v57  ;;  %v5711_v8 = vshrl.u32 %v15264_v28, %v5710_v9 }
 0x63f   :  { %8944 = vcosq.f32 %v5575_v12  ;;  %v8357_v11 = vmin.u32 %v5865_v37, %v13382_v56  ;;  %v5726_v50 = vor.u32 %v5725_v6, %v5724_v0  ;;  %vm5727_vm9 = vcmp.lt.s32.totalorder %v5708_v52, 1 }
 0x640   :  { %8946 = vsinq.f32 %v5575_v12  ;;  %vm5728_vm11 = vcmp.lt.s32.totalorder %v5708_v52, 2  ;;  %vm5730_vm14 = vcmp.lt.s32.totalorder %v5708_v52, 4  ;;  %vm5729_vm13 = vcmp.lt.s32.totalorder %v5708_v52, 3 }
 0x641   :  { %v5867_v40 = vclz %v8357_v11  ;;  %v5732_v47 = vsel %vm5730_vm14, %v5720_v23, 2102212464  ;;  %v5735_v16 = vsel %vm5727_vm9, %v5714_v14, %v5717_v55  ;;  %v5736_v38 = vsel %vm5730_vm14, %v5723_v54, 920167782 }
 0x642   :  { %vm5586_vm15 = vcmp.eq.s32.totalorder %v13371_v34, 2  ;;  %v5731_v32 = vsel %vm5727_vm9, %v5711_v8, %v5714_v14  ;;  %v5737_v17 = vsel %vm5729_vm13, %v5720_v23, %v5736_v38  ;;  %v5739_v42 = vsel %vm5727_vm9, %v5717_v55, %v5720_v23 }
 0x643   :  { %v8358_v20 = vadd.s32 4294967294, %v5867_v40  ;;  %vm5583_vm2 = vcmp.eq.s32.totalorder %v13371_v34, 0  ;;  %v5733_v4 = vsel %vm5729_vm13, %v5717_v55, %v5732_v47  ;;  %v5738_v18 = vsel %vm5728_vm11, %v5735_v16, %v5737_v17 }
 0x644   :  { %v5740_v25 = vsel %vm5730_vm14, %v5726_v50, 1326507024  ;;  %v6011_v36 = vshrl.u32 %v6010_v1, 23  ;;  %v13412_v57 = vmul.u32.u64.low %v13402_v27, %v5738_v18  ;;  %v13413_v62 = vmul.u32.u64.high %v13402_v27, %v5738_v18, %v13412_v57 }
 0x645   :  { %vm8359_vm1 = vcmp.lt.s32.totalorder %v8358_v20, 0  ;;  %v5741_v15 = vsel %vm5729_vm13, %v5723_v54, %v5740_v25  ;;  %vm5579_vm3 = vweird.f32 %v13150_v26  ;;  %v6007_v45 = vand.u32 2147483647, %v13376_v61 }
 0x646   :  { %v5870_v9 = vsel %vm8359_vm1, 0, %v8358_v20  ;;  %v5742_v3 = vsel %vm5728_vm11, %v5739_v42, %v5741_v15  ;;  %v8364_v51 = vadd.s32 4294967169, %v6011_v36  ;;  %v5855_v46 = vadd.s32 %v13342_v29, %v13340_v60  ;;  %v1120_v60 = vpop.permute.xlu1 %1119 }
 0x647   :  { %v5871_v24 = vsub.s32 32, %v5870_v9  ;;  %v5875_v7 = vsub.s32 4294967266, %v5870_v9  ;;  %v5888_v44 = vsel %vm13395_vm12, 0, %v5886_v48  ;;  %v5734_v2 = vsel %vm5728_vm11, %v5731_v32, %v5733_v4 }
 0x648   :  { %v13425_v19 = vmul.u32.u64.low %v13402_v27, %v5742_v3  ;;  %v13426_v49 = vmul.u32.u64.high %v13402_v27, %v5742_v3, %v13425_v19  ;;  %v6017_v22 = vadd.s32 1, %v8364_v51  ;;  %v5872_v33 = vshll.u32 %v13382_v56, %v5870_v9 }
 0x649   :  { %v8945_v14 = vpop.eup %8944  ;;  %v5873_v63 = vshrl.u32 %v5855_v46, %v5871_v24  ;;  %v5876_v37 = vadd.s32 127, %v5875_v7  ;;  %v5753_v55 = vadd.s32 1, %v13413_v62  ;;  %v5892_v12 = vadd.s32 3, %v5888_v44 }
 0x64a   :  { %v8947_v29 = vpop.eup %8946  ;;  %v5587_v23 = vxor.u32 2147483648, %v8945_v14  ;;  %v6014_v52 = vand.u32 8388607, %v6007_v45  ;;  %vm6018_vm0 = vcmp.gt.s32.totalorder %v6017_v22, 0  ;;  %v5750_v56 = vmul.u32 %v13402_v27, %v5734_v2 }
 0x64b   :  { %v5584_v54 = vxor.u32 2147483648, %v8947_v29  ;;  %v5874_v0 = vor.u32 %v5873_v63, %v5872_v33  ;;  %v5877_v6 = vshll.u32 %v5876_v37, 23  ;;  %v6019_v11 = vsel %vm6018_vm0, %v6017_v22, 0 }
 0x64c   :  { %v5588_v1 = vsel %vm5586_vm15, %v5587_v23, %v8947_v29  ;;  %vm5752_vm4 = vc.u32 %v13426_v49, %v13412_v57  ;;  %v1278_v48 = vmul.f32 %v13114_v53, %v1120_v60  ;;  %vm5582_vm5 = vcmp.lt.s32.totalorder %v13371_v34, 2 }
 0x64d   :  { %v5585_v8 = vsel %vm5583_vm2, %v8945_v14, %v5584_v54  ;;  %v5878_v50 = vor.u32 4788187, %v5877_v6  ;;  %v5754_v40 = vsel %vm5752_vm4, %v5753_v55, %v13413_v62  ;;  %v13442_v16 = vand.u32 3, %v5892_v12 }
 0x64e   :  { %v5589_v47 = vsel %vm5582_vm5, %v5585_v8, %v5588_v1  ;;  %v5755_v38 = vadd.s32 %v5754_v40, %v5750_v56  ;;  %v6021_v20 = vand.u32 31, %v6019_v11  ;;  %v5881_v17 = vcvt.s32.f32 %v5874_v0 }
 0x64f   :  { %v5590_v27 = vsel %vm5579_vm3, nan, %v5589_v47  ;;  %v5879_v32 = vand.u32 2147483647, %v5878_v50  ;;  %v6015_v42 = vor.u32 8388608, %v6014_v52  ;;  %v6020_v18 = vshrl.u32 %v6019_v11, 5 }
 0x650   :  { %8126 = vst [vmem:[#allocation8 + $0x138] sm:$0xff] %v5590_v27  ;;  %v5756_v4 = vadd.s32 536870912, %v5755_v38  ;;  %v6022_v25 = vsub.s32 32, %v6021_v20  ;;  %v1342_v34 = vadd.f32 %v1278_v48, %v13369_v30  ;;  %v6024_v15 = vshll.u32 %v15264_v28, %v6021_v20 }
 0x651   :  { %v5882_v36 = vmul.f32 %v5881_v17, %v5879_v32  ;;  %v6027_v62 = vshll.u32 %v15266_v39, %v6021_v20  ;;  %v6030_v9 = vshll.u32 %v15267_v41, %v6021_v20  ;;  %v6033_v46 = vshll.u32 %v15268_v35, %v6021_v20  ;;  %v1138_v17 = vpop.permute.xlu0 %1137 }
 0x652   :  { %v5757_v3 = vshrl.u32 %v5756_v4, 30  ;;  %v6025_v26 = vshrl.u32 %v15266_v39, %v6022_v25  ;;  %v6028_v51 = vshrl.u32 %v15267_v41, %v6022_v25  ;;  %v6031_v7 = vshrl.u32 %v15268_v35, %v6022_v25 }
 0x653   :  { %v5883_v24 = vxor.u32 2147483648, %v5882_v36  ;;  %v6034_v44 = vshrl.u32 %v15269_v13, %v6022_v25  ;;  %v6037_v30 = vshrl.u32 %v15270_v59, %v6022_v25  ;;  %v6036_v22 = vshll.u32 %v15269_v13, %v6021_v20  ;;  %v15386_v20 = vld [vmem:[#allocation54_spill] sm:$0xff] }
 0x654   :  { %v5758_v2 = vshll.u32 %v5757_v3, 30  ;;  %v6026_v19 = vor.u32 %v6025_v26, %v6024_v15  ;;  %v13457_v14 = vshll.u32 %v6015_v42, 8  ;;  %v6029_v63 = vor.u32 %v6028_v51, %v6027_v62 }
 0x655   :  { %v5884_v33 = vsel %vm5801_vm10, %v5883_v24, %v5882_v36  ;;  %v6032_v37 = vor.u32 %v6031_v7, %v6030_v9  ;;  %v6035_v55 = vor.u32 %v6034_v44, %v6033_v46  ;;  %v6038_v23 = vor.u32 %v6037_v30, %v6036_v22 }
 0x656   :  { %v5887_v60 = vsel %vm13395_vm12, %v13207_v31, %v5884_v33  ;;  %v13464_v29 = vsub.s32 %v5755_v38, %v5758_v2  ;;  %v13467_v12 = vadd.f32 %v13147_v21, %v1342_v34  ;;  %vm6039_vm6 = vcmp.lt.s32.totalorder %v6020_v18, 1 }
 0x657   :  { %8948 = vcosq.f32 %v5887_v60  ;;  %vm6040_vm7 = vcmp.lt.s32.totalorder %v6020_v18, 2  ;;  %vm6042_vm8 = vcmp.lt.s32.totalorder %v6020_v18, 4  ;;  %vm6041_vm10 = vcmp.lt.s32.totalorder %v6020_v18, 3 }
 0x658   :  { %8950 = vsinq.f32 %v5887_v60  ;;  %v5761_v52 = vsub.s32 0, %v13464_v29  ;;  %v6044_v54 = vsel %vm6042_vm8, %v6032_v37, 2102212464  ;;  %v5781_v0 = vsub.s32 4, %v5757_v3 }
 0x659   :  { %v6023_v6 = vshrl.u32 %v15264_v28, %v6022_v25  ;;  %v6047_v58 = vsel %vm6039_vm6, %v6026_v19, %v6029_v63  ;;  %v6048_v11 = vsel %vm6042_vm8, %v6035_v55, 920167782  ;;  %v6051_v48 = vsel %vm6039_vm6, %v6029_v63, %v6032_v37 }
 0x65a   :  { %v8353_v1 = vmin.u32 %v5761_v52, %v13464_v29  ;;  %v6049_v56 = vsel %vm6041_vm10, %v6032_v37, %v6048_v11  ;;  %v6052_v8 = vsel %vm6042_vm8, %v6038_v23, 1326507024  ;;  %v6045_v40 = vsel %vm6041_vm10, %v6029_v63, %v6044_v54  ;;  %v1131_v37 = vpop.permute.xlu1 %1130  ;;  %v13519_v11 = vld [vmem:[%s15203_s3 + $0x1] ss:$0 sm:$0xff] }
 0x65b   :  { %v6043_v50 = vsel %vm6039_vm6, %v6023_v6, %v6026_v19  ;;  %v6050_v47 = vsel %vm6040_vm7, %v6047_v58, %v6049_v56  ;;  %v6053_v38 = vsel %vm6041_vm10, %v6035_v55, %v6052_v8  ;;  %v861_v27 = vmul.f32 %v13212_v5, %v15386_v20 }
 0x65c   :  { %vm5697_vm12 = vcmp.lt.s32.totalorder %v13299_v10, 0  ;;  %v5763_v32 = vclz %v8353_v1  ;;  %v6054_v4 = vsel %vm6040_vm7, %v6051_v48, %v6053_v38  ;;  %vm5891_vm9 = vweird.f32 %v13207_v31 }
 0x65d   :  { %v5782_v42 = vsel %vm5697_vm12, %v5781_v0, %v5757_v3  ;;  %v13480_v25 = vmul.u32.u64.low %v13457_v14, %v6050_v47  ;;  %v13481_v34 = vmul.u32.u64.high %v13457_v14, %v6050_v47, %v13480_v25  ;;  %v6046_v15 = vsel %vm6040_vm7, %v6043_v50, %v6045_v40 }
 0x65e   :  { %v8354_v36 = vadd.s32 4294967294, %v5763_v32  ;;  %v13487_v62 = vmul.u32.u64.low %v13457_v14, %v6054_v4  ;;  %v13488_v9 = vmul.u32.u64.high %v13457_v14, %v6054_v4, %v13487_v62  ;;  %vm5895_vm11 = vcmp.eq.s32.totalorder %v13442_v16, 0  ;;  %v15389_v32 = vld [vmem:[#allocation55_spill] sm:$0xff] }
 0x65f   :  { %vm13493_vm14 = vcmp.le.f32.partialorder %v5695_v43, 0.7853982  ;;  %v5906_v26 = vand.u32 2139095040, %v13467_v12  ;;  %v1281_v51 = vmul.f32 %v13114_v53, %v1138_v17  ;;  %vm5898_vm13 = vcmp.eq.s32.totalorder %v13442_v16, 2 }
 0x660   :  { %v5751_v18 = vadd.s32 %v13412_v57, %v13426_v49  ;;  %vm8355_vm15 = vcmp.lt.s32.totalorder %v8354_v36, 0  ;;  %v5784_v46 = vsel %vm13493_vm14, 0, %v5782_v42  ;;  %v6062_v43 = vmul.u32 %v13457_v14, %v6046_v15 }
 0x661   :  { %v8949_v24 = vpop.eup %8948  ;;  %v5766_v7 = vsel %vm8355_vm15, 0, %v8354_v36  ;;  %v6065_v44 = vadd.s32 1, %v13481_v34  ;;  %v5907_v30 = vshrl.u32 %v5906_v26, 23  ;;  %v5903_v33 = vand.u32 2147483647, %v13467_v12 }
 0x662   :  { %v8951_v2 = vpop.eup %8950  ;;  %v5899_v19 = vxor.u32 2147483648, %v8949_v24  ;;  %v5767_v22 = vsub.s32 32, %v5766_v7  ;;  %v5771_v53 = vsub.s32 4294967266, %v5766_v7  ;;  %v5768_v57 = vshll.u32 %v13464_v29, %v5766_v7 }
 0x663   :  { %v5896_v63 = vxor.u32 2147483648, %v8951_v2  ;;  %vm6064_vm2 = vc.u32 %v13488_v9, %v13480_v25  ;;  %v8360_v49 = vadd.s32 4294967169, %v5907_v30  ;;  %vm5894_vm1 = vcmp.lt.s32.totalorder %v13442_v16, 2 }
 0x664   :  { %v5900_v14 = vsel %vm5898_vm13, %v5899_v19, %v8951_v2  ;;  %v5769_v55 = vshrl.u32 %v5751_v18, %v5767_v22  ;;  %v5772_v60 = vadd.s32 127, %v5771_v53  ;;  %v6066_v23 = vsel %vm6064_vm2, %v6065_v44, %v13481_v34 }
 0x665   :  { %v5897_v52 = vsel %vm5895_vm11, %v8949_v24, %v5896_v63  ;;  %v6067_v54 = vadd.s32 %v6066_v23, %v6062_v43  ;;  %v5913_v0 = vadd.s32 1, %v8360_v49  ;;  %v1280_v1 = vmul.f32 %v13519_v11, %v1131_v37 }
 0x666   :  { %v5901_v29 = vsel %vm5894_vm1, %v5897_v52, %v5900_v14  ;;  %v5770_v6 = vor.u32 %v5769_v55, %v5768_v57  ;;  %v5773_v58 = vshll.u32 %v5772_v60, 23  ;;  %v5788_v48 = vadd.s32 3, %v5784_v46 }
 0x667   :  { %v5902_v56 = vsel %vm5891_vm9, nan, %v5901_v29  ;;  %v6068_v8 = vadd.s32 536870912, %v6067_v54  ;;  %vm5914_vm3 = vcmp.gt.s32.totalorder %v5913_v0, 0  ;;  %v5910_v50 = vand.u32 8388607, %v5903_v33 }
 0x668   :  { %8129 = vst [vmem:[#allocation8 + $0x150] sm:$0xff] %v5902_v56  ;;  %v5774_v16 = vor.u32 4788187, %v5773_v58  ;;  %v5915_v40 = vsel %vm5914_vm3, %v5913_v0, 0  ;;  %v1345_v47 = vadd.f32 %v1281_v51, %v861_v27  ;;  %v860_v17 = vmul.f32 %v13212_v5, %v15389_v32 }
 0x669   :  { %v6069_v38 = vshrl.u32 %v6068_v8, 30  ;;  %v5917_v20 = vand.u32 31, %v5915_v40  ;;  %v5777_v4 = vcvt.s32.f32 %v5770_v6  ;;  %v13528_v34 = vand.u32 3, %v5788_v48 }
 0x66a   :  { %v5775_v42 = vand.u32 2147483647, %v5774_v16  ;;  %vm6009_vm0 = vcmp.lt.s32.totalorder %v13376_v61, 0  ;;  %v5911_v62 = vor.u32 8388608, %v5910_v50  ;;  %v13532_v26 = vadd.f32 %v13147_v21, %v1345_v47 }
 0x66b   :  { %v6070_v31 = vshll.u32 %v6069_v38, 30  ;;  %v5918_v36 = vsub.s32 32, %v5917_v20  ;;  %v13534_v18 = vadd.f32 %v1280_v1, %v860_v17  ;;  %v6063_v27 = vadd.s32 %v13480_v25, %v13488_v9 }
 0x66c   :  { %v5778_v15 = vmul.f32 %v5777_v4, %v5775_v42  ;;  %v13540_v5 = vshrl.u32 %v5915_v40, 5  ;;  %v5920_v7 = vshll.u32 %v15264_v28, %v5917_v20  ;;  %v5923_v30 = vshll.u32 %v15266_v39, %v5917_v20 }
 0x66d   :  { %v13538_v51 = vsub.s32 %v6067_v54, %v6070_v31  ;;  %v5921_v46 = vshrl.u32 %v15266_v39, %v5918_v36  ;;  %v5924_v43 = vshrl.u32 %v15267_v41, %v5918_v36  ;;  %v5927_v44 = vshrl.u32 %v15268_v35, %v5918_v36 }
 0x66e   :  { %v5779_v24 = vxor.u32 2147483648, %v5778_v15  ;;  %v5926_v2 = vshll.u32 %v15267_v41, %v5917_v20  ;;  %v5930_v25 = vshrl.u32 %v15269_v13, %v5918_v36  ;;  %v6093_v19 = vsub.s32 4, %v6069_v38 }
 0x66f   :  { %v6073_v21 = vsub.s32 0, %v13538_v51  ;;  %v5922_v22 = vor.u32 %v5921_v46, %v5920_v7  ;;  %v5929_v53 = vshll.u32 %v15268_v35, %v5917_v20  ;;  %v5925_v49 = vor.u32 %v5924_v43, %v5923_v30 }
 0x670   :  { %v5780_v9 = vsel %vm5697_vm12, %v5779_v24, %v5778_v15  ;;  %v5928_v37 = vor.u32 %v5927_v44, %v5926_v2  ;;  %v5932_v55 = vshll.u32 %v15269_v13, %v5917_v20  ;;  %v5933_v60 = vshrl.u32 %v15270_v59, %v5918_v36 }
 0x671   :  { %v5783_v63 = vsel %vm13493_vm14, %v13299_v10, %v5780_v9  ;;  %v8365_v57 = vmin.u32 %v6073_v21, %v13538_v51  ;;  %v5931_v14 = vor.u32 %v5930_v25, %v5929_v53  ;;  %vm13561_vm4 = vcmp.le.f32.partialorder %v6007_v45, 0.7853982 }
 0x672   :  { %8952 = vcosq.f32 %v5783_v63  ;;  %v13565_v3 = vshll.u32 %v5911_v62, 8  ;;  %v6218_v54 = vand.u32 2139095040, %v13532_v26  ;;  %v6094_v0 = vsel %vm6009_vm0, %v6093_v19, %v6069_v38 }
 0x673   :  { %8954 = vsinq.f32 %v5783_v63  ;;  %v6075_v52 = vclz %v8365_v57  ;;  %v5919_v29 = vshrl.u32 %v15264_v28, %v5918_v36  ;;  %v5934_v6 = vor.u32 %v5933_v60, %v5932_v55  ;;  %v13616_v63 = vld [vmem:[%s15203_s3 + $0x2] ss:$0 sm:$0xff] }
 0x674   :  { %vm5935_vm5 = vcmp.lt.s32.totalorder %v13540_v5, 1  ;;  %vm5937_vm6 = vcmp.lt.s32.totalorder %v13540_v5, 3  ;;  %vm5938_vm7 = vcmp.lt.s32.totalorder %v13540_v5, 4  ;;  %vm5791_vm8 = vcmp.eq.s32.totalorder %v13528_v34, 0 }
 0x675   :  { %v8366_v58 = vadd.s32 4294967294, %v6075_v52  ;;  %v5943_v45 = vsel %vm5935_vm5, %v5922_v22, %v5925_v49  ;;  %v5940_v1 = vsel %vm5938_vm7, %v5928_v37, 2102212464  ;;  %v5944_v56 = vsel %vm5938_vm7, %v5931_v14, 920167782 }
 0x676   :  { %v5947_v48 = vsel %vm5935_vm5, %v5925_v49, %v5928_v37  ;;  %v5948_v8 = vsel %vm5938_vm7, %v5934_v6, 1326507024  ;;  %vm5936_vm12 = vcmp.lt.s32.totalorder %v13540_v5, 2  ;;  %v5945_v16 = vsel %vm5937_vm6, %v5928_v37, %v5944_v56 }
 0x677   :  { %vm8367_vm10 = vcmp.lt.s32.totalorder %v8366_v58, 0  ;;  %v5949_v50 = vsel %vm5937_vm6, %v5931_v14, %v5948_v8  ;;  %vm5790_vm9 = vcmp.lt.s32.totalorder %v13528_v34, 2  ;;  %v5939_v47 = vsel %vm5935_vm5, %v5919_v29, %v5922_v22 }
 0x678   :  { %v6078_v40 = vsel %vm8367_vm10, 0, %v8366_v58  ;;  %v5946_v38 = vsel %vm5936_vm12, %v5943_v45, %v5945_v16  ;;  %v5950_v20 = vsel %vm5936_vm12, %v5947_v48, %v5949_v50  ;;  %vm5787_vm11 = vweird.f32 %v13299_v10 }
 0x679   :  { %v6079_v32 = vsub.s32 32, %v6078_v40  ;;  %v6083_v17 = vsub.s32 4294967266, %v6078_v40  ;;  %v5941_v42 = vsel %vm5937_vm6, %v5925_v49, %v5940_v1  ;;  %v6219_v4 = vshrl.u32 %v6218_v54, 23  ;;  %v1149_v54 = vpop.permute.xlu0 %1148 }
 0x67a   :  { %v13595_v31 = vmul.u32.u64.low %v13565_v3, %v5950_v20  ;;  %v13596_v36 = vmul.u32.u64.high %v13565_v3, %v5950_v20, %v13595_v31  ;;  %v13599_v15 = vmul.u32.u64.low %v13565_v3, %v5946_v38  ;;  %v13600_v62 = vmul.u32.u64.high %v13565_v3, %v5946_v38, %v13599_v15 }
 0x67b   :  { %v6080_v46 = vshll.u32 %v13538_v51, %v6078_v40  ;;  %v6081_v24 = vshrl.u32 %v6063_v27, %v6079_v32  ;;  %v6084_v7 = vadd.s32 127, %v6083_v17  ;;  %v8372_v43 = vadd.s32 4294967169, %v6219_v4 }
 0x67c   :  { %v8953_v44 = vpop.eup %8952  ;;  %vm5794_vm14 = vcmp.eq.s32.totalorder %v13528_v34, 2  ;;  %v6096_v21 = vsel %vm13561_vm4, 0, %v6094_v0  ;;  %v5942_v30 = vsel %vm5936_vm12, %v5939_v47, %v5941_v42  ;;  %v6215_v2 = vand.u32 2147483647, %v13532_v26 }
 0x67d   :  { %v8955_v25 = vpop.eup %8954  ;;  %v5795_v9 = vxor.u32 2147483648, %v8953_v44  ;;  %v6082_v19 = vor.u32 %v6081_v24, %v6080_v46  ;;  %v6085_v22 = vshll.u32 %v6084_v7, 23  ;;  %v6225_v53 = vadd.s32 1, %v8372_v43 }
 0x67e   :  { %v5792_v51 = vxor.u32 2147483648, %v8955_v25  ;;  %vm5960_vm13 = vc.u32 %v13596_v36, %v13599_v15  ;;  %v5961_v27 = vadd.s32 1, %v13600_v62  ;;  %v13620_v5 = vadd.f32 %v13616_v63, %v13534_v18 }
 0x67f   :  { %v5796_v57 = vsel %vm5794_vm14, %v5795_v9, %v8955_v25  ;;  %v6086_v49 = vor.u32 4788187, %v6085_v22  ;;  %v5958_v37 = vmul.u32 %v13565_v3, %v5942_v30  ;;  %vm6226_vm15 = vcmp.gt.s32.totalorder %v6225_v53, 0 }
 0x680   :  { %v5793_v14 = vsel %vm5791_vm8, %v8953_v44, %v5792_v51  ;;  %v6100_v55 = vadd.s32 3, %v6096_v21  ;;  %v5962_v60 = vsel %vm5960_vm13, %v5961_v27, %v13600_v62  ;;  %v6227_v52 = vsel %vm6226_vm15, %v6225_v53, 0 }
 0x681   :  { %v5797_v0 = vsel %vm5790_vm9, %v5793_v14, %v5796_v57  ;;  %v6087_v18 = vand.u32 2147483647, %v6086_v49  ;;  %v6089_v29 = vcvt.s32.f32 %v6082_v19  ;;  %v5963_v6 = vadd.s32 %v5962_v60, %v5958_v37 }
 0x682   :  { %v5798_v58 = vsel %vm5787_vm11, nan, %v5797_v0  ;;  %v6229_v45 = vand.u32 31, %v6227_v52  ;;  %v6222_v56 = vand.u32 8388607, %v6215_v2  ;;  %v13635_v48 = vmul.f32 %v13519_v11, %v1149_v54 }
 0x683   :  { %8128 = vst [vmem:[#allocation8 + $0x148] sm:$0xff] %v5798_v58  ;;  %v6090_v3 = vmul.f32 %v6089_v29, %v6087_v18  ;;  %v5964_v1 = vadd.s32 536870912, %v5963_v6  ;;  %v13637_v8 = vand.u32 3, %v6100_v55  ;;  %v6228_v34 = vshrl.u32 %v6227_v52, 5 }
 0x684   :  { %v6230_v16 = vsub.s32 32, %v6229_v45  ;;  %v6114_v50 = vand.u32 2139095040, %v13620_v5  ;;  %v6232_v10 = vshll.u32 %v15264_v28, %v6229_v45  ;;  %v6235_v38 = vshll.u32 %v15266_v39, %v6229_v45 }
 0x685   :  { %v6091_v40 = vxor.u32 2147483648, %v6090_v3  ;;  %v13640_v47 = vshrl.u32 %v5964_v1, 30  ;;  %v6238_v17 = vshll.u32 %v15267_v41, %v6229_v45  ;;  %v6241_v62 = vshll.u32 %v15268_v35, %v6229_v45 }
 0x686   :  { %v6233_v20 = vshrl.u32 %v15266_v39, %v6230_v16  ;;  %v6236_v32 = vshrl.u32 %v15267_v41, %v6230_v16  ;;  %v6239_v42 = vshrl.u32 %v15268_v35, %v6230_v16  ;;  %v6242_v46 = vshrl.u32 %v15269_v13, %v6230_v16 }
 0x687   :  { %v6092_v4 = vsel %vm6009_vm0, %v6091_v40, %v6090_v3  ;;  %v5966_v31 = vshll.u32 %v13640_v47, 30  ;;  %v6223_v30 = vor.u32 8388608, %v6222_v56  ;;  %v6244_v9 = vshll.u32 %v15269_v13, %v6229_v45 }
 0x688   :  { %v6095_v24 = vsel %vm13561_vm4, %v13376_v61, %v6092_v4  ;;  %v6234_v7 = vor.u32 %v6233_v20, %v6232_v10  ;;  %v6237_v43 = vor.u32 %v6236_v32, %v6235_v38  ;;  %v6240_v44 = vor.u32 %v6239_v42, %v6238_v17 }
 0x689   :  { %8956 = vcosq.f32 %v6095_v24  ;;  %v13656_v21 = vsub.s32 %v5963_v6, %v5966_v31  ;;  %v6243_v25 = vor.u32 %v6242_v46, %v6241_v62  ;;  %v6245_v19 = vshrl.u32 %v15270_v59, %v6230_v16 }
 0x68a   :  { %8958 = vsinq.f32 %v6095_v24  ;;  %v6115_v22 = vshrl.u32 %v6114_v50, 23  ;;  %vm5905_vm2 = vcmp.lt.s32.totalorder %v13467_v12, 0  ;;  %vm6247_vm1 = vcmp.lt.s32.totalorder %v6228_v34, 1 }
 0x68b   :  { %v5969_v53 = vsub.s32 0, %v13656_v21  ;;  %vm6249_vm3 = vcmp.lt.s32.totalorder %v6228_v34, 3  ;;  %vm6250_vm0 = vcmp.lt.s32.totalorder %v6228_v34, 4  ;;  %v6246_v23 = vor.u32 %v6245_v19, %v6244_v9 }
 0x68c   :  { %v6252_v51 = vsel %vm6250_vm0, %v6240_v44, 2102212464  ;;  %v6255_v27 = vsel %vm6247_vm1, %v6234_v7, %v6237_v43  ;;  %v6256_v57 = vsel %vm6250_vm0, %v6243_v25, 920167782  ;;  %v6231_v37 = vshrl.u32 %v15264_v28, %v6230_v16 }
 0x68d   :  { %v8361_v49 = vmin.u32 %v5969_v53, %v13656_v21  ;;  %vm6248_vm4 = vcmp.lt.s32.totalorder %v6228_v34, 2  ;;  %v6257_v14 = vsel %vm6249_vm3, %v6240_v44, %v6256_v57  ;;  %v6259_v60 = vsel %vm6247_vm1, %v6237_v43, %v6240_v44 }
 0x68e   :  { %v6258_v55 = vsel %vm6248_vm4, %v6255_v27, %v6257_v14  ;;  %v6260_v52 = vsel %vm6250_vm0, %v6246_v23, 1326507024  ;;  %v6263_v54 = vshll.u32 %v6223_v30, 8  ;;  %vm6102_vm5 = vcmp.lt.s32.totalorder %v13637_v8, 2 }
 0x68f   :  { %vm13671_vm6 = vcmp.le.f32.partialorder %v5903_v33, 0.7853982  ;;  %v5971_v18 = vclz %v8361_v49  ;;  %v6251_v29 = vsel %vm6247_vm1, %v6231_v37, %v6234_v7  ;;  %v6253_v6 = vsel %vm6249_vm3, %v6237_v43, %v6252_v51  ;;  %v13717_v49 = vld [vmem:[%s15203_s3] ss:$0 sm:$0xff] }
 0x690   :  { %vm6099_vm7 = vweird.f32 %v13376_v61  ;;  %v5989_v58 = vsub.s32 4, %v13640_v47  ;;  %v6261_v45 = vsel %vm6249_vm3, %v6243_v25, %v6260_v52  ;;  %vm6103_vm8 = vcmp.eq.s32.totalorder %v13637_v8, 0 }
 0x691   :  { %v13680_v3 = vmul.u32.u64.low %v6263_v54, %v6258_v55  ;;  %v13681_v1 = vmul.u32.u64.high %v6263_v54, %v6258_v55, %v13680_v3  ;;  %v8362_v33 = vadd.s32 4294967294, %v5971_v18  ;;  %v6262_v56 = vsel %vm6248_vm4, %v6259_v60, %v6261_v45  ;;  %v15395_v60 = vld [vmem:[#allocation56_spill] sm:$0xff] }
 0x692   :  { %v8368_v16 = vadd.s32 4294967169, %v6115_v22  ;;  %vm6106_vm10 = vcmp.eq.s32.totalorder %v13637_v8, 2  ;;  %v6254_v50 = vsel %vm6248_vm4, %v6251_v29, %v6253_v6  ;;  %v5959_v20 = vadd.s32 %v13599_v15, %v13596_v36  ;;  %v15394_v8 = vld [vmem:[#allocation13_spill] sm:$0xff] }
 0x693   :  { %v13688_v40 = vmul.u32.u64.low %v6263_v54, %v6262_v56  ;;  %v13689_v10 = vmul.u32.u64.high %v6263_v54, %v6262_v56, %v13688_v40  ;;  %v8957_v38 = vpop.eup %8956  ;;  %vm8363_vm12 = vcmp.lt.s32.totalorder %v8362_v33, 0  ;;  %v6111_v32 = vand.u32 2147483647, %v13620_v5 }
 0x694   :  { %v6121_v17 = vadd.s32 1, %v8368_v16  ;;  %v8959_v42 = vpop.eup %8958  ;;  %v6107_v4 = vxor.u32 2147483648, %v8957_v38  ;;  %v5974_v31 = vsel %vm8363_vm12, 0, %v8362_v33  ;;  %v5990_v62 = vsel %vm5905_vm2, %v5989_v58, %v13640_v47 }
 0x695   :  { %v6273_v34 = vadd.s32 1, %v13681_v1  ;;  %v6104_v46 = vxor.u32 2147483648, %v8959_v42  ;;  %v5975_v24 = vsub.s32 32, %v5974_v31  ;;  %v5979_v7 = vsub.s32 4294967266, %v5974_v31 }
 0x696   :  { %v6270_v43 = vmul.u32 %v6263_v54, %v6254_v50  ;;  %v6108_v36 = vsel %vm6106_vm10, %v6107_v4, %v8959_v42  ;;  %v5976_v15 = vshll.u32 %v13656_v21, %v5974_v31  ;;  %vm6272_vm9 = vc.u32 %v13689_v10, %v13680_v3  ;;  %v1142_v21 = vpop.permute.xlu1 %1141 }
 0x697   :  { %vm6122_vm11 = vcmp.gt.s32.totalorder %v6121_v17, 0  ;;  %v6105_v44 = vsel %vm6103_vm8, %v8957_v38, %v6104_v46  ;;  %v5977_v30 = vshrl.u32 %v5959_v20, %v5975_v24  ;;  %v5980_v47 = vadd.s32 127, %v5979_v7 }
 0x698   :  { %v6274_v25 = vsel %vm6272_vm9, %v6273_v34, %v13681_v1  ;;  %v6109_v9 = vsel %vm6102_vm5, %v6105_v44, %v6108_v36  ;;  %v5992_v19 = vsel %vm13671_vm6, 0, %v5990_v62  ;;  %v6123_v53 = vsel %vm6122_vm11, %v6121_v17, 0 }
 0x699   :  { %v6275_v22 = vadd.s32 %v6274_v25, %v6270_v43  ;;  %v6110_v23 = vsel %vm6099_vm7, nan, %v6109_v9  ;;  %v5978_v51 = vor.u32 %v5977_v30, %v5976_v15  ;;  %v5981_v27 = vshll.u32 %v5980_v47, 23 }
 0x69a   :  { %v6118_v57 = vand.u32 8388607, %v6111_v32  ;;  %v863_v37 = vmul.f32 %v13717_v49, %v15394_v8  ;;  %8131 = vst [vmem:[#allocation8 + $0x160] sm:$0xff] %v6110_v23  ;;  %v6125_v55 = vand.u32 31, %v6123_v53  ;;  %v13723_v61 = vmul.f32 %v13717_v49, %v15395_v60 }
 0x69b   :  { %v6276_v14 = vadd.s32 536870912, %v6275_v22  ;;  %v5982_v52 = vor.u32 4788187, %v5981_v27  ;;  %v13726_v54 = vmul.f32 %v13519_v11, %v1142_v21  ;;  %v5996_v18 = vadd.s32 3, %v5992_v19 }
 0x69c   :  { %v6126_v6 = vsub.s32 32, %v6125_v55  ;;  %v1347_v58 = vadd.f32 %v13635_v48, %v863_v37  ;;  %v5985_v1 = vcvt.s32.f32 %v5978_v51  ;;  %v6119_v33 = vor.u32 8388608, %v6118_v57 }
 0x69d   :  { %v6277_v29 = vshrl.u32 %v6276_v14, 30  ;;  %v5983_v45 = vand.u32 2147483647, %v5982_v52  ;;  %v6124_v56 = vshrl.u32 %v6123_v53, 5  ;;  %v6128_v50 = vshll.u32 %v15264_v28, %v6125_v55 }
 0x69e   :  { %v6129_v40 = vshrl.u32 %v15266_v39, %v6126_v6  ;;  %v6131_v38 = vshll.u32 %v15266_v39, %v6125_v55  ;;  %v6132_v17 = vshrl.u32 %v15267_v41, %v6126_v6  ;;  %v6135_v42 = vshrl.u32 %v15268_v35, %v6126_v6 }
 0x69f   :  { %v6278_v16 = vshll.u32 %v6277_v29, 30  ;;  %v5986_v20 = vmul.f32 %v5985_v1, %v5983_v45  ;;  %v6138_v4 = vshrl.u32 %v15269_v13, %v6126_v6  ;;  %v6134_v48 = vshll.u32 %v15267_v41, %v6125_v55 }
 0x6a0   :  { %v6137_v62 = vshll.u32 %v15268_v35, %v6125_v55  ;;  %v6141_v34 = vshrl.u32 %v15270_v59, %v6126_v6  ;;  %v13740_v24 = vand.u32 3, %v5996_v18  ;;  %v6130_v7 = vor.u32 %v6129_v40, %v6128_v50 }
 0x6a1   :  { %v13735_v31 = vsub.s32 %v6275_v22, %v6278_v16  ;;  %v5987_v46 = vxor.u32 2147483648, %v5986_v20  ;;  %v6133_v43 = vor.u32 %v6132_v17, %v6131_v38  ;;  %vm6217_vm14 = vcmp.lt.s32.totalorder %v13532_v26, 0 }
 0x6a2   :  { %v6136_v15 = vor.u32 %v6135_v42, %v6134_v48  ;;  %v6139_v44 = vor.u32 %v6138_v4, %v6137_v62  ;;  %v6140_v30 = vshll.u32 %v15269_v13, %v6125_v55  ;;  %vm6143_vm13 = vcmp.lt.s32.totalorder %v6124_v56, 1 }
 0x6a3   :  { %v6281_v36 = vsub.s32 0, %v13735_v31  ;;  %v5988_v47 = vsel %vm5905_vm2, %v5987_v46, %v5986_v20  ;;  %v6159_v25 = vshll.u32 %v6119_v33, 8  ;;  %v13748_v9 = vadd.f32 %v13616_v63, %v1347_v58 }
 0x6a4   :  { %v5991_v19 = vsel %vm13671_vm6, %v13467_v12, %v5988_v47  ;;  %v6142_v53 = vor.u32 %v6141_v34, %v6140_v30  ;;  %vm6146_vm15 = vcmp.lt.s32.totalorder %v6124_v56, 4  ;;  %v6127_v21 = vshrl.u32 %v15264_v28, %v6126_v6 }
 0x6a5   :  { %v8373_v22 = vmin.u32 %v6281_v36, %v13735_v31  ;;  %8960 = vcosq.f32 %v5991_v19  ;;  %v6151_v23 = vsel %vm6143_vm13, %v6130_v7, %v6133_v43  ;;  %v6152_v51 = vsel %vm6146_vm15, %v6139_v44, 920167782 }
 0x6a6   :  { %8962 = vsinq.f32 %v5991_v19  ;;  %vm6145_vm2 = vcmp.lt.s32.totalorder %v6124_v56, 3  ;;  %v6148_v57 = vsel %vm6146_vm15, %v6136_v15, 2102212464  ;;  %v6301_v8 = vsub.s32 4, %v6277_v29 }
 0x6a7   :  { %v6283_v27 = vclz %v8373_v22  ;;  %vm6144_vm1 = vcmp.lt.s32.totalorder %v6124_v56, 2  ;;  %v6153_v0 = vsel %vm6145_vm2, %v6136_v15, %v6152_v51  ;;  %v6155_v37 = vsel %vm6143_vm13, %v6133_v43, %v6136_v15 }
 0x6a8   :  { %v6147_v55 = vsel %vm6143_vm13, %v6127_v21, %v6130_v7  ;;  %v6154_v60 = vsel %vm6144_vm1, %v6151_v23, %v6153_v0  ;;  %v6156_v52 = vsel %vm6146_vm15, %v6142_v53, 1326507024  ;;  %v6149_v18 = vsel %vm6145_vm2, %v6133_v43, %v6148_v57 }
 0x6a9   :  { %v8374_v14 = vadd.s32 4294967294, %v6283_v27  ;;  %v6157_v6 = vsel %vm6145_vm2, %v6139_v44, %v6156_v52  ;;  %v13762_v58 = vmul.u32.u64.low %v6159_v25, %v6154_v60  ;;  %v13763_v45 = vmul.u32.u64.high %v6159_v25, %v6154_v60, %v13762_v58  ;;  %v1160_v52 = vpop.permute.xlu0 %1159 }
 0x6aa   :  { %v6271_v1 = vadd.s32 %v13680_v3, %v13689_v10  ;;  %v6158_v33 = vsel %vm6144_vm1, %v6155_v37, %v6157_v6  ;;  %v6426_v16 = vand.u32 2139095040, %v13748_v9  ;;  %v6302_v40 = vsel %vm6217_vm14, %v6301_v8, %v6277_v29  ;;  %v15398_v6 = vld [vmem:[#allocation15_spill] sm:$0xff] }
 0x6ab   :  { %vm8375_vm3 = vcmp.lt.s32.totalorder %v8374_v14, 0  ;;  %v13772_v38 = vmul.u32.u64.low %v6159_v25, %v6158_v33  ;;  %v13773_v20 = vmul.u32.u64.high %v6159_v25, %v6158_v33, %v13772_v38  ;;  %vm5995_vm0 = vweird.f32 %v13467_v12 }
 0x6ac   :  { %v6286_v50 = vsel %vm8375_vm3, 0, %v8374_v14  ;;  %v6150_v4 = vsel %vm6144_vm1, %v6147_v55, %v6149_v18  ;;  %v6427_v48 = vshrl.u32 %v6426_v16, 23  ;;  %vm5998_vm4 = vcmp.lt.s32.totalorder %v13740_v24, 2 }
 0x6ad   :  { %v6287_v17 = vsub.s32 32, %v6286_v50  ;;  %v6291_v42 = vsub.s32 4294967266, %v6286_v50  ;;  %vm6002_vm5 = vcmp.eq.s32.totalorder %v13740_v24, 2  ;;  %vm13781_vm6 = vcmp.le.f32.partialorder %v6215_v2, 0.7853982 }
 0x6ae   :  { %v6169_v10 = vadd.s32 1, %v13763_v45  ;;  %v6288_v29 = vshll.u32 %v13735_v31, %v6286_v50  ;;  %v8380_v46 = vadd.s32 4294967169, %v6427_v48  ;;  %v6304_v7 = vsel %vm13781_vm6, 0, %v6302_v40 }
 0x6af   :  { %v6289_v62 = vshrl.u32 %v6271_v1, %v6287_v17  ;;  %v6292_v34 = vadd.s32 127, %v6291_v42  ;;  %v8961_v56 = vpop.eup %8960  ;;  %v6166_v43 = vmul.u32 %v6159_v25, %v6150_v4  ;;  %vm6168_vm7 = vc.u32 %v13773_v20, %v13762_v58 }
 0x6b0   :  { %v6423_v2 = vand.u32 2147483647, %v13748_v9  ;;  %v8963_v36 = vpop.eup %8962  ;;  %v6003_v15 = vxor.u32 2147483648, %v8961_v56  ;;  %v6170_v47 = vsel %vm6168_vm7, %v6169_v10, %v13763_v45  ;;  %v6433_v22 = vadd.s32 1, %v8380_v46 }
 0x6b1   :  { %v6290_v44 = vor.u32 %v6289_v62, %v6288_v29  ;;  %v6293_v30 = vshll.u32 %v6292_v34, 23  ;;  %v6000_v31 = vxor.u32 2147483648, %v8963_v36  ;;  %v6171_v19 = vadd.s32 %v6170_v47, %v6166_v43 }
 0x6b2   :  { %v1346_v53 = vadd.f32 %v13726_v54, %v13723_v61  ;;  %vm5999_vm8 = vcmp.eq.s32.totalorder %v13740_v24, 0  ;;  %v6004_v25 = vsel %vm6002_vm5, %v6003_v15, %v8963_v36  ;;  %v6308_v23 = vadd.s32 3, %v6304_v7 }
 0x6b3   :  { %v6294_v21 = vor.u32 4788187, %v6293_v30  ;;  %v6001_v51 = vsel %vm5999_vm8, %v8961_v56, %v6000_v31  ;;  %v6172_v27 = vadd.s32 536870912, %v6171_v19  ;;  %v6430_v57 = vand.u32 8388607, %v6423_v2 }
 0x6b4   :  { %vm6434_vm10 = vcmp.gt.s32.totalorder %v6433_v22, 0  ;;  %v6005_v8 = vsel %vm5998_vm4, %v6001_v51, %v6004_v25  ;;  %v6297_v37 = vcvt.s32.f32 %v6290_v44  ;;  %v13807_v60 = vadd.f32 %v13616_v63, %v1346_v53 }
 0x6b5   :  { %v6295_v0 = vand.u32 2147483647, %v6294_v21  ;;  %v6435_v14 = vsel %vm6434_vm10, %v6433_v22, 0  ;;  %v6006_v61 = vsel %vm5995_vm0, nan, %v6005_v8  ;;  %v13804_v54 = vshrl.u32 %v6172_v27, 30 }
 0x6b6   :  { %v6437_v55 = vand.u32 31, %v6435_v14  ;;  %8130 = vst [vmem:[#allocation8 + $0x158] sm:$0xff] %v6006_v61  ;;  %v13811_v45 = vmul.f32 %v13717_v49, %v15398_v6  ;;  %v13814_v16 = vand.u32 3, %v6308_v23  ;;  %v6431_v12 = vor.u32 8388608, %v6430_v57 }
 0x6b7   :  { %v6298_v18 = vmul.f32 %v6297_v37, %v6295_v0  ;;  %v6174_v24 = vshll.u32 %v13804_v54, 30  ;;  %v13817_v50 = vmul.f32 %v13519_v11, %v1160_v52  ;;  %v6436_v38 = vshrl.u32 %v6435_v14, 5 }
 0x6b8   :  { %v6438_v1 = vsub.s32 32, %v6437_v55  ;;  %v6322_v42 = vand.u32 2139095040, %v13807_v60  ;;  %v6440_v48 = vshll.u32 %v15264_v28, %v6437_v55  ;;  %v6443_v34 = vshll.u32 %v15266_v39, %v6437_v55 }
 0x6b9   :  { %v6299_v33 = vxor.u32 2147483648, %v6298_v18  ;;  %v13819_v40 = vsub.s32 %v6171_v19, %v6174_v24  ;;  %v6446_v46 = vshll.u32 %v15267_v41, %v6437_v55  ;;  %v6449_v7 = vshll.u32 %v15268_v35, %v6437_v55 }
 0x6ba   :  { %v6441_v17 = vshrl.u32 %v15266_v39, %v6438_v1  ;;  %v6444_v10 = vshrl.u32 %v15267_v41, %v6438_v1  ;;  %v6447_v29 = vshrl.u32 %v15268_v35, %v6438_v1  ;;  %v6450_v43 = vshrl.u32 %v15269_v13, %v6438_v1 }
 0x6bb   :  { %v6300_v4 = vsel %vm6217_vm14, %v6299_v33, %v6298_v18  ;;  %v6177_v62 = vsub.s32 0, %v13819_v40  ;;  %v6452_v3 = vshll.u32 %v15269_v13, %v6437_v55  ;;  %v6453_v47 = vshrl.u32 %v15270_v59, %v6438_v1 }
 0x6bc   :  { %v6303_v11 = vsel %vm13781_vm6, %v13532_v26, %v6300_v4  ;;  %v6442_v56 = vor.u32 %v6441_v17, %v6440_v48  ;;  %v6445_v15 = vor.u32 %v6444_v10, %v6443_v34  ;;  %v6448_v44 = vor.u32 %v6447_v29, %v6446_v46 }
 0x6bd   :  { %8964 = vcosq.f32 %v6303_v11  ;;  %v8369_v36 = vmin.u32 %v6177_v62, %v13819_v40  ;;  %v6451_v30 = vor.u32 %v6450_v43, %v6449_v7  ;;  %v6471_v31 = vshll.u32 %v6431_v12, 8 }
 0x6be   :  { %8966 = vsinq.f32 %v6303_v11  ;;  %v6439_v22 = vshrl.u32 %v15264_v28, %v6438_v1  ;;  %vm6455_vm12 = vcmp.lt.s32.totalorder %v6436_v38, 1  ;;  %v6323_v53 = vshrl.u32 %v6322_v42, 23 }
 0x6bf   :  { %v6179_v19 = vclz %v8369_v36  ;;  %v6454_v25 = vor.u32 %v6453_v47, %v6452_v3  ;;  %vm6456_vm9 = vcmp.lt.s32.totalorder %v6436_v38, 2  ;;  %vm6457_vm11 = vcmp.lt.s32.totalorder %v6436_v38, 3 }
 0x6c0   :  { %vm6458_vm14 = vcmp.lt.s32.totalorder %v6436_v38, 4  ;;  %vm6311_vm13 = vcmp.eq.s32.totalorder %v13814_v16, 0  ;;  %v6463_v51 = vsel %vm6455_vm12, %v6442_v56, %v6445_v15  ;;  %vm6310_vm15 = vcmp.lt.s32.totalorder %v13814_v16, 2 }
 0x6c1   :  { %v8370_v21 = vadd.s32 4294967294, %v6179_v19  ;;  %v6460_v23 = vsel %vm6458_vm14, %v6448_v44, 2102212464  ;;  %v6464_v27 = vsel %vm6458_vm14, %v6451_v30, 920167782  ;;  %v6459_v57 = vsel %vm6455_vm12, %v6439_v22, %v6442_v56 }
 0x6c2   :  { %v6465_v8 = vsel %vm6457_vm11, %v6448_v44, %v6464_v27  ;;  %v6467_v0 = vsel %vm6455_vm12, %v6445_v15, %v6448_v44  ;;  %v6468_v37 = vsel %vm6458_vm14, %v6454_v25, 1326507024  ;;  %vm6307_vm2 = vweird.f32 %v13532_v26 }
 0x6c3   :  { %vm6113_vm1 = vcmp.lt.s32.totalorder %v13620_v5, 0  ;;  %vm8371_vm3 = vcmp.lt.s32.totalorder %v8370_v21, 0  ;;  %v6461_v14 = vsel %vm6457_vm11, %v6445_v15, %v6460_v23  ;;  %v6466_v61 = vsel %vm6456_vm9, %v6463_v51, %v6465_v8 }
 0x6c4   :  { %v6469_v55 = vsel %vm6457_vm11, %v6451_v30, %v6468_v37  ;;  %v6182_v52 = vsel %vm8371_vm3, 0, %v8370_v21  ;;  %v13849_v6 = vmul.u32.u64.low %v6471_v31, %v6466_v61  ;;  %v13850_v24 = vmul.u32.u64.high %v6471_v31, %v6466_v61, %v13849_v6 }
 0x6c5   :  { %v6470_v18 = vsel %vm6456_vm9, %v6467_v0, %v6469_v55  ;;  %vm6314_vm0 = vcmp.eq.s32.totalorder %v13814_v16, 2  ;;  %v6167_v1 = vadd.s32 %v13762_v58, %v13773_v20  ;;  %v6183_v33 = vsub.s32 32, %v6182_v52 }
 0x6c6   :  { %v6187_v12 = vsub.s32 4294967266, %v6182_v52  ;;  %v6462_v42 = vsel %vm6456_vm9, %v6459_v57, %v6461_v14  ;;  %v13857_v4 = vmul.u32.u64.low %v6471_v31, %v6470_v18  ;;  %v13858_v48 = vmul.u32.u64.high %v6471_v31, %v6470_v18, %v13857_v4 }
 0x6c7   :  { %v8965_v17 = vpop.eup %8964  ;;  %v8376_v10 = vadd.s32 4294967169, %v6323_v53  ;;  %v6184_v62 = vshll.u32 %v13819_v40, %v6182_v52  ;;  %v6185_v34 = vshrl.u32 %v6167_v1, %v6183_v33  ;;  %v6197_v7 = vsub.s32 4, %v13804_v54 }
 0x6c8   :  { %v8967_v29 = vpop.eup %8966  ;;  %v6315_v11 = vxor.u32 2147483648, %v8965_v17  ;;  %v6188_v46 = vadd.s32 127, %v6187_v12  ;;  %v6481_v58 = vadd.s32 1, %v13850_v24  ;;  %v6319_v15 = vand.u32 2147483647, %v13807_v60 }
 0x6c9   :  { %v6312_v56 = vxor.u32 2147483648, %v8967_v29  ;;  %v6329_v20 = vadd.s32 1, %v8376_v10  ;;  %v6186_v43 = vor.u32 %v6185_v34, %v6184_v62  ;;  %v6478_v30 = vmul.u32 %v6471_v31, %v6462_v42 }
 0x6ca   :  { %v6316_v38 = vsel %vm6314_vm0, %v6315_v11, %v8967_v29  ;;  %v6189_v36 = vshll.u32 %v6188_v46, 23  ;;  %vm6480_vm4 = vc.u32 %v13858_v48, %v13849_v6  ;;  %v1349_v19 = vadd.f32 %v13817_v50, %v13811_v45 }
 0x6cb   :  { %v6313_v44 = vsel %vm6311_vm13, %v8965_v17, %v6312_v56  ;;  %vm6330_vm5 = vcmp.gt.s32.totalorder %v6329_v20, 0  ;;  %v6482_v47 = vsel %vm6480_vm4, %v6481_v58, %v13850_v24  ;;  %v6198_v31 = vsel %vm6113_vm1, %v6197_v7, %v13804_v54 }
 0x6cc   :  { %v6317_v40 = vsel %vm6310_vm15, %v6313_v44, %v6316_v38  ;;  %v6190_v3 = vor.u32 4788187, %v6189_v36  ;;  %v6483_v53 = vadd.s32 %v6482_v47, %v6478_v30  ;;  %v6331_v25 = vsel %vm6330_vm5, %v6329_v20, 0 }
 0x6cd   :  { %v6318_v22 = vsel %vm6307_vm2, nan, %v6317_v40  ;;  %v6193_v23 = vcvt.s32.f32 %v6186_v43  ;;  %v6333_v16 = vand.u32 31, %v6331_v25  ;;  %vm13882_vm6 = vcmp.le.f32.partialorder %v6111_v32, 0.7853982 }
 0x6ce   :  { %8133 = vst [vmem:[#allocation8 + $0x170] sm:$0xff] %v6318_v22  ;;  %v6191_v21 = vand.u32 2147483647, %v6190_v3  ;;  %v6484_v45 = vadd.s32 536870912, %v6483_v53  ;;  %v6326_v26 = vand.u32 8388607, %v6319_v15  ;;  %v13891_v57 = vadd.f32 %v13616_v63, %v1349_v19 }
 0x6cf   :  { %v6200_v54 = vsel %vm13882_vm6, 0, %v6198_v31  ;;  %v6334_v27 = vsub.s32 32, %v6333_v16  ;;  %v6332_v0 = vshrl.u32 %v6331_v25, 5  ;;  %v6336_v32 = vshll.u32 %v15264_v28, %v6333_v16 }
 0x6d0   :  { %v6194_v50 = vmul.f32 %v6193_v23, %v6191_v21  ;;  %v13893_v8 = vshrl.u32 %v6484_v45, 30  ;;  %v6339_v37 = vshll.u32 %v15266_v39, %v6333_v16  ;;  %v6342_v52 = vshll.u32 %v15267_v41, %v6333_v16 }
 0x6d1   :  { %v6337_v61 = vshrl.u32 %v15266_v39, %v6334_v27  ;;  %v6340_v55 = vshrl.u32 %v15267_v41, %v6334_v27  ;;  %v6343_v24 = vshrl.u32 %v15268_v35, %v6334_v27  ;;  %v6345_v1 = vshll.u32 %v15268_v35, %v6333_v16 }
 0x6d2   :  { %v6195_v14 = vxor.u32 2147483648, %v6194_v50  ;;  %v6486_v18 = vshll.u32 %v13893_v8, 30  ;;  %v6346_v33 = vshrl.u32 %v15269_v13, %v6334_v27  ;;  %v6348_v42 = vshll.u32 %v15269_v13, %v6333_v16 }
 0x6d3   :  { %v6338_v17 = vor.u32 %v6337_v61, %v6336_v32  ;;  %v6349_v4 = vshrl.u32 %v15270_v59, %v6334_v27  ;;  %v6341_v11 = vor.u32 %v6340_v55, %v6339_v37  ;;  %v6344_v62 = vor.u32 %v6343_v24, %v6342_v52 }
 0x6d4   :  { %v6196_v12 = vsel %vm6113_vm1, %v6195_v14, %v6194_v50  ;;  %v13911_v29 = vsub.s32 %v6483_v53, %v6486_v18  ;;  %v6327_v34 = vor.u32 8388608, %v6326_v26  ;;  %v6347_v46 = vor.u32 %v6346_v33, %v6345_v1 }
 0x6d5   :  { %v6199_v10 = vsel %vm13882_vm6, %v13620_v5, %v6196_v12  ;;  %v6350_v56 = vor.u32 %v6349_v4, %v6348_v42  ;;  %v6204_v7 = vadd.s32 3, %v6200_v54  ;;  %v6335_v20 = vshrl.u32 %v15264_v28, %v6334_v27 }
 0x6d6   :  { %8968 = vcosq.f32 %v6199_v10  ;;  %v6489_v58 = vsub.s32 0, %v13911_v29  ;;  %vm6351_vm7 = vcmp.lt.s32.totalorder %v6332_v0, 1  ;;  %vm6353_vm8 = vcmp.lt.s32.totalorder %v6332_v0, 3 }
 0x6d7   :  { %8970 = vsinq.f32 %v6199_v10  ;;  %vm6354_vm10 = vcmp.lt.s32.totalorder %v6332_v0, 4  ;;  %v6634_v38 = vand.u32 2139095040, %v13891_v57  ;;  %v6355_v36 = vsel %vm6351_vm7, %v6335_v20, %v6338_v17 }
 0x6d8   :  { %v8381_v43 = vmin.u32 %v6489_v58, %v13911_v29  ;;  %v6356_v44 = vsel %vm6354_vm10, %v6344_v62, 2102212464  ;;  %v6359_v30 = vsel %vm6351_vm7, %v6338_v17, %v6341_v11  ;;  %v6360_v3 = vsel %vm6354_vm10, %v6347_v46, 920167782 }
 0x6d9   :  { %v6357_v40 = vsel %vm6353_vm8, %v6341_v11, %v6356_v44  ;;  %v6363_v47 = vsel %vm6351_vm7, %v6341_v11, %v6344_v62  ;;  %v6364_v19 = vsel %vm6354_vm10, %v6350_v56, 1326507024  ;;  %v6205_v22 = vand.u32 3, %v6204_v7 }
 0x6da   :  { %vm6425_vm12 = vcmp.lt.s32.totalorder %v13748_v9, 0  ;;  %v6491_v31 = vclz %v8381_v43  ;;  %v6367_v53 = vshll.u32 %v6327_v34, 8  ;;  %vm6352_vm9 = vcmp.lt.s32.totalorder %v6332_v0, 2 }
 0x6db   :  { %v6361_v25 = vsel %vm6353_vm8, %v6344_v62, %v6360_v3  ;;  %v6365_v21 = vsel %vm6353_vm8, %v6347_v46, %v6364_v19  ;;  %v6635_v23 = vshrl.u32 %v6634_v38, 23  ;;  %vm6203_vm11 = vweird.f32 %v13620_v5  ;;  %v1153_v62 = vpop.permute.xlu1 %1152  ;;  %v15403_v5 = vld [vmem:[#allocation12_spill] sm:$0xff] }
 0x6dc   :  { %v8382_v16 = vadd.s32 4294967294, %v6491_v31  ;;  %v6358_v51 = vsel %vm6352_vm9, %v6355_v36, %v6357_v40  ;;  %v6362_v45 = vsel %vm6352_vm9, %v6359_v30, %v6361_v25  ;;  %v6366_v26 = vsel %vm6352_vm9, %v6363_v47, %v6365_v21  ;;  %v13956_v36 = vld [vmem:[%s15203_s3 + $0x1] ss:$0 sm:$0xff]  ;;  %v15404_v25 = vld [vmem:[#allocation17_spill] sm:$0xff] }
 0x6dd   :  { %vm13924_vm14 = vcmp.le.f32.partialorder %v6423_v2, 0.7853982  ;;  %v13928_v54 = vmul.u32.u64.low %v6367_v53, %v6366_v26  ;;  %v13929_v27 = vmul.u32.u64.high %v6367_v53, %v6366_v26, %v13928_v54  ;;  %vm6207_vm13 = vcmp.eq.s32.totalorder %v6205_v22, 0 }
 0x6de   :  { %v13931_v32 = vmul.u32.u64.low %v6367_v53, %v6362_v45  ;;  %v13932_v37 = vmul.u32.u64.high %v6367_v53, %v6362_v45, %v13931_v32  ;;  %vm6210_vm15 = vcmp.eq.s32.totalorder %v6205_v22, 2  ;;  %vm8383_vm2 = vcmp.lt.s32.totalorder %v8382_v16, 0 }
 0x6df   :  { %v8388_v0 = vadd.s32 4294967169, %v6635_v23  ;;  %v6479_v61 = vadd.s32 %v13849_v6, %v13858_v48  ;;  %v6494_v55 = vsel %vm8383_vm2, 0, %v8382_v16  ;;  %v6509_v2 = vsub.s32 4, %v13893_v8 }
 0x6e0   :  { %v8969_v14 = vpop.eup %8968  ;;  %v6631_v52 = vand.u32 2147483647, %v13891_v57  ;;  %v6495_v1 = vsub.s32 32, %v6494_v55  ;;  %v6499_v33 = vsub.s32 4294967266, %v6494_v55  ;;  %v6374_v12 = vmul.u32 %v6367_v53, %v6358_v51 }
 0x6e1   :  { %v8971_v18 = vpop.eup %8970  ;;  %v6211_v24 = vxor.u32 2147483648, %v8969_v14  ;;  %v6496_v42 = vshll.u32 %v13911_v29, %v6494_v55  ;;  %vm6376_vm1 = vc.u32 %v13929_v27, %v13931_v32  ;;  %v6377_v4 = vadd.s32 1, %v13932_v37 }
 0x6e2   :  { %v6208_v17 = vxor.u32 2147483648, %v8971_v18  ;;  %v6497_v48 = vshrl.u32 %v6479_v61, %v6495_v1  ;;  %v6500_v10 = vadd.s32 127, %v6499_v33  ;;  %v6641_v11 = vadd.s32 1, %v8388_v0 }
 0x6e3   :  { %v6212_v6 = vsel %vm6210_vm15, %v6211_v24, %v8971_v18  ;;  %vm6206_vm3 = vcmp.lt.s32.totalorder %v6205_v22, 2  ;;  %v6510_v46 = vsel %vm6425_vm12, %v6509_v2, %v13893_v8  ;;  %v6378_v29 = vsel %vm6376_vm1, %v6377_v4, %v13932_v37 }
 0x6e4   :  { %v6209_v34 = vsel %vm6207_vm13, %v8969_v14, %v6208_v17  ;;  %v6498_v7 = vor.u32 %v6497_v48, %v6496_v42  ;;  %v6501_v58 = vshll.u32 %v6500_v10, 23  ;;  %v6379_v20 = vadd.s32 %v6378_v29, %v6374_v12 }
 0x6e5   :  { %v6213_v56 = vsel %vm6206_vm3, %v6209_v34, %v6212_v6  ;;  %v6638_v43 = vand.u32 8388607, %v6631_v52  ;;  %vm6642_vm0 = vcmp.gt.s32.totalorder %v6641_v11, 0  ;;  %v1284_v8 = vmul.f32 %v13956_v36, %v1153_v62 }
 0x6e6   :  { %v6214_v38 = vsel %vm6203_vm11, nan, %v6213_v56  ;;  %v6502_v44 = vor.u32 4788187, %v6501_v58  ;;  %v6512_v30 = vsel %vm13924_vm14, 0, %v6510_v46  ;;  %v6380_v40 = vadd.s32 536870912, %v6379_v20 }
 0x6e7   :  { %8132 = vst [vmem:[#allocation8 + $0x168] sm:$0xff] %v6214_v38  ;;  %v6643_v3 = vsel %vm6642_vm0, %v6641_v11, 0  ;;  %v864_v47 = vmul.f32 %v13717_v49, %v15403_v5  ;;  %v6505_v31 = vcvt.s32.f32 %v6498_v7  ;;  %v13967_v21 = vmul.f32 %v13717_v49, %v15404_v25 }
 0x6e8   :  { %v6645_v19 = vand.u32 31, %v6643_v3  ;;  %v6503_v22 = vand.u32 2147483647, %v6502_v44  ;;  %v13963_v53 = vshrl.u32 %v6380_v40, 30  ;;  %v6516_v23 = vadd.s32 3, %v6512_v30 }
 0x6e9   :  { %v1348_v51 = vadd.f32 %v1284_v8, %v864_v47  ;;  %v6639_v54 = vor.u32 8388608, %v6638_v43  ;;  %v6644_v1 = vshrl.u32 %v6643_v3, 5  ;;  %vm6321_vm4 = vcmp.lt.s32.totalorder %v13807_v60, 0 }
 0x6ea   :  { %v6646_v16 = vsub.s32 32, %v6645_v19  ;;  %v6506_v45 = vmul.f32 %v6505_v31, %v6503_v22  ;;  %v6382_v26 = vshll.u32 %v13963_v53, 30  ;;  %v6648_v37 = vshll.u32 %v15264_v28, %v6645_v19  ;;  %v1171_v31 = vpop.permute.xlu0 %1170 }
 0x6eb   :  { %v6651_v14 = vshll.u32 %v15266_v39, %v6645_v19  ;;  %v6654_v18 = vshll.u32 %v15267_v41, %v6645_v19  ;;  %v6657_v12 = vshll.u32 %v15268_v35, %v6645_v19  ;;  %v13981_v17 = vadd.f32 %v13616_v63, %v1348_v51 }
 0x6ec   :  { %v6649_v0 = vshrl.u32 %v15266_v39, %v6646_v16  ;;  %v6652_v61 = vshrl.u32 %v15267_v41, %v6646_v16  ;;  %v6655_v55 = vshrl.u32 %v15268_v35, %v6646_v16  ;;  %v6507_v2 = vxor.u32 2147483648, %v6506_v45 }
 0x6ed   :  { %v13975_v49 = vsub.s32 %v6379_v20, %v6382_v26  ;;  %v6658_v24 = vshrl.u32 %v15269_v13, %v6646_v16  ;;  %v6660_v62 = vshll.u32 %v15269_v13, %v6645_v19  ;;  %v6661_v34 = vshrl.u32 %v15270_v59, %v6646_v16 }
 0x6ee   :  { %v6650_v33 = vor.u32 %v6649_v0, %v6648_v37  ;;  %v6508_v42 = vsel %vm6425_vm12, %v6507_v2, %v6506_v45  ;;  %v6653_v6 = vor.u32 %v6652_v61, %v6651_v14  ;;  %v6656_v48 = vor.u32 %v6655_v55, %v6654_v18 }
 0x6ef   :  { %v6385_v4 = vsub.s32 0, %v13975_v49  ;;  %v6511_v10 = vsel %vm13924_vm14, %v13748_v9, %v6508_v42  ;;  %v6659_v11 = vor.u32 %v6658_v24, %v6657_v12  ;;  %v13991_v46 = vand.u32 3, %v6516_v23 }
 0x6f0   :  { %8972 = vcosq.f32 %v6511_v10  ;;  %v13994_v29 = vshll.u32 %v6639_v54, 8  ;;  %v6647_v56 = vshrl.u32 %v15264_v28, %v6646_v16  ;;  %v6662_v7 = vor.u32 %v6661_v34, %v6660_v62 }
 0x6f1   :  { %v8377_v63 = vmin.u32 %v6385_v4, %v13975_v49  ;;  %8974 = vsinq.f32 %v6511_v10  ;;  %v6530_v58 = vand.u32 2139095040, %v13981_v17  ;;  %vm6663_vm5 = vcmp.lt.s32.totalorder %v6644_v1, 1 }
 0x6f2   :  { %vm6664_vm6 = vcmp.lt.s32.totalorder %v6644_v1, 2  ;;  %vm6666_vm7 = vcmp.lt.s32.totalorder %v6644_v1, 4  ;;  %vm6665_vm8 = vcmp.lt.s32.totalorder %v6644_v1, 3  ;;  %v6671_v38 = vsel %vm6663_vm5, %v6650_v33, %v6653_v6 }
 0x6f3   :  { %v6387_v50 = vclz %v8377_v63  ;;  %v6668_v20 = vsel %vm6666_vm7, %v6656_v48, 2102212464  ;;  %v6672_v43 = vsel %vm6666_vm7, %v6659_v11, 920167782  ;;  %vm6522_vm10 = vcmp.eq.s32.totalorder %v13991_v46, 2 }
 0x6f4   :  { %v6667_v44 = vsel %vm6663_vm5, %v6647_v56, %v6650_v33  ;;  %v6673_v30 = vsel %vm6665_vm8, %v6656_v48, %v6672_v43  ;;  %v6675_v40 = vsel %vm6663_vm5, %v6653_v6, %v6656_v48  ;;  %vm14003_vm12 = vcmp.le.f32.partialorder %v6319_v15, 0.7853982 }
 0x6f5   :  { %v8378_v8 = vadd.s32 4294967294, %v6387_v50  ;;  %v6669_v5 = vsel %vm6665_vm8, %v6653_v6, %v6668_v20  ;;  %v6674_v47 = vsel %vm6664_vm6, %v6671_v38, %v6673_v30  ;;  %v6676_v19 = vsel %vm6666_vm7, %v6662_v7, 1326507024 }
 0x6f6   :  { %v6531_v22 = vshrl.u32 %v6530_v58, 23  ;;  %vm6518_vm9 = vcmp.lt.s32.totalorder %v13991_v46, 2  ;;  %v6677_v25 = vsel %vm6665_vm8, %v6659_v11, %v6676_v19  ;;  %vm6515_vm14 = vweird.f32 %v13748_v9 }
 0x6f7   :  { %vm8379_vm11 = vcmp.lt.s32.totalorder %v8378_v8, 0  ;;  %v14012_v23 = vmul.u32.u64.low %v13994_v29, %v6674_v47  ;;  %v14013_v16 = vmul.u32.u64.high %v13994_v29, %v6674_v47, %v14012_v23  ;;  %v6405_v51 = vsub.s32 4, %v13963_v53 }
 0x6f8   :  { %v6390_v15 = vsel %vm8379_vm11, 0, %v8378_v8  ;;  %v6678_v45 = vsel %vm6664_vm6, %v6675_v40, %v6677_v25  ;;  %v8384_v26 = vadd.s32 4294967169, %v6531_v22  ;;  %v6375_v54 = vadd.s32 %v13931_v32, %v13929_v27 }
 0x6f9   :  { %v6391_v37 = vsub.s32 32, %v6390_v15  ;;  %v6395_v0 = vsub.s32 4294967266, %v6390_v15  ;;  %v1287_v14 = vmul.f32 %v13956_v36, %v1171_v31  ;;  %v6670_v61 = vsel %vm6664_vm6, %v6667_v44, %v6669_v5 }
 0x6fa   :  { %v14024_v55 = vmul.u32.u64.low %v13994_v29, %v6678_v45  ;;  %v14025_v2 = vmul.u32.u64.high %v13994_v29, %v6678_v45, %v14024_v55  ;;  %v6537_v18 = vadd.s32 1, %v8384_v26  ;;  %v8973_v24 = vpop.eup %8972  ;;  %v6392_v33 = vshll.u32 %v13975_v49, %v6390_v15 }
 0x6fb   :  { %v6393_v12 = vshrl.u32 %v6375_v54, %v6391_v37  ;;  %v6396_v42 = vadd.s32 127, %v6395_v0  ;;  %v6689_v4 = vadd.s32 1, %v14013_v16  ;;  %v8975_v6 = vpop.eup %8974  ;;  %v6523_v27 = vxor.u32 2147483648, %v8973_v24 }
 0x6fc   :  { %v6406_v32 = vsel %vm6321_vm4, %v6405_v51, %v13963_v53  ;;  %v6527_v1 = vand.u32 2147483647, %v13981_v17  ;;  %vm6538_vm13 = vcmp.gt.s32.totalorder %v6537_v18, 0  ;;  %v6520_v48 = vxor.u32 2147483648, %v8975_v6 }
 0x6fd   :  { %v6394_v10 = vor.u32 %v6393_v12, %v6392_v33  ;;  %v6397_v11 = vshll.u32 %v6396_v42, 23  ;;  %v6539_v62 = vsel %vm6538_vm13, %v6537_v18, 0  ;;  %vm6519_vm15 = vcmp.eq.s32.totalorder %v13991_v46, 0 }
 0x6fe   :  { %v6524_v49 = vsel %vm6522_vm10, %v6523_v27, %v8975_v6  ;;  %v6686_v34 = vmul.u32 %v13994_v29, %v6670_v61  ;;  %vm6688_vm2 = vc.u32 %v14025_v2, %v14012_v23  ;;  %v6521_v63 = vsel %vm6519_vm15, %v8973_v24, %v6520_v48 }
 0x6ff   :  { %v6398_v56 = vor.u32 4788187, %v6397_v11  ;;  %v6408_v53 = vsel %vm14003_vm12, 0, %v6406_v32  ;;  %v6690_v7 = vsel %vm6688_vm2, %v6689_v4, %v14013_v16  ;;  %v6525_v58 = vsel %vm6518_vm9, %v6521_v63, %v6524_v49  ;;  %v14072_v4 = vld [vmem:[%s15203_s3 + $0x2] ss:$0 sm:$0xff]  ;;  %v1164_v49 = vpop.permute.xlu1 %1163 }
 0x700   :  { %v6691_v50 = vadd.s32 %v6690_v7, %v6686_v34  ;;  %v6534_v20 = vand.u32 8388607, %v6527_v1  ;;  %v6541_v38 = vand.u32 31, %v6539_v62  ;;  %v6526_v29 = vsel %vm6515_vm14, nan, %v6525_v58 }
 0x701   :  { %v6399_v43 = vand.u32 2147483647, %v6398_v56  ;;  %v6401_v8 = vcvt.s32.f32 %v6394_v10  ;;  %v1351_v44 = vadd.f32 %v1287_v14, %v13967_v21  ;;  %8135 = vst [vmem:[#allocation8 + $0x180] sm:$0xff] %v6526_v29  ;;  %v6412_v30 = vadd.s32 3, %v6408_v53 }
 0x702   :  { %v6692_v40 = vadd.s32 536870912, %v6691_v50  ;;  %v14049_v5 = vshrl.u32 %v6539_v62, 5  ;;  %v6542_v47 = vsub.s32 32, %v6541_v38  ;;  %v6544_v19 = vshll.u32 %v15264_v28, %v6541_v38 }
 0x703   :  { %v6402_v46 = vmul.f32 %v6401_v8, %v6399_v43  ;;  %v6547_v22 = vshll.u32 %v15266_v39, %v6541_v38  ;;  %v6550_v31 = vshll.u32 %v15267_v41, %v6541_v38  ;;  %v6553_v21 = vshll.u32 %v15268_v35, %v6541_v38 }
 0x704   :  { %v6693_v25 = vshrl.u32 %v6692_v40, 30  ;;  %v6545_v9 = vshrl.u32 %v15266_v39, %v6542_v47  ;;  %v6548_v16 = vshrl.u32 %v15267_v41, %v6542_v47  ;;  %v6551_v51 = vshrl.u32 %v15268_v35, %v6542_v47 }
 0x705   :  { %v6403_v15 = vxor.u32 2147483648, %v6402_v46  ;;  %v6554_v45 = vshrl.u32 %v15269_v13, %v6542_v47  ;;  %v6557_v26 = vshrl.u32 %v15270_v59, %v6542_v47  ;;  %v6535_v37 = vor.u32 8388608, %v6534_v20 }
 0x706   :  { %v6694_v54 = vshll.u32 %v6693_v25, 30  ;;  %v6546_v0 = vor.u32 %v6545_v9, %v6544_v19  ;;  %v6556_v14 = vshll.u32 %v15269_v13, %v6541_v38  ;;  %vm6633_vm1 = vcmp.lt.s32.totalorder %v13891_v57, 0 }
 0x707   :  { %v6404_v61 = vsel %vm6321_vm4, %v6403_v15, %v6402_v46  ;;  %v6549_v55 = vor.u32 %v6548_v16, %v6547_v22  ;;  %v6552_v18 = vor.u32 %v6551_v51, %v6550_v31  ;;  %v6555_v24 = vor.u32 %v6554_v45, %v6553_v21 }
 0x708   :  { %v6407_v33 = vsel %vm14003_vm12, %v13807_v60, %v6404_v61  ;;  %v14067_v12 = vsub.s32 %v6691_v50, %v6694_v54  ;;  %v6558_v42 = vor.u32 %v6557_v26, %v6556_v14  ;;  %v14075_v6 = vadd.f32 %v14072_v4, %v1351_v44 }
 0x709   :  { %8976 = vcosq.f32 %v6407_v33  ;;  %vm6559_vm3 = vcmp.lt.s32.totalorder %v14049_v5, 1  ;;  %vm6560_vm0 = vcmp.lt.s32.totalorder %v14049_v5, 2  ;;  %vm6561_vm4 = vcmp.lt.s32.totalorder %v14049_v5, 3 }
 0x70a   :  { %8978 = vsinq.f32 %v6407_v33  ;;  %vm14082_vm5 = vcmp.le.f32.partialorder %v6631_v52, 0.7853982  ;;  %v6697_v27 = vsub.s32 0, %v14067_v12  ;;  %v6543_v32 = vshrl.u32 %v15264_v28, %v6542_v47 }
 0x70b   :  { %vm6562_vm6 = vcmp.lt.s32.totalorder %v14049_v5, 4  ;;  %v6717_v48 = vsub.s32 4, %v6693_v25  ;;  %v6567_v11 = vsel %vm6559_vm3, %v6546_v0, %v6549_v55  ;;  %v6571_v63 = vsel %vm6559_vm3, %v6549_v55, %v6552_v18 }
 0x70c   :  { %v6564_v10 = vsel %vm6562_vm6, %v6552_v18, 2102212464  ;;  %v6568_v62 = vsel %vm6562_vm6, %v6555_v24, 920167782  ;;  %v8389_v34 = vmin.u32 %v6697_v27, %v14067_v12  ;;  %v6572_v56 = vsel %vm6562_vm6, %v6558_v42, 1326507024 }
 0x70d   :  { %v6569_v52 = vsel %vm6561_vm4, %v6552_v18, %v6568_v62  ;;  %v6413_v53 = vand.u32 3, %v6412_v30  ;;  %v6573_v58 = vsel %vm6561_vm4, %v6555_v24, %v6572_v56  ;;  %v6575_v50 = vshll.u32 %v6535_v37, 8  ;;  %v1182_v62 = vpop.permute.xlu0 %1181  ;;  %v14140_v56 = vld [vmem:[%s15203_s3] ss:$0 sm:$0xff] }
 0x70e   :  { %v6570_v7 = vsel %vm6560_vm0, %v6567_v11, %v6569_v52  ;;  %v6699_v20 = vclz %v8389_v34  ;;  %v6563_v38 = vsel %vm6559_vm3, %v6543_v32, %v6546_v0  ;;  %v6565_v29 = vsel %vm6561_vm4, %v6549_v55, %v6564_v10 }
 0x70f   :  { %v1286_v43 = vmul.f32 %v13956_v36, %v1164_v49  ;;  %v6574_v8 = vsel %vm6560_vm0, %v6571_v63, %v6573_v58  ;;  %v14107_v44 = vmul.u32.u64.low %v6575_v50, %v6570_v7  ;;  %v14108_v30 = vmul.u32.u64.high %v6575_v50, %v6570_v7, %v14107_v44  ;;  %v15409_v7 = vld [vmem:[#allocation14_spill] sm:$0xff] }
 0x710   :  { %v6842_v40 = vand.u32 2139095040, %v14075_v6  ;;  %vm6411_vm7 = vweird.f32 %v13807_v60  ;;  %v8390_v47 = vadd.s32 4294967294, %v6699_v20  ;;  %v6718_v46 = vsel %vm6633_vm1, %v6717_v48, %v6693_v25 }
 0x711   :  { %v14115_v19 = vmul.u32.u64.low %v6575_v50, %v6574_v8  ;;  %v14116_v22 = vmul.u32.u64.high %v6575_v50, %v6574_v8, %v14115_v19  ;;  %vm6414_vm8 = vcmp.lt.s32.totalorder %v6413_v53, 2  ;;  %vm6415_vm10 = vcmp.eq.s32.totalorder %v6413_v53, 0 }
 0x712   :  { %v6566_v31 = vsel %vm6560_vm0, %v6563_v38, %v6565_v29  ;;  %v6843_v9 = vshrl.u32 %v6842_v40, 23  ;;  %vm6418_vm12 = vcmp.eq.s32.totalorder %v6413_v53, 2  ;;  %v6687_v16 = vadd.s32 %v14012_v23, %v14025_v2 }
 0x713   :  { %vm8391_vm9 = vcmp.lt.s32.totalorder %v8390_v47, 0  ;;  %v6839_v21 = vand.u32 2147483647, %v14075_v6  ;;  %v8977_v15 = vpop.eup %8976  ;;  %v6720_v25 = vsel %vm14082_vm5, 0, %v6718_v46  ;;  %v6585_v45 = vadd.s32 1, %v14108_v30 }
 0x714   :  { %v6702_v51 = vsel %vm8391_vm9, 0, %v8390_v47  ;;  %v8396_v26 = vadd.s32 4294967169, %v6843_v9  ;;  %v8979_v54 = vpop.eup %8978  ;;  %v6419_v37 = vxor.u32 2147483648, %v8977_v15  ;;  %v6582_v14 = vmul.u32 %v6575_v50, %v6566_v31  ;;  %v15410_v50 = vld [vmem:[#allocation19_spill] sm:$0xff] }
 0x715   :  { %v6703_v5 = vsub.s32 32, %v6702_v51  ;;  %v6707_v0 = vsub.s32 4294967266, %v6702_v51  ;;  %v6416_v61 = vxor.u32 2147483648, %v8979_v54  ;;  %v6704_v55 = vshll.u32 %v14067_v12, %v6702_v51 }
 0x716   :  { %vm6584_vm11 = vc.u32 %v14116_v22, %v14107_v44  ;;  %v6849_v23 = vadd.s32 1, %v8396_v26  ;;  %v6420_v2 = vsel %vm6418_vm12, %v6419_v37, %v8979_v54  ;;  %v6724_v27 = vadd.s32 3, %v6720_v25 }
 0x717   :  { %v6705_v18 = vshrl.u32 %v6687_v16, %v6703_v5  ;;  %v6708_v24 = vadd.s32 127, %v6707_v0  ;;  %v6586_v33 = vsel %vm6584_vm11, %v6585_v45, %v14108_v30  ;;  %v6417_v42 = vsel %vm6415_vm10, %v8977_v15, %v6416_v61 }
 0x718   :  { %v6587_v32 = vadd.s32 %v6586_v33, %v6582_v14  ;;  %vm6850_vm14 = vcmp.gt.s32.totalorder %v6849_v23, 0  ;;  %v6421_v48 = vsel %vm6414_vm8, %v6417_v42, %v6420_v2  ;;  %v6846_v52 = vand.u32 8388607, %v6839_v21 }
 0x719   :  { %v6706_v10 = vor.u32 %v6705_v18, %v6704_v55  ;;  %v6709_v11 = vshll.u32 %v6708_v24, 23  ;;  %v6851_v12 = vsel %vm6850_vm14, %v6849_v23, 0  ;;  %v6422_v49 = vsel %vm6411_vm7, nan, %v6421_v48 }
 0x71a   :  { %v6588_v34 = vadd.s32 536870912, %v6587_v32  ;;  %v6853_v63 = vand.u32 31, %v6851_v12  ;;  %v866_v53 = vmul.f32 %v14140_v56, %v15409_v7  ;;  %8134 = vst [vmem:[#allocation8 + $0x178] sm:$0xff] %v6422_v49  ;;  %v14146_v20 = vmul.f32 %v14140_v56, %v15410_v50 }
 0x71b   :  { %v6710_v58 = vor.u32 4788187, %v6709_v11  ;;  %v14151_v29 = vmul.f32 %v13956_v36, %v1182_v62  ;;  %v6713_v30 = vcvt.s32.f32 %v6706_v10  ;;  %v14153_v40 = vand.u32 3, %v6724_v27 }
 0x71c   :  { %v14148_v60 = vshrl.u32 %v6588_v34, 30  ;;  %v6854_v38 = vsub.s32 32, %v6853_v63  ;;  %v1350_v47 = vadd.f32 %v1286_v43, %v866_v53  ;;  %v6847_v19 = vor.u32 8388608, %v6846_v52 }
 0x71d   :  { %v6711_v8 = vand.u32 2147483647, %v6710_v58  ;;  %v6856_v31 = vshll.u32 %v15264_v28, %v6853_v63  ;;  %v6859_v26 = vshll.u32 %v15266_v39, %v6853_v63  ;;  %v6862_v43 = vshll.u32 %v15267_v41, %v6853_v63 }
 0x71e   :  { %v6590_v46 = vshll.u32 %v14148_v60, 30  ;;  %v6857_v9 = vshrl.u32 %v15266_v39, %v6854_v38  ;;  %v6860_v15 = vshrl.u32 %v15267_v41, %v6854_v38  ;;  %v6863_v51 = vshrl.u32 %v15268_v35, %v6854_v38 }
 0x71f   :  { %v6714_v16 = vmul.f32 %v6713_v30, %v6711_v8  ;;  %v6866_v25 = vshrl.u32 %v15269_v13, %v6854_v38  ;;  %v6869_v54 = vshrl.u32 %v15270_v59, %v6854_v38  ;;  %v6852_v5 = vshrl.u32 %v6851_v12, 5 }
 0x720   :  { %v14161_v45 = vsub.s32 %v6587_v32, %v6590_v46  ;;  %v6865_v0 = vshll.u32 %v15268_v35, %v6853_v63  ;;  %v6868_v14 = vshll.u32 %v15269_v13, %v6853_v63  ;;  %v6858_v55 = vor.u32 %v6857_v9, %v6856_v31 }
 0x721   :  { %v6715_v37 = vxor.u32 2147483648, %v6714_v16  ;;  %v6861_v23 = vor.u32 %v6860_v15, %v6859_v26  ;;  %v6864_v2 = vor.u32 %v6863_v51, %v6862_v43  ;;  %vm6529_vm13 = vcmp.lt.s32.totalorder %v13981_v17, 0 }
 0x722   :  { %v6593_v61 = vsub.s32 0, %v14161_v45  ;;  %v6583_v24 = vadd.s32 %v14107_v44, %v14116_v22  ;;  %v6867_v33 = vor.u32 %v6866_v25, %v6865_v0  ;;  %v14175_v42 = vadd.f32 %v14072_v4, %v1350_v47 }
 0x723   :  { %v6716_v18 = vsel %vm6633_vm1, %v6715_v37, %v6714_v16  ;;  %v6870_v48 = vor.u32 %v6869_v54, %v6868_v14  ;;  %v6887_v10 = vshll.u32 %v6847_v19, 8  ;;  %v6613_v11 = vsub.s32 4, %v14148_v60 }
 0x724   :  { %v6719_v27 = vsel %vm14082_vm5, %v13891_v57, %v6716_v18  ;;  %v8385_v32 = vmin.u32 %v6593_v61, %v14161_v45  ;;  %vm6871_vm15 = vcmp.lt.s32.totalorder %v6852_v5, 1  ;;  %vm6874_vm2 = vcmp.lt.s32.totalorder %v6852_v5, 4 }
 0x725   :  { %8980 = vcosq.f32 %v6719_v27  ;;  %vm14184_vm1 = vcmp.le.f32.partialorder %v6527_v1, 0.7853982  ;;  %v6876_v12 = vsel %vm6874_vm2, %v6864_v2, 2102212464  ;;  %v6879_v3 = vsel %vm6871_vm15, %v6858_v55, %v6861_v23 }
 0x726   :  { %8982 = vsinq.f32 %v6719_v27  ;;  %v6595_v22 = vclz %v8385_v32  ;;  %v6855_v62 = vshrl.u32 %v15264_v28, %v6854_v38  ;;  %vm6873_vm3 = vcmp.lt.s32.totalorder %v6852_v5, 3 }
 0x727   :  { %v6880_v49 = vsel %vm6874_vm2, %v6867_v33, 920167782  ;;  %v6883_v34 = vsel %vm6871_vm15, %v6861_v23, %v6864_v2  ;;  %vm6872_vm0 = vcmp.lt.s32.totalorder %v6852_v5, 2  ;;  %v6884_v7 = vsel %vm6874_vm2, %v6870_v48, 1326507024 }
 0x728   :  { %v8386_v52 = vadd.s32 4294967294, %v6595_v22  ;;  %v6881_v63 = vsel %vm6873_vm3, %v6864_v2, %v6880_v49  ;;  %v6875_v53 = vsel %vm6871_vm15, %v6855_v62, %v6858_v55  ;;  %v6877_v58 = vsel %vm6873_vm3, %v6861_v23, %v6876_v12 }
 0x729   :  { %v6882_v50 = vsel %vm6872_vm0, %v6879_v3, %v6881_v63  ;;  %v6885_v1 = vsel %vm6873_vm3, %v6867_v33, %v6884_v7  ;;  %v6738_v31 = vand.u32 2139095040, %v14175_v42  ;;  %vm6723_vm5 = vweird.f32 %v13891_v57 }
 0x72a   :  { %vm8387_vm4 = vcmp.lt.s32.totalorder %v8386_v52, 0  ;;  %v6886_v8 = vsel %vm6872_vm0, %v6883_v34, %v6885_v1  ;;  %v14191_v30 = vmul.u32.u64.low %v6887_v10, %v6882_v50  ;;  %v14192_v47 = vmul.u32.u64.high %v6887_v10, %v6882_v50, %v14191_v30  ;;  %v15413_v50 = vld [vmem:[#allocation16_spill] sm:$0xff] }
 0x72b   :  { %v6598_v38 = vsel %vm8387_vm4, 0, %v8386_v52  ;;  %v14195_v46 = vmul.u32.u64.low %v6887_v10, %v6886_v8  ;;  %v14196_v19 = vmul.u32.u64.high %v6887_v10, %v6886_v8, %v14195_v46  ;;  %v6614_v15 = vsel %vm6529_vm13, %v6613_v11, %v14148_v60 }
 0x72c   :  { %v6599_v9 = vsub.s32 32, %v6598_v38  ;;  %v6603_v16 = vsub.s32 4294967266, %v6598_v38  ;;  %v6878_v51 = vsel %vm6872_vm0, %v6875_v53, %v6877_v58  ;;  %vm6726_vm6 = vcmp.lt.s32.totalorder %v14153_v40, 2  ;;  %v1175_v53 = vpop.permute.xlu1 %1174 }
 0x72d   :  { %vm6730_vm7 = vcmp.eq.s32.totalorder %v14153_v40, 2  ;;  %v6735_v25 = vand.u32 2147483647, %v14175_v42  ;;  %v6739_v26 = vshrl.u32 %v6738_v31, 23  ;;  %v6600_v43 = vshll.u32 %v14161_v45, %v6598_v38 }
 0x72e   :  { %v6601_v54 = vshrl.u32 %v6583_v24, %v6599_v9  ;;  %v6604_v37 = vadd.s32 127, %v6603_v16  ;;  %v6897_v0 = vadd.s32 1, %v14192_v47  ;;  %v6616_v61 = vsel %vm14184_vm1, 0, %v6614_v15 }
 0x72f   :  { %v8981_v14 = vpop.eup %8980  ;;  %v6894_v60 = vmul.u32 %v6887_v10, %v6878_v51  ;;  %vm6896_vm8 = vc.u32 %v14196_v19, %v14191_v30  ;;  %v8392_v5 = vadd.s32 4294967169, %v6739_v26  ;;  %v1353_v32 = vadd.f32 %v14151_v29, %v14146_v20 }
 0x730   :  { %v8983_v55 = vpop.eup %8982  ;;  %v6731_v23 = vxor.u32 2147483648, %v8981_v14  ;;  %v6602_v2 = vor.u32 %v6601_v54, %v6600_v43  ;;  %v6605_v18 = vshll.u32 %v6604_v37, 23  ;;  %v6898_v33 = vsel %vm6896_vm8, %v6897_v0, %v14192_v47 }
 0x731   :  { %v6728_v45 = vxor.u32 2147483648, %v8983_v55  ;;  %v6899_v24 = vadd.s32 %v6898_v33, %v6894_v60  ;;  %v6745_v27 = vadd.s32 1, %v8392_v5  ;;  %vm6727_vm10 = vcmp.eq.s32.totalorder %v14153_v40, 0 }
 0x732   :  { %v6732_v48 = vsel %vm6730_vm7, %v6731_v23, %v8983_v55  ;;  %v6606_v10 = vor.u32 4788187, %v6605_v18  ;;  %v6620_v11 = vadd.s32 3, %v6616_v61  ;;  %v6742_v3 = vand.u32 8388607, %v6735_v25 }
 0x733   :  { %v6729_v22 = vsel %vm6727_vm10, %v8981_v14, %v6728_v45  ;;  %v6900_v12 = vadd.s32 536870912, %v6899_v24  ;;  %vm6746_vm12 = vcmp.gt.s32.totalorder %v6745_v27, 0  ;;  %v6609_v34 = vcvt.s32.f32 %v6602_v2 }
 0x734   :  { %v6733_v62 = vsel %vm6726_vm6, %v6729_v22, %v6732_v48  ;;  %v6607_v49 = vand.u32 2147483647, %v6606_v10  ;;  %v6747_v52 = vsel %vm6746_vm12, %v6745_v27, 0  ;;  %v14228_v7 = vadd.f32 %v14072_v4, %v1353_v32 }
 0x735   :  { %v6734_v20 = vsel %vm6723_vm5, nan, %v6733_v62  ;;  %v14225_v29 = vshrl.u32 %v6900_v12, 30  ;;  %v6749_v63 = vand.u32 31, %v6747_v52  ;;  %v14232_v1 = vmul.f32 %v14140_v56, %v15413_v50 }
 0x736   :  { %8137 = vst [vmem:[#allocation8 + $0x190] sm:$0xff] %v6734_v20  ;;  %v6610_v58 = vmul.f32 %v6609_v34, %v6607_v49  ;;  %v14235_v38 = vand.u32 3, %v6620_v11  ;;  %v6743_v57 = vor.u32 8388608, %v6742_v3  ;;  %v14238_v46 = vmul.f32 %v13956_v36, %v1175_v53 }
 0x737   :  { %v6902_v40 = vshll.u32 %v14225_v29, 30  ;;  %v6750_v8 = vsub.s32 32, %v6749_v63  ;;  %v6748_v9 = vshrl.u32 %v6747_v52, 5  ;;  %v7050_v15 = vand.u32 2139095040, %v14228_v7 }
 0x738   :  { %v6611_v47 = vxor.u32 2147483648, %v6610_v58  ;;  %v6752_v26 = vshll.u32 %v15264_v28, %v6749_v63  ;;  %v6755_v14 = vshll.u32 %v15266_v39, %v6749_v63  ;;  %v6758_v61 = vshll.u32 %v15267_v41, %v6749_v63 }
 0x739   :  { %v14240_v31 = vsub.s32 %v6899_v24, %v6902_v40  ;;  %v6753_v16 = vshrl.u32 %v15266_v39, %v6750_v8  ;;  %v6756_v43 = vshrl.u32 %v15267_v41, %v6750_v8  ;;  %v6759_v54 = vshrl.u32 %v15268_v35, %v6750_v8 }
 0x73a   :  { %v6612_v51 = vsel %vm6529_vm13, %v6611_v47, %v6610_v58  ;;  %v6761_v5 = vshll.u32 %v15268_v35, %v6749_v63  ;;  %v6762_v55 = vshrl.u32 %v15269_v13, %v6750_v8  ;;  %v6764_v44 = vshll.u32 %v15269_v13, %v6749_v63 }
 0x73b   :  { %v6615_v37 = vsel %vm14184_vm1, %v13981_v17, %v6612_v51  ;;  %v6905_v0 = vsub.s32 0, %v14240_v31  ;;  %v6754_v60 = vor.u32 %v6753_v16, %v6752_v26  ;;  %v6757_v2 = vor.u32 %v6756_v43, %v6755_v14 }
 0x73c   :  { %8984 = vcosq.f32 %v6615_v37  ;;  %v6760_v18 = vor.u32 %v6759_v54, %v6758_v61  ;;  %v6763_v33 = vor.u32 %v6762_v55, %v6761_v5  ;;  %v6765_v45 = vshrl.u32 %v15270_v59, %v6750_v8 }
 0x73d   :  { %8986 = vsinq.f32 %v6615_v37  ;;  %v8397_v23 = vmin.u32 %v6905_v0, %v14240_v31  ;;  %v14260_v24 = vshll.u32 %v6743_v57, 8  ;;  %v6751_v32 = vshrl.u32 %v15264_v28, %v6750_v8 }
 0x73e   :  { %vm6767_vm9 = vcmp.lt.s32.totalorder %v6748_v9, 1  ;;  %v7051_v48 = vshrl.u32 %v7050_v15, 23  ;;  %vm6626_vm11 = vcmp.eq.s32.totalorder %v14235_v38, 2  ;;  %vm6841_vm14 = vcmp.lt.s32.totalorder %v14075_v6, 0 }
 0x73f   :  { %v6907_v27 = vclz %v8397_v23  ;;  %v6766_v10 = vor.u32 %v6765_v45, %v6764_v44  ;;  %vm6768_vm13 = vcmp.lt.s32.totalorder %v6748_v9, 2  ;;  %vm6769_vm15 = vcmp.lt.s32.totalorder %v6748_v9, 3 }
 0x740   :  { %vm6770_vm2 = vcmp.lt.s32.totalorder %v6748_v9, 4  ;;  %vm6623_vm1 = vcmp.eq.s32.totalorder %v14235_v38, 0  ;;  %v6775_v12 = vsel %vm6767_vm9, %v6754_v60, %v6757_v2  ;;  %vm6622_vm3 = vcmp.lt.s32.totalorder %v14235_v38, 2 }
 0x741   :  { %v8398_v11 = vadd.s32 4294967294, %v6907_v27  ;;  %v6772_v22 = vsel %vm6770_vm2, %v6760_v18, 2102212464  ;;  %v6776_v3 = vsel %vm6770_vm2, %v6763_v33, 920167782  ;;  %v6771_v62 = vsel %vm6767_vm9, %v6751_v32, %v6754_v60 }
 0x742   :  { %v6777_v49 = vsel %vm6769_vm15, %v6760_v18, %v6776_v3  ;;  %v6779_v34 = vsel %vm6767_vm9, %v6757_v2, %v6760_v18  ;;  %v6780_v52 = vsel %vm6770_vm2, %v6766_v10, 1326507024  ;;  %vm6619_vm0 = vweird.f32 %v13981_v17  ;;  %v1193_v10 = vpop.permute.xlu0 %1192 }
 0x743   :  { %vm14274_vm4 = vcmp.le.f32.partialorder %v6839_v21, 0.7853982  ;;  %vm8399_vm5 = vcmp.lt.s32.totalorder %v8398_v11, 0  ;;  %v6773_v63 = vsel %vm6769_vm15, %v6757_v2, %v6772_v22  ;;  %v6778_v53 = vsel %vm6768_vm13, %v6775_v12, %v6777_v49 }
 0x744   :  { %v6781_v58 = vsel %vm6769_vm15, %v6763_v33, %v6780_v52  ;;  %v6910_v50 = vsel %vm8399_vm5, 0, %v8398_v11  ;;  %v14283_v8 = vmul.u32.u64.low %v14260_v24, %v6778_v53  ;;  %v14284_v47 = vmul.u32.u64.high %v14260_v24, %v6778_v53, %v14283_v8 }
 0x745   :  { %v6782_v40 = vsel %vm6768_vm13, %v6779_v34, %v6781_v58  ;;  %v6895_v21 = vadd.s32 %v14191_v30, %v14196_v19  ;;  %v6911_v57 = vsub.s32 32, %v6910_v50  ;;  %v6915_v16 = vsub.s32 4294967266, %v6910_v50 }
 0x746   :  { %v6925_v15 = vsub.s32 4, %v14225_v29  ;;  %v8985_v51 = vpop.eup %8984  ;;  %v6774_v26 = vsel %vm6768_vm13, %v6771_v62, %v6773_v63  ;;  %v14292_v43 = vmul.u32.u64.low %v14260_v24, %v6782_v40  ;;  %v14293_v54 = vmul.u32.u64.high %v14260_v24, %v6782_v40, %v14292_v43  ;;  %v15416_v62 = vld [vmem:[#allocation21_spill] sm:$0xff] }
 0x747   :  { %v8404_v37 = vadd.s32 4294967169, %v7051_v48  ;;  %v8987_v0 = vpop.eup %8986  ;;  %v6627_v14 = vxor.u32 2147483648, %v8985_v51  ;;  %v6912_v61 = vshll.u32 %v14240_v31, %v6910_v50  ;;  %v6913_v60 = vshrl.u32 %v6895_v21, %v6911_v57 }
 0x748   :  { %v6916_v5 = vadd.s32 127, %v6915_v16  ;;  %v6624_v55 = vxor.u32 2147483648, %v8987_v0  ;;  %v6793_v30 = vadd.s32 1, %v14284_v47  ;;  %v7047_v19 = vand.u32 2147483647, %v14228_v7 }
 0x749   :  { %v7057_v23 = vadd.s32 1, %v8404_v37  ;;  %v6628_v9 = vsel %vm6626_vm11, %v6627_v14, %v8987_v0  ;;  %v6914_v2 = vor.u32 %v6913_v60, %v6912_v61  ;;  %v6926_v33 = vsel %vm6841_vm14, %v6925_v15, %v14225_v29 }
 0x74a   :  { %v6917_v18 = vshll.u32 %v6916_v5, 23  ;;  %v6625_v31 = vsel %vm6623_vm1, %v8985_v51, %v6624_v55  ;;  %v6790_v44 = vmul.u32 %v14260_v24, %v6774_v26  ;;  %vm6792_vm6 = vc.u32 %v14293_v54, %v14283_v8 }
 0x74b   :  { %vm7058_vm7 = vcmp.gt.s32.totalorder %v7057_v23, 0  ;;  %v6629_v45 = vsel %vm6622_vm3, %v6625_v31, %v6628_v9  ;;  %v6794_v32 = vsel %vm6792_vm6, %v6793_v30, %v14284_v47  ;;  %v1352_v48 = vadd.f32 %v14238_v46, %v14232_v1 }
 0x74c   :  { %v6918_v27 = vor.u32 4788187, %v6917_v18  ;;  %v6630_v29 = vsel %vm6619_vm0, nan, %v6629_v45  ;;  %v6928_v24 = vsel %vm14274_vm4, 0, %v6926_v33  ;;  %v6795_v11 = vadd.s32 %v6794_v32, %v6790_v44 }
 0x74d   :  { %v7059_v22 = vsel %vm7058_vm7, %v7057_v23, 0  ;;  %8136 = vst [vmem:[#allocation8 + $0x188] sm:$0xff] %v6630_v29  ;;  %v6921_v3 = vcvt.s32.f32 %v6914_v2  ;;  %v14319_v49 = vmul.f32 %v14140_v56, %v15416_v62  ;;  %v7054_v1 = vand.u32 8388607, %v7047_v19 }
 0x74e   :  { %v6919_v12 = vand.u32 2147483647, %v6918_v27  ;;  %v7061_v38 = vand.u32 31, %v7059_v22  ;;  %v6796_v34 = vadd.s32 536870912, %v6795_v11  ;;  %v14324_v17 = vmul.f32 %v13956_v36, %v1193_v10 }
 0x74f   :  { %v6932_v52 = vadd.s32 3, %v6928_v24  ;;  %v14327_v53 = vadd.f32 %v14072_v4, %v1352_v48  ;;  %v7060_v50 = vshrl.u32 %v7059_v22, 5  ;;  %vm6737_vm8 = vcmp.lt.s32.totalorder %v14175_v42, 0 }
 0x750   :  { %v6922_v46 = vmul.f32 %v6921_v3, %v6919_v12  ;;  %v7062_v63 = vsub.s32 32, %v7061_v38  ;;  %v6797_v58 = vshrl.u32 %v6796_v34, 30  ;;  %v7064_v40 = vshll.u32 %v15264_v28, %v7061_v38 }
 0x751   :  { %v7067_v47 = vshll.u32 %v15266_v39, %v7061_v38  ;;  %v7070_v16 = vshll.u32 %v15267_v41, %v7061_v38  ;;  %v7073_v26 = vshll.u32 %v15268_v35, %v7061_v38  ;;  %v7076_v14 = vshll.u32 %v15269_v13, %v7061_v38 }
 0x752   :  { %v6923_v21 = vxor.u32 2147483648, %v6922_v46  ;;  %v7065_v57 = vshrl.u32 %v15266_v39, %v7062_v63  ;;  %v7068_v36 = vshrl.u32 %v15267_v41, %v7062_v63  ;;  %v6798_v15 = vshll.u32 %v6797_v58, 30 }
 0x753   :  { %v7071_v51 = vshrl.u32 %v15268_v35, %v7062_v63  ;;  %v7074_v43 = vshrl.u32 %v15269_v13, %v7062_v63  ;;  %v7077_v61 = vshrl.u32 %v15270_v59, %v7062_v63  ;;  %v7055_v23 = vor.u32 8388608, %v7054_v1 }
 0x754   :  { %v6924_v37 = vsel %vm6841_vm14, %v6923_v21, %v6922_v46  ;;  %v7066_v0 = vor.u32 %v7065_v57, %v7064_v40  ;;  %v14345_v5 = vsub.s32 %v6795_v11, %v6798_v15  ;;  %v7069_v55 = vor.u32 %v7068_v36, %v7067_v47 }
 0x755   :  { %v6927_v60 = vsel %vm14274_vm4, %v14075_v6, %v6924_v37  ;;  %v7072_v30 = vor.u32 %v7071_v51, %v7070_v16  ;;  %v7075_v9 = vor.u32 %v7074_v43, %v7073_v26  ;;  %v7078_v2 = vor.u32 %v7077_v61, %v7076_v14 }
 0x756   :  { %8988 = vcosq.f32 %v6927_v60  ;;  %vm14349_vm10 = vcmp.le.f32.partialorder %v6735_v25, 0.7853982  ;;  %v6801_v33 = vsub.s32 0, %v14345_v5  ;;  %v6821_v31 = vsub.s32 4, %v6797_v58 }
 0x757   :  { %8990 = vsinq.f32 %v6927_v60  ;;  %v7063_v20 = vshrl.u32 %v15264_v28, %v7062_v63  ;;  %vm7079_vm12 = vcmp.lt.s32.totalorder %v7060_v50, 1  ;;  %vm7081_vm9 = vcmp.lt.s32.totalorder %v7060_v50, 3 }
 0x758   :  { %vm7082_vm11 = vcmp.lt.s32.totalorder %v7060_v50, 4  ;;  %v6946_v44 = vand.u32 2139095040, %v14327_v53  ;;  %v8393_v45 = vmin.u32 %v6801_v33, %v14345_v5  ;;  %v7087_v48 = vsel %vm7079_vm12, %v7066_v0, %v7069_v55 }
 0x759   :  { %v7083_v27 = vsel %vm7079_vm12, %v7063_v20, %v7066_v0  ;;  %v7084_v32 = vsel %vm7082_vm11, %v7072_v30, 2102212464  ;;  %v7088_v10 = vsel %vm7082_vm11, %v7075_v9, 920167782  ;;  %v7091_v29 = vsel %vm7079_vm12, %v7069_v55, %v7072_v30 }
 0x75a   :  { %v7085_v25 = vsel %vm7081_vm9, %v7069_v55, %v7084_v32  ;;  %v7092_v24 = vsel %vm7082_vm11, %v7078_v2, 1326507024  ;;  %v6933_v11 = vand.u32 3, %v6932_v52  ;;  %v6803_v22 = vclz %v8393_v45 }
 0x75b   :  { %v6822_v12 = vsel %vm6737_vm8, %v6821_v31, %v6797_v58  ;;  %v7095_v3 = vshll.u32 %v7055_v23, 8  ;;  %vm7080_vm14 = vcmp.lt.s32.totalorder %v7060_v50, 2  ;;  %v7089_v38 = vsel %vm7081_vm9, %v7072_v30, %v7088_v10 }
 0x75c   :  { %v7093_v62 = vsel %vm7081_vm9, %v7075_v9, %v7092_v24  ;;  %v6947_v34 = vshrl.u32 %v6946_v44, 23  ;;  %v8394_v1 = vadd.s32 4294967294, %v6803_v22  ;;  %v7086_v46 = vsel %vm7080_vm14, %v7083_v27, %v7085_v25 }
 0x75d   :  { %v7090_v63 = vsel %vm7080_vm14, %v7087_v48, %v7089_v38  ;;  %v7094_v40 = vsel %vm7080_vm14, %v7091_v29, %v7093_v62  ;;  %vm6935_vm13 = vcmp.eq.s32.totalorder %v6933_v11, 0  ;;  %vm6938_vm15 = vcmp.eq.s32.totalorder %v6933_v11, 2  ;;  %v15419_v29 = vld [vmem:[#allocation18_spill] sm:$0xff] }
 0x75e   :  { %v14362_v47 = vmul.u32.u64.low %v7095_v3, %v7094_v40  ;;  %v14363_v21 = vmul.u32.u64.high %v7095_v3, %v7094_v40, %v14362_v47  ;;  %v14365_v57 = vmul.u32.u64.low %v7095_v3, %v7090_v63  ;;  %v14366_v52 = vmul.u32.u64.high %v7095_v3, %v7090_v63, %v14365_v57 }
 0x75f   :  { %vm8395_vm2 = vcmp.lt.s32.totalorder %v8394_v1, 0  ;;  %v8400_v58 = vadd.s32 4294967169, %v6947_v34  ;;  %v6791_v50 = vadd.s32 %v14283_v8, %v14293_v54  ;;  %v6824_v15 = vsel %vm14349_vm10, 0, %v6822_v12 }
 0x760   :  { %v8989_v36 = vpop.eup %8988  ;;  %v6806_v16 = vsel %vm8395_vm2, 0, %v8394_v1  ;;  %v6943_v51 = vand.u32 2147483647, %v14327_v53  ;;  %v7102_v14 = vmul.u32 %v7095_v3, %v7086_v46  ;;  %vm7104_vm1 = vc.u32 %v14363_v21, %v14365_v57 }
 0x761   :  { %v8991_v26 = vpop.eup %8990  ;;  %v6939_v43 = vxor.u32 2147483648, %v8989_v36  ;;  %v6807_v37 = vsub.s32 32, %v6806_v16  ;;  %v6811_v0 = vsub.s32 4294967266, %v6806_v16  ;;  %v6808_v60 = vshll.u32 %v14345_v5, %v6806_v16 }
 0x762   :  { %v6936_v61 = vxor.u32 2147483648, %v8991_v26  ;;  %v7105_v55 = vadd.s32 1, %v14366_v52  ;;  %v6953_v23 = vadd.s32 1, %v8400_v58  ;;  %vm6931_vm3 = vweird.f32 %v14075_v6 }
 0x763   :  { %v6940_v8 = vsel %vm6938_vm15, %v6939_v43, %v8991_v26  ;;  %v6809_v54 = vshrl.u32 %v6791_v50, %v6807_v37  ;;  %v6812_v30 = vadd.s32 127, %v6811_v0  ;;  %vm6934_vm0 = vcmp.lt.s32.totalorder %v6933_v11, 2 }
 0x764   :  { %v6937_v9 = vsel %vm6935_vm13, %v8989_v36, %v6936_v61  ;;  %v7106_v2 = vsel %vm7104_vm1, %v7105_v55, %v14366_v52  ;;  %v6828_v45 = vadd.s32 3, %v6824_v15  ;;  %v6950_v27 = vand.u32 8388607, %v6943_v51 }
 0x765   :  { %v6941_v33 = vsel %vm6934_vm0, %v6937_v9, %v6940_v8  ;;  %v6810_v31 = vor.u32 %v6809_v54, %v6808_v60  ;;  %v6813_v5 = vshll.u32 %v6812_v30, 23  ;;  %v7107_v20 = vadd.s32 %v7106_v2, %v7102_v14 }
 0x766   :  { %v6942_v44 = vsel %vm6931_vm3, nan, %v6941_v33  ;;  %vm6954_vm4 = vcmp.gt.s32.totalorder %v6953_v23, 0  ;;  %v1355_v6 = vadd.f32 %v14324_v17, %v14319_v49  ;;  %v14388_v24 = vmul.f32 %v14140_v56, %v15419_v29 }
 0x767   :  { %8139 = vst [vmem:[#allocation8 + $0x1a0] sm:$0xff] %v6942_v44  ;;  %v6814_v32 = vor.u32 4788187, %v6813_v5  ;;  %v7108_v48 = vadd.s32 536870912, %v7107_v20  ;;  %v6955_v25 = vsel %vm6954_vm4, %v6953_v23, 0  ;;  %v6817_v22 = vcvt.s32.f32 %v6810_v31 }
 0x768   :  { %v6957_v10 = vand.u32 31, %v6955_v25  ;;  %v14390_v3 = vand.u32 3, %v6828_v45  ;;  %vm7049_vm5 = vcmp.lt.s32.totalorder %v14228_v7, 0  ;;  %v6951_v38 = vor.u32 8388608, %v6950_v27 }
 0x769   :  { %v6815_v11 = vand.u32 2147483647, %v6814_v32  ;;  %v7109_v12 = vshrl.u32 %v7108_v48, 30  ;;  %v14395_v49 = vadd.f32 %v14072_v4, %v1355_v6  ;;  %v6956_v15 = vshrl.u32 %v6955_v25, 5 }
 0x76a   :  { %v6958_v62 = vsub.s32 32, %v6957_v10  ;;  %v6960_v46 = vshll.u32 %v15264_v28, %v6957_v10  ;;  %v6963_v63 = vshll.u32 %v15266_v39, %v6957_v10  ;;  %v6966_v36 = vshll.u32 %v15267_v41, %v6957_v10 }
 0x76b   :  { %v6818_v34 = vmul.f32 %v6817_v22, %v6815_v11  ;;  %v7110_v1 = vshll.u32 %v7109_v12, 30  ;;  %v7133_v16 = vsub.s32 4, %v7109_v12  ;;  %v6969_v4 = vshll.u32 %v15268_v35, %v6957_v10 }
 0x76c   :  { %v6961_v17 = vshrl.u32 %v15266_v39, %v6958_v62  ;;  %v6964_v40 = vshrl.u32 %v15267_v41, %v6958_v62  ;;  %v6967_v47 = vshrl.u32 %v15268_v35, %v6958_v62  ;;  %v6970_v50 = vshrl.u32 %v15269_v13, %v6958_v62 }
 0x76d   :  { %v6819_v52 = vxor.u32 2147483648, %v6818_v34  ;;  %v14401_v58 = vsub.s32 %v7107_v20, %v7110_v1  ;;  %vm14414_vm6 = vcmp.le.f32.partialorder %v7047_v19, 0.7853982  ;;  %v6972_v8 = vshll.u32 %v15269_v13, %v6957_v10 }
 0x76e   :  { %v6962_v26 = vor.u32 %v6961_v17, %v6960_v46  ;;  %v6965_v0 = vor.u32 %v6964_v40, %v6963_v63  ;;  %v6968_v14 = vor.u32 %v6967_v47, %v6966_v36  ;;  %v6971_v55 = vor.u32 %v6970_v50, %v6969_v4 }
 0x76f   :  { %v6820_v43 = vsel %vm6737_vm8, %v6819_v52, %v6818_v34  ;;  %v7113_v37 = vsub.s32 0, %v14401_v58  ;;  %v6973_v54 = vshrl.u32 %v15270_v59, %v6958_v62  ;;  %v14421_v23 = vshll.u32 %v6951_v38, 8 }
 0x770   :  { %v6823_v61 = vsel %vm14349_vm10, %v14175_v42, %v6820_v43  ;;  %v7258_v9 = vand.u32 2139095040, %v14395_v49  ;;  %v7134_v18 = vsel %vm7049_vm5, %v7133_v16, %v7109_v12  ;;  %v6959_v19 = vshrl.u32 %v15264_v28, %v6958_v62 }
 0x771   :  { %8992 = vcosq.f32 %v6823_v61  ;;  %v8405_v30 = vmin.u32 %v7113_v37, %v14401_v58  ;;  %v6974_v2 = vor.u32 %v6973_v54, %v6972_v8  ;;  %vm6975_vm7 = vcmp.lt.s32.totalorder %v6956_v15, 1 }
 0x772   :  { %8994 = vsinq.f32 %v6823_v61  ;;  %vm6976_vm8 = vcmp.lt.s32.totalorder %v6956_v15, 2  ;;  %vm6978_vm10 = vcmp.lt.s32.totalorder %v6956_v15, 4  ;;  %vm6977_vm12 = vcmp.lt.s32.totalorder %v6956_v15, 3 }
 0x773   :  { %v7115_v33 = vclz %v8405_v30  ;;  %v6980_v31 = vsel %vm6978_vm10, %v6968_v14, 2102212464  ;;  %v6983_v5 = vsel %vm6975_vm7, %v6962_v26, %v6965_v0  ;;  %v6984_v20 = vsel %vm6978_vm10, %v6971_v55, 920167782  ;;  %v14459_v30 = vld [vmem:[%s15203_s3 + $0x1] ss:$0 sm:$0xff] }
 0x774   :  { %vm6834_vm9 = vcmp.eq.s32.totalorder %v14390_v3, 2  ;;  %v6979_v45 = vsel %vm6975_vm7, %v6959_v19, %v6962_v26  ;;  %v6985_v27 = vsel %vm6977_vm12, %v6968_v14, %v6984_v20  ;;  %v6987_v32 = vsel %vm6975_vm7, %v6965_v0, %v6968_v14 }
 0x775   :  { %v8406_v44 = vadd.s32 4294967294, %v7115_v33  ;;  %vm6831_vm11 = vcmp.eq.s32.totalorder %v14390_v3, 0  ;;  %v6981_v48 = vsel %vm6977_vm12, %v6965_v0, %v6980_v31  ;;  %v6986_v25 = vsel %vm6976_vm8, %v6983_v5, %v6985_v27 }
 0x776   :  { %v6988_v6 = vsel %vm6978_vm10, %v6974_v2, 1326507024  ;;  %v7259_v10 = vshrl.u32 %v7258_v9, 23  ;;  %v14431_v11 = vmul.u32.u64.low %v14421_v23, %v6986_v25  ;;  %v14432_v22 = vmul.u32.u64.high %v14421_v23, %v6986_v25, %v14431_v11 }
 0x777   :  { %vm8407_vm14 = vcmp.lt.s32.totalorder %v8406_v44, 0  ;;  %v6989_v29 = vsel %vm6977_vm12, %v6971_v55, %v6988_v6  ;;  %vm6827_vm13 = vweird.f32 %v14175_v42  ;;  %v7255_v62 = vand.u32 2147483647, %v14395_v49 }
 0x778   :  { %v7118_v12 = vsel %vm8407_vm14, 0, %v8406_v44  ;;  %v6990_v38 = vsel %vm6976_vm8, %v6987_v32, %v6989_v29  ;;  %v8412_v34 = vadd.s32 4294967169, %v7259_v10  ;;  %v7103_v1 = vadd.s32 %v14365_v57, %v14363_v21  ;;  %v1186_v21 = vpop.permute.xlu1 %1185 }
 0x779   :  { %v7119_v46 = vsub.s32 32, %v7118_v12  ;;  %v7123_v17 = vsub.s32 4294967266, %v7118_v12  ;;  %v7136_v63 = vsel %vm14414_vm6, 0, %v7134_v18  ;;  %v6982_v40 = vsel %vm6976_vm8, %v6979_v45, %v6981_v48 }
 0x77a   :  { %v14444_v47 = vmul.u32.u64.low %v14421_v23, %v6990_v38  ;;  %v14445_v52 = vmul.u32.u64.high %v14421_v23, %v6990_v38, %v14444_v47  ;;  %v7265_v36 = vadd.s32 1, %v8412_v34  ;;  %v7120_v16 = vshll.u32 %v14401_v58, %v7118_v12 }
 0x77b   :  { %v8993_v50 = vpop.eup %8992  ;;  %v7121_v26 = vshrl.u32 %v7103_v1, %v7119_v46  ;;  %v7124_v4 = vadd.s32 127, %v7123_v17  ;;  %v7001_v43 = vadd.s32 1, %v14432_v22  ;;  %v7140_v0 = vadd.s32 3, %v7136_v63 }
 0x77c   :  { %v8995_v57 = vpop.eup %8994  ;;  %v6835_v37 = vxor.u32 2147483648, %v8993_v50  ;;  %v7262_v15 = vand.u32 8388607, %v7255_v62  ;;  %vm7266_vm15 = vcmp.gt.s32.totalorder %v7265_v36, 0  ;;  %v6998_v58 = vmul.u32 %v14421_v23, %v6982_v40 }
 0x77d   :  { %v6832_v14 = vxor.u32 2147483648, %v8995_v57  ;;  %v7122_v61 = vor.u32 %v7121_v26, %v7120_v16  ;;  %v7125_v55 = vshll.u32 %v7124_v4, 23  ;;  %v7267_v8 = vsel %vm7266_vm15, %v7265_v36, 0 }
 0x77e   :  { %v6836_v54 = vsel %vm6834_vm9, %v6835_v37, %v8995_v57  ;;  %vm7000_vm2 = vc.u32 %v14445_v52, %v14431_v11  ;;  %v1290_v9 = vmul.f32 %v14459_v30, %v1186_v21  ;;  %vm6830_vm1 = vcmp.lt.s32.totalorder %v14390_v3, 2  ;;  %v14493_v37 = vld [vmem:[%s15203_s3 + $0x2] ss:$0 sm:$0xff] }
 0x77f   :  { %v6833_v18 = vsel %vm6831_vm11, %v8993_v50, %v6832_v14  ;;  %v7126_v19 = vor.u32 4788187, %v7125_v55  ;;  %v7002_v2 = vsel %vm7000_vm2, %v7001_v43, %v14432_v22  ;;  %v14466_v23 = vand.u32 3, %v7140_v0 }
 0x780   :  { %v6837_v33 = vsel %vm6830_vm1, %v6833_v18, %v6836_v54  ;;  %v7003_v31 = vadd.s32 %v7002_v2, %v6998_v58  ;;  %v7269_v5 = vand.u32 31, %v7267_v8  ;;  %v7129_v45 = vcvt.s32.f32 %v7122_v61 }
 0x781   :  { %v6838_v20 = vsel %vm6827_vm13, nan, %v6837_v33  ;;  %v7127_v44 = vand.u32 2147483647, %v7126_v19  ;;  %v7263_v27 = vor.u32 8388608, %v7262_v15  ;;  %v7268_v48 = vshrl.u32 %v7267_v8, 5 }
 0x782   :  { %8138 = vst [vmem:[#allocation8 + $0x198] sm:$0xff] %v6838_v20  ;;  %v7004_v32 = vadd.s32 536870912, %v7003_v31  ;;  %v7270_v25 = vsub.s32 32, %v7269_v5  ;;  %v1354_v3 = vadd.f32 %v1290_v9, %v14388_v24  ;;  %v7272_v10 = vshll.u32 %v15264_v28, %v7269_v5 }
 0x783   :  { %v7130_v6 = vmul.f32 %v7129_v45, %v7127_v44  ;;  %v7275_v29 = vshll.u32 %v15266_v39, %v7269_v5  ;;  %v7278_v22 = vshll.u32 %v15267_v41, %v7269_v5  ;;  %v7281_v34 = vshll.u32 %v15268_v35, %v7269_v5  ;;  %v1204_v45 = vpop.permute.xlu0 %1203 }
 0x784   :  { %v7005_v12 = vshrl.u32 %v7004_v32, 30  ;;  %v7273_v42 = vshrl.u32 %v15266_v39, %v7270_v25  ;;  %v7276_v38 = vshrl.u32 %v15267_v41, %v7270_v25  ;;  %v7279_v46 = vshrl.u32 %v15268_v35, %v7270_v25 }
 0x785   :  { %v7131_v1 = vxor.u32 2147483648, %v7130_v6  ;;  %v7282_v17 = vshrl.u32 %v15269_v13, %v7270_v25  ;;  %v7285_v24 = vshrl.u32 %v15270_v59, %v7270_v25  ;;  %v7284_v47 = vshll.u32 %v15269_v13, %v7269_v5  ;;  %v15422_v5 = vld [vmem:[#allocation23_spill] sm:$0xff] }
 0x786   :  { %v7006_v63 = vshll.u32 %v7005_v12, 30  ;;  %v7274_v40 = vor.u32 %v7273_v42, %v7272_v10  ;;  %v14481_v36 = vshll.u32 %v7263_v27, 8  ;;  %v7277_v16 = vor.u32 %v7276_v38, %v7275_v29 }
 0x787   :  { %v7132_v50 = vsel %vm7049_vm5, %v7131_v1, %v7130_v6  ;;  %v7280_v26 = vor.u32 %v7279_v46, %v7278_v22  ;;  %v7283_v4 = vor.u32 %v7282_v17, %v7281_v34  ;;  %v7286_v57 = vor.u32 %v7285_v24, %v7284_v47 }
 0x788   :  { %v7135_v43 = vsel %vm14414_vm6, %v14228_v7, %v7132_v50  ;;  %v14488_v21 = vsub.s32 %v7003_v31, %v7006_v63  ;;  %v14496_v0 = vadd.f32 %v14493_v37, %v1354_v3  ;;  %vm7287_vm3 = vcmp.lt.s32.totalorder %v7268_v48, 1 }
 0x789   :  { %8996 = vcosq.f32 %v7135_v43  ;;  %vm7288_vm0 = vcmp.lt.s32.totalorder %v7268_v48, 2  ;;  %vm7290_vm4 = vcmp.lt.s32.totalorder %v7268_v48, 4  ;;  %vm7289_vm5 = vcmp.lt.s32.totalorder %v7268_v48, 3 }
 0x78a   :  { %8998 = vsinq.f32 %v7135_v43  ;;  %v7009_v15 = vsub.s32 0, %v14488_v21  ;;  %v7292_v60 = vsel %vm7290_vm4, %v7280_v26, 2102212464  ;;  %v7029_v14 = vsub.s32 4, %v7005_v12 }
 0x78b   :  { %v7271_v61 = vshrl.u32 %v15264_v28, %v7270_v25  ;;  %v7295_v55 = vsel %vm7287_vm3, %v7274_v40, %v7277_v16  ;;  %v7296_v8 = vsel %vm7290_vm4, %v7283_v4, 920167782  ;;  %v7299_v9 = vsel %vm7287_vm3, %v7277_v16, %v7280_v26 }
 0x78c   :  { %v8401_v54 = vmin.u32 %v7009_v15, %v14488_v21  ;;  %v7297_v58 = vsel %vm7289_vm5, %v7280_v26, %v7296_v8  ;;  %v7300_v18 = vsel %vm7290_vm4, %v7286_v57, 1326507024  ;;  %v7293_v2 = vsel %vm7289_vm5, %v7277_v16, %v7292_v60  ;;  %v1197_v26 = vpop.permute.xlu1 %1196 }
 0x78d   :  { %v7291_v19 = vsel %vm7287_vm3, %v7271_v61, %v7274_v40  ;;  %v7298_v33 = vsel %vm7288_vm0, %v7295_v55, %v7297_v58  ;;  %v7301_v31 = vsel %vm7289_vm5, %v7283_v4, %v7300_v18  ;;  %v873_v20 = vmul.f32 %v14140_v56, %v15422_v5  ;;  %v14553_v5 = vld [vmem:[%s15203_s3] ss:$0 sm:$0xff] }
 0x78e   :  { %vm6945_vm6 = vcmp.lt.s32.totalorder %v14327_v53, 0  ;;  %v7011_v44 = vclz %v8401_v54  ;;  %v7302_v32 = vsel %vm7288_vm0, %v7299_v9, %v7301_v31  ;;  %vm7139_vm7 = vweird.f32 %v14228_v7 }
 0x78f   :  { %v7030_v27 = vsel %vm6945_vm6, %v7029_v14, %v7005_v12  ;;  %v14509_v25 = vmul.u32.u64.low %v14481_v36, %v7298_v33  ;;  %v14510_v3 = vmul.u32.u64.high %v14481_v36, %v7298_v33, %v14509_v25  ;;  %v7294_v10 = vsel %vm7288_vm0, %v7291_v19, %v7293_v2 }
 0x790   :  { %v8402_v6 = vadd.s32 4294967294, %v7011_v44  ;;  %v14516_v56 = vmul.u32.u64.low %v14481_v36, %v7302_v32  ;;  %v14517_v29 = vmul.u32.u64.high %v14481_v36, %v7302_v32, %v14516_v56  ;;  %vm7143_vm8 = vcmp.eq.s32.totalorder %v14466_v23, 0  ;;  %v15425_v44 = vld [vmem:[#allocation20_spill] sm:$0xff] }
 0x791   :  { %vm14522_vm10 = vcmp.le.f32.partialorder %v6943_v51, 0.7853982  ;;  %v7154_v12 = vand.u32 2139095040, %v14496_v0  ;;  %v1293_v42 = vmul.f32 %v14459_v30, %v1204_v45  ;;  %vm7146_vm12 = vcmp.eq.s32.totalorder %v14466_v23, 2 }
 0x792   :  { %v6999_v48 = vadd.s32 %v14431_v11, %v14445_v52  ;;  %vm8403_vm9 = vcmp.lt.s32.totalorder %v8402_v6, 0  ;;  %v7032_v38 = vsel %vm14522_vm10, 0, %v7030_v27  ;;  %v7310_v51 = vmul.u32 %v14481_v36, %v7294_v10 }
 0x793   :  { %v8997_v34 = vpop.eup %8996  ;;  %v7014_v1 = vsel %vm8403_vm9, 0, %v8402_v6  ;;  %v7313_v46 = vadd.s32 1, %v14510_v3  ;;  %v7155_v17 = vshrl.u32 %v7154_v12, 23  ;;  %v7151_v50 = vand.u32 2147483647, %v14496_v0 }
 0x794   :  { %v8999_v24 = vpop.eup %8998  ;;  %v7147_v63 = vxor.u32 2147483648, %v8997_v34  ;;  %v7015_v40 = vsub.s32 32, %v7014_v1  ;;  %v7019_v47 = vsub.s32 4294967266, %v7014_v1  ;;  %v7016_v11 = vshll.u32 %v14488_v21, %v7014_v1 }
 0x795   :  { %v7144_v16 = vxor.u32 2147483648, %v8999_v24  ;;  %vm7312_vm11 = vc.u32 %v14517_v29, %v14509_v25  ;;  %v8408_v52 = vadd.s32 4294967169, %v7155_v17  ;;  %vm7142_vm14 = vcmp.lt.s32.totalorder %v14466_v23, 2 }
 0x796   :  { %v7148_v36 = vsel %vm7146_vm12, %v7147_v63, %v8999_v24  ;;  %v7017_v4 = vshrl.u32 %v6999_v48, %v7015_v40  ;;  %v7020_v43 = vadd.s32 127, %v7019_v47  ;;  %v7314_v57 = vsel %vm7312_vm11, %v7313_v46, %v14510_v3 }
 0x797   :  { %v7145_v15 = vsel %vm7143_vm8, %v8997_v34, %v7144_v16  ;;  %v7315_v60 = vadd.s32 %v7314_v57, %v7310_v51  ;;  %v7161_v14 = vadd.s32 1, %v8408_v52  ;;  %v1292_v8 = vmul.f32 %v14459_v30, %v1197_v26 }
 0x798   :  { %v7149_v21 = vsel %vm7142_vm14, %v7145_v15, %v7148_v36  ;;  %v7018_v61 = vor.u32 %v7017_v4, %v7016_v11  ;;  %v7021_v55 = vshll.u32 %v7020_v43, 23  ;;  %v7036_v58 = vadd.s32 3, %v7032_v38 }
 0x799   :  { %v7150_v54 = vsel %vm7139_vm7, nan, %v7149_v21  ;;  %v7316_v9 = vadd.s32 536870912, %v7315_v60  ;;  %vm7162_vm13 = vcmp.gt.s32.totalorder %v7161_v14, 0  ;;  %v7158_v19 = vand.u32 8388607, %v7151_v50 }
 0x79a   :  { %8141 = vst [vmem:[#allocation8 + $0x1b0] sm:$0xff] %v7150_v54  ;;  %v7022_v18 = vor.u32 4788187, %v7021_v55  ;;  %v7163_v23 = vsel %vm7162_vm13, %v7161_v14, 0  ;;  %v1357_v2 = vadd.f32 %v1293_v42, %v873_v20  ;;  %v872_v7 = vmul.f32 %v14553_v5, %v15425_v44 }
 0x79b   :  { %v7317_v33 = vshrl.u32 %v7316_v9, 30  ;;  %v7165_v31 = vand.u32 31, %v7163_v23  ;;  %v7025_v27 = vcvt.s32.f32 %v7018_v61  ;;  %v14557_v32 = vand.u32 3, %v7036_v58 }
 0x79c   :  { %v7023_v45 = vand.u32 2147483647, %v7022_v18  ;;  %vm7257_vm15 = vcmp.lt.s32.totalorder %v14395_v49, 0  ;;  %v7159_v20 = vor.u32 8388608, %v7158_v19  ;;  %v14561_v56 = vadd.f32 %v14493_v37, %v1357_v2 }
 0x79d   :  { %v7318_v3 = vshll.u32 %v7317_v33, 30  ;;  %v7166_v6 = vsub.s32 32, %v7165_v31  ;;  %v14563_v12 = vadd.f32 %v1292_v8, %v872_v7  ;;  %v7311_v42 = vadd.s32 %v14509_v25, %v14517_v29 }
 0x79e   :  { %v7026_v10 = vmul.f32 %v7025_v27, %v7023_v45  ;;  %v14569_v38 = vshrl.u32 %v7163_v23, 5  ;;  %v7168_v51 = vshll.u32 %v15264_v28, %v7165_v31  ;;  %v7171_v63 = vshll.u32 %v15266_v39, %v7165_v31 }
 0x79f   :  { %v14567_v48 = vsub.s32 %v7315_v60, %v7318_v3  ;;  %v7169_v34 = vshrl.u32 %v15266_v39, %v7166_v6  ;;  %v7172_v46 = vshrl.u32 %v15267_v41, %v7166_v6  ;;  %v7175_v17 = vshrl.u32 %v15268_v35, %v7166_v6 }
 0x7a0   :  { %v7027_v1 = vxor.u32 2147483648, %v7026_v10  ;;  %v7174_v40 = vshll.u32 %v15267_v41, %v7165_v31  ;;  %v7178_v25 = vshrl.u32 %v15269_v13, %v7166_v6  ;;  %v7341_v47 = vsub.s32 4, %v7317_v33 }
 0x7a1   :  { %v7321_v24 = vsub.s32 0, %v14567_v48  ;;  %v7170_v16 = vor.u32 %v7169_v34, %v7168_v51  ;;  %v7177_v11 = vshll.u32 %v15268_v35, %v7165_v31  ;;  %v7173_v36 = vor.u32 %v7172_v46, %v7171_v63 }
 0x7a2   :  { %v7028_v29 = vsel %vm6945_vm6, %v7027_v1, %v7026_v10  ;;  %v7176_v4 = vor.u32 %v7175_v17, %v7174_v40  ;;  %v7180_v57 = vshll.u32 %v15269_v13, %v7165_v31  ;;  %v7181_v15 = vshrl.u32 %v15270_v59, %v7166_v6 }
 0x7a3   :  { %v7031_v52 = vsel %vm14522_vm10, %v14327_v53, %v7028_v29  ;;  %v8413_v26 = vmin.u32 %v7321_v24, %v14567_v48  ;;  %v7179_v43 = vor.u32 %v7178_v25, %v7177_v11  ;;  %vm14590_vm2 = vcmp.le.f32.partialorder %v7255_v62, 0.7853982 }
 0x7a4   :  { %9000 = vcosq.f32 %v7031_v52  ;;  %v14594_v22 = vshll.u32 %v7159_v20, 8  ;;  %v7466_v21 = vand.u32 2139095040, %v14561_v56  ;;  %v7342_v61 = vsel %vm7257_vm15, %v7341_v47, %v7317_v33 }
 0x7a5   :  { %9002 = vsinq.f32 %v7031_v52  ;;  %v7323_v14 = vclz %v8413_v26  ;;  %v7167_v55 = vshrl.u32 %v15264_v28, %v7166_v6  ;;  %v7182_v8 = vor.u32 %v7181_v15, %v7180_v57 }
 0x7a6   :  { %vm7183_vm1 = vcmp.lt.s32.totalorder %v14569_v38, 1  ;;  %vm7185_vm3 = vcmp.lt.s32.totalorder %v14569_v38, 3  ;;  %vm7186_vm0 = vcmp.lt.s32.totalorder %v14569_v38, 4  ;;  %vm7039_vm4 = vcmp.eq.s32.totalorder %v14557_v32, 0 }
 0x7a7   :  { %v8414_v54 = vadd.s32 4294967294, %v7323_v14  ;;  %v7191_v62 = vsel %vm7183_vm1, %v7170_v16, %v7173_v36  ;;  %v7188_v58 = vsel %vm7186_vm0, %v7176_v4, 2102212464  ;;  %v7192_v9 = vsel %vm7186_vm0, %v7179_v43, 920167782 }
 0x7a8   :  { %v7195_v18 = vsel %vm7183_vm1, %v7173_v36, %v7176_v4  ;;  %v7196_v19 = vsel %vm7186_vm0, %v7182_v8, 1326507024  ;;  %vm7184_vm6 = vcmp.lt.s32.totalorder %v14569_v38, 2  ;;  %v7193_v23 = vsel %vm7185_vm3, %v7176_v4, %v7192_v9 }
 0x7a9   :  { %vm8415_vm5 = vcmp.lt.s32.totalorder %v8414_v54, 0  ;;  %v7197_v2 = vsel %vm7185_vm3, %v7179_v43, %v7196_v19  ;;  %vm7038_vm7 = vcmp.lt.s32.totalorder %v14557_v32, 2  ;;  %v7187_v31 = vsel %vm7183_vm1, %v7167_v55, %v7170_v16 }
 0x7aa   :  { %v7326_v33 = vsel %vm8415_vm5, 0, %v8414_v54  ;;  %v7194_v44 = vsel %vm7184_vm6, %v7191_v62, %v7193_v23  ;;  %v7198_v7 = vsel %vm7184_vm6, %v7195_v18, %v7197_v2  ;;  %vm7035_vm8 = vweird.f32 %v14327_v53 }
 0x7ab   :  { %v7327_v45 = vsub.s32 32, %v7326_v33  ;;  %v7331_v27 = vsub.s32 4294967266, %v7326_v33  ;;  %v7189_v3 = vsel %vm7185_vm3, %v7173_v36, %v7188_v58  ;;  %v7467_v6 = vshrl.u32 %v7466_v21, 23 }
 0x7ac   :  { %v14624_v10 = vmul.u32.u64.low %v14594_v22, %v7198_v7  ;;  %v14625_v20 = vmul.u32.u64.high %v14594_v22, %v7198_v7, %v14624_v10  ;;  %v14628_v34 = vmul.u32.u64.low %v14594_v22, %v7194_v44  ;;  %v14629_v1 = vmul.u32.u64.high %v14594_v22, %v7194_v44, %v14628_v34 }
 0x7ad   :  { %v7328_v51 = vshll.u32 %v14567_v48, %v7326_v33  ;;  %v7329_v46 = vshrl.u32 %v7311_v42, %v7327_v45  ;;  %v7332_v17 = vadd.s32 127, %v7331_v27  ;;  %v8420_v24 = vadd.s32 4294967169, %v7467_v6 }
 0x7ae   :  { %v9001_v63 = vpop.eup %9000  ;;  %vm7042_vm10 = vcmp.eq.s32.totalorder %v14557_v32, 2  ;;  %v7344_v40 = vsel %vm14590_vm2, 0, %v7342_v61  ;;  %v7190_v25 = vsel %vm7184_vm6, %v7187_v31, %v7189_v3  ;;  %v7463_v29 = vand.u32 2147483647, %v14561_v56  ;;  %v1215_v61 = vpop.permute.xlu0 %1214 }
 0x7af   :  { %v9003_v47 = vpop.eup %9002  ;;  %v7043_v16 = vxor.u32 2147483648, %v9001_v63  ;;  %v7330_v11 = vor.u32 %v7329_v46, %v7328_v51  ;;  %v7333_v52 = vshll.u32 %v7332_v17, 23  ;;  %v7473_v26 = vadd.s32 1, %v8420_v24 }
 0x7b0   :  { %v7040_v48 = vxor.u32 2147483648, %v9003_v47  ;;  %vm7208_vm12 = vc.u32 %v14625_v20, %v14628_v34  ;;  %v7209_v42 = vadd.s32 1, %v14629_v1  ;;  %v14644_v36 = vadd.f32 %v14493_v37, %v14563_v12 }
 0x7b1   :  { %v7044_v4 = vsel %vm7042_vm10, %v7043_v16, %v9003_v47  ;;  %v7334_v38 = vor.u32 4788187, %v7333_v52  ;;  %v7206_v43 = vmul.u32 %v14594_v22, %v7190_v25  ;;  %vm7474_vm9 = vcmp.gt.s32.totalorder %v7473_v26, 0 }
 0x7b2   :  { %v7041_v57 = vsel %vm7039_vm4, %v9001_v63, %v7040_v48  ;;  %v7348_v15 = vadd.s32 3, %v7344_v40  ;;  %v7210_v14 = vsel %vm7208_vm12, %v7209_v42, %v14629_v1  ;;  %v7475_v21 = vsel %vm7474_vm9, %v7473_v26, 0 }
 0x7b3   :  { %v7045_v55 = vsel %vm7038_vm7, %v7041_v57, %v7044_v4  ;;  %v7335_v8 = vand.u32 2147483647, %v7334_v38  ;;  %v7337_v54 = vcvt.s32.f32 %v7330_v11  ;;  %v7211_v12 = vadd.s32 %v7210_v14, %v7206_v43 }
 0x7b4   :  { %v7046_v62 = vsel %vm7035_vm8, nan, %v7045_v55  ;;  %v7477_v58 = vand.u32 31, %v7475_v21  ;;  %v7470_v18 = vand.u32 8388607, %v7463_v29  ;;  %v14657_v19 = vmul.f32 %v14459_v30, %v1215_v61 }
 0x7b5   :  { %8140 = vst [vmem:[#allocation8 + $0x1a8] sm:$0xff] %v7046_v62  ;;  %v7338_v22 = vmul.f32 %v7337_v54, %v7335_v8  ;;  %v7212_v9 = vadd.s32 536870912, %v7211_v12  ;;  %v14659_v23 = vand.u32 3, %v7348_v15  ;;  %v7476_v32 = vshrl.u32 %v7475_v21, 5 }
 0x7b6   :  { %v7478_v2 = vsub.s32 32, %v7477_v58  ;;  %v7362_v33 = vand.u32 2139095040, %v14644_v36  ;;  %v7480_v53 = vshll.u32 %v15264_v28, %v7477_v58  ;;  %v7483_v7 = vshll.u32 %v15266_v39, %v7477_v58 }
 0x7b7   :  { %v7339_v31 = vxor.u32 2147483648, %v7338_v22  ;;  %v14662_v44 = vshrl.u32 %v7212_v9, 30  ;;  %v7486_v3 = vshll.u32 %v15267_v41, %v7477_v58  ;;  %v7489_v51 = vshll.u32 %v15268_v35, %v7477_v58 }
 0x7b8   :  { %v7481_v45 = vshrl.u32 %v15266_v39, %v7478_v2  ;;  %v7484_v27 = vshrl.u32 %v15267_v41, %v7478_v2  ;;  %v7487_v6 = vshrl.u32 %v15268_v35, %v7478_v2  ;;  %v7490_v46 = vshrl.u32 %v15269_v13, %v7478_v2 }
 0x7b9   :  { %v7340_v10 = vsel %vm7257_vm15, %v7339_v31, %v7338_v22  ;;  %v7214_v1 = vshll.u32 %v14662_v44, 30  ;;  %v7471_v47 = vor.u32 8388608, %v7470_v18  ;;  %v7492_v11 = vshll.u32 %v15269_v13, %v7477_v58 }
 0x7ba   :  { %v7343_v17 = vsel %vm14590_vm2, %v14395_v49, %v7340_v10  ;;  %v7482_v24 = vor.u32 %v7481_v45, %v7480_v53  ;;  %v7485_v63 = vor.u32 %v7484_v27, %v7483_v7  ;;  %v7488_v40 = vor.u32 %v7487_v6, %v7486_v3 }
 0x7bb   :  { %9004 = vcosq.f32 %v7343_v17  ;;  %v14678_v25 = vsub.s32 %v7211_v12, %v7214_v1  ;;  %v7491_v16 = vor.u32 %v7490_v46, %v7489_v51  ;;  %v7493_v52 = vshrl.u32 %v15270_v59, %v7478_v2 }
 0x7bc   :  { %9006 = vsinq.f32 %v7343_v17  ;;  %v7363_v26 = vshrl.u32 %v7362_v33, 23  ;;  %vm7153_vm11 = vcmp.lt.s32.totalorder %v14496_v0, 0  ;;  %vm7495_vm14 = vcmp.lt.s32.totalorder %v7476_v32, 1 }
 0x7bd   :  { %v7217_v48 = vsub.s32 0, %v14678_v25  ;;  %vm7497_vm13 = vcmp.lt.s32.totalorder %v7476_v32, 3  ;;  %vm7498_vm15 = vcmp.lt.s32.totalorder %v7476_v32, 4  ;;  %v7494_v60 = vor.u32 %v7493_v52, %v7492_v11 }
 0x7be   :  { %v7500_v42 = vsel %vm7498_vm15, %v7488_v40, 2102212464  ;;  %v7503_v4 = vsel %vm7495_vm14, %v7482_v24, %v7485_v63  ;;  %v7504_v38 = vsel %vm7498_vm15, %v7491_v16, 920167782  ;;  %v7479_v57 = vshrl.u32 %v15264_v28, %v7478_v2 }
 0x7bf   :  { %v8409_v43 = vmin.u32 %v7217_v48, %v14678_v25  ;;  %vm7496_vm2 = vcmp.lt.s32.totalorder %v7476_v32, 2  ;;  %v7505_v15 = vsel %vm7497_vm13, %v7488_v40, %v7504_v38  ;;  %v7507_v21 = vsel %vm7495_vm14, %v7485_v63, %v7488_v40 }
 0x7c0   :  { %v7506_v14 = vsel %vm7496_vm2, %v7503_v4, %v7505_v15  ;;  %v7508_v61 = vsel %vm7498_vm15, %v7494_v60, 1326507024  ;;  %v7511_v55 = vshll.u32 %v7471_v47, 8  ;;  %vm7350_vm1 = vcmp.lt.s32.totalorder %v14659_v23, 2 }
 0x7c1   :  { %vm14693_vm3 = vcmp.le.f32.partialorder %v7151_v50, 0.7853982  ;;  %v7219_v54 = vclz %v8409_v43  ;;  %v7499_v12 = vsel %vm7495_vm14, %v7479_v57, %v7482_v24  ;;  %v7501_v62 = vsel %vm7497_vm13, %v7485_v63, %v7500_v42  ;;  %v15430_v57 = vld [vmem:[#allocation25_spill] sm:$0xff] }
 0x7c2   :  { %vm7347_vm0 = vweird.f32 %v14395_v49  ;;  %v7237_v58 = vsub.s32 4, %v14662_v44  ;;  %v7509_v22 = vsel %vm7497_vm13, %v7491_v16, %v7508_v61  ;;  %vm7351_vm4 = vcmp.eq.s32.totalorder %v14659_v23, 0 }
 0x7c3   :  { %v14702_v9 = vmul.u32.u64.low %v7511_v55, %v7506_v14  ;;  %v14703_v18 = vmul.u32.u64.high %v7511_v55, %v7506_v14, %v14702_v9  ;;  %v8410_v50 = vadd.s32 4294967294, %v7219_v54  ;;  %v7510_v2 = vsel %vm7496_vm2, %v7507_v21, %v7509_v22  ;;  %v15431_v21 = vld [vmem:[#allocation22_spill] sm:$0xff] }
 0x7c4   :  { %v8416_v33 = vadd.s32 4294967169, %v7363_v26  ;;  %vm7354_vm5 = vcmp.eq.s32.totalorder %v14659_v23, 2  ;;  %v7502_v31 = vsel %vm7496_vm2, %v7499_v12, %v7501_v62  ;;  %v7207_v27 = vadd.s32 %v14628_v34, %v14625_v20 }
 0x7c5   :  { %v14710_v53 = vmul.u32.u64.low %v7511_v55, %v7510_v2  ;;  %v14711_v7 = vmul.u32.u64.high %v7511_v55, %v7510_v2, %v14710_v53  ;;  %v9005_v45 = vpop.eup %9004  ;;  %vm8411_vm6 = vcmp.lt.s32.totalorder %v8410_v50, 0  ;;  %v7359_v3 = vand.u32 2147483647, %v14644_v36 }
 0x7c6   :  { %v7369_v6 = vadd.s32 1, %v8416_v33  ;;  %v9007_v10 = vpop.eup %9006  ;;  %v7355_v1 = vxor.u32 2147483648, %v9005_v45  ;;  %v7222_v51 = vsel %vm8411_vm6, 0, %v8410_v50  ;;  %v7238_v46 = vsel %vm7153_vm11, %v7237_v58, %v14662_v44 }
 0x7c7   :  { %v7521_v32 = vadd.s32 1, %v14703_v18  ;;  %v7352_v17 = vxor.u32 2147483648, %v9007_v10  ;;  %v7223_v24 = vsub.s32 32, %v7222_v51  ;;  %v7227_v63 = vsub.s32 4294967266, %v7222_v51 }
 0x7c8   :  { %v7518_v40 = vmul.u32 %v7511_v55, %v7502_v31  ;;  %v7356_v20 = vsel %vm7354_vm5, %v7355_v1, %v9007_v10  ;;  %v7224_v34 = vshll.u32 %v14678_v25, %v7222_v51  ;;  %vm7520_vm7 = vc.u32 %v14711_v7, %v14702_v9  ;;  %v1208_v25 = vpop.permute.xlu1 %1207 }
 0x7c9   :  { %vm7370_vm8 = vcmp.gt.s32.totalorder %v7369_v6, 0  ;;  %v7353_v47 = vsel %vm7351_vm4, %v9005_v45, %v7352_v17  ;;  %v7225_v16 = vshrl.u32 %v7207_v27, %v7223_v24  ;;  %v7228_v44 = vadd.s32 127, %v7227_v63 }
 0x7ca   :  { %v7522_v11 = vsel %vm7520_vm7, %v7521_v32, %v14703_v18  ;;  %v7357_v52 = vsel %vm7350_vm1, %v7353_v47, %v7356_v20  ;;  %v7240_v26 = vsel %vm14693_vm3, 0, %v7238_v46  ;;  %v7371_v60 = vsel %vm7370_vm8, %v7369_v6, 0 }
 0x7cb   :  { %v7523_v48 = vadd.s32 %v7522_v11, %v7518_v40  ;;  %v7358_v42 = vsel %vm7347_vm0, nan, %v7357_v52  ;;  %v7226_v4 = vor.u32 %v7225_v16, %v7224_v34  ;;  %v7229_v38 = vshll.u32 %v7228_v44, 23 }
 0x7cc   :  { %v7366_v43 = vand.u32 8388607, %v7359_v3  ;;  %v875_v15 = vmul.f32 %v14553_v5, %v15430_v57  ;;  %8143 = vst [vmem:[#allocation8 + $0x1c0] sm:$0xff] %v7358_v42  ;;  %v7373_v14 = vand.u32 31, %v7371_v60  ;;  %v14740_v61 = vmul.f32 %v14553_v5, %v15431_v21 }
 0x7cd   :  { %v7524_v23 = vadd.s32 536870912, %v7523_v48  ;;  %v7230_v55 = vor.u32 4788187, %v7229_v38  ;;  %v14743_v54 = vmul.f32 %v14459_v30, %v1208_v25  ;;  %v7244_v49 = vadd.s32 3, %v7240_v26 }
 0x7ce   :  { %v7374_v62 = vsub.s32 32, %v7373_v14  ;;  %v1359_v58 = vadd.f32 %v14657_v19, %v875_v15  ;;  %v7233_v18 = vcvt.s32.f32 %v7226_v4  ;;  %v7367_v50 = vor.u32 8388608, %v7366_v43 }
 0x7cf   :  { %v7525_v12 = vshrl.u32 %v7524_v23, 30  ;;  %v7231_v22 = vand.u32 2147483647, %v7230_v55  ;;  %v7372_v2 = vshrl.u32 %v7371_v60, 5  ;;  %v7376_v31 = vshll.u32 %v15264_v28, %v7373_v14 }
 0x7d0   :  { %v7377_v53 = vshrl.u32 %v15266_v39, %v7374_v62  ;;  %v7379_v45 = vshll.u32 %v15266_v39, %v7373_v14  ;;  %v7380_v6 = vshrl.u32 %v15267_v41, %v7374_v62  ;;  %v7383_v10 = vshrl.u32 %v15268_v35, %v7374_v62 }
 0x7d1   :  { %v7526_v33 = vshll.u32 %v7525_v12, 30  ;;  %v7234_v27 = vmul.f32 %v7233_v18, %v7231_v22  ;;  %v7386_v1 = vshrl.u32 %v15269_v13, %v7374_v62  ;;  %v7382_v19 = vshll.u32 %v15267_v41, %v7373_v14 }
 0x7d2   :  { %v7385_v46 = vshll.u32 %v15268_v35, %v7373_v14  ;;  %v7389_v32 = vshrl.u32 %v15270_v59, %v7374_v62  ;;  %v14757_v24 = vand.u32 3, %v7244_v49  ;;  %v7378_v63 = vor.u32 %v7377_v53, %v7376_v31 }
 0x7d3   :  { %v14752_v51 = vsub.s32 %v7523_v48, %v7526_v33  ;;  %v7235_v17 = vxor.u32 2147483648, %v7234_v27  ;;  %v7381_v40 = vor.u32 %v7380_v6, %v7379_v45  ;;  %vm7465_vm10 = vcmp.lt.s32.totalorder %v14561_v56, 0 }
 0x7d4   :  { %v7384_v34 = vor.u32 %v7383_v10, %v7382_v19  ;;  %v7387_v47 = vor.u32 %v7386_v1, %v7385_v46  ;;  %v7388_v16 = vshll.u32 %v15269_v13, %v7373_v14  ;;  %vm7391_vm12 = vcmp.lt.s32.totalorder %v7372_v2, 1 }
 0x7d5   :  { %v7529_v20 = vsub.s32 0, %v14752_v51  ;;  %v7236_v44 = vsel %vm7153_vm11, %v7235_v17, %v7234_v27  ;;  %v7407_v11 = vshll.u32 %v7367_v50, 8  ;;  %v14765_v52 = vadd.f32 %v14493_v37, %v1359_v58 }
 0x7d6   :  { %v7239_v26 = vsel %vm14693_vm3, %v14496_v0, %v7236_v44  ;;  %v7390_v60 = vor.u32 %v7389_v32, %v7388_v16  ;;  %vm7394_vm9 = vcmp.lt.s32.totalorder %v7372_v2, 4  ;;  %v7375_v25 = vshrl.u32 %v15264_v28, %v7374_v62 }
 0x7d7   :  { %v8421_v48 = vmin.u32 %v7529_v20, %v14752_v51  ;;  %9008 = vcosq.f32 %v7239_v26  ;;  %v7399_v42 = vsel %vm7391_vm12, %v7378_v63, %v7381_v40  ;;  %v7400_v4 = vsel %vm7394_vm9, %v7387_v47, 920167782 }
 0x7d8   :  { %9010 = vsinq.f32 %v7239_v26  ;;  %vm7393_vm11 = vcmp.lt.s32.totalorder %v7372_v2, 3  ;;  %v7396_v43 = vsel %vm7394_vm9, %v7384_v34, 2102212464  ;;  %v7549_v57 = vsub.s32 4, %v7525_v12 }
 0x7d9   :  { %v7531_v38 = vclz %v8421_v48  ;;  %vm7392_vm14 = vcmp.lt.s32.totalorder %v7372_v2, 2  ;;  %v7401_v8 = vsel %vm7393_vm11, %v7384_v34, %v7400_v4  ;;  %v7403_v15 = vsel %vm7391_vm12, %v7381_v40, %v7384_v34 }
 0x7da   :  { %v7395_v14 = vsel %vm7391_vm12, %v7375_v25, %v7378_v63  ;;  %v7402_v21 = vsel %vm7392_vm14, %v7399_v42, %v7401_v8  ;;  %v7404_v55 = vsel %vm7394_vm9, %v7390_v60, 1326507024  ;;  %v7397_v49 = vsel %vm7393_vm11, %v7381_v40, %v7396_v43 }
 0x7db   :  { %v8422_v23 = vadd.s32 4294967294, %v7531_v38  ;;  %v7405_v62 = vsel %vm7393_vm11, %v7387_v47, %v7404_v55  ;;  %v14779_v58 = vmul.u32.u64.low %v7407_v11, %v7402_v21  ;;  %v14780_v22 = vmul.u32.u64.high %v7407_v11, %v7402_v21, %v14779_v58  ;;  %v1226_v55 = vpop.permute.xlu0 %1225 }
 0x7dc   :  { %v7519_v18 = vadd.s32 %v14702_v9, %v14711_v7  ;;  %v7406_v50 = vsel %vm7392_vm14, %v7403_v15, %v7405_v62  ;;  %v7674_v33 = vand.u32 2139095040, %v14765_v52  ;;  %v7550_v53 = vsel %vm7465_vm10, %v7549_v57, %v7525_v12  ;;  %v15434_v62 = vld [vmem:[#allocation27_spill] sm:$0xff] }
 0x7dd   :  { %vm8423_vm13 = vcmp.lt.s32.totalorder %v8422_v23, 0  ;;  %v14789_v45 = vmul.u32.u64.low %v7407_v11, %v7406_v50  ;;  %v14790_v27 = vmul.u32.u64.high %v7407_v11, %v7406_v50, %v14789_v45  ;;  %vm7243_vm15 = vweird.f32 %v14496_v0 }
 0x7de   :  { %v7534_v31 = vsel %vm8423_vm13, 0, %v8422_v23  ;;  %v7398_v1 = vsel %vm7392_vm14, %v7395_v14, %v7397_v49  ;;  %v7675_v19 = vshrl.u32 %v7674_v33, 23  ;;  %vm7246_vm2 = vcmp.lt.s32.totalorder %v14757_v24, 2 }
 0x7df   :  { %v7535_v6 = vsub.s32 32, %v7534_v31  ;;  %v7539_v10 = vsub.s32 4294967266, %v7534_v31  ;;  %vm7250_vm1 = vcmp.eq.s32.totalorder %v14757_v24, 2  ;;  %vm14798_vm3 = vcmp.le.f32.partialorder %v7463_v29, 0.7853982 }
 0x7e0   :  { %v7417_v7 = vadd.s32 1, %v14780_v22  ;;  %v7536_v12 = vshll.u32 %v14752_v51, %v7534_v31  ;;  %v8428_v17 = vadd.s32 4294967169, %v7675_v19  ;;  %v7552_v63 = vsel %vm14798_vm3, 0, %v7550_v53 }
 0x7e1   :  { %v7537_v46 = vshrl.u32 %v7519_v18, %v7535_v6  ;;  %v7540_v32 = vadd.s32 127, %v7539_v10  ;;  %v9009_v2 = vpop.eup %9008  ;;  %v7414_v40 = vmul.u32 %v7407_v11, %v7398_v1  ;;  %vm7416_vm0 = vc.u32 %v14790_v27, %v14779_v58 }
 0x7e2   :  { %v7671_v29 = vand.u32 2147483647, %v14765_v52  ;;  %v9011_v20 = vpop.eup %9010  ;;  %v7251_v34 = vxor.u32 2147483648, %v9009_v2  ;;  %v7418_v44 = vsel %vm7416_vm0, %v7417_v7, %v14780_v22  ;;  %v7681_v48 = vadd.s32 1, %v8428_v17 }
 0x7e3   :  { %v7538_v47 = vor.u32 %v7537_v46, %v7536_v12  ;;  %v7541_v16 = vshll.u32 %v7540_v32, 23  ;;  %v7248_v51 = vxor.u32 2147483648, %v9011_v20  ;;  %v7419_v26 = vadd.s32 %v7418_v44, %v7414_v40 }
 0x7e4   :  { %v1358_v60 = vadd.f32 %v14743_v54, %v14740_v61  ;;  %vm7247_vm4 = vcmp.eq.s32.totalorder %v14757_v24, 0  ;;  %v7252_v11 = vsel %vm7250_vm1, %v7251_v34, %v9011_v20  ;;  %v7556_v42 = vadd.s32 3, %v7552_v63 }
 0x7e5   :  { %v7542_v25 = vor.u32 4788187, %v7541_v16  ;;  %v7249_v4 = vsel %vm7247_vm4, %v9009_v2, %v7248_v51  ;;  %v7420_v38 = vadd.s32 536870912, %v7419_v26  ;;  %v7678_v43 = vand.u32 8388607, %v7671_v29 }
 0x7e6   :  { %vm7682_vm5 = vcmp.gt.s32.totalorder %v7681_v48, 0  ;;  %v7253_v57 = vsel %vm7246_vm2, %v7249_v4, %v7252_v11  ;;  %v7545_v15 = vcvt.s32.f32 %v7538_v47  ;;  %v14824_v21 = vadd.f32 %v14493_v37, %v1358_v60 }
 0x7e7   :  { %v7543_v8 = vand.u32 2147483647, %v7542_v25  ;;  %v7683_v23 = vsel %vm7682_vm5, %v7681_v48, 0  ;;  %v7254_v61 = vsel %vm7243_vm15, nan, %v7253_v57  ;;  %v14821_v54 = vshrl.u32 %v7420_v38, 30 }
 0x7e8   :  { %v7685_v14 = vand.u32 31, %v7683_v23  ;;  %8142 = vst [vmem:[#allocation8 + $0x1b8] sm:$0xff] %v7254_v61  ;;  %v14828_v22 = vmul.f32 %v14553_v5, %v15434_v62  ;;  %v14831_v33 = vand.u32 3, %v7556_v42  ;;  %v7679_v0 = vor.u32 8388608, %v7678_v43 }
 0x7e9   :  { %v7546_v49 = vmul.f32 %v7545_v15, %v7543_v8  ;;  %v7422_v24 = vshll.u32 %v14821_v54, 30  ;;  %v14834_v31 = vmul.f32 %v14459_v30, %v1226_v55  ;;  %v7684_v45 = vshrl.u32 %v7683_v23, 5 }
 0x7ea   :  { %v7686_v18 = vsub.s32 32, %v7685_v14  ;;  %v7570_v10 = vand.u32 2139095040, %v14824_v21  ;;  %v7688_v1 = vshll.u32 %v15264_v28, %v7685_v14  ;;  %v7691_v46 = vshll.u32 %v15266_v39, %v7685_v14 }
 0x7eb   :  { %v7547_v50 = vxor.u32 2147483648, %v7546_v49  ;;  %v14836_v53 = vsub.s32 %v7419_v26, %v7422_v24  ;;  %v7694_v32 = vshll.u32 %v15267_v41, %v7685_v14  ;;  %v7697_v2 = vshll.u32 %v15268_v35, %v7685_v14 }
 0x7ec   :  { %v7689_v6 = vshrl.u32 %v15266_v39, %v7686_v18  ;;  %v7692_v19 = vshrl.u32 %v15267_v41, %v7686_v18  ;;  %v7695_v7 = vshrl.u32 %v15268_v35, %v7686_v18  ;;  %v7698_v63 = vshrl.u32 %v15269_v13, %v7686_v18 }
 0x7ed   :  { %v7548_v5 = vsel %vm7465_vm10, %v7547_v50, %v7546_v49  ;;  %v7425_v12 = vsub.s32 0, %v14836_v53  ;;  %v7700_v9 = vshll.u32 %v15269_v13, %v7685_v14  ;;  %v7701_v16 = vshrl.u32 %v15270_v59, %v7686_v18 }
 0x7ee   :  { %v7551_v30 = vsel %vm14798_vm3, %v14561_v56, %v7548_v5  ;;  %v7690_v17 = vor.u32 %v7689_v6, %v7688_v1  ;;  %v7693_v20 = vor.u32 %v7692_v19, %v7691_v46  ;;  %v7696_v34 = vor.u32 %v7695_v7, %v7694_v32 }
 0x7ef   :  { %9012 = vcosq.f32 %v7551_v30  ;;  %v8417_v40 = vmin.u32 %v7425_v12, %v14836_v53  ;;  %v7699_v47 = vor.u32 %v7698_v63, %v7697_v2  ;;  %v7719_v44 = vshll.u32 %v7679_v0, 8 }
 0x7f0   :  { %9014 = vsinq.f32 %v7551_v30  ;;  %v7687_v26 = vshrl.u32 %v15264_v28, %v7686_v18  ;;  %vm7703_vm6 = vcmp.lt.s32.totalorder %v7684_v45, 1  ;;  %v7571_v48 = vshrl.u32 %v7570_v10, 23 }
 0x7f1   :  { %v7427_v51 = vclz %v8417_v40  ;;  %v7702_v60 = vor.u32 %v7701_v16, %v7700_v9  ;;  %vm7704_vm7 = vcmp.lt.s32.totalorder %v7684_v45, 2  ;;  %vm7705_vm8 = vcmp.lt.s32.totalorder %v7684_v45, 3 }
 0x7f2   :  { %vm7706_vm10 = vcmp.lt.s32.totalorder %v7684_v45, 4  ;;  %vm7559_vm12 = vcmp.eq.s32.totalorder %v14831_v33, 0  ;;  %v7711_v42 = vsel %vm7703_vm6, %v7690_v17, %v7693_v20  ;;  %vm7558_vm9 = vcmp.lt.s32.totalorder %v14831_v33, 2 }
 0x7f3   :  { %v8418_v11 = vadd.s32 4294967294, %v7427_v51  ;;  %v7708_v25 = vsel %vm7706_vm10, %v7696_v34, 2102212464  ;;  %v7712_v4 = vsel %vm7706_vm10, %v7699_v47, 920167782  ;;  %v7707_v38 = vsel %vm7703_vm6, %v7687_v26, %v7690_v17 }
 0x7f4   :  { %v7713_v43 = vsel %vm7705_vm8, %v7696_v34, %v7712_v4  ;;  %v7715_v57 = vsel %vm7703_vm6, %v7693_v20, %v7696_v34  ;;  %v7716_v8 = vsel %vm7706_vm10, %v7702_v60, 1326507024  ;;  %vm7555_vm11 = vweird.f32 %v14561_v56 }
 0x7f5   :  { %vm7361_vm14 = vcmp.lt.s32.totalorder %v14644_v36, 0  ;;  %vm8419_vm13 = vcmp.lt.s32.totalorder %v8418_v11, 0  ;;  %v7709_v15 = vsel %vm7705_vm8, %v7693_v20, %v7708_v25  ;;  %v7714_v23 = vsel %vm7704_vm7, %v7711_v42, %v7713_v43 }
 0x7f6   :  { %v7717_v61 = vsel %vm7705_vm8, %v7699_v47, %v7716_v8  ;;  %v7430_v14 = vsel %vm8419_vm13, 0, %v8418_v11  ;;  %v14866_v49 = vmul.u32.u64.low %v7719_v44, %v7714_v23  ;;  %v14867_v62 = vmul.u32.u64.high %v7719_v44, %v7714_v23, %v14866_v49 }
 0x7f7   :  { %v7718_v55 = vsel %vm7704_vm7, %v7715_v57, %v7717_v61  ;;  %vm7562_vm15 = vcmp.eq.s32.totalorder %v14831_v33, 2  ;;  %v7415_v24 = vadd.s32 %v14779_v58, %v14790_v27  ;;  %v7431_v18 = vsub.s32 32, %v7430_v14 }
 0x7f8   :  { %v7435_v50 = vsub.s32 4294967266, %v7430_v14  ;;  %v7710_v6 = vsel %vm7704_vm7, %v7707_v38, %v7709_v15  ;;  %v14874_v10 = vmul.u32.u64.low %v7719_v44, %v7718_v55  ;;  %v14875_v5 = vmul.u32.u64.high %v7719_v44, %v7718_v55, %v14874_v10 }
 0x7f9   :  { %v9013_v0 = vpop.eup %9012  ;;  %v8424_v1 = vadd.s32 4294967169, %v7571_v48  ;;  %v7432_v30 = vshll.u32 %v14836_v53, %v7430_v14  ;;  %v7433_v12 = vshrl.u32 %v7415_v24, %v7431_v18  ;;  %v7445_v17 = vsub.s32 4, %v14821_v54 }
 0x7fa   :  { %v9015_v19 = vpop.eup %9014  ;;  %v7563_v7 = vxor.u32 2147483648, %v9013_v0  ;;  %v7436_v46 = vadd.s32 127, %v7435_v50  ;;  %v7729_v58 = vadd.s32 1, %v14867_v62  ;;  %v7567_v40 = vand.u32 2147483647, %v14824_v21 }
 0x7fb   :  { %v7560_v32 = vxor.u32 2147483648, %v9015_v19  ;;  %v7577_v27 = vadd.s32 1, %v8424_v1  ;;  %v7434_v2 = vor.u32 %v7433_v12, %v7432_v30  ;;  %v7726_v34 = vmul.u32 %v7719_v44, %v7710_v6 }
 0x7fc   :  { %v7564_v45 = vsel %vm7562_vm15, %v7563_v7, %v9015_v19  ;;  %v7437_v63 = vshll.u32 %v7436_v46, 23  ;;  %vm7728_vm2 = vc.u32 %v14875_v5, %v14866_v49  ;;  %v1361_v16 = vadd.f32 %v14834_v31, %v14828_v22 }
 0x7fd   :  { %v7561_v20 = vsel %vm7559_vm12, %v9013_v0, %v7560_v32  ;;  %vm7578_vm1 = vcmp.gt.s32.totalorder %v7577_v27, 0  ;;  %v7730_v9 = vsel %vm7728_vm2, %v7729_v58, %v14867_v62  ;;  %v7446_v44 = vsel %vm7361_vm14, %v7445_v17, %v14821_v54 }
 0x7fe   :  { %v7565_v53 = vsel %vm7558_vm9, %v7561_v20, %v7564_v45  ;;  %v7438_v47 = vor.u32 4788187, %v7437_v63  ;;  %v7731_v26 = vadd.s32 %v7730_v9, %v7726_v34  ;;  %v7579_v48 = vsel %vm7578_vm1, %v7577_v27, 0 }
 0x7ff   :  { %v7566_v51 = vsel %vm7555_vm11, nan, %v7565_v53  ;;  %v7441_v11 = vcvt.s32.f32 %v7434_v2  ;;  %v7581_v33 = vand.u32 31, %v7579_v48  ;;  %vm14899_vm3 = vcmp.le.f32.partialorder %v7359_v3, 0.7853982 }
 0x800   :  { %8145 = vst [vmem:[#allocation8 + $0x1d0] sm:$0xff] %v7566_v51  ;;  %v7439_v60 = vand.u32 2147483647, %v7438_v47  ;;  %v7732_v22 = vadd.s32 536870912, %v7731_v26  ;;  %v7574_v56 = vand.u32 8388607, %v7567_v40  ;;  %v14908_v4 = vadd.f32 %v14493_v37, %v1361_v16 }
 0x801   :  { %v7448_v54 = vsel %vm14899_vm3, 0, %v7446_v44  ;;  %v7582_v42 = vsub.s32 32, %v7581_v33  ;;  %v7580_v43 = vshrl.u32 %v7579_v48, 5  ;;  %v7584_v3 = vshll.u32 %v15264_v28, %v7581_v33 }
 0x802   :  { %v7442_v31 = vmul.f32 %v7441_v11, %v7439_v60  ;;  %v14910_v38 = vshrl.u32 %v7732_v22, 30  ;;  %v7587_v57 = vshll.u32 %v15266_v39, %v7581_v33  ;;  %v7590_v61 = vshll.u32 %v15267_v41, %v7581_v33 }
 0x803   :  { %v7585_v15 = vshrl.u32 %v15266_v39, %v7582_v42  ;;  %v7588_v23 = vshrl.u32 %v15267_v41, %v7582_v42  ;;  %v7591_v55 = vshrl.u32 %v15268_v35, %v7582_v42  ;;  %v7593_v37 = vshll.u32 %v15268_v35, %v7581_v33 }
 0x804   :  { %v7443_v8 = vxor.u32 2147483648, %v7442_v31  ;;  %v7734_v14 = vshll.u32 %v14910_v38, 30  ;;  %v7594_v62 = vshrl.u32 %v15269_v13, %v7582_v42  ;;  %v7596_v50 = vshll.u32 %v15269_v13, %v7581_v33 }
 0x805   :  { %v7586_v18 = vor.u32 %v7585_v15, %v7584_v3  ;;  %v7597_v0 = vshrl.u32 %v15270_v59, %v7582_v42  ;;  %v7589_v1 = vor.u32 %v7588_v23, %v7587_v57  ;;  %v7592_v19 = vor.u32 %v7591_v55, %v7590_v61 }
 0x806   :  { %v7444_v24 = vsel %vm7361_vm14, %v7443_v8, %v7442_v31  ;;  %v14928_v10 = vsub.s32 %v7731_v26, %v7734_v14  ;;  %v7575_v7 = vor.u32 8388608, %v7574_v56  ;;  %v7595_v30 = vor.u32 %v7594_v62, %v7593_v37 }
 0x807   :  { %v7447_v6 = vsel %vm14899_vm3, %v14644_v36, %v7444_v24  ;;  %v7598_v12 = vor.u32 %v7597_v0, %v7596_v50  ;;  %v7452_v46 = vadd.s32 3, %v7448_v54  ;;  %v7583_v17 = vshrl.u32 %v15264_v28, %v7582_v42 }
 0x808   :  { %9016 = vcosq.f32 %v7447_v6  ;;  %v7737_v32 = vsub.s32 0, %v14928_v10  ;;  %vm7599_vm0 = vcmp.lt.s32.totalorder %v7580_v43, 1  ;;  %vm7601_vm4 = vcmp.lt.s32.totalorder %v7580_v43, 3 }
 0x809   :  { %9018 = vsinq.f32 %v7447_v6  ;;  %vm7602_vm5 = vcmp.lt.s32.totalorder %v7580_v43, 4  ;;  %v7882_v58 = vand.u32 2139095040, %v14908_v4  ;;  %v7603_v45 = vsel %vm7599_vm0, %v7583_v17, %v7586_v18  ;;  %v1219_v6 = vpop.permute.xlu1 %1218 }
 0x80a   :  { %v8429_v27 = vmin.u32 %v7737_v32, %v14928_v10  ;;  %v7604_v2 = vsel %vm7602_vm5, %v7592_v19, 2102212464  ;;  %v7607_v63 = vsel %vm7599_vm0, %v7586_v18, %v7589_v1  ;;  %v7608_v34 = vsel %vm7602_vm5, %v7595_v30, 920167782 }
 0x80b   :  { %v7605_v20 = vsel %vm7601_vm4, %v7589_v1, %v7604_v2  ;;  %v7611_v53 = vsel %vm7599_vm0, %v7589_v1, %v7592_v19  ;;  %v7612_v47 = vsel %vm7602_vm5, %v7598_v12, 1326507024  ;;  %v7453_v9 = vand.u32 3, %v7452_v46 }
 0x80c   :  { %vm7673_vm6 = vcmp.lt.s32.totalorder %v14765_v52, 0  ;;  %v7739_v16 = vclz %v8429_v27  ;;  %v7615_v51 = vshll.u32 %v7575_v7, 8  ;;  %vm7600_vm7 = vcmp.lt.s32.totalorder %v7580_v43, 2 }
 0x80d   :  { %v7609_v44 = vsel %vm7601_vm4, %v7592_v19, %v7608_v34  ;;  %v7613_v26 = vsel %vm7601_vm4, %v7595_v30, %v7612_v47  ;;  %v7883_v48 = vshrl.u32 %v7882_v58, 23  ;;  %vm7451_vm8 = vweird.f32 %v14644_v36  ;;  %v14973_v58 = vld [vmem:[%s15203_s3 + $0x1] ss:$0 sm:$0xff]  ;;  %v9071_v36 = vld [vmem:[%s15203_s3] ss:$0 sm:$0xff] }
 0x80e   :  { %v8430_v60 = vadd.s32 4294967294, %v7739_v16  ;;  %v7606_v11 = vsel %vm7600_vm7, %v7603_v45, %v7605_v20  ;;  %v7610_v33 = vsel %vm7600_vm7, %v7607_v63, %v7609_v44  ;;  %v7614_v25 = vsel %vm7600_vm7, %v7611_v53, %v7613_v26  ;;  %v15439_v20 = vld [vmem:[#allocation24_spill] sm:$0xff] }
 0x80f   :  { %vm14941_vm10 = vcmp.le.f32.partialorder %v7671_v29, 0.7853982  ;;  %v14945_v56 = vmul.u32.u64.low %v7615_v51, %v7614_v25  ;;  %v14946_v31 = vmul.u32.u64.high %v7615_v51, %v7614_v25, %v14945_v56  ;;  %vm7455_vm12 = vcmp.eq.s32.totalorder %v7453_v9, 0 }
 0x810   :  { %v14948_v54 = vmul.u32.u64.low %v7615_v51, %v7610_v33  ;;  %v14949_v42 = vmul.u32.u64.high %v7615_v51, %v7610_v33, %v14948_v54  ;;  %vm7458_vm9 = vcmp.eq.s32.totalorder %v7453_v9, 2  ;;  %vm8431_vm11 = vcmp.lt.s32.totalorder %v8430_v60, 0 }
 0x811   :  { %v8436_v43 = vadd.s32 4294967169, %v7883_v48  ;;  %v7727_v57 = vadd.s32 %v14866_v49, %v14875_v5  ;;  %v7742_v8 = vsel %vm8431_vm11, 0, %v8430_v60  ;;  %v7757_v29 = vsub.s32 4, %v14910_v38 }
 0x812   :  { %v9017_v3 = vpop.eup %9016  ;;  %v7879_v15 = vand.u32 2147483647, %v14908_v4  ;;  %v7743_v14 = vsub.s32 32, %v7742_v8  ;;  %v7747_v55 = vsub.s32 4294967266, %v7742_v8  ;;  %v7622_v37 = vmul.u32 %v7615_v51, %v7606_v11  ;;  %v15440_v51 = vld [vmem:[#allocation26_spill] sm:$0xff] }
 0x813   :  { %v9019_v23 = vpop.eup %9018  ;;  %v7459_v61 = vxor.u32 2147483648, %v9017_v3  ;;  %v7744_v24 = vshll.u32 %v14928_v10, %v7742_v8  ;;  %vm7624_vm14 = vc.u32 %v14946_v31, %v14948_v54  ;;  %v7625_v18 = vadd.s32 1, %v14949_v42 }
 0x814   :  { %v7456_v62 = vxor.u32 2147483648, %v9019_v23  ;;  %v7745_v5 = vshrl.u32 %v7727_v57, %v7743_v14  ;;  %v7748_v50 = vadd.s32 127, %v7747_v55  ;;  %v7889_v0 = vadd.s32 1, %v8436_v43 }
 0x815   :  { %v7460_v49 = vsel %vm7458_vm9, %v7459_v61, %v9019_v23  ;;  %vm7454_vm13 = vcmp.lt.s32.totalorder %v7453_v9, 2  ;;  %v7758_v19 = vsel %vm7673_vm6, %v7757_v29, %v14910_v38  ;;  %v7626_v10 = vsel %vm7624_vm14, %v7625_v18, %v14949_v42 }
 0x816   :  { %v7457_v1 = vsel %vm7455_vm12, %v9017_v3, %v7456_v62  ;;  %v7746_v30 = vor.u32 %v7745_v5, %v7744_v24  ;;  %v7749_v12 = vshll.u32 %v7748_v50, 23  ;;  %v7627_v46 = vadd.s32 %v7626_v10, %v7622_v37  ;;  %v15001_v62 = vld [vmem:[%s15203_s3 + $0x2] ss:$0 sm:$0xff]  ;;  %s9178_s3 = smov [#allocation8]  }
 0x817   :  { %v7461_v7 = vsel %vm7454_vm13, %v7457_v1, %v7460_v49  ;;  %v7886_v17 = vand.u32 8388607, %v7879_v15  ;;  %vm7890_vm15 = vcmp.gt.s32.totalorder %v7889_v0, 0  ;;  %v1296_v38 = vmul.f32 %v14973_v58, %v1219_v6  ;;  %s8156_s17 = sshll.u32 %s9178_s3, 4  ;;  %s8157_s17 = int_to_ptr.vmem [resolvable:$true] %s8156_s17 }
 0x818   :  { %v7462_v32 = vsel %vm7451_vm8, nan, %v7461_v7  ;;  %v7750_v27 = vor.u32 4788187, %v7749_v12  ;;  %v7760_v45 = vsel %vm14941_vm10, 0, %v7758_v19  ;;  %v7628_v2 = vadd.s32 536870912, %v7627_v46  ;;  %s9139_s19 = scalar_lea.vmem %s8157_s17, 8192  ;;  %p9144_p11 = scmp.lt.s32.totalorder %s8157_s17, %s8157_s17 }
 0x819   :  { %8144 = vst [vmem:[#allocation8 + $0x1c8] sm:$0xff] %v7462_v32  ;;  %v7891_v63 = vsel %vm7890_vm15, %v7889_v0, 0  ;;  %v876_v34 = vmul.f32 %v9071_v36, %v15439_v20  ;;  %v7753_v9 = vcvt.s32.f32 %v7746_v30  ;;  %v14985_v44 = vmul.f32 %v9071_v36, %v15440_v51  ;;  %p9140_p10 = scmp.ne.s32.totalorder %s8157_s17, %s9139_s19  ;;  %p9145_p12 = scmp.lt.s32.totalorder %s9139_s19, %s9139_s19 }
 0x81a   :  { %v7893_v53 = vand.u32 31, %v7891_v63  ;;  %v7751_v47 = vand.u32 2147483647, %v7750_v27  ;;  %v14982_v16 = vshrl.u32 %v7628_v2, 30  ;;  %v7764_v26 = vadd.s32 3, %v7760_v45 }
 0x81b   :  { %v1360_v60 = vadd.f32 %v1296_v38, %v876_v34  ;;  %v7887_v25 = vor.u32 8388608, %v7886_v17  ;;  %v7892_v14 = vshrl.u32 %v7891_v63, 5  ;;  %vm7569_vm4 = vcmp.lt.s32.totalorder %v14824_v21, 0  ;;  %p9146_p13 = por %p9145_p12, %p9144_p11 }
 0x81c   :  { %v7894_v48 = vsub.s32 32, %v7893_v53  ;;  %v7754_v11 = vmul.f32 %v7753_v9, %v7751_v47  ;;  %v7630_v33 = vshll.u32 %v14982_v16, 30  ;;  %v7896_v56 = vshll.u32 %v15264_v28, %v7893_v53 }
 0x81d   :  { %v7899_v43 = vshll.u32 %v15266_v39, %v7893_v53  ;;  %v7902_v23 = vshll.u32 %v15267_v41, %v7893_v53  ;;  %v7905_v37 = vshll.u32 %v15268_v35, %v7893_v53  ;;  %v15004_v24 = vadd.f32 %v15001_v62, %v1360_v60  ;;  %p9147_p0 = pnand %p9146_p13, %p9140_p10 }
 0x81e   :  { %v7897_v42 = vshrl.u32 %v15266_v39, %v7894_v48  ;;  %v7900_v3 = vshrl.u32 %v15267_v41, %v7894_v48  ;;  %v7903_v57 = vshrl.u32 %v15268_v35, %v7894_v48  ;;  %v7755_v8 = vxor.u32 2147483648, %v7754_v11 }
 0x81f   :  { %v14993_v29 = vsub.s32 %v7627_v46, %v7630_v33  ;;  %v7906_v61 = vshrl.u32 %v15269_v13, %v7894_v48  ;;  %v7908_v1 = vshll.u32 %v15269_v13, %v7893_v53  ;;  %v7909_v19 = vshrl.u32 %v15270_v59, %v7894_v48 }
 0x820   :  { %v7898_v55 = vor.u32 %v7897_v42, %v7896_v56  ;;  %v7756_v18 = vsel %vm7673_vm6, %v7755_v8, %v7754_v11  ;;  %v7901_v5 = vor.u32 %v7900_v3, %v7899_v43  ;;  %v7904_v50 = vor.u32 %v7903_v57, %v7902_v23  ;;  %v1230_v3 = vpop.permute.xlu1 %1229 }
 0x821   :  { %v7633_v49 = vsub.s32 0, %v14993_v29  ;;  %v7759_v0 = vsel %vm14941_vm10, %v14765_v52, %v7756_v18  ;;  %v7907_v6 = vor.u32 %v7906_v61, %v7905_v37  ;;  %v15014_v10 = vand.u32 3, %v7764_v26 }
 0x822   :  { %9020 = vcosq.f32 %v7759_v0  ;;  %v15017_v30 = vshll.u32 %v7887_v25, 8  ;;  %v7895_v12 = vshrl.u32 %v15264_v28, %v7894_v48  ;;  %v7910_v46 = vor.u32 %v7909_v19, %v7908_v1 }
 0x823   :  { %v8425_v7 = vmin.u32 %v7633_v49, %v14993_v29  ;;  %9022 = vsinq.f32 %v7759_v0  ;;  %v7778_v32 = vand.u32 2139095040, %v15004_v24  ;;  %vm7911_vm2 = vcmp.lt.s32.totalorder %v7892_v14, 1 }
 0x824   :  { %vm7912_vm1 = vcmp.lt.s32.totalorder %v7892_v14, 2  ;;  %vm7914_vm3 = vcmp.lt.s32.totalorder %v7892_v14, 4  ;;  %vm7913_vm0 = vcmp.lt.s32.totalorder %v7892_v14, 3  ;;  %v7919_v38 = vsel %vm7911_vm2, %v7898_v55, %v7901_v5 }
 0x825   :  { %v7635_v22 = vclz %v8425_v7  ;;  %v7916_v17 = vsel %vm7914_vm3, %v7904_v50, 2102212464  ;;  %v7920_v27 = vsel %vm7914_vm3, %v7907_v6, 920167782  ;;  %v7915_v2 = vsel %vm7911_vm2, %v7895_v12, %v7898_v55 }
 0x826   :  { %v7921_v63 = vsel %vm7913_vm0, %v7904_v50, %v7920_v27  ;;  %v7923_v36 = vsel %vm7911_vm2, %v7901_v5, %v7904_v50  ;;  %v7917_v20 = vsel %vm7913_vm0, %v7901_v5, %v7916_v17  ;;  %v7924_v53 = vsel %vm7914_vm3, %v7910_v46, 1326507024 }
 0x827   :  { %v8426_v45 = vadd.s32 4294967294, %v7635_v22  ;;  %v7922_v34 = vsel %vm7912_vm1, %v7919_v38, %v7921_v63  ;;  %v7779_v47 = vshrl.u32 %v7778_v32, 23  ;;  %vm7766_vm5 = vcmp.lt.s32.totalorder %v15014_v10, 2 }
 0x828   :  { %v7925_v9 = vsel %vm7913_vm0, %v7907_v6, %v7924_v53  ;;  %v15025_v51 = vmul.u32.u64.low %v15017_v30, %v7922_v34  ;;  %v15026_v26 = vmul.u32.u64.high %v15017_v30, %v7922_v34, %v15025_v51  ;;  %vm7763_vm7 = vweird.f32 %v14765_v52 }
 0x829   :  { %vm8427_vm6 = vcmp.lt.s32.totalorder %v8426_v45, 0  ;;  %vm7770_vm8 = vcmp.eq.s32.totalorder %v15014_v10, 2  ;;  %v7926_v60 = vsel %vm7912_vm1, %v7923_v36, %v7925_v9  ;;  %v8432_v11 = vadd.s32 4294967169, %v7779_v47 }
 0x82a   :  { %v7638_v48 = vsel %vm8427_vm6, 0, %v8426_v45  ;;  %vm15034_vm10 = vcmp.le.f32.partialorder %v7567_v40, 0.7853982  ;;  %v7623_v25 = vadd.s32 %v14948_v54, %v14946_v31  ;;  %v7653_v43 = vsub.s32 4, %v14982_v16 }
 0x82b   :  { %v7639_v56 = vsub.s32 32, %v7638_v48  ;;  %v7643_v42 = vsub.s32 4294967266, %v7638_v48  ;;  %v7918_v57 = vsel %vm7912_vm1, %v7915_v2, %v7917_v20  ;;  %v7785_v61 = vadd.s32 1, %v8432_v11 }
 0x82c   :  { %v15043_v8 = vmul.u32.u64.low %v15017_v30, %v7926_v60  ;;  %v15044_v23 = vmul.u32.u64.high %v15017_v30, %v7926_v60, %v15043_v8  ;;  %v9021_v55 = vpop.eup %9020  ;;  %v7640_v40 = vshll.u32 %v14993_v29, %v7638_v48  ;;  %v7937_v49 = vadd.s32 1, %v15026_v26 }
 0x82d   :  { %v7641_v37 = vshrl.u32 %v7623_v25, %v7639_v56  ;;  %v7644_v18 = vadd.s32 127, %v7643_v42  ;;  %v9023_v31 = vpop.eup %9022  ;;  %v7771_v54 = vxor.u32 2147483648, %v9021_v55  ;;  %v7775_v5 = vand.u32 2147483647, %v15004_v24 }
 0x82e   :  { %vm7786_vm12 = vcmp.gt.s32.totalorder %v7785_v61, 0  ;;  %v1298_v14 = vmul.f32 %v14973_v58, %v1230_v3  ;;  %v7768_v50 = vxor.u32 2147483648, %v9023_v31  ;;  %vm7767_vm9 = vcmp.eq.s32.totalorder %v15014_v10, 0 }
 0x82f   :  { %v7642_v0 = vor.u32 %v7641_v37, %v7640_v40  ;;  %v7645_v6 = vshll.u32 %v7644_v18, 23  ;;  %v7787_v1 = vsel %vm7786_vm12, %v7785_v61, 0  ;;  %v7772_v29 = vsel %vm7770_vm8, %v7771_v54, %v9023_v31 }
 0x830   :  { %v7934_v19 = vmul.u32 %v15017_v30, %v7918_v57  ;;  %vm7936_vm11 = vc.u32 %v15044_v23, %v15025_v51  ;;  %v7769_v7 = vsel %vm7767_vm9, %v9021_v55, %v7768_v50  ;;  %v7654_v58 = vsel %vm7569_vm4, %v7653_v43, %v14982_v16 }
 0x831   :  { %v7646_v12 = vor.u32 4788187, %v7645_v6  ;;  %v7938_v46 = vsel %vm7936_vm11, %v7937_v49, %v15026_v26  ;;  %v7773_v32 = vsel %vm7766_vm5, %v7769_v7, %v7772_v29  ;;  %v7782_v17 = vand.u32 8388607, %v7775_v5 }
 0x832   :  { %v7939_v22 = vadd.s32 %v7938_v46, %v7934_v19  ;;  %v7789_v38 = vand.u32 31, %v7787_v1  ;;  %v7774_v30 = vsel %vm7763_vm7, nan, %v7773_v32  ;;  %v7649_v45 = vcvt.s32.f32 %v7642_v0 }
 0x833   :  { %v7647_v27 = vand.u32 2147483647, %v7646_v12  ;;  %v1362_v2 = vadd.f32 %v1298_v14, %v14985_v44  ;;  %8147 = vst [vmem:[#allocation8 + $0x1e0] sm:$0xff] %v7774_v30  ;;  %v7656_v16 = vsel %vm15034_vm10, 0, %v7654_v58  ;;  %v7788_v36 = vshrl.u32 %v7787_v1, 5 }
 0x834   :  { %v7940_v63 = vadd.s32 536870912, %v7939_v22  ;;  %v7790_v10 = vsub.s32 32, %v7789_v38  ;;  %v7792_v34 = vshll.u32 %v15264_v28, %v7789_v38  ;;  %v7795_v53 = vshll.u32 %v15266_v39, %v7789_v38 }
 0x835   :  { %v7650_v20 = vmul.f32 %v7649_v45, %v7647_v27  ;;  %v7798_v47 = vshll.u32 %v15267_v41, %v7789_v38  ;;  %v7801_v26 = vshll.u32 %v15268_v35, %v7789_v38  ;;  %v7660_v56 = vadd.s32 3, %v7656_v16 }
 0x836   :  { %v15072_v52 = vshrl.u32 %v7940_v63, 30  ;;  %v7793_v9 = vshrl.u32 %v15266_v39, %v7790_v10  ;;  %v7796_v44 = vshrl.u32 %v15267_v41, %v7790_v10  ;;  %v7799_v60 = vshrl.u32 %v15268_v35, %v7790_v10 }
 0x837   :  { %v7651_v48 = vxor.u32 2147483648, %v7650_v20  ;;  %v7802_v11 = vshrl.u32 %v15269_v13, %v7790_v10  ;;  %v7805_v25 = vshrl.u32 %v15270_v59, %v7790_v10  ;;  %v7804_v3 = vshll.u32 %v15269_v13, %v7789_v38 }
 0x838   :  { %v7942_v42 = vshll.u32 %v15072_v52, 30  ;;  %v7794_v43 = vor.u32 %v7793_v9, %v7792_v34  ;;  %v7797_v8 = vor.u32 %v7796_v44, %v7795_v53  ;;  %v7800_v61 = vor.u32 %v7799_v60, %v7798_v47 }
 0x839   :  { %v7652_v57 = vsel %vm7569_vm4, %v7651_v48, %v7650_v20  ;;  %v7803_v55 = vor.u32 %v7802_v11, %v7801_v26  ;;  %v7783_v18 = vor.u32 8388608, %v7782_v17  ;;  %v7806_v49 = vor.u32 %v7805_v25, %v7804_v3 }
 0x83a   :  { %v7655_v40 = vsel %vm15034_vm10, %v14824_v21, %v7652_v57  ;;  %v15087_v37 = vsub.s32 %v7939_v22, %v7942_v42  ;;  %vm7807_vm14 = vcmp.lt.s32.totalorder %v7788_v36, 1  ;;  %vm7808_vm13 = vcmp.lt.s32.totalorder %v7788_v36, 2 }
 0x83b   :  { %9024 = vcosq.f32 %v7655_v40  ;;  %v15090_v31 = vadd.f32 %v15001_v62, %v1362_v2  ;;  %vm7809_vm15 = vcmp.lt.s32.totalorder %v7788_v36, 3  ;;  %vm7810_vm2 = vcmp.lt.s32.totalorder %v7788_v36, 4 }
 0x83c   :  { %9026 = vsinq.f32 %v7655_v40  ;;  %v7945_v54 = vsub.s32 0, %v15087_v37  ;;  %v7791_v14 = vshrl.u32 %v15264_v28, %v7790_v10  ;;  %v7812_v50 = vsel %vm7810_vm2, %v7800_v61, 2102212464 }
 0x83d   :  { %v7815_v33 = vsel %vm7807_vm14, %v7794_v43, %v7797_v8  ;;  %v7816_v0 = vsel %vm7810_vm2, %v7803_v55, 920167782  ;;  %v7819_v29 = vsel %vm7807_vm14, %v7797_v8, %v7800_v61  ;;  %v7820_v19 = vsel %vm7810_vm2, %v7806_v49, 1326507024 }
 0x83e   :  { %v8437_v6 = vmin.u32 %v7945_v54, %v15087_v37  ;;  %v7817_v1 = vsel %vm7809_vm15, %v7800_v61, %v7816_v0  ;;  %v7661_v62 = vand.u32 3, %v7660_v56  ;;  %v7821_v12 = vsel %vm7809_vm15, %v7803_v55, %v7820_v19 }
 0x83f   :  { %v7818_v7 = vsel %vm7808_vm13, %v7815_v33, %v7817_v1  ;;  %v7823_v58 = vshll.u32 %v7783_v18, 8  ;;  %v7811_v32 = vsel %vm7807_vm14, %v7791_v14, %v7794_v43  ;;  %v7813_v22 = vsel %vm7809_vm15, %v7797_v8, %v7812_v50 }
 0x840   :  { %v7947_v46 = vclz %v8437_v6  ;;  %v7822_v17 = vsel %vm7808_vm13, %v7819_v29, %v7821_v12  ;;  %v7986_v27 = vand.u32 2139095040, %v15090_v31  ;;  %vm7659_vm1 = vweird.f32 %v14824_v21 }
 0x841   :  { %v15103_v38 = vmul.u32.u64.low %v7823_v58, %v7818_v7  ;;  %v15104_v30 = vmul.u32.u64.high %v7823_v58, %v7818_v7, %v15103_v38  ;;  %vm7881_vm3 = vcmp.lt.s32.totalorder %v14908_v4, 0  ;;  %vm7662_vm0 = vcmp.lt.s32.totalorder %v7661_v62, 2 }
 0x842   :  { %v8438_v45 = vadd.s32 4294967294, %v7947_v46  ;;  %v15110_v2 = vmul.u32.u64.low %v7823_v58, %v7822_v17  ;;  %v15111_v16 = vmul.u32.u64.high %v7823_v58, %v7822_v17, %v15110_v2  ;;  %vm7663_vm4 = vcmp.eq.s32.totalorder %v7661_v62, 0 }
 0x843   :  { %v7814_v63 = vsel %vm7808_vm13, %v7811_v32, %v7813_v22  ;;  %v7987_v10 = vshrl.u32 %v7986_v27, 23  ;;  %vm7666_vm5 = vcmp.eq.s32.totalorder %v7661_v62, 2  ;;  %v7935_v20 = vadd.s32 %v15025_v51, %v15044_v23 }
 0x844   :  { %vm8439_vm6 = vcmp.lt.s32.totalorder %v8438_v45, 0  ;;  %v7983_v34 = vand.u32 2147483647, %v15090_v31  ;;  %v7965_v9 = vsub.s32 4, %v15072_v52  ;;  %v7833_v44 = vadd.s32 1, %v15104_v30 }
 0x845   :  { %v9025_v53 = vpop.eup %9024  ;;  %v7950_v47 = vsel %vm8439_vm6, 0, %v8438_v45  ;;  %v8440_v26 = vadd.s32 4294967169, %v7987_v10  ;;  %v7830_v25 = vmul.u32 %v7823_v58, %v7814_v63  ;;  %vm7832_vm7 = vc.u32 %v15111_v16, %v15103_v38 }
 0x846   :  { %v9027_v48 = vpop.eup %9026  ;;  %v7667_v60 = vxor.u32 2147483648, %v9025_v53  ;;  %v7951_v11 = vsub.s32 32, %v7950_v47  ;;  %v7955_v36 = vsub.s32 4294967266, %v7950_v47  ;;  %v7952_v42 = vshll.u32 %v15087_v37, %v7950_v47 }
 0x847   :  { %v7664_v56 = vxor.u32 2147483648, %v9027_v48  ;;  %v7993_v51 = vadd.s32 1, %v8440_v26  ;;  %v7834_v57 = vsel %vm7832_vm7, %v7833_v44, %v15104_v30  ;;  %v7966_v61 = vsel %vm7881_vm3, %v7965_v9, %v15072_v52 }
 0x848   :  { %v7668_v23 = vsel %vm7666_vm5, %v7667_v60, %v9027_v48  ;;  %v7953_v43 = vshrl.u32 %v7935_v20, %v7951_v11  ;;  %v7956_v3 = vadd.s32 127, %v7955_v36  ;;  %v7835_v55 = vadd.s32 %v7834_v57, %v7830_v25 }
 0x849   :  { %v7665_v8 = vsel %vm7663_vm4, %v9025_v53, %v7664_v56  ;;  %vm7994_vm8 = vcmp.gt.s32.totalorder %v7993_v51, 0  ;;  %v7990_v50 = vand.u32 8388607, %v7983_v34  ;;  %vm15135_vm10 = vcmp.le.f32.partialorder %v7879_v15, 0.7853982 }
 0x84a   :  { %v7669_v40 = vsel %vm7662_vm0, %v7665_v8, %v7668_v23  ;;  %v7954_v37 = vor.u32 %v7953_v43, %v7952_v42  ;;  %v7957_v18 = vshll.u32 %v7956_v3, 23  ;;  %v7995_v49 = vsel %vm7994_vm8, %v7993_v51, 0 }
 0x84b   :  { %v7670_v54 = vsel %vm7659_vm1, nan, %v7669_v40  ;;  %v7836_v14 = vadd.s32 536870912, %v7835_v55  ;;  %v7997_v33 = vand.u32 31, %v7995_v49  ;;  %v7968_v21 = vsel %vm15135_vm10, 0, %v7966_v61 }
 0x84c   :  { %8146 = vst [vmem:[#allocation8 + $0x1d8] sm:$0xff] %v7670_v54  ;;  %v7958_v0 = vor.u32 4788187, %v7957_v18  ;;  %v7961_v19 = vcvt.s32.f32 %v7954_v37  ;;  %v7991_v7 = vor.u32 8388608, %v7990_v50  ;;  %v7996_v63 = vshrl.u32 %v7995_v49, 5 }
 0x84d   :  { %v15139_v6 = vshrl.u32 %v7836_v14, 30  ;;  %v7998_v1 = vsub.s32 32, %v7997_v33  ;;  %v8000_v12 = vshll.u32 %v15264_v28, %v7997_v33  ;;  %v8003_v30 = vshll.u32 %v15266_v39, %v7997_v33 }
 0x84e   :  { %v7959_v29 = vand.u32 2147483647, %v7958_v0  ;;  %v8006_v27 = vshll.u32 %v15267_v41, %v7997_v33  ;;  %v8009_v10 = vshll.u32 %v15268_v35, %v7997_v33  ;;  %v8012_v20 = vshll.u32 %v15269_v13, %v7997_v33 }
 0x84f   :  { %v7838_v62 = vshll.u32 %v15139_v6, 30  ;;  %v8001_v58 = vshrl.u32 %v15266_v39, %v7998_v1  ;;  %v8004_v15 = vshrl.u32 %v15267_v41, %v7998_v1  ;;  %v8007_v32 = vshrl.u32 %v15268_v35, %v7998_v1 }
 0x850   :  { %v7962_v46 = vmul.f32 %v7961_v19, %v7959_v29  ;;  %v8010_v22 = vshrl.u32 %v15269_v13, %v7998_v1  ;;  %v8013_v45 = vshrl.u32 %v15270_v59, %v7998_v1  ;;  %v7972_v41 = vadd.s32 3, %v7968_v21 }
 0x851   :  { %v7839_v17 = vsub.s32 %v7835_v55, %v7838_v62  ;;  %v8002_v47 = vor.u32 %v8001_v58, %v8000_v12  ;;  %v8005_v9 = vor.u32 %v8004_v15, %v8003_v30  ;;  %v8008_v44 = vor.u32 %v8007_v32, %v8006_v27 }
 0x852   :  { %v7963_v2 = vxor.u32 2147483648, %v7962_v46  ;;  %v8011_v48 = vor.u32 %v8010_v22, %v8009_v10  ;;  %v8014_v60 = vor.u32 %v8013_v45, %v8012_v20  ;;  %vm8015_vm12 = vcmp.lt.s32.totalorder %v7996_v63, 1 }
 0x853   :  { %v7841_v53 = vsub.s32 0, %v7839_v17  ;;  %vm8018_vm9 = vcmp.lt.s32.totalorder %v7996_v63, 4  ;;  %v8031_v35 = vshll.u32 %v7991_v7, 8  ;;  %v8023_v36 = vsel %vm8015_vm12, %v8002_v47, %v8005_v9 }
 0x854   :  { %v7964_v26 = vsel %vm7881_vm3, %v7963_v2, %v7962_v46  ;;  %v8020_v11 = vsel %vm8018_vm9, %v8008_v44, 2102212464  ;;  %v7999_v25 = vshrl.u32 %v15264_v28, %v7998_v1  ;;  %vm8017_vm11 = vcmp.lt.s32.totalorder %v7996_v63, 3 }
 0x855   :  { %v7967_v39 = vsel %vm15135_vm10, %v14908_v4, %v7964_v26  ;;  %v8433_v59 = vmin.u32 %v7841_v53, %v7839_v17  ;;  %v8024_v56 = vsel %vm8018_vm9, %v8011_v48, 920167782  ;;  %v8027_v42 = vsel %vm8015_vm12, %v8005_v9, %v8008_v44 }
 0x856   :  { %9028 = vcosq.f32 %v7967_v39  ;;  %vm8016_vm14 = vcmp.lt.s32.totalorder %v7996_v63, 2  ;;  %v8025_v23 = vsel %vm8017_vm11, %v8008_v44, %v8024_v56  ;;  %v8028_v43 = vsel %vm8018_vm9, %v8014_v60, 1326507024 }
 0x857   :  { %9030 = vsinq.f32 %v7967_v39  ;;  %v7843_v13 = vclz %v8433_v59  ;;  %v8019_v3 = vsel %vm8015_vm12, %v7999_v25, %v8002_v47  ;;  %v8021_v57 = vsel %vm8017_vm11, %v8005_v9, %v8020_v11 }
 0x858   :  { %v8026_v8 = vsel %vm8016_vm14, %v8023_v36, %v8025_v23  ;;  %v8029_v61 = vsel %vm8017_vm11, %v8011_v48, %v8028_v43  ;;  %v7831_v28 = vadd.s32 %v15103_v38, %v15111_v16  ;;  %v8022_v33 = vsel %vm8016_vm14, %v8019_v3, %v8021_v57 }
 0x859   :  { %v8434_v51 = vadd.s32 4294967294, %v7843_v13  ;;  %v8030_v55 = vsel %vm8016_vm14, %v8027_v42, %v8029_v61  ;;  %v15160_v40 = vmul.u32.u64.low %v8031_v35, %v8026_v8  ;;  %v15161_v37 = vmul.u32.u64.high %v8031_v35, %v8026_v8, %v15160_v40 }
 0x85a   :  { %v15163_v49 = vmul.u32.u64.low %v8031_v35, %v8030_v55  ;;  %v15164_v54 = vmul.u32.u64.high %v8031_v35, %v8030_v55, %v15163_v49  ;;  %v7973_v0 = vand.u32 3, %v7972_v41  ;;  %v8038_v62 = vmul.u32 %v8031_v35, %v8022_v33 }
 0x85b   :  { %vm8435_vm13 = vcmp.lt.s32.totalorder %v8434_v51, 0  ;;  %v8041_v19 = vadd.s32 1, %v15161_v37  ;;  %vm7971_vm0 = vweird.f32 %v14908_v4  ;;  %v7861_v53 = vsub.s32 4, %v15139_v6 }
 0x85c   :  { %v7846_v18 = vsel %vm8435_vm13, 0, %v8434_v51  ;;  %vm8040_vm15 = vc.u32 %v15164_v54, %v15160_v40  ;;  %vm7978_vm2 = vcmp.eq.s32.totalorder %v7973_v0, 2  ;;  %vm7975_vm1 = vcmp.eq.s32.totalorder %v7973_v0, 0 }
 0x85d   :  { %v7847_v14 = vsub.s32 32, %v7846_v18  ;;  %v7851_v50 = vsub.s32 4294967266, %v7846_v18  ;;  %v7848_v52 = vshll.u32 %v7839_v17, %v7846_v18  ;;  %v8042_v15 = vsel %vm8040_vm15, %v8041_v19, %v15161_v37 }
 0x85e   :  { %v8043_v16 = vadd.s32 %v8042_v15, %v8038_v62  ;;  %vm7974_vm3 = vcmp.lt.s32.totalorder %v7973_v0, 2  ;;  %vm7777_vm4 = vcmp.lt.s32.totalorder %v15004_v24, 0  ;;  %vm7776_vm5 = vcmp.le.f32.partialorder %v7775_v5, 0.7853982 }
 0x85f   :  { %v7849_v1 = vshrl.u32 %v7831_v28, %v7847_v14  ;;  %v7852_v29 = vadd.s32 127, %v7851_v50  ;;  %v7862_v4 = vsel %vm7777_vm4, %v7861_v53, %v15139_v6  ;;  %v8039_v25 = vadd.s32 %v15160_v40, %v15164_v54 }
 0x860   :  { %v9029_v21 = vpop.eup %9028  ;;  %v8044_v30 = vadd.s32 536870912, %v8043_v16  ;;  %v7864_v41 = vsel %vm7776_vm5, 0, %v7862_v4  ;;  %vm7867_vm12 = vweird.f32 %v15004_v24  ;;  %vm7985_vm9 = vcmp.lt.s32.totalorder %v15090_v31, 0 }
 0x861   :  { %v9031_v7 = vpop.eup %9030  ;;  %v7979_v12 = vxor.u32 2147483648, %v9029_v21  ;;  %v7850_v58 = vor.u32 %v7849_v1, %v7848_v52  ;;  %v7853_v46 = vshll.u32 %v7852_v29, 23  ;;  %v7868_v35 = vadd.s32 3, %v7864_v41 }
 0x862   :  { %v7976_v38 = vxor.u32 2147483648, %v9031_v7  ;;  %v8045_v10 = vshrl.u32 %v8044_v30, 30  ;;  %vm7984_vm11 = vcmp.le.f32.partialorder %v7983_v34, 0.7853982 }
 0x863   :  { %v7980_v32 = vsel %vm7978_vm2, %v7979_v12, %v9031_v7  ;;  %v7854_v22 = vor.u32 4788187, %v7853_v46  ;;  %v7857_v2 = vcvt.s32.f32 %v7850_v58  ;;  %v7869_v11 = vand.u32 3, %v7868_v35 }
 0x864   :  { %v7977_v17 = vsel %vm7975_vm1, %v9029_v21, %v7976_v38  ;;  %v8046_v47 = vshll.u32 %v8045_v10, 30  ;;  %v8069_v50 = vsub.s32 4, %v8045_v10  ;;  %vm8075_vm2 = vweird.f32 %v15090_v31 }
 0x865   :  { %v7981_v27 = vsel %vm7974_vm3, %v7977_v17, %v7980_v32  ;;  %v7855_v45 = vand.u32 2147483647, %v7854_v22  ;;  %vm7874_vm7 = vcmp.eq.s32.totalorder %v7869_v11, 2  ;;  %vm7871_vm8 = vcmp.eq.s32.totalorder %v7869_v11, 0 }
 0x866   :  { %v7982_v63 = vsel %vm7971_vm0, nan, %v7981_v27  ;;  %v8047_v44 = vsub.s32 %v8043_v16, %v8046_v47  ;;  %vm7870_vm10 = vcmp.lt.s32.totalorder %v7869_v11, 2  ;;  %v8070_v52 = vsel %vm7985_vm9, %v8069_v50, %v8045_v10 }
 0x867   :  { %8149 = vst [vmem:[#allocation8 + $0x1f0] sm:$0xff] %v7982_v63  ;;  %v7858_v20 = vmul.f32 %v7857_v2, %v7855_v45 }
 0x868   :  { %v8049_v39 = vsub.s32 0, %v8047_v44 }
 0x869   :  { %v7859_v9 = vxor.u32 2147483648, %v7858_v20 }
 0x86a   :  { %v8441_v59 = vmin.u32 %v8049_v39, %v8047_v44 }
 0x86b   :  { %v7860_v26 = vsel %vm7777_vm4, %v7859_v9, %v7858_v20 }
 0x86c   :  { %v7863_v48 = vsel %vm7776_vm5, %v15004_v24, %v7860_v26  ;;  %v8051_v60 = vclz %v8441_v59  ;;  %v8072_v24 = vsel %vm7984_vm11, 0, %v8070_v52 }
 0x86d   :  { %9032 = vcosq.f32 %v7863_v48  ;;  %v8076_v29 = vadd.s32 3, %v8072_v24 }
 0x86e   :  { %9034 = vsinq.f32 %v7863_v48  ;;  %v8442_v13 = vadd.s32 4294967294, %v8051_v60 }
 0x86f   :  { %v8077_v19 = vand.u32 3, %v8076_v29 }
 0x870   :  { %vm8443_vm6 = vcmp.lt.s32.totalorder %v8442_v13, 0 }
 0x871   :  { %v8054_v36 = vsel %vm8443_vm6, 0, %v8442_v13  ;;  %vm8082_vm14 = vcmp.eq.s32.totalorder %v8077_v19, 2  ;;  %vm8079_vm13 = vcmp.eq.s32.totalorder %v8077_v19, 0  ;;  %vm8078_vm15 = vcmp.lt.s32.totalorder %v8077_v19, 2 }
 0x872   :  { %v8055_v56 = vsub.s32 32, %v8054_v36  ;;  %v8059_v5 = vsub.s32 4294967266, %v8054_v36  ;;  %v8056_v23 = vshll.u32 %v8047_v44, %v8054_v36 }
 0x874   :  { %v8057_v43 = vshrl.u32 %v8039_v25, %v8055_v56  ;;  %v8060_v3 = vadd.s32 127, %v8059_v5 }
 0x876   :  { %v8058_v61 = vor.u32 %v8057_v43, %v8056_v23  ;;  %v8061_v55 = vshll.u32 %v8060_v3, 23 }
 0x877   :  { %v9033_v42 = vpop.eup %9032 }
 0x878   :  { %v9035_v51 = vpop.eup %9034  ;;  %v7875_v6 = vxor.u32 2147483648, %v9033_v42  ;;  %v8062_v40 = vor.u32 4788187, %v8061_v55  ;;  %v8065_v28 = vcvt.s32.f32 %v8058_v61 }
 0x879   :  { %v7872_v57 = vxor.u32 2147483648, %v9035_v51 }
 0x87a   :  { %v7876_v8 = vsel %vm7874_vm7, %v7875_v6, %v9035_v51  ;;  %v8063_v54 = vand.u32 2147483647, %v8062_v40 }
 0x87b   :  { %v7873_v37 = vsel %vm7871_vm8, %v9033_v42, %v7872_v57 }
 0x87c   :  { %v7877_v18 = vsel %vm7870_vm10, %v7873_v37, %v7876_v8  ;;  %v8066_v14 = vmul.f32 %v8065_v28, %v8063_v54 }
 0x87d   :  { %v7878_v49 = vsel %vm7867_vm12, nan, %v7877_v18 }
 0x87e   :  { %8148 = vst [vmem:[#allocation8 + $0x1e8] sm:$0xff] %v7878_v49  ;;  %v8067_v33 = vxor.u32 2147483648, %v8066_v14 }
 0x880   :  { %v8068_v0 = vsel %vm7985_vm9, %v8067_v33, %v8066_v14 }
 0x881   :  { %v8071_v1 = vsel %vm7984_vm11, %v15090_v31, %v8068_v0 }
 0x882   :  { %9036 = vcosq.f32 %v8071_v1 }
 0x883   :  { %9038 = vsinq.f32 %v8071_v1 }
 0x88c   :  { %v9037_v21 = vpop.eup %9036 }
 0x88d   :  { %v9039_v62 = vpop.eup %9038  ;;  %v8083_v7 = vxor.u32 2147483648, %v9037_v21 }
 0x88e   :  { %v8080_v12 = vxor.u32 2147483648, %v9039_v62 }
 0x88f   :  { %v8084_v58 = vsel %vm8082_vm14, %v8083_v7, %v9039_v62 }
 0x890   :  { %v8081_v34 = vsel %vm8079_vm13, %v9037_v21, %v8080_v12 }
 0x891   :  { %v8085_v46 = vsel %vm8078_vm15, %v8081_v34, %v8084_v58 }
 0x892   :  { %v8086_v15 = vsel %vm8075_vm2, nan, %v8085_v46 }
 0x893   :  { %8150 = vst [vmem:[#allocation8 + $0x1f8] sm:$0xff] %v8086_v15 }
 0x894   :  { %9150 = shalt.err (!%p9147_p0)
}
 0x895   :  { %s9151_s22 = scalar_lea.hbm %s15204_s4, 8192 }
 0x896   :  { %p9152_p1 = scmp.ne.s32.totalorder %s15204_s4, %s9151_s22  ;;  %p9155_p2 = scmp.lt.u32.totalorder %s9151_s22, %s15204_s4 }
 0x898   :  { %p9157_p3 = pnand %p9155_p2, %p9152_p1 }
 0x89a   :  { %9160 = shalt.err (!%p9157_p3)
}
 0x89b   :  { %8162 = dma.vmem_to_hbm [thread:$0]  %s8157_s17, 8192, %s15204_s4, [#allocation4], %s9169_s27, %s9169_s27, %s9170_s28  }
 0x89c   :  { %9165 = dma.done.wait [#allocation4], 8192  }
 0x89d   :  { %9166 = vsyncadd [#allocation4], 4294959104 }
 0x89e   :  { %8166 = vsyncpa [#allocation3], 1 }
 0x89f   :  { %8167 = vsyncpa [#allocation6], 1 }
 0x8a0   :  { %8168 = vsyncpa [#allocation4], 1 }

</bundles_post_ra>
